<compile_context>
chip_gen: v7x
topology: tpu7x:2x2x1
jax: 0.10.0
libtpu: 0.0.40
codegen_flags: <defaults>
</compile_context>

<pallas_src>
import functools

import jax
import jax.numpy as jnp
from jax import lax
from jax.experimental import pallas as pl
from jax.experimental.pallas import tpu as pltpu

LANE = 128
SUB = 8

# ---------------- model config (scaled-down DenseNet) ----------------
GROWTH = 16
BN_SIZE = 4
INIT_FEATURES = 32
BLOCK_CONFIG = (2, 2, 2)      # three dense blocks, two transitions -> final 7x7
NUM_CLASSES = 10
BN_EPS = 1e-5


# ---------------- small helpers ----------------
def _ceil_to(v, m):
    return ((v + m - 1) // m) * m


def _row_tile(m, cap):
    """Pick a row tile <= cap that is a multiple of 8 and divides the (possibly
    padded) row count.  Returns (tile, padded_rows)."""
    if m <= cap:
        return m, m
    for t in range(cap, SUB - 1, -SUB):
        if m % t == 0:
            return t, m
    # Fallback (not hit for the shapes in this script): pad rows to a multiple.
    return cap, _ceil_to(m, cap)


# ---------------- Pallas kernels ----------------
def _fused_matmul_kernel(*refs, has_affine, has_bias, relu):
    """out = [relu](x * scale + shift) @ w [+ bias], f32 accumulation on MXU."""
    i = 0
    x = refs[i][...]
    i += 1
    if has_affine:
        x = x * refs[i][...] + refs[i + 1][...]
        i += 2
        if relu:
            x = jnp.maximum(x, 0.0)
    acc = jnp.dot(x, refs[i][...], preferred_element_type=jnp.float32)
    i += 1
    if has_bias:
        acc = acc + refs[i][...]
        i += 1
    o_ref = refs[i]
    o_ref[...] = acc.astype(o_ref.dtype)


def pallas_matmul(x, w, *, scale=None, shift=None, bias=None, relu=False,
                  row_cap=512):
    """Tiled fused (affine+ReLU+)matmul(+bias).  x:(M,K) f32, w:(K,N) f32."""
    m, k = x.shape
    kw_, n = w.shape
    assert k == kw_
    pk, pn = _ceil_to(k, LANE), _ceil_to(n, LANE)
    tile, pm = _row_tile(m, row_cap)
    xp = jnp.pad(x, ((0, pm - m), (0, pk - k)))
    wp = jnp.pad(w, ((0, pk - k), (0, pn - n)))

    has_affine = scale is not None
    has_bias = bias is not None

    args = [xp]
    in_specs = [pl.BlockSpec((tile, pk), lambda i: (i, 0))]
    if has_affine:
        args += [jnp.pad(scale.reshape(1, k), ((0, 0), (0, pk - k))),
                 jnp.pad(shift.reshape(1, k), ((0, 0), (0, pk - k)))]
        in_specs += [pl.BlockSpec((1, pk), lambda i: (0, 0)),
                     pl.BlockSpec((1, pk), lambda i: (0, 0))]
    args.append(wp)
    in_specs.append(pl.BlockSpec((pk, pn), lambda i: (0, 0)))
    if has_bias:
        args.append(jnp.pad(bias.reshape(1, n), ((0, 0), (0, pn - n))))
        in_specs.append(pl.BlockSpec((1, pn), lambda i: (0, 0)))

    out = pl.pallas_call(
        functools.partial(_fused_matmul_kernel, has_affine=has_affine,
                          has_bias=has_bias, relu=relu),
        out_shape=jax.ShapeDtypeStruct((pm, pn), jnp.float32),
        grid_spec=pltpu.PrefetchScalarGridSpec(
            num_scalar_prefetch=0,
            grid=(pm // tile,),
            in_specs=in_specs,
            out_specs=pl.BlockSpec((tile, pn), lambda i: (i, 0)),
        ),
        compiler_params=pltpu.CompilerParams(
            dimension_semantics=("parallel",)),
    )(*args)
    return out[:m, :n]


def _affine_relu_kernel(x_ref, s_ref, t_ref, o_ref):
    o_ref[...] = jnp.maximum(x_ref[...] * s_ref[...] + t_ref[...], 0.0)


def pallas_affine_relu(x, scale, shift, row_cap=1024):
    """Per-channel BN (folded scale/shift) + ReLU, tiled over rows."""
    m, c = x.shape
    pc = _ceil_to(c, LANE)
    tile, pm = _row_tile(m, row_cap)
    xp = jnp.pad(x, ((0, pm - m), (0, pc - c)))
    sp = jnp.pad(scale.reshape(1, c), ((0, 0), (0, pc - c)))
    tp = jnp.pad(shift.reshape(1, c), ((0, 0), (0, pc - c)))
    out = pl.pallas_call(
        _affine_relu_kernel,
        out_shape=jax.ShapeDtypeStruct((pm, pc), jnp.float32),
        grid_spec=pltpu.PrefetchScalarGridSpec(
            num_scalar_prefetch=0,
            grid=(pm // tile,),
            in_specs=[pl.BlockSpec((tile, pc), lambda i: (i, 0)),
                      pl.BlockSpec((1, pc), lambda i: (0, 0)),
                      pl.BlockSpec((1, pc), lambda i: (0, 0))],
            out_specs=pl.BlockSpec((tile, pc), lambda i: (i, 0)),
        ),
        compiler_params=pltpu.CompilerParams(
            dimension_semantics=("parallel",)),
    )(xp, sp, tp)
    return out[:m, :c]


# ---------------- JAX glue (pure layout / window ops, not compute) ----------------
# TODO(synk): maxpool / 2x2 avgpool / im2col / channel concat are thin XLA glue.
def _im2col(x, kh, kw, stride, pad):
    n, h, w, c = x.shape
    xp = jnp.pad(x, ((0, 0), (pad, pad), (pad, pad), (0, 0)))
    ho = (h + 2 * pad - kh) // stride + 1
    wo = (w + 2 * pad - kw) // stride + 1
    taps = []
    for i in range(kh):
        for j in range(kw):
            taps.append(lax.slice(
                xp, (0, i, j, 0),
                (n, i + (ho - 1) * stride + 1, j + (wo - 1) * stride + 1, c),
                (1, stride, stride, 1)))
    patches = jnp.stack(taps, axis=3)                 # (n, ho, wo, kh*kw, c)
    return patches.reshape(n * ho * wo, kh * kw * c), (n, ho, wo)


def _maxpool_3x3_s2_p1(x):
    return lax.reduce_window(x, -jnp.inf, lax.max, (1, 3, 3, 1), (1, 2, 2, 1),
                             ((0, 0), (1, 1), (1, 1), (0, 0)))


def _avgpool_2x2(x):
    n, h, w, c = x.shape
    return x.reshape(n, h // 2, 2, w // 2, 2, c).mean(axis=(2, 4))


# ---------------- parameters (random, BN folded to scale/shift) ----------------
def _bn_params(key, c):
    k1, k2, k3, k4 = jax.random.split(key, 4)
    gamma = 1.0 + 0.1 * jax.random.normal(k1, (c,), jnp.float32)
    beta = 0.1 * jax.random.normal(k2, (c,), jnp.float32)
    mean = 0.1 * jax.random.normal(k3, (c,), jnp.float32)
    var = jax.random.uniform(k4, (c,), jnp.float32, 0.5, 1.5)
    scale = gamma * lax.rsqrt(var + BN_EPS)
    shift = beta - mean * scale
    return scale, shift


def _conv_w(key, kh, kw, cin, cout):
    fan = kh * kw * cin
    return jax.random.normal(key, (kh, kw, cin, cout), jnp.float32) * (2.0 / fan) ** 0.5


def make_params(key):
    p = {}
    key, k = jax.random.split(key)
    p['conv0_w'] = _conv_w(k, 7, 7, 3, INIT_FEATURES)
    key, k = jax.random.split(key)
    p['norm0'] = _bn_params(k, INIT_FEATURES)

    c = INIT_FEATURES
    blocks, transitions = [], []
    for bi, n_layers in enumerate(BLOCK_CONFIG):
        layers = []
        for _ in range(n_layers):
            key, k1, k2, k3, k4 = jax.random.split(key, 5)
            layers.append({
                'norm1': _bn_params(k1, c),
                'conv1_w': _conv_w(k2, 1, 1, c, BN_SIZE * GROWTH)[0, 0],   # (c, 4g)
                'norm2': _bn_params(k3, BN_SIZE * GROWTH),
                'conv2_w': _conv_w(k4, 3, 3, BN_SIZE * GROWTH, GROWTH),    # HWIO
            })
            c += GROWTH
        blocks.append(layers)
        if bi < len(BLOCK_CONFIG) - 1:
            key, k1, k2 = jax.random.split(key, 3)
            transitions.append({
                'norm': _bn_params(k1, c),
                'conv_w': _conv_w(k2, 1, 1, c, c // 2)[0, 0],              # (c, c/2)
            })
            c //= 2
    p['blocks'], p['transitions'] = blocks, transitions

    key, k1, k2, k3 = jax.random.split(key, 4)
    p['norm5'] = _bn_params(k1, c)
    p['cls_w'] = jax.random.normal(k2, (c, NUM_CLASSES), jnp.float32) * (1.0 / c) ** 0.5
    p['cls_b'] = 0.01 * jax.random.normal(k3, (NUM_CLASSES,), jnp.float32)
    return p


# ---------------- forward: Pallas path ----------------
def densenet_forward_pallas(params, x_nchw):
    x = jnp.transpose(x_nchw, (0, 2, 3, 1))                       # NHWC (lane = C)

    # --- stem: conv0 7x7/s2 -> norm0 + relu0 -> maxpool 3x3/s2/p1
    patches, (n, ho, wo) = _im2col(x, 7, 7, 2, 3)
    y = pallas_matmul(patches, params['conv0_w'].reshape(-1, INIT_FEATURES))
    y = pallas_affine_relu(y, *params['norm0'])
    feat = _maxpool_3x3_s2_p1(y.reshape(n, ho, wo, INIT_FEATURES))

    # --- dense blocks (+ transitions)
    for bi, layers in enumerate(params['blocks']):
        for layer in layers:
            n_, h_, w_, c_ = feat.shape
            rows = feat.reshape(n_ * h_ * w_, c_)
            # BN1 + ReLU1 + 1x1 conv, fused into one MXU kernel
            s1, t1 = layer['norm1']
            bott = pallas_matmul(rows, layer['conv1_w'], scale=s1, shift=t1, relu=True)
            # BN2 + ReLU2 (must precede zero-padded im2col), then 3x3 conv matmul
            bott = pallas_affine_relu(bott, *layer['norm2'])
            bott = bott.reshape(n_, h_, w_, BN_SIZE * GROWTH)
            patches, _ = _im2col(bott, 3, 3, 1, 1)
            new = pallas_matmul(patches, layer['conv2_w'].reshape(-1, GROWTH))
            feat = jnp.concatenate([feat, new.reshape(n_, h_, w_, GROWTH)], axis=-1)
        if bi < len(params['transitions']):
            tr = params['transitions'][bi]
            n_, h_, w_, c_ = feat.shape
            s, t = tr['norm']
            y = pallas_matmul(feat.reshape(n_ * h_ * w_, c_), tr['conv_w'],
                              scale=s, shift=t, relu=True)
            feat = _avgpool_2x2(y.reshape(n_, h_, w_, c_ // 2))

    # --- head (ModifiedDenseNet.forward): norm5 -> relu -> avg_pool2d(7) -> view -> fc
    n_, h_, w_, c_ = feat.shape
    assert h_ == 7 and w_ == 7                                    # avg_pool2d(kernel_size=7)
    rows = pallas_affine_relu(feat.reshape(n_ * h_ * w_, c_), *params['norm5'])
    pooled = rows.reshape(n_, h_ * w_, c_).mean(axis=1)           # == 7x7 avg pool + view
    return pallas_matmul(pooled, params['cls_w'], bias=params['cls_b'])


# ---------------- forward: pure-JAX reference ----------------
def densenet_forward_ref(params, x_nchw):
    hp = lax.Precision.HIGHEST
    x = jnp.transpose(x_nchw, (0, 2, 3, 1))

    def conv(x, w, stride, pad):
        return lax.conv_general_dilated(
            x, w, (stride, stride), ((pad, pad), (pad, pad)),
            dimension_numbers=('NHWC', 'HWIO', 'NHWC'), precision=hp)

    def bnrelu(x, sc, sh):
        return jnp.maximum(x * sc + sh, 0.0)

    y = bnrelu(conv(x, params['conv0_w'], 2, 3), *params['norm0'])
    feat = _maxpool_3x3_s2_p1(y)
    for bi, layers in enumerate(params['blocks']):
        for layer in layers:
            b = bnrelu(feat, *layer['norm1'])
            b = jnp.einsum('nhwc,cd->nhwd', b, layer['conv1_w'], precision=hp)
            b = bnrelu(b, *layer['norm2'])
            new = conv(b, layer['conv2_w'], 1, 1)
            feat = jnp.concatenate([feat, new], axis=-1)
        if bi < len(params['transitions']):
            tr = params['transitions'][bi]
            y = bnrelu(feat, *tr['norm'])
            y = jnp.einsum('nhwc,cd->nhwd', y, tr['conv_w'], precision=hp)
            feat = _avgpool_2x2(y)
    out = bnrelu(feat, *params['norm5'])
    pooled = out.mean(axis=(1, 2))
    return jnp.dot(pooled, params['cls_w'], precision=hp) + params['cls_b']


# ---------------- main ----------------
if __name__ == "__main__":
    key = jax.random.PRNGKey(0)
    kp, kx = jax.random.split(key)
    params = make_params(kp)
    x = jax.random.normal(kx, (2, 3, 112, 112), jnp.float32)

    logits = jax.block_until_ready(jax.jit(densenet_forward_pallas)(params, x))
    ref = jax.block_until_ready(jax.jit(densenet_forward_ref)(params, x))

    assert logits.shape == (2, NUM_CLASSES), logits.shape
    assert bool(jnp.all(jnp.isfinite(logits)))
    err = float(jnp.max(jnp.abs(logits - ref)))
    scale = float(jnp.max(jnp.abs(ref))) + 1e-6
    assert err / scale < 2e-2, (err, scale)

    print("KERNEL_OK")
</pallas_src>

<mosaic_0001>
module attributes {stable_mosaic.version = 11 : i64} {
  func.func @_fused_matmul_kernel(%arg0: i32, %arg1: memref<448x256xf32, #tpu.memory_space<vmem>>, %arg2: memref<256x128xf32, #tpu.memory_space<vmem>>, %arg3: memref<448x128xf32, #tpu.memory_space<vmem>>) attributes {dimension_semantics = [#tpu.dimension_semantics<parallel>], iteration_bounds = array<i64: 14>, scalar_prefetch = 0 : i64, scratch_operands = 0 : i64, tpu.core_type = #tpu.core_type<tc>, window_params = [{transform_indices = @transform_0, window_bounds = array<i64: 448, 256>}, {pipeline_mode = #tpu.pipeline_mode<synchronous>, transform_indices = @transform_1, window_bounds = array<i64: 256, 128>}, {transform_indices = @transform_2, window_bounds = array<i64: 448, 128>}]} {
    %c0 = arith.constant 0 : index
    %c0_0 = arith.constant 0 : index
    %0 = vector.load %arg1[%c0, %c0_0] : memref<448x256xf32, #tpu.memory_space<vmem>>, vector<448x256xf32>
    %c0_1 = arith.constant 0 : index
    %c0_2 = arith.constant 0 : index
    %1 = vector.load %arg2[%c0_1, %c0_2] : memref<256x128xf32, #tpu.memory_space<vmem>>, vector<256x128xf32>
    %cst = arith.constant dense<0.000000e+00> : vector<448x128xf32>
    %2 = tpu.matmul %0, %1, %cst {dimension_numbers = #tpu.dot_dimension_numbers<[1], [0], [0], [1], [0, 0, 1, 1], [], []>} : vector<448x256xf32>, vector<256x128xf32>, vector<448x128xf32> -> vector<448x128xf32>
    %c0_3 = arith.constant 0 : index
    %c0_4 = arith.constant 0 : index
    %3 = vector.load %arg3[%c0_3, %c0_4] : memref<448x128xf32, #tpu.memory_space<vmem>>, vector<448x128xf32>
    tpu.vector_store %arg3[%c0_3, %c0_4], %2 {strides = array<i32>} : memref<448x128xf32, #tpu.memory_space<vmem>>, vector<448x128xf32>,
    return
  }
  func.func @transform_0(%arg0: i32) -> (i32, i32) {
    %c0_i32 = arith.constant 0 : i32
    %c0_i32_0 = arith.constant 0 : i32
    return %arg0, %c0_i32 : i32, i32
  }
  func.func @transform_1(%arg0: i32) -> (i32, i32) {
    %c0_i32 = arith.constant 0 : i32
    %c0_i32_0 = arith.constant 0 : i32
    %c0_i32_1 = arith.constant 0 : i32
    return %c0_i32, %c0_i32_0 : i32, i32
  }
  func.func @transform_2(%arg0: i32) -> (i32, i32) {
    %c0_i32 = arith.constant 0 : i32
    %c0_i32_0 = arith.constant 0 : i32
    return %arg0, %c0_i32 : i32, i32
  }
}

module attributes {stable_mosaic.version = 11 : i64} {
  func.func @_affine_relu_kernel(%arg0: i32, %arg1: memref<896x128xf32, #tpu.memory_space<vmem>>, %arg2: memref<1x128xf32, #tpu.memory_space<vmem>>, %arg3: memref<1x128xf32, #tpu.memory_space<vmem>>, %arg4: memref<896x128xf32, #tpu.memory_space<vmem>>) attributes {dimension_semantics = [#tpu.dimension_semantics<parallel>], iteration_bounds = array<i64: 7>, scalar_prefetch = 0 : i64, scratch_operands = 0 : i64, tpu.core_type = #tpu.core_type<tc>, window_params = [{transform_indices = @transform_0, window_bounds = array<i64: 896, 128>}, {pipeline_mode = #tpu.pipeline_mode<synchronous>, transform_indices = @transform_1, window_bounds = array<i64: 1, 128>}, {pipeline_mode = #tpu.pipeline_mode<synchronous>, transform_indices = @transform_2, window_bounds = array<i64: 1, 128>}, {transform_indices = @transform_3, window_bounds = array<i64: 896, 128>}]} {
    %c0 = arith.constant 0 : index
    %c0_0 = arith.constant 0 : index
    %0 = vector.load %arg1[%c0, %c0_0] : memref<896x128xf32, #tpu.memory_space<vmem>>, vector<896x128xf32>
    %c0_1 = arith.constant 0 : index
    %c0_2 = arith.constant 0 : index
    %1 = vector.load %arg2[%c0_1, %c0_2] : memref<1x128xf32, #tpu.memory_space<vmem>>, vector<1x128xf32>
    %2 = vector.broadcast %1 : vector<1x128xf32> to vector<896x128xf32>
    %3 = arith.mulf %0, %2 : vector<896x128xf32>
    %c0_3 = arith.constant 0 : index
    %c0_4 = arith.constant 0 : index
    %4 = vector.load %arg3[%c0_3, %c0_4] : memref<1x128xf32, #tpu.memory_space<vmem>>, vector<1x128xf32>
    %5 = vector.broadcast %4 : vector<1x128xf32> to vector<896x128xf32>
    %6 = arith.addf %3, %5 : vector<896x128xf32>
    %cst = arith.constant 0.000000e+00 : f32
    %7 = vector.broadcast %cst : f32 to vector<896x128xf32>
    %8 = arith.maximumf %6, %7 : vector<896x128xf32>
    %c0_5 = arith.constant 0 : index
    %c0_6 = arith.constant 0 : index
    %9 = vector.load %arg4[%c0_5, %c0_6] : memref<896x128xf32, #tpu.memory_space<vmem>>, vector<896x128xf32>
    tpu.vector_store %arg4[%c0_5, %c0_6], %8 {strides = array<i32>} : memref<896x128xf32, #tpu.memory_space<vmem>>, vector<896x128xf32>,
    return
  }
  func.func @transform_0(%arg0: i32) -> (i32, i32) {
    %c0_i32 = arith.constant 0 : i32
    %c0_i32_0 = arith.constant 0 : i32
    return %arg0, %c0_i32 : i32, i32
  }
  func.func @transform_1(%arg0: i32) -> (i32, i32) {
    %c0_i32 = arith.constant 0 : i32
    %c0_i32_0 = arith.constant 0 : i32
    %c0_i32_1 = arith.constant 0 : i32
    return %c0_i32, %c0_i32_0 : i32, i32
  }
  func.func @transform_2(%arg0: i32) -> (i32, i32) {
    %c0_i32 = arith.constant 0 : i32
    %c0_i32_0 = arith.constant 0 : i32
    %c0_i32_1 = arith.constant 0 : i32
    return %c0_i32, %c0_i32_0 : i32, i32
  }
  func.func @transform_3(%arg0: i32) -> (i32, i32) {
    %c0_i32 = arith.constant 0 : i32
    %c0_i32_0 = arith.constant 0 : i32
    return %arg0, %c0_i32 : i32, i32
  }
}

module attributes {stable_mosaic.version = 11 : i64} {
  func.func @_fused_matmul_kernel(%arg0: i32, %arg1: memref<392x128xf32, #tpu.memory_space<vmem>>, %arg2: memref<1x128xf32, #tpu.memory_space<vmem>>, %arg3: memref<1x128xf32, #tpu.memory_space<vmem>>, %arg4: memref<128x128xf32, #tpu.memory_space<vmem>>, %arg5: memref<392x128xf32, #tpu.memory_space<vmem>>) attributes {dimension_semantics = [#tpu.dimension_semantics<parallel>], iteration_bounds = array<i64: 4>, scalar_prefetch = 0 : i64, scratch_operands = 0 : i64, tpu.core_type = #tpu.core_type<tc>, window_params = [{transform_indices = @transform_0, window_bounds = array<i64: 392, 128>}, {pipeline_mode = #tpu.pipeline_mode<synchronous>, transform_indices = @transform_1, window_bounds = array<i64: 1, 128>}, {pipeline_mode = #tpu.pipeline_mode<synchronous>, transform_indices = @transform_2, window_bounds = array<i64: 1, 128>}, {pipeline_mode = #tpu.pipeline_mode<synchronous>, transform_indices = @transform_3, window_bounds = array<i64: 128, 128>}, {transform_indices = @transform_4, window_bounds = array<i64: 392, 128>}]} {
    %c0 = arith.constant 0 : index
    %c0_0 = arith.constant 0 : index
    %0 = vector.load %arg1[%c0, %c0_0] : memref<392x128xf32, #tpu.memory_space<vmem>>, vector<392x128xf32>
    %c0_1 = arith.constant 0 : index
    %c0_2 = arith.constant 0 : index
    %1 = vector.load %arg2[%c0_1, %c0_2] : memref<1x128xf32, #tpu.memory_space<vmem>>, vector<1x128xf32>
    %2 = vector.broadcast %1 : vector<1x128xf32> to vector<392x128xf32>
    %3 = arith.mulf %0, %2 : vector<392x128xf32>
    %c0_3 = arith.constant 0 : index
    %c0_4 = arith.constant 0 : index
    %4 = vector.load %arg3[%c0_3, %c0_4] : memref<1x128xf32, #tpu.memory_space<vmem>>, vector<1x128xf32>
    %5 = vector.broadcast %4 : vector<1x128xf32> to vector<392x128xf32>
    %6 = arith.addf %3, %5 : vector<392x128xf32>
    %cst = arith.constant 0.000000e+00 : f32
    %7 = vector.broadcast %cst : f32 to vector<392x128xf32>
    %8 = arith.maximumf %6, %7 : vector<392x128xf32>
    %c0_5 = arith.constant 0 : index
    %c0_6 = arith.constant 0 : index
    %9 = vector.load %arg4[%c0_5, %c0_6] : memref<128x128xf32, #tpu.memory_space<vmem>>, vector<128x128xf32>
    %cst_7 = arith.constant dense<0.000000e+00> : vector<392x128xf32>
    %10 = tpu.matmul %8, %9, %cst_7 {dimension_numbers = #tpu.dot_dimension_numbers<[1], [0], [0], [1], [0, 0, 1, 1], [], []>} : vector<392x128xf32>, vector<128x128xf32>, vector<392x128xf32> -> vector<392x128xf32>
    %c0_8 = arith.constant 0 : index
    %c0_9 = arith.constant 0 : index
    %11 = vector.load %arg5[%c0_8, %c0_9] : memref<392x128xf32, #tpu.memory_space<vmem>>, vector<392x128xf32>
    tpu.vector_store %arg5[%c0_8, %c0_9], %10 {strides = array<i32>} : memref<392x128xf32, #tpu.memory_space<vmem>>, vector<392x128xf32>,
    return
  }
  func.func @transform_0(%arg0: i32) -> (i32, i32) {
    %c0_i32 = arith.constant 0 : i32
    %c0_i32_0 = arith.constant 0 : i32
    return %arg0, %c0_i32 : i32, i32
  }
  func.func @transform_1(%arg0: i32) -> (i32, i32) {
    %c0_i32 = arith.constant 0 : i32
    %c0_i32_0 = arith.constant 0 : i32
    %c0_i32_1 = arith.constant 0 : i32
    return %c0_i32, %c0_i32_0 : i32, i32
  }
  func.func @transform_2(%arg0: i32) -> (i32, i32) {
    %c0_i32 = arith.constant 0 : i32
    %c0_i32_0 = arith.constant 0 : i32
    %c0_i32_1 = arith.constant 0 : i32
    return %c0_i32, %c0_i32_0 : i32, i32
  }
  func.func @transform_3(%arg0: i32) -> (i32, i32) {
    %c0_i32 = arith.constant 0 : i32
    %c0_i32_0 = arith.constant 0 : i32
    %c0_i32_1 = arith.constant 0 : i32
    return %c0_i32, %c0_i32_0 : i32, i32
  }
  func.func @transform_4(%arg0: i32) -> (i32, i32) {
    %c0_i32 = arith.constant 0 : i32
    %c0_i32_0 = arith.constant 0 : i32
    return %arg0, %c0_i32 : i32, i32
  }
}

module attributes {stable_mosaic.version = 11 : i64} {
  func.func @_affine_relu_kernel(%arg0: i32, %arg1: memref<784x128xf32, #tpu.memory_space<vmem>>, %arg2: memref<1x128xf32, #tpu.memory_space<vmem>>, %arg3: memref<1x128xf32, #tpu.memory_space<vmem>>, %arg4: memref<784x128xf32, #tpu.memory_space<vmem>>) attributes {dimension_semantics = [#tpu.dimension_semantics<parallel>], iteration_bounds = array<i64: 2>, scalar_prefetch = 0 : i64, scratch_operands = 0 : i64, tpu.core_type = #tpu.core_type<tc>, window_params = [{transform_indices = @transform_0, window_bounds = array<i64: 784, 128>}, {pipeline_mode = #tpu.pipeline_mode<synchronous>, transform_indices = @transform_1, window_bounds = array<i64: 1, 128>}, {pipeline_mode = #tpu.pipeline_mode<synchronous>, transform_indices = @transform_2, window_bounds = array<i64: 1, 128>}, {transform_indices = @transform_3, window_bounds = array<i64: 784, 128>}]} {
    %c0 = arith.constant 0 : index
    %c0_0 = arith.constant 0 : index
    %0 = vector.load %arg1[%c0, %c0_0] : memref<784x128xf32, #tpu.memory_space<vmem>>, vector<784x128xf32>
    %c0_1 = arith.constant 0 : index
    %c0_2 = arith.constant 0 : index
    %1 = vector.load %arg2[%c0_1, %c0_2] : memref<1x128xf32, #tpu.memory_space<vmem>>, vector<1x128xf32>
    %2 = vector.broadcast %1 : vector<1x128xf32> to vector<784x128xf32>
    %3 = arith.mulf %0, %2 : vector<784x128xf32>
    %c0_3 = arith.constant 0 : index
    %c0_4 = arith.constant 0 : index
    %4 = vector.load %arg3[%c0_3, %c0_4] : memref<1x128xf32, #tpu.memory_space<vmem>>, vector<1x128xf32>
    %5 = vector.broadcast %4 : vector<1x128xf32> to vector<784x128xf32>
    %6 = arith.addf %3, %5 : vector<784x128xf32>
    %cst = arith.constant 0.000000e+00 : f32
    %7 = vector.broadcast %cst : f32 to vector<784x128xf32>
    %8 = arith.maximumf %6, %7 : vector<784x128xf32>
    %c0_5 = arith.constant 0 : index
    %c0_6 = arith.constant 0 : index
    %9 = vector.load %arg4[%c0_5, %c0_6] : memref<784x128xf32, #tpu.memory_space<vmem>>, vector<784x128xf32>
    tpu.vector_store %arg4[%c0_5, %c0_6], %8 {strides = array<i32>} : memref<784x128xf32, #tpu.memory_space<vmem>>, vector<784x128xf32>,
    return
  }
  func.func @transform_0(%arg0: i32) -> (i32, i32) {
    %c0_i32 = arith.constant 0 : i32
    %c0_i32_0 = arith.constant 0 : i32
    return %arg0, %c0_i32 : i32, i32
  }
  func.func @transform_1(%arg0: i32) -> (i32, i32) {
    %c0_i32 = arith.constant 0 : i32
    %c0_i32_0 = arith.constant 0 : i32
    %c0_i32_1 = arith.constant 0 : i32
    return %c0_i32, %c0_i32_0 : i32, i32
  }
  func.func @transform_2(%arg0: i32) -> (i32, i32) {
    %c0_i32 = arith.constant 0 : i32
    %c0_i32_0 = arith.constant 0 : i32
    %c0_i32_1 = arith.constant 0 : i32
    return %c0_i32, %c0_i32_0 : i32, i32
  }
  func.func @transform_3(%arg0: i32) -> (i32, i32) {
    %c0_i32 = arith.constant 0 : i32
    %c0_i32_0 = arith.constant 0 : i32
    return %arg0, %c0_i32 : i32, i32
  }
}

module attributes {stable_mosaic.version = 11 : i64} {
  func.func @_fused_matmul_kernel(%arg0: i32, %arg1: memref<392x640xf32, #tpu.memory_space<vmem>>, %arg2: memref<640x128xf32, #tpu.memory_space<vmem>>, %arg3: memref<392x128xf32, #tpu.memory_space<vmem>>) attributes {dimension_semantics = [#tpu.dimension_semantics<parallel>], iteration_bounds = array<i64: 4>, scalar_prefetch = 0 : i64, scratch_operands = 0 : i64, tpu.core_type = #tpu.core_type<tc>, window_params = [{transform_indices = @transform_0, window_bounds = array<i64: 392, 640>}, {pipeline_mode = #tpu.pipeline_mode<synchronous>, transform_indices = @transform_1, window_bounds = array<i64: 640, 128>}, {transform_indices = @transform_2, window_bounds = array<i64: 392, 128>}]} {
    %c0 = arith.constant 0 : index
    %c0_0 = arith.constant 0 : index
    %0 = vector.load %arg1[%c0, %c0_0] : memref<392x640xf32, #tpu.memory_space<vmem>>, vector<392x640xf32>
    %c0_1 = arith.constant 0 : index
    %c0_2 = arith.constant 0 : index
    %1 = vector.load %arg2[%c0_1, %c0_2] : memref<640x128xf32, #tpu.memory_space<vmem>>, vector<640x128xf32>
    %cst = arith.constant dense<0.000000e+00> : vector<392x128xf32>
    %2 = tpu.matmul %0, %1, %cst {dimension_numbers = #tpu.dot_dimension_numbers<[1], [0], [0], [1], [0, 0, 1, 1], [], []>} : vector<392x640xf32>, vector<640x128xf32>, vector<392x128xf32> -> vector<392x128xf32>
    %c0_3 = arith.constant 0 : index
    %c0_4 = arith.constant 0 : index
    %3 = vector.load %arg3[%c0_3, %c0_4] : memref<392x128xf32, #tpu.memory_space<vmem>>, vector<392x128xf32>
    tpu.vector_store %arg3[%c0_3, %c0_4], %2 {strides = array<i32>} : memref<392x128xf32, #tpu.memory_space<vmem>>, vector<392x128xf32>,
    return
  }
  func.func @transform_0(%arg0: i32) -> (i32, i32) {
    %c0_i32 = arith.constant 0 : i32
    %c0_i32_0 = arith.constant 0 : i32
    return %arg0, %c0_i32 : i32, i32
  }
  func.func @transform_1(%arg0: i32) -> (i32, i32) {
    %c0_i32 = arith.constant 0 : i32
    %c0_i32_0 = arith.constant 0 : i32
    %c0_i32_1 = arith.constant 0 : i32
    return %c0_i32, %c0_i32_0 : i32, i32
  }
  func.func @transform_2(%arg0: i32) -> (i32, i32) {
    %c0_i32 = arith.constant 0 : i32
    %c0_i32_0 = arith.constant 0 : i32
    return %arg0, %c0_i32 : i32, i32
  }
}

module attributes {stable_mosaic.version = 11 : i64} {
  func.func @_fused_matmul_kernel(%arg0: i32, %arg1: memref<392x128xf32, #tpu.memory_space<vmem>>, %arg2: memref<1x128xf32, #tpu.memory_space<vmem>>, %arg3: memref<1x128xf32, #tpu.memory_space<vmem>>, %arg4: memref<128x128xf32, #tpu.memory_space<vmem>>, %arg5: memref<392x128xf32, #tpu.memory_space<vmem>>) attributes {dimension_semantics = [#tpu.dimension_semantics<parallel>], iteration_bounds = array<i64: 1>, scalar_prefetch = 0 : i64, scratch_operands = 0 : i64, tpu.core_type = #tpu.core_type<tc>, window_params = [{transform_indices = @transform_0, window_bounds = array<i64: 392, 128>}, {pipeline_mode = #tpu.pipeline_mode<synchronous>, transform_indices = @transform_1, window_bounds = array<i64: 1, 128>}, {pipeline_mode = #tpu.pipeline_mode<synchronous>, transform_indices = @transform_2, window_bounds = array<i64: 1, 128>}, {pipeline_mode = #tpu.pipeline_mode<synchronous>, transform_indices = @transform_3, window_bounds = array<i64: 128, 128>}, {transform_indices = @transform_4, window_bounds = array<i64: 392, 128>}]} {
    %c0 = arith.constant 0 : index
    %c0_0 = arith.constant 0 : index
    %0 = vector.load %arg1[%c0, %c0_0] : memref<392x128xf32, #tpu.memory_space<vmem>>, vector<392x128xf32>
    %c0_1 = arith.constant 0 : index
    %c0_2 = arith.constant 0 : index
    %1 = vector.load %arg2[%c0_1, %c0_2] : memref<1x128xf32, #tpu.memory_space<vmem>>, vector<1x128xf32>
    %2 = vector.broadcast %1 : vector<1x128xf32> to vector<392x128xf32>
    %3 = arith.mulf %0, %2 : vector<392x128xf32>
    %c0_3 = arith.constant 0 : index
    %c0_4 = arith.constant 0 : index
    %4 = vector.load %arg3[%c0_3, %c0_4] : memref<1x128xf32, #tpu.memory_space<vmem>>, vector<1x128xf32>
    %5 = vector.broadcast %4 : vector<1x128xf32> to vector<392x128xf32>
    %6 = arith.addf %3, %5 : vector<392x128xf32>
    %cst = arith.constant 0.000000e+00 : f32
    %7 = vector.broadcast %cst : f32 to vector<392x128xf32>
    %8 = arith.maximumf %6, %7 : vector<392x128xf32>
    %c0_5 = arith.constant 0 : index
    %c0_6 = arith.constant 0 : index
    %9 = vector.load %arg4[%c0_5, %c0_6] : memref<128x128xf32, #tpu.memory_space<vmem>>, vector<128x128xf32>
    %cst_7 = arith.constant dense<0.000000e+00> : vector<392x128xf32>
    %10 = tpu.matmul %8, %9, %cst_7 {dimension_numbers = #tpu.dot_dimension_numbers<[1], [0], [0], [1], [0, 0, 1, 1], [], []>} : vector<392x128xf32>, vector<128x128xf32>, vector<392x128xf32> -> vector<392x128xf32>
    %c0_8 = arith.constant 0 : index
    %c0_9 = arith.constant 0 : index
    %11 = vector.load %arg5[%c0_8, %c0_9] : memref<392x128xf32, #tpu.memory_space<vmem>>, vector<392x128xf32>
    tpu.vector_store %arg5[%c0_8, %c0_9], %10 {strides = array<i32>} : memref<392x128xf32, #tpu.memory_space<vmem>>, vector<392x128xf32>,
    return
  }
  func.func @transform_0(%arg0: i32) -> (i32, i32) {
    %c0_i32 = arith.constant 0 : i32
    %c0_i32_0 = arith.constant 0 : i32
    return %arg0, %c0_i32 : i32, i32
  }
  func.func @transform_1(%arg0: i32) -> (i32, i32) {
    %c0_i32 = arith.constant 0 : i32
    %c0_i32_0 = arith.constant 0 : i32
    %c0_i32_1 = arith.constant 0 : i32
    return %c0_i32, %c0_i32_0 : i32, i32
  }
  func.func @transform_2(%arg0: i32) -> (i32, i32) {
    %c0_i32 = arith.constant 0 : i32
    %c0_i32_0 = arith.constant 0 : i32
    %c0_i32_1 = arith.constant 0 : i32
    return %c0_i32, %c0_i32_0 : i32, i32
  }
  func.func @transform_3(%arg0: i32) -> (i32, i32) {
    %c0_i32 = arith.constant 0 : i32
    %c0_i32_0 = arith.constant 0 : i32
    %c0_i32_1 = arith.constant 0 : i32
    return %c0_i32, %c0_i32_0 : i32, i32
  }
  func.func @transform_4(%arg0: i32) -> (i32, i32) {
    %c0_i32 = arith.constant 0 : i32
    %c0_i32_0 = arith.constant 0 : i32
    return %arg0, %c0_i32 : i32, i32
  }
}

module attributes {stable_mosaic.version = 11 : i64} {
  func.func @_affine_relu_kernel(%arg0: i32, %arg1: memref<392x128xf32, #tpu.memory_space<vmem>>, %arg2: memref<1x128xf32, #tpu.memory_space<vmem>>, %arg3: memref<1x128xf32, #tpu.memory_space<vmem>>, %arg4: memref<392x128xf32, #tpu.memory_space<vmem>>) attributes {dimension_semantics = [#tpu.dimension_semantics<parallel>], iteration_bounds = array<i64: 1>, scalar_prefetch = 0 : i64, scratch_operands = 0 : i64, tpu.core_type = #tpu.core_type<tc>, window_params = [{transform_indices = @transform_0, window_bounds = array<i64: 392, 128>}, {pipeline_mode = #tpu.pipeline_mode<synchronous>, transform_indices = @transform_1, window_bounds = array<i64: 1, 128>}, {pipeline_mode = #tpu.pipeline_mode<synchronous>, transform_indices = @transform_2, window_bounds = array<i64: 1, 128>}, {transform_indices = @transform_3, window_bounds = array<i64: 392, 128>}]} {
    %c0 = arith.constant 0 : index
    %c0_0 = arith.constant 0 : index
    %0 = vector.load %arg1[%c0, %c0_0] : memref<392x128xf32, #tpu.memory_space<vmem>>, vector<392x128xf32>
    %c0_1 = arith.constant 0 : index
    %c0_2 = arith.constant 0 : index
    %1 = vector.load %arg2[%c0_1, %c0_2] : memref<1x128xf32, #tpu.memory_space<vmem>>, vector<1x128xf32>
    %2 = vector.broadcast %1 : vector<1x128xf32> to vector<392x128xf32>
    %3 = arith.mulf %0, %2 : vector<392x128xf32>
    %c0_3 = arith.constant 0 : index
    %c0_4 = arith.constant 0 : index
    %4 = vector.load %arg3[%c0_3, %c0_4] : memref<1x128xf32, #tpu.memory_space<vmem>>, vector<1x128xf32>
    %5 = vector.broadcast %4 : vector<1x128xf32> to vector<392x128xf32>
    %6 = arith.addf %3, %5 : vector<392x128xf32>
    %cst = arith.constant 0.000000e+00 : f32
    %7 = vector.broadcast %cst : f32 to vector<392x128xf32>
    %8 = arith.maximumf %6, %7 : vector<392x128xf32>
    %c0_5 = arith.constant 0 : index
    %c0_6 = arith.constant 0 : index
    %9 = vector.load %arg4[%c0_5, %c0_6] : memref<392x128xf32, #tpu.memory_space<vmem>>, vector<392x128xf32>
    tpu.vector_store %arg4[%c0_5, %c0_6], %8 {strides = array<i32>} : memref<392x128xf32, #tpu.memory_space<vmem>>, vector<392x128xf32>,
    return
  }
  func.func @transform_0(%arg0: i32) -> (i32, i32) {
    %c0_i32 = arith.constant 0 : i32
    %c0_i32_0 = arith.constant 0 : i32
    return %arg0, %c0_i32 : i32, i32
  }
  func.func @transform_1(%arg0: i32) -> (i32, i32) {
    %c0_i32 = arith.constant 0 : i32
    %c0_i32_0 = arith.constant 0 : i32
    %c0_i32_1 = arith.constant 0 : i32
    return %c0_i32, %c0_i32_0 : i32, i32
  }
  func.func @transform_2(%arg0: i32) -> (i32, i32) {
    %c0_i32 = arith.constant 0 : i32
    %c0_i32_0 = arith.constant 0 : i32
    %c0_i32_1 = arith.constant 0 : i32
    return %c0_i32, %c0_i32_0 : i32, i32
  }
  func.func @transform_3(%arg0: i32) -> (i32, i32) {
    %c0_i32 = arith.constant 0 : i32
    %c0_i32_0 = arith.constant 0 : i32
    return %arg0, %c0_i32 : i32, i32
  }
}

module attributes {stable_mosaic.version = 11 : i64} {
  func.func @_fused_matmul_kernel(%arg0: i32, %arg1: memref<392x640xf32, #tpu.memory_space<vmem>>, %arg2: memref<640x128xf32, #tpu.memory_space<vmem>>, %arg3: memref<392x128xf32, #tpu.memory_space<vmem>>) attributes {dimension_semantics = [#tpu.dimension_semantics<parallel>], iteration_bounds = array<i64: 1>, scalar_prefetch = 0 : i64, scratch_operands = 0 : i64, tpu.core_type = #tpu.core_type<tc>, window_params = [{transform_indices = @transform_0, window_bounds = array<i64: 392, 640>}, {pipeline_mode = #tpu.pipeline_mode<synchronous>, transform_indices = @transform_1, window_bounds = array<i64: 640, 128>}, {transform_indices = @transform_2, window_bounds = array<i64: 392, 128>}]} {
    %c0 = arith.constant 0 : index
    %c0_0 = arith.constant 0 : index
    %0 = vector.load %arg1[%c0, %c0_0] : memref<392x640xf32, #tpu.memory_space<vmem>>, vector<392x640xf32>
    %c0_1 = arith.constant 0 : index
    %c0_2 = arith.constant 0 : index
    %1 = vector.load %arg2[%c0_1, %c0_2] : memref<640x128xf32, #tpu.memory_space<vmem>>, vector<640x128xf32>
    %cst = arith.constant dense<0.000000e+00> : vector<392x128xf32>
    %2 = tpu.matmul %0, %1, %cst {dimension_numbers = #tpu.dot_dimension_numbers<[1], [0], [0], [1], [0, 0, 1, 1], [], []>} : vector<392x640xf32>, vector<640x128xf32>, vector<392x128xf32> -> vector<392x128xf32>
    %c0_3 = arith.constant 0 : index
    %c0_4 = arith.constant 0 : index
    %3 = vector.load %arg3[%c0_3, %c0_4] : memref<392x128xf32, #tpu.memory_space<vmem>>, vector<392x128xf32>
    tpu.vector_store %arg3[%c0_3, %c0_4], %2 {strides = array<i32>} : memref<392x128xf32, #tpu.memory_space<vmem>>, vector<392x128xf32>,
    return
  }
  func.func @transform_0(%arg0: i32) -> (i32, i32) {
    %c0_i32 = arith.constant 0 : i32
    %c0_i32_0 = arith.constant 0 : i32
    return %arg0, %c0_i32 : i32, i32
  }
  func.func @transform_1(%arg0: i32) -> (i32, i32) {
    %c0_i32 = arith.constant 0 : i32
    %c0_i32_0 = arith.constant 0 : i32
    %c0_i32_1 = arith.constant 0 : i32
    return %c0_i32, %c0_i32_0 : i32, i32
  }
  func.func @transform_2(%arg0: i32) -> (i32, i32) {
    %c0_i32 = arith.constant 0 : i32
    %c0_i32_0 = arith.constant 0 : i32
    return %arg0, %c0_i32 : i32, i32
  }
}

module attributes {stable_mosaic.version = 11 : i64} {
  func.func @_fused_matmul_kernel(%arg0: i32, %arg1: memref<98x128xf32, #tpu.memory_space<vmem>>, %arg2: memref<1x128xf32, #tpu.memory_space<vmem>>, %arg3: memref<1x128xf32, #tpu.memory_space<vmem>>, %arg4: memref<128x128xf32, #tpu.memory_space<vmem>>, %arg5: memref<98x128xf32, #tpu.memory_space<vmem>>) attributes {dimension_semantics = [#tpu.dimension_semantics<parallel>], iteration_bounds = array<i64: 1>, scalar_prefetch = 0 : i64, scratch_operands = 0 : i64, tpu.core_type = #tpu.core_type<tc>, window_params = [{transform_indices = @transform_0, window_bounds = array<i64: 98, 128>}, {pipeline_mode = #tpu.pipeline_mode<synchronous>, transform_indices = @transform_1, window_bounds = array<i64: 1, 128>}, {pipeline_mode = #tpu.pipeline_mode<synchronous>, transform_indices = @transform_2, window_bounds = array<i64: 1, 128>}, {pipeline_mode = #tpu.pipeline_mode<synchronous>, transform_indices = @transform_3, window_bounds = array<i64: 128, 128>}, {transform_indices = @transform_4, window_bounds = array<i64: 98, 128>}]} {
    %c0 = arith.constant 0 : index
    %c0_0 = arith.constant 0 : index
    %0 = vector.load %arg1[%c0, %c0_0] : memref<98x128xf32, #tpu.memory_space<vmem>>, vector<98x128xf32>
    %c0_1 = arith.constant 0 : index
    %c0_2 = arith.constant 0 : index
    %1 = vector.load %arg2[%c0_1, %c0_2] : memref<1x128xf32, #tpu.memory_space<vmem>>, vector<1x128xf32>
    %2 = vector.broadcast %1 : vector<1x128xf32> to vector<98x128xf32>
    %3 = arith.mulf %0, %2 : vector<98x128xf32>
    %c0_3 = arith.constant 0 : index
    %c0_4 = arith.constant 0 : index
    %4 = vector.load %arg3[%c0_3, %c0_4] : memref<1x128xf32, #tpu.memory_space<vmem>>, vector<1x128xf32>
    %5 = vector.broadcast %4 : vector<1x128xf32> to vector<98x128xf32>
    %6 = arith.addf %3, %5 : vector<98x128xf32>
    %cst = arith.constant 0.000000e+00 : f32
    %7 = vector.broadcast %cst : f32 to vector<98x128xf32>
    %8 = arith.maximumf %6, %7 : vector<98x128xf32>
    %c0_5 = arith.constant 0 : index
    %c0_6 = arith.constant 0 : index
    %9 = vector.load %arg4[%c0_5, %c0_6] : memref<128x128xf32, #tpu.memory_space<vmem>>, vector<128x128xf32>
    %cst_7 = arith.constant dense<0.000000e+00> : vector<98x128xf32>
    %10 = tpu.matmul %8, %9, %cst_7 {dimension_numbers = #tpu.dot_dimension_numbers<[1], [0], [0], [1], [0, 0, 1, 1], [], []>} : vector<98x128xf32>, vector<128x128xf32>, vector<98x128xf32> -> vector<98x128xf32>
    %c0_8 = arith.constant 0 : index
    %c0_9 = arith.constant 0 : index
    %11 = vector.load %arg5[%c0_8, %c0_9] : memref<98x128xf32, #tpu.memory_space<vmem>>, vector<98x128xf32>
    tpu.vector_store %arg5[%c0_8, %c0_9], %10 {strides = array<i32>} : memref<98x128xf32, #tpu.memory_space<vmem>>, vector<98x128xf32>,
    return
  }
  func.func @transform_0(%arg0: i32) -> (i32, i32) {
    %c0_i32 = arith.constant 0 : i32
    %c0_i32_0 = arith.constant 0 : i32
    return %arg0, %c0_i32 : i32, i32
  }
  func.func @transform_1(%arg0: i32) -> (i32, i32) {
    %c0_i32 = arith.constant 0 : i32
    %c0_i32_0 = arith.constant 0 : i32
    %c0_i32_1 = arith.constant 0 : i32
    return %c0_i32, %c0_i32_0 : i32, i32
  }
  func.func @transform_2(%arg0: i32) -> (i32, i32) {
    %c0_i32 = arith.constant 0 : i32
    %c0_i32_0 = arith.constant 0 : i32
    %c0_i32_1 = arith.constant 0 : i32
    return %c0_i32, %c0_i32_0 : i32, i32
  }
  func.func @transform_3(%arg0: i32) -> (i32, i32) {
    %c0_i32 = arith.constant 0 : i32
    %c0_i32_0 = arith.constant 0 : i32
    %c0_i32_1 = arith.constant 0 : i32
    return %c0_i32, %c0_i32_0 : i32, i32
  }
  func.func @transform_4(%arg0: i32) -> (i32, i32) {
    %c0_i32 = arith.constant 0 : i32
    %c0_i32_0 = arith.constant 0 : i32
    return %arg0, %c0_i32 : i32, i32
  }
}

module attributes {stable_mosaic.version = 11 : i64} {
  func.func @_affine_relu_kernel(%arg0: i32, %arg1: memref<98x128xf32, #tpu.memory_space<vmem>>, %arg2: memref<1x128xf32, #tpu.memory_space<vmem>>, %arg3: memref<1x128xf32, #tpu.memory_space<vmem>>, %arg4: memref<98x128xf32, #tpu.memory_space<vmem>>) attributes {dimension_semantics = [#tpu.dimension_semantics<parallel>], iteration_bounds = array<i64: 1>, scalar_prefetch = 0 : i64, scratch_operands = 0 : i64, tpu.core_type = #tpu.core_type<tc>, window_params = [{transform_indices = @transform_0, window_bounds = array<i64: 98, 128>}, {pipeline_mode = #tpu.pipeline_mode<synchronous>, transform_indices = @transform_1, window_bounds = array<i64: 1, 128>}, {pipeline_mode = #tpu.pipeline_mode<synchronous>, transform_indices = @transform_2, window_bounds = array<i64: 1, 128>}, {transform_indices = @transform_3, window_bounds = array<i64: 98, 128>}]} {
    %c0 = arith.constant 0 : index
    %c0_0 = arith.constant 0 : index
    %0 = vector.load %arg1[%c0, %c0_0] : memref<98x128xf32, #tpu.memory_space<vmem>>, vector<98x128xf32>
    %c0_1 = arith.constant 0 : index
    %c0_2 = arith.constant 0 : index
    %1 = vector.load %arg2[%c0_1, %c0_2] : memref<1x128xf32, #tpu.memory_space<vmem>>, vector<1x128xf32>
    %2 = vector.broadcast %1 : vector<1x128xf32> to vector<98x128xf32>
    %3 = arith.mulf %0, %2 : vector<98x128xf32>
    %c0_3 = arith.constant 0 : index
    %c0_4 = arith.constant 0 : index
    %4 = vector.load %arg3[%c0_3, %c0_4] : memref<1x128xf32, #tpu.memory_space<vmem>>, vector<1x128xf32>
    %5 = vector.broadcast %4 : vector<1x128xf32> to vector<98x128xf32>
    %6 = arith.addf %3, %5 : vector<98x128xf32>
    %cst = arith.constant 0.000000e+00 : f32
    %7 = vector.broadcast %cst : f32 to vector<98x128xf32>
    %8 = arith.maximumf %6, %7 : vector<98x128xf32>
    %c0_5 = arith.constant 0 : index
    %c0_6 = arith.constant 0 : index
    %9 = vector.load %arg4[%c0_5, %c0_6] : memref<98x128xf32, #tpu.memory_space<vmem>>, vector<98x128xf32>
    tpu.vector_store %arg4[%c0_5, %c0_6], %8 {strides = array<i32>} : memref<98x128xf32, #tpu.memory_space<vmem>>, vector<98x128xf32>,
    return
  }
  func.func @transform_0(%arg0: i32) -> (i32, i32) {
    %c0_i32 = arith.constant 0 : i32
    %c0_i32_0 = arith.constant 0 : i32
    return %arg0, %c0_i32 : i32, i32
  }
  func.func @transform_1(%arg0: i32) -> (i32, i32) {
    %c0_i32 = arith.constant 0 : i32
    %c0_i32_0 = arith.constant 0 : i32
    %c0_i32_1 = arith.constant 0 : i32
    return %c0_i32, %c0_i32_0 : i32, i32
  }
  func.func @transform_2(%arg0: i32) -> (i32, i32) {
    %c0_i32 = arith.constant 0 : i32
    %c0_i32_0 = arith.constant 0 : i32
    %c0_i32_1 = arith.constant 0 : i32
    return %c0_i32, %c0_i32_0 : i32, i32
  }
  func.func @transform_3(%arg0: i32) -> (i32, i32) {
    %c0_i32 = arith.constant 0 : i32
    %c0_i32_0 = arith.constant 0 : i32
    return %arg0, %c0_i32 : i32, i32
  }
}

module attributes {stable_mosaic.version = 11 : i64} {
  func.func @_fused_matmul_kernel(%arg0: i32, %arg1: memref<98x640xf32, #tpu.memory_space<vmem>>, %arg2: memref<640x128xf32, #tpu.memory_space<vmem>>, %arg3: memref<98x128xf32, #tpu.memory_space<vmem>>) attributes {dimension_semantics = [#tpu.dimension_semantics<parallel>], iteration_bounds = array<i64: 1>, scalar_prefetch = 0 : i64, scratch_operands = 0 : i64, tpu.core_type = #tpu.core_type<tc>, window_params = [{transform_indices = @transform_0, window_bounds = array<i64: 98, 640>}, {pipeline_mode = #tpu.pipeline_mode<synchronous>, transform_indices = @transform_1, window_bounds = array<i64: 640, 128>}, {transform_indices = @transform_2, window_bounds = array<i64: 98, 128>}]} {
    %c0 = arith.constant 0 : index
    %c0_0 = arith.constant 0 : index
    %0 = vector.load %arg1[%c0, %c0_0] : memref<98x640xf32, #tpu.memory_space<vmem>>, vector<98x640xf32>
    %c0_1 = arith.constant 0 : index
    %c0_2 = arith.constant 0 : index
    %1 = vector.load %arg2[%c0_1, %c0_2] : memref<640x128xf32, #tpu.memory_space<vmem>>, vector<640x128xf32>
    %cst = arith.constant dense<0.000000e+00> : vector<98x128xf32>
    %2 = tpu.matmul %0, %1, %cst {dimension_numbers = #tpu.dot_dimension_numbers<[1], [0], [0], [1], [0, 0, 1, 1], [], []>} : vector<98x640xf32>, vector<640x128xf32>, vector<98x128xf32> -> vector<98x128xf32>
    %c0_3 = arith.constant 0 : index
    %c0_4 = arith.constant 0 : index
    %3 = vector.load %arg3[%c0_3, %c0_4] : memref<98x128xf32, #tpu.memory_space<vmem>>, vector<98x128xf32>
    tpu.vector_store %arg3[%c0_3, %c0_4], %2 {strides = array<i32>} : memref<98x128xf32, #tpu.memory_space<vmem>>, vector<98x128xf32>,
    return
  }
  func.func @transform_0(%arg0: i32) -> (i32, i32) {
    %c0_i32 = arith.constant 0 : i32
    %c0_i32_0 = arith.constant 0 : i32
    return %arg0, %c0_i32 : i32, i32
  }
  func.func @transform_1(%arg0: i32) -> (i32, i32) {
    %c0_i32 = arith.constant 0 : i32
    %c0_i32_0 = arith.constant 0 : i32
    %c0_i32_1 = arith.constant 0 : i32
    return %c0_i32, %c0_i32_0 : i32, i32
  }
  func.func @transform_2(%arg0: i32) -> (i32, i32) {
    %c0_i32 = arith.constant 0 : i32
    %c0_i32_0 = arith.constant 0 : i32
    return %arg0, %c0_i32 : i32, i32
  }
}

module attributes {stable_mosaic.version = 11 : i64} {
  func.func @_fused_matmul_kernel(%arg0: i32, %arg1: memref<2x128xf32, #tpu.memory_space<vmem>>, %arg2: memref<128x128xf32, #tpu.memory_space<vmem>>, %arg3: memref<1x128xf32, #tpu.memory_space<vmem>>, %arg4: memref<2x128xf32, #tpu.memory_space<vmem>>) attributes {dimension_semantics = [#tpu.dimension_semantics<parallel>], iteration_bounds = array<i64: 1>, scalar_prefetch = 0 : i64, scratch_operands = 0 : i64, tpu.core_type = #tpu.core_type<tc>, window_params = [{transform_indices = @transform_0, window_bounds = array<i64: 2, 128>}, {pipeline_mode = #tpu.pipeline_mode<synchronous>, transform_indices = @transform_1, window_bounds = array<i64: 128, 128>}, {pipeline_mode = #tpu.pipeline_mode<synchronous>, transform_indices = @transform_2, window_bounds = array<i64: 1, 128>}, {transform_indices = @transform_3, window_bounds = array<i64: 2, 128>}]} {
    %c0 = arith.constant 0 : index
    %c0_0 = arith.constant 0 : index
    %0 = vector.load %arg1[%c0, %c0_0] : memref<2x128xf32, #tpu.memory_space<vmem>>, vector<2x128xf32>
    %c0_1 = arith.constant 0 : index
    %c0_2 = arith.constant 0 : index
    %1 = vector.load %arg2[%c0_1, %c0_2] : memref<128x128xf32, #tpu.memory_space<vmem>>, vector<128x128xf32>
    %cst = arith.constant dense<0.000000e+00> : vector<2x128xf32>
    %2 = tpu.matmul %0, %1, %cst {dimension_numbers = #tpu.dot_dimension_numbers<[1], [0], [0], [1], [0, 0, 1, 1], [], []>} : vector<2x128xf32>, vector<128x128xf32>, vector<2x128xf32> -> vector<2x128xf32>
    %c0_3 = arith.constant 0 : index
    %c0_4 = arith.constant 0 : index
    %3 = vector.load %arg3[%c0_3, %c0_4] : memref<1x128xf32, #tpu.memory_space<vmem>>, vector<1x128xf32>
    %4 = vector.broadcast %3 : vector<1x128xf32> to vector<2x128xf32>
    %5 = arith.addf %2, %4 : vector<2x128xf32>
    %c0_5 = arith.constant 0 : index
    %c0_6 = arith.constant 0 : index
    %6 = vector.load %arg4[%c0_5, %c0_6] : memref<2x128xf32, #tpu.memory_space<vmem>>, vector<2x128xf32>
    tpu.vector_store %arg4[%c0_5, %c0_6], %5 {strides = array<i32>} : memref<2x128xf32, #tpu.memory_space<vmem>>, vector<2x128xf32>,
    return
  }
  func.func @transform_0(%arg0: i32) -> (i32, i32) {
    %c0_i32 = arith.constant 0 : i32
    %c0_i32_0 = arith.constant 0 : i32
    return %arg0, %c0_i32 : i32, i32
  }
  func.func @transform_1(%arg0: i32) -> (i32, i32) {
    %c0_i32 = arith.constant 0 : i32
    %c0_i32_0 = arith.constant 0 : i32
    %c0_i32_1 = arith.constant 0 : i32
    return %c0_i32, %c0_i32_0 : i32, i32
  }
  func.func @transform_2(%arg0: i32) -> (i32, i32) {
    %c0_i32 = arith.constant 0 : i32
    %c0_i32_0 = arith.constant 0 : i32
    %c0_i32_1 = arith.constant 0 : i32
    return %c0_i32, %c0_i32_0 : i32, i32
  }
  func.func @transform_3(%arg0: i32) -> (i32, i32) {
    %c0_i32 = arith.constant 0 : i32
    %c0_i32_0 = arith.constant 0 : i32
    return %arg0, %c0_i32 : i32, i32
  }
}

</mosaic_0001>

<bundles_post_ra>
// kernel: densenet_forward_pallas.24
= control target key start
LH: loop header
LB: loop body
LE: loop exit
PB: predicated region body
PF: predicated region fallthrough
CT: control target
= control target key end

     0   :  { %s875_s9 = smov 0   ;;  %s1196_s0 = inlined_call_operand.vmem [shape: f32[6272,256], index: 0, kind: input, shape index: {}]   ;;  %s1197_s1 = inlined_call_operand.vmem [shape: f32[256,128], index: 1, kind: input, shape index: {}]   ;;  %s1198_s2 = inlined_call_operand.vmem [shape: f32[6272,128], index: 2, kind: output, shape index: {}]  }
   0x1 LB: > { %s751_s10 = sadd.s32 4294967295, %s857_s9   ;;  %p755_p0 = scmp.ge.s32.totalorder %s857_s9, 1  ;;  %s857_s9 = sphi %s875_s9, %s12_s9  }
   0x2   : > { %p114_p1 = scmp.lt.s32.totalorder %s857_s9, 15 }
   0x4   : > { %p115_p2 = pnand %p755_p0, %p114_p1 }
   0x5   : > { %v262_v0 = vld [vmem:[%s1197_s1] sm:$0xff] (!%p115_p2)  ;;  %v263_v1 = vld [vmem:[%s1197_s1 + $0x8] sm:$0xff] (!%p115_p2)  ;;  %v264_v2 = vld [vmem:[%s1197_s1 + $0x10] sm:$0xff] (!%p115_p2)  ;;  %s137_s17 = smul.u32 (!%p115_p2), 56, %s751_s10  ;;  %v859_v3 = vmov (!%p115_p2), 0.0|0.0  }
   0x6   : > { %118 = sbr.rel (%p115_p2) target bundleno = 392 (0x188), region = 28  ;;  %762 = vmatprep.subr.bf16.mxu0 (!%p115_p2), %v859_v3  ;;  %810 = vmatprep.subr.bf16.mxu1 (!%p115_p2), %v859_v3  ;;  %v763_v4 = vpack.c.bf16 (!%p115_p2), %v263_v1, %v262_v0  ;;  %v265_v5 = vld [vmem:[%s1197_s1 + $0x18] sm:$0xff] (!%p115_p2)  ;;  %v266_v7 = vld [vmem:[%s1197_s1 + $0x20] sm:$0xff] (!%p115_p2)  ;;  %v267_v8 = vld [vmem:[%s1197_s1 + $0x28] sm:$0xff] (!%p115_p2) }
   0x7   : > { %p138_p3 = scmp.lt.s32.totalorder (!%p115_p2), %s137_s17, 783  ;;  %v766_v6 = vpack.c.bf16 (!%p115_p2), %v265_v5, %v264_v2  ;;  %v769_v9 = vpack.c.bf16 (!%p115_p2), %v267_v8, %v266_v7  ;;  %v268_v10 = vld [vmem:[%s1197_s1 + $0x30] sm:$0xff] (!%p115_p2)  ;;  %v269_v11 = vld [vmem:[%s1197_s1 + $0x38] sm:$0xff] (!%p115_p2)  ;;  %v270_v15 = vld [vmem:[%s1197_s1 + $0x40] sm:$0xff] (!%p115_p2) }
   0x8   : > { %764 = vmatpush1.bf16.msra.mxu0 (!%p115_p2), %v763_v4  ;;  %826 = vmatpush1.bf16.msra.mxu1 (!%p115_p2), %v763_v4  ;;  %v772_v13 = vpack.c.bf16 (!%p115_p2), %v269_v11, %v268_v10  ;;  %v271_v16 = vld [vmem:[%s1197_s1 + $0x48] sm:$0xff] (!%p115_p2)  ;;  %v272_v18 = vld [vmem:[%s1197_s1 + $0x50] sm:$0xff] (!%p115_p2)  ;;  %v273_v19 = vld [vmem:[%s1197_s1 + $0x58] sm:$0xff] (!%p115_p2) }
   0x9   : > { %765 = vmatprep.subr.bf16.mxu0 (!%p115_p2), %v859_v3  ;;  %811 = vmatprep.subr.bf16.mxu1 (!%p115_p2), %v859_v3  ;;  %v775_v17 = vpack.c.bf16 (!%p115_p2), %v271_v16, %v270_v15  ;;  %v778_v20 = vpack.c.bf16 (!%p115_p2), %v273_v19, %v272_v18  ;;  %v274_v21 = vld [vmem:[%s1197_s1 + $0x60] sm:$0xff] (!%p115_p2)  ;;  %v275_v22 = vld [vmem:[%s1197_s1 + $0x68] sm:$0xff] (!%p115_p2)  ;;  %v276_v24 = vld [vmem:[%s1197_s1 + $0x70] sm:$0xff] (!%p115_p2) }
   0xa   : > { %v781_v23 = vpack.c.bf16 (!%p115_p2), %v275_v22, %v274_v21  ;;  %v277_v25 = vld [vmem:[%s1197_s1 + $0x78] sm:$0xff] (!%p115_p2)  ;;  %v278_v27 = vld [vmem:[%s1197_s1 + $0x80] sm:$0xff] (!%p115_p2)  ;;  %v279_v28 = vld [vmem:[%s1197_s1 + $0x88] sm:$0xff] (!%p115_p2) }
   0xb   : > { %v784_v26 = vpack.c.bf16 (!%p115_p2), %v277_v25, %v276_v24  ;;  %v787_v29 = vpack.c.bf16 (!%p115_p2), %v279_v28, %v278_v27  ;;  %v280_v30 = vld [vmem:[%s1197_s1 + $0x90] sm:$0xff] (!%p115_p2)  ;;  %v281_v31 = vld [vmem:[%s1197_s1 + $0x98] sm:$0xff] (!%p115_p2)  ;;  %v282_v33 = vld [vmem:[%s1197_s1 + $0xa0] sm:$0xff] (!%p115_p2) }
   0xc   : > { %767 = vmatpush1.bf16.msra.mxu0 (!%p115_p2), %v766_v6  ;;  %827 = vmatpush1.bf16.msra.mxu1 (!%p115_p2), %v766_v6  ;;  %v790_v32 = vpack.c.bf16 (!%p115_p2), %v281_v31, %v280_v30  ;;  %v283_v34 = vld [vmem:[%s1197_s1 + $0xa8] sm:$0xff] (!%p115_p2)  ;;  %v284_v36 = vld [vmem:[%s1197_s1 + $0xb0] sm:$0xff] (!%p115_p2)  ;;  %v285_v37 = vld [vmem:[%s1197_s1 + $0xb8] sm:$0xff] (!%p115_p2) }
   0xd   : > { %s1200_s17 = smov (!%p138_p3, %s137_s17), 783  ;;  %768 = vmatprep.subr.bf16.mxu0 %v859_v3  ;;  %812 = vmatprep.subr.bf16.mxu1 %v859_v3  ;;  %v793_v35 = vpack.c.bf16 %v283_v34, %v282_v33  ;;  %v796_v38 = vpack.c.bf16 %v285_v37, %v284_v36  ;;  %v286_v39 = vld [vmem:[%s1197_s1 + $0xc0] sm:$0xff]  ;;  %v287_v40 = vld [vmem:[%s1197_s1 + $0xc8] sm:$0xff]  ;;  %v288_v42 = vld [vmem:[%s1197_s1 + $0xd0] sm:$0xff] }
   0xe   : > { %s761_s24 = sshll.u32 %s1200_s17, 4  ;;  %v799_v41 = vpack.c.bf16 %v287_v40, %v286_v39  ;;  %v289_v43 = vld [vmem:[%s1197_s1 + $0xd8] sm:$0xff]  ;;  %v290_v45 = vld [vmem:[%s1197_s1 + $0xe0] sm:$0xff]  ;;  %v291_v46 = vld [vmem:[%s1197_s1 + $0xe8] sm:$0xff]  ;;  %s758_s30 = sshll.u32 %s1200_s17, 3 }
   0xf   : > { %s911_s27 = scalar_lea.vmem %s1196_s0, %s761_s24  ;;  %v802_v44 = vpack.c.bf16 %v289_v43, %v288_v42  ;;  %v805_v47 = vpack.c.bf16 %v291_v46, %v290_v45  ;;  %v292_v48 = vld [vmem:[%s1197_s1 + $0xf0] sm:$0xff]  ;;  %v293_v49 = vld [vmem:[%s1197_s1 + $0xf8] sm:$0xff]  ;;  %s1135_s5 = scalar_lea.vmem %s1198_s2, %s758_s30 }
  0x10   : > { %v151_v12 = vld [vmem:[%s911_s27 + $0x8] sm:$0xff]  ;;  %770 = vmatpush1.bf16.msra.mxu0 %v769_v9  ;;  %828 = vmatpush1.bf16.msra.mxu1 %v769_v9  ;;  %v808_v50 = vpack.c.bf16 %v293_v49, %v292_v48  ;;  %v150_v51 = vld [vmem:[%s911_s27] sm:$0xff]  ;;  %v153_v53 = vld [vmem:[%s911_s27 + $0x18] sm:$0xff] }
  0x11   : > { %v207_v14 = vld [vmem:[%s911_s27 + $0x1c8] sm:$0xff]  ;;  %771 = vmatprep.subr.bf16.mxu0 %v859_v3  ;;  %813 = vmatprep.subr.bf16.mxu1 %v859_v3  ;;  %v206_v52 = vld [vmem:[%s911_s27 + $0x1c0] sm:$0xff]  ;;  %v209_v54 = vld [vmem:[%s911_s27 + $0x1d8] sm:$0xff] }
  0x12   : > { %358 = vmatprep.mubr.f32.mxu0 %v151_v12  ;;  %498 = vmatprep.mubr.f32.mxu1 %v207_v14  ;;  %v152_v55 = vld [vmem:[%s911_s27 + $0x10] sm:$0xff]  ;;  %v155_v57 = vld [vmem:[%s911_s27 + $0x28] sm:$0xff]  ;;  %v154_v59 = vld [vmem:[%s911_s27 + $0x20] sm:$0xff] }
  0x13   : > { %v208_v56 = vld [vmem:[%s911_s27 + $0x1d0] sm:$0xff]  ;;  %v211_v58 = vld [vmem:[%s911_s27 + $0x1e8] sm:$0xff]  ;;  %v210_v60 = vld [vmem:[%s911_s27 + $0x1e0] sm:$0xff] }
  0x14   : > { %773 = vmatpush1.bf16.msra.mxu0 %v772_v13  ;;  %829 = vmatpush1.bf16.msra.mxu1 %v772_v13  ;;  %v157_v61 = vld [vmem:[%s911_s27 + $0x38] sm:$0xff]  ;;  %v156_v63 = vld [vmem:[%s911_s27 + $0x30] sm:$0xff]  ;;  %v159_v1 = vld [vmem:[%s911_s27 + $0x48] sm:$0xff] }
  0x15   : > { %774 = vmatprep.subr.bf16.mxu0 %v859_v3  ;;  %814 = vmatprep.subr.bf16.mxu1 %v859_v3  ;;  %v213_v62 = vld [vmem:[%s911_s27 + $0x1f8] sm:$0xff]  ;;  %v212_v0 = vld [vmem:[%s911_s27 + $0x1f0] sm:$0xff]  ;;  %v215_v2 = vld [vmem:[%s911_s27 + $0x208] sm:$0xff] }
  0x16   : > { %v214_v4 = vld [vmem:[%s911_s27 + $0x200] sm:$0xff]  ;;  %v161_v5 = vld [vmem:[%s911_s27 + $0x58] sm:$0xff]  ;;  %v160_v7 = vld [vmem:[%s911_s27 + $0x50] sm:$0xff] }
  0x17   : > { %v217_v6 = vld [vmem:[%s911_s27 + $0x218] sm:$0xff]  ;;  %v216_v8 = vld [vmem:[%s911_s27 + $0x210] sm:$0xff]  ;;  %v163_v9 = vld [vmem:[%s911_s27 + $0x68] sm:$0xff] }
  0x18   : > { %776 = vmatpush1.bf16.msra.mxu0 %v775_v17  ;;  %830 = vmatpush1.bf16.msra.mxu1 %v775_v17  ;;  %v219_v10 = vld [vmem:[%s911_s27 + $0x228] sm:$0xff]  ;;  %v162_v11 = vld [vmem:[%s911_s27 + $0x60] sm:$0xff]  ;;  %v165_v13 = vld [vmem:[%s911_s27 + $0x78] sm:$0xff] }
  0x19   : > { %777 = vmatprep.subr.bf16.mxu0 %v859_v3  ;;  %815 = vmatprep.subr.bf16.mxu1 %v859_v3  ;;  %v218_v12 = vld [vmem:[%s911_s27 + $0x220] sm:$0xff]  ;;  %v221_v14 = vld [vmem:[%s911_s27 + $0x238] sm:$0xff]  ;;  %v164_v15 = vld [vmem:[%s911_s27 + $0x70] sm:$0xff] }
  0x1a   : > { %v220_v16 = vld [vmem:[%s911_s27 + $0x230] sm:$0xff]  ;;  %v167_v17 = vld [vmem:[%s911_s27 + $0x88] sm:$0xff]  ;;  %v166_v19 = vld [vmem:[%s911_s27 + $0x80] sm:$0xff] }
  0x1b   : > { %v223_v18 = vld [vmem:[%s911_s27 + $0x248] sm:$0xff]  ;;  %v169_v21 = vld [vmem:[%s911_s27 + $0x98] sm:$0xff]  ;;  %v224_v24 = vld [vmem:[%s911_s27 + $0x250] sm:$0xff] }
  0x1c   : > { %779 = vmatpush1.bf16.msra.mxu0 %v778_v20  ;;  %831 = vmatpush1.bf16.msra.mxu1 %v778_v20  ;;  %v222_v20 = vld [vmem:[%s911_s27 + $0x240] sm:$0xff]  ;;  %v225_v22 = vld [vmem:[%s911_s27 + $0x258] sm:$0xff]  ;;  %v171_v25 = vld [vmem:[%s911_s27 + $0xa8] sm:$0xff] }
  0x1d   : > { %780 = vmatprep.subr.bf16.mxu0 %v859_v3  ;;  %816 = vmatprep.subr.bf16.mxu1 %v859_v3  ;;  %v170_v27 = vld [vmem:[%s911_s27 + $0xa0] sm:$0xff]  ;;  %v229_v30 = vld [vmem:[%s911_s27 + $0x278] sm:$0xff]  ;;  %v172_v31 = vld [vmem:[%s911_s27 + $0xb0] sm:$0xff] }
  0x1e   : > { %v226_v28 = vld [vmem:[%s911_s27 + $0x260] sm:$0xff]  ;;  %v175_v33 = vld [vmem:[%s911_s27 + $0xc8] sm:$0xff]  ;;  %v177_v37 = vld [vmem:[%s911_s27 + $0xd8] sm:$0xff] }
  0x1f   : > { %v231_v34 = vld [vmem:[%s911_s27 + $0x288] sm:$0xff]  ;;  %v230_v36 = vld [vmem:[%s911_s27 + $0x280] sm:$0xff]  ;;  %v176_v39 = vld [vmem:[%s911_s27 + $0xd0] sm:$0xff] }
  0x20   : > { %782 = vmatpush1.bf16.msra.mxu0 %v781_v23  ;;  %832 = vmatpush1.bf16.msra.mxu1 %v781_v23  ;;  %v168_v23 = vld [vmem:[%s911_s27 + $0x90] sm:$0xff]  ;;  %v235_v42 = vld [vmem:[%s911_s27 + $0x2a8] sm:$0xff]  ;;  %v178_v43 = vld [vmem:[%s911_s27 + $0xe0] sm:$0xff] }
  0x21   : > { %783 = vmatprep.subr.bf16.mxu0 %v859_v3  ;;  %817 = vmatprep.subr.bf16.mxu1 %v859_v3  ;;  %v232_v40 = vld [vmem:[%s911_s27 + $0x290] sm:$0xff]  ;;  %v181_v45 = vld [vmem:[%s911_s27 + $0xf8] sm:$0xff]  ;;  %v183_v49 = vld [vmem:[%s911_s27 + $0x108] sm:$0xff] }
  0x22   : > { %v237_v46 = vld [vmem:[%s911_s27 + $0x2b8] sm:$0xff]  ;;  %v236_v48 = vld [vmem:[%s911_s27 + $0x2b0] sm:$0xff] }
  0x24   : > { %785 = vmatpush1.bf16.msra.mxu0 %v784_v26  ;;  %833 = vmatpush1.bf16.msra.mxu1 %v784_v26  ;;  %v227_v26 = vld [vmem:[%s911_s27 + $0x268] sm:$0xff] }
  0x25   : > { %786 = vmatprep.subr.bf16.mxu0 %v859_v3  ;;  %818 = vmatprep.subr.bf16.mxu1 %v859_v3 }
  0x28   : > { %788 = vmatpush1.bf16.msra.mxu0 %v787_v29  ;;  %834 = vmatpush1.bf16.msra.mxu1 %v787_v29  ;;  %v173_v29 = vld [vmem:[%s911_s27 + $0xb8] sm:$0xff] }
  0x29   : > { %789 = vmatprep.subr.bf16.mxu0 %v859_v3  ;;  %819 = vmatprep.subr.bf16.mxu1 %v859_v3 }
  0x2c   : > { %791 = vmatpush1.bf16.msra.mxu0 %v790_v32  ;;  %835 = vmatpush1.bf16.msra.mxu1 %v790_v32  ;;  %v228_v32 = vld [vmem:[%s911_s27 + $0x270] sm:$0xff] }
  0x2d   : > { %792 = vmatprep.subr.bf16.mxu0 %v859_v3  ;;  %820 = vmatprep.subr.bf16.mxu1 %v859_v3 }
  0x30   : > { %794 = vmatpush1.bf16.msra.mxu0 %v793_v35  ;;  %836 = vmatpush1.bf16.msra.mxu1 %v793_v35  ;;  %v174_v35 = vld [vmem:[%s911_s27 + $0xc0] sm:$0xff] }
  0x31   : > { %795 = vmatprep.subr.bf16.mxu0 %v859_v3  ;;  %821 = vmatprep.subr.bf16.mxu1 %v859_v3 }
  0x34   : > { %797 = vmatpush1.bf16.msra.mxu0 %v796_v38  ;;  %837 = vmatpush1.bf16.msra.mxu1 %v796_v38  ;;  %v233_v38 = vld [vmem:[%s911_s27 + $0x298] sm:$0xff] }
  0x35   : > { %798 = vmatprep.subr.bf16.mxu0 %v859_v3  ;;  %822 = vmatprep.subr.bf16.mxu1 %v859_v3 }
  0x38   : > { %800 = vmatpush1.bf16.msra.mxu0 %v799_v41  ;;  %838 = vmatpush1.bf16.msra.mxu1 %v799_v41  ;;  %v179_v41 = vld [vmem:[%s911_s27 + $0xe8] sm:$0xff] }
  0x39   : > { %801 = vmatprep.subr.bf16.mxu0 %v859_v3  ;;  %823 = vmatprep.subr.bf16.mxu1 %v859_v3 }
  0x3c   : > { %803 = vmatpush1.bf16.msra.mxu0 %v802_v44  ;;  %839 = vmatpush1.bf16.msra.mxu1 %v802_v44  ;;  %v234_v44 = vld [vmem:[%s911_s27 + $0x2a0] sm:$0xff] }
  0x3d   : > { %804 = vmatprep.subr.bf16.mxu0 %v859_v3  ;;  %824 = vmatprep.subr.bf16.mxu1 %v859_v3 }
  0x40   : > { %806 = vmatpush1.bf16.msra.mxu0 %v805_v47  ;;  %840 = vmatpush1.bf16.msra.mxu1 %v805_v47  ;;  %v180_v47 = vld [vmem:[%s911_s27 + $0xf0] sm:$0xff] }
  0x41   : > { %807 = vmatprep.subr.bf16.mxu0 %v859_v3  ;;  %825 = vmatprep.subr.bf16.mxu1 %v859_v3  ;;  %v158_v3 = vld [vmem:[%s911_s27 + $0x40] sm:$0xff] }
  0x44   : > { %809 = vmatpush1.bf16.msra.mxu0 %v808_v50  ;;  %841 = vmatpush1.bf16.msra.mxu1 %v808_v50  ;;  %v239_v50 = vld [vmem:[%s911_s27 + $0x2c8] sm:$0xff] }
  0x47   : > { %359 = vmatmul.mubr.f32.vlgmr.msra.gmra.mrb[0].mxu0 %v150_v51  ;;  %499 = vmatmul.mubr.f32.vlgmr.msra.gmra.mrb[0].mxu1 %v206_v52  ;;  %v182_v51 = vld [vmem:[%s911_s27 + $0x100] sm:$0xff] }
  0x48   : > { %363 = vmatprep.mubr.f32.mxu0 %v153_v53  ;;  %503 = vmatprep.mubr.f32.mxu1 %v209_v54  ;;  %v238_v52 = vld [vmem:[%s911_s27 + $0x2c0] sm:$0xff]  ;;  %v185_v53 = vld [vmem:[%s911_s27 + $0x118] sm:$0xff] }
  0x49   : > { %v241_v54 = vld [vmem:[%s911_s27 + $0x2d8] sm:$0xff] }
  0x4b   : > { %364 = vmatmul.mubr.f32.gmra.mrb[2].mxu0 %v152_v55  ;;  %504 = vmatmul.mubr.f32.gmra.mrb[2].mxu1 %v208_v56  ;;  %v184_v55 = vld [vmem:[%s911_s27 + $0x110] sm:$0xff] }
  0x4c   : > { %368 = vmatprep.mubr.f32.mxu0 %v155_v57  ;;  %508 = vmatprep.mubr.f32.mxu1 %v211_v58  ;;  %v240_v56 = vld [vmem:[%s911_s27 + $0x2d0] sm:$0xff]  ;;  %v187_v57 = vld [vmem:[%s911_s27 + $0x128] sm:$0xff] }
  0x4d   : > { %v243_v58 = vld [vmem:[%s911_s27 + $0x2e8] sm:$0xff] }
  0x4f   : > { %369 = vmatmul.mubr.f32.gmra.mrb[4].mxu0 %v154_v59  ;;  %509 = vmatmul.mubr.f32.gmra.mrb[4].mxu1 %v210_v60  ;;  %v186_v59 = vld [vmem:[%s911_s27 + $0x120] sm:$0xff] }
  0x50   : > { %373 = vmatprep.mubr.f32.mxu0 %v157_v61  ;;  %513 = vmatprep.mubr.f32.mxu1 %v213_v62  ;;  %v242_v60 = vld [vmem:[%s911_s27 + $0x2e0] sm:$0xff]  ;;  %v189_v61 = vld [vmem:[%s911_s27 + $0x138] sm:$0xff] }
  0x51   : > { %v245_v62 = vld [vmem:[%s911_s27 + $0x2f8] sm:$0xff] }
  0x53   : > { %374 = vmatmul.mubr.f32.gmra.mrb[6].mxu0 %v156_v63  ;;  %514 = vmatmul.mubr.f32.gmra.mrb[6].mxu1 %v212_v0  ;;  %v188_v63 = vld [vmem:[%s911_s27 + $0x130] sm:$0xff] }
  0x54   : > { %378 = vmatprep.mubr.f32.mxu0 %v159_v1  ;;  %518 = vmatprep.mubr.f32.mxu1 %v215_v2  ;;  %v244_v0 = vld [vmem:[%s911_s27 + $0x2f0] sm:$0xff]  ;;  %v191_v1 = vld [vmem:[%s911_s27 + $0x148] sm:$0xff] }
  0x55   : > { %v247_v2 = vld [vmem:[%s911_s27 + $0x308] sm:$0xff] }
  0x57   : > { %379 = vmatmul.mubr.f32.gmra.mrb[8].mxu0 %v158_v3  ;;  %519 = vmatmul.mubr.f32.gmra.mrb[8].mxu1 %v214_v4  ;;  %v190_v3 = vld [vmem:[%s911_s27 + $0x140] sm:$0xff] }
  0x58   : > { %383 = vmatprep.mubr.f32.mxu0 %v161_v5  ;;  %523 = vmatprep.mubr.f32.mxu1 %v217_v6  ;;  %v246_v4 = vld [vmem:[%s911_s27 + $0x300] sm:$0xff]  ;;  %v193_v5 = vld [vmem:[%s911_s27 + $0x158] sm:$0xff] }
  0x59   : > { %v249_v6 = vld [vmem:[%s911_s27 + $0x318] sm:$0xff] }
  0x5b   : > { %384 = vmatmul.mubr.f32.gmra.mrb[10].mxu0 %v160_v7  ;;  %524 = vmatmul.mubr.f32.gmra.mrb[10].mxu1 %v216_v8  ;;  %v192_v7 = vld [vmem:[%s911_s27 + $0x150] sm:$0xff] }
  0x5c   : > { %388 = vmatprep.mubr.f32.mxu0 %v163_v9  ;;  %528 = vmatprep.mubr.f32.mxu1 %v219_v10  ;;  %v248_v8 = vld [vmem:[%s911_s27 + $0x310] sm:$0xff]  ;;  %v195_v9 = vld [vmem:[%s911_s27 + $0x168] sm:$0xff] }
  0x5d   : > { %v251_v10 = vld [vmem:[%s911_s27 + $0x328] sm:$0xff] }
  0x5f   : > { %389 = vmatmul.mubr.f32.gmra.mrb[12].mxu0 %v162_v11  ;;  %529 = vmatmul.mubr.f32.gmra.mrb[12].mxu1 %v218_v12  ;;  %v194_v11 = vld [vmem:[%s911_s27 + $0x160] sm:$0xff] }
  0x60   : > { %393 = vmatprep.mubr.f32.mxu0 %v165_v13  ;;  %533 = vmatprep.mubr.f32.mxu1 %v221_v14  ;;  %v250_v12 = vld [vmem:[%s911_s27 + $0x320] sm:$0xff]  ;;  %v197_v13 = vld [vmem:[%s911_s27 + $0x178] sm:$0xff] }
  0x61   : > { %v253_v14 = vld [vmem:[%s911_s27 + $0x338] sm:$0xff] }
  0x63   : > { %394 = vmatmul.mubr.f32.gmra.mrb[14].mxu0 %v164_v15  ;;  %534 = vmatmul.mubr.f32.gmra.mrb[14].mxu1 %v220_v16  ;;  %v196_v15 = vld [vmem:[%s911_s27 + $0x170] sm:$0xff] }
  0x64   : > { %398 = vmatprep.mubr.f32.mxu0 %v167_v17  ;;  %538 = vmatprep.mubr.f32.mxu1 %v223_v18  ;;  %v252_v16 = vld [vmem:[%s911_s27 + $0x330] sm:$0xff]  ;;  %v199_v17 = vld [vmem:[%s911_s27 + $0x188] sm:$0xff] }
  0x65   : > { %v255_v18 = vld [vmem:[%s911_s27 + $0x348] sm:$0xff] }
  0x67   : > { %399 = vmatmul.mubr.f32.gmra.mrb[16].mxu0 %v166_v19  ;;  %539 = vmatmul.mubr.f32.gmra.mrb[16].mxu1 %v222_v20  ;;  %v198_v19 = vld [vmem:[%s911_s27 + $0x180] sm:$0xff] }
  0x68   : > { %403 = vmatprep.mubr.f32.mxu0 %v169_v21  ;;  %543 = vmatprep.mubr.f32.mxu1 %v225_v22  ;;  %v254_v20 = vld [vmem:[%s911_s27 + $0x340] sm:$0xff]  ;;  %v201_v21 = vld [vmem:[%s911_s27 + $0x198] sm:$0xff] }
  0x69   : > { %v257_v22 = vld [vmem:[%s911_s27 + $0x358] sm:$0xff] }
  0x6b   : > { %404 = vmatmul.mubr.f32.gmra.mrb[18].mxu0 %v168_v23  ;;  %544 = vmatmul.mubr.f32.gmra.mrb[18].mxu1 %v224_v24  ;;  %v200_v23 = vld [vmem:[%s911_s27 + $0x190] sm:$0xff] }
  0x6c   : > { %408 = vmatprep.mubr.f32.mxu0 %v171_v25  ;;  %548 = vmatprep.mubr.f32.mxu1 %v227_v26  ;;  %v256_v24 = vld [vmem:[%s911_s27 + $0x350] sm:$0xff]  ;;  %v203_v25 = vld [vmem:[%s911_s27 + $0x1a8] sm:$0xff] }
  0x6d   : > { %v259_v26 = vld [vmem:[%s911_s27 + $0x368] sm:$0xff] }
  0x6f   : > { %409 = vmatmul.mubr.f32.gmra.mrb[20].mxu0 %v170_v27  ;;  %549 = vmatmul.mubr.f32.gmra.mrb[20].mxu1 %v226_v28  ;;  %v202_v27 = vld [vmem:[%s911_s27 + $0x1a0] sm:$0xff] }
  0x70   : > { %413 = vmatprep.mubr.f32.mxu0 %v173_v29  ;;  %553 = vmatprep.mubr.f32.mxu1 %v229_v30  ;;  %v258_v28 = vld [vmem:[%s911_s27 + $0x360] sm:$0xff]  ;;  %v205_v29 = vld [vmem:[%s911_s27 + $0x1b8] sm:$0xff] }
  0x71   : > { %v261_v30 = vld [vmem:[%s911_s27 + $0x378] sm:$0xff] }
  0x73   : > { %414 = vmatmul.mubr.f32.gmra.mrb[22].mxu0 %v172_v31  ;;  %554 = vmatmul.mubr.f32.gmra.mrb[22].mxu1 %v228_v32  ;;  %v204_v31 = vld [vmem:[%s911_s27 + $0x1b0] sm:$0xff] }
  0x74   : > { %418 = vmatprep.mubr.f32.mxu0 %v175_v33  ;;  %558 = vmatprep.mubr.f32.mxu1 %v231_v34  ;;  %v260_v32 = vld [vmem:[%s911_s27 + $0x370] sm:$0xff] }
  0x77   : > { %419 = vmatmul.mubr.f32.gmra.mrb[24].mxu0 %v174_v35  ;;  %559 = vmatmul.mubr.f32.gmra.mrb[24].mxu1 %v230_v36 }
  0x78   : > { %423 = vmatprep.mubr.f32.mxu0 %v177_v37  ;;  %563 = vmatprep.mubr.f32.mxu1 %v233_v38 }
  0x7b   : > { %424 = vmatmul.mubr.f32.gmra.mrb[26].mxu0 %v176_v39  ;;  %564 = vmatmul.mubr.f32.gmra.mrb[26].mxu1 %v232_v40 }
  0x7c   : > { %428 = vmatprep.mubr.f32.mxu0 %v179_v41  ;;  %568 = vmatprep.mubr.f32.mxu1 %v235_v42 }
  0x7f   : > { %429 = vmatmul.mubr.f32.gmra.mrb[28].mxu0 %v178_v43  ;;  %569 = vmatmul.mubr.f32.gmra.mrb[28].mxu1 %v234_v44 }
  0x80   : > { %433 = vmatprep.mubr.f32.mxu0 %v181_v45  ;;  %573 = vmatprep.mubr.f32.mxu1 %v237_v46 }
  0x83   : > { %434 = vmatmul.mubr.f32.gmra.mrb[30].mxu0 %v180_v47  ;;  %574 = vmatmul.mubr.f32.gmra.mrb[30].mxu1 %v236_v48 }
  0x84   : > { %438 = vmatprep.mubr.f32.mxu0 %v183_v49  ;;  %578 = vmatprep.mubr.f32.mxu1 %v239_v50 }
  0x87   : > { %439 = vmatmul.mubr.f32.gmra.mrb[32].mxu0 %v182_v51  ;;  %579 = vmatmul.mubr.f32.gmra.mrb[32].mxu1 %v238_v52 }
  0x88   : > { %443 = vmatprep.mubr.f32.mxu0 %v185_v53  ;;  %583 = vmatprep.mubr.f32.mxu1 %v241_v54 }
  0x8b   : > { %444 = vmatmul.mubr.f32.gmra.mrb[34].mxu0 %v184_v55  ;;  %584 = vmatmul.mubr.f32.gmra.mrb[34].mxu1 %v240_v56 }
  0x8c   : > { %448 = vmatprep.mubr.f32.mxu0 %v187_v57  ;;  %588 = vmatprep.mubr.f32.mxu1 %v243_v58 }
  0x8f   : > { %449 = vmatmul.mubr.f32.gmra.mrb[36].mxu0 %v186_v59  ;;  %589 = vmatmul.mubr.f32.gmra.mrb[36].mxu1 %v242_v60 }
  0x90   : > { %453 = vmatprep.mubr.f32.mxu0 %v189_v61  ;;  %593 = vmatprep.mubr.f32.mxu1 %v245_v62 }
  0x93   : > { %454 = vmatmul.mubr.f32.gmra.mrb[38].mxu0 %v188_v63  ;;  %594 = vmatmul.mubr.f32.gmra.mrb[38].mxu1 %v244_v0 }
  0x94   : > { %458 = vmatprep.mubr.f32.mxu0 %v191_v1  ;;  %598 = vmatprep.mubr.f32.mxu1 %v247_v2 }
  0x97   : > { %459 = vmatmul.mubr.f32.gmra.mrb[40].mxu0 %v190_v3  ;;  %599 = vmatmul.mubr.f32.gmra.mrb[40].mxu1 %v246_v4 }
  0x98   : > { %463 = vmatprep.mubr.f32.mxu0 %v193_v5  ;;  %603 = vmatprep.mubr.f32.mxu1 %v249_v6 }
  0x9b   : > { %464 = vmatmul.mubr.f32.gmra.mrb[42].mxu0 %v192_v7  ;;  %604 = vmatmul.mubr.f32.gmra.mrb[42].mxu1 %v248_v8 }
  0x9c   : > { %468 = vmatprep.mubr.f32.mxu0 %v195_v9  ;;  %608 = vmatprep.mubr.f32.mxu1 %v251_v10 }
  0x9f   : > { %469 = vmatmul.mubr.f32.gmra.mrb[44].mxu0 %v194_v11  ;;  %609 = vmatmul.mubr.f32.gmra.mrb[44].mxu1 %v250_v12 }
  0xa0   : > { %473 = vmatprep.mubr.f32.mxu0 %v197_v13  ;;  %613 = vmatprep.mubr.f32.mxu1 %v253_v14 }
  0xa3   : > { %474 = vmatmul.mubr.f32.gmra.mrb[46].mxu0 %v196_v15  ;;  %614 = vmatmul.mubr.f32.gmra.mrb[46].mxu1 %v252_v16 }
  0xa4   : > { %478 = vmatprep.mubr.f32.mxu0 %v199_v17  ;;  %618 = vmatprep.mubr.f32.mxu1 %v255_v18 }
  0xa7   : > { %479 = vmatmul.mubr.f32.gmra.mrb[48].mxu0 %v198_v19  ;;  %619 = vmatmul.mubr.f32.gmra.mrb[48].mxu1 %v254_v20 }
  0xa8   : > { %483 = vmatprep.mubr.f32.mxu0 %v201_v21  ;;  %623 = vmatprep.mubr.f32.mxu1 %v257_v22 }
  0xab   : > { %484 = vmatmul.mubr.f32.gmra.mrb[50].mxu0 %v200_v23  ;;  %624 = vmatmul.mubr.f32.gmra.mrb[50].mxu1 %v256_v24 }
  0xac   : > { %488 = vmatprep.mubr.f32.mxu0 %v203_v25  ;;  %628 = vmatprep.mubr.f32.mxu1 %v259_v26 }
  0xaf   : > { %489 = vmatmul.mubr.f32.gmra.mrb[52].mxu0 %v202_v27  ;;  %629 = vmatmul.mubr.f32.gmra.mrb[52].mxu1 %v258_v28 }
  0xb0   : > { %493 = vmatprep.mubr.f32.mxu0 %v205_v29  ;;  %633 = vmatprep.mubr.f32.mxu1 %v261_v30 }
  0xb3   : > { %494 = vmatmul.mubr.f32.gmra.mrb[54].mxu0 %v204_v31  ;;  %634 = vmatmul.mubr.f32.gmra.mrb[54].mxu1 %v260_v32 }
 0x11a   : > { %v360_v33 = vpop.f32.mrb[0].mxu0  ;;  %v500_v34 = vpop.f32.mrb[0].mxu1 }
 0x11b   : > { %639 = vst [vmem:[%s1135_s5] sm:$0xff] %v360_v33  ;;  %667 = vst [vmem:[%s1135_s5 + $0xe0] sm:$0xff] %v500_v34  ;;  %v362_v35 = vpop.f32.mrb[1].mxu0  ;;  %v502_v36 = vpop.f32.mrb[1].mxu1 }
 0x11e   : > { %v365_v37 = vpop.f32.mrb[2].mxu0  ;;  %v505_v38 = vpop.f32.mrb[2].mxu1 }
 0x11f   : > { %640 = vst [vmem:[%s1135_s5 + $0x8] sm:$0xff] %v365_v37  ;;  %668 = vst [vmem:[%s1135_s5 + $0xe8] sm:$0xff] %v505_v38  ;;  %v367_v39 = vpop.f32.mrb[3].mxu0  ;;  %v507_v40 = vpop.f32.mrb[3].mxu1 }
 0x122   : > { %v370_v41 = vpop.f32.mrb[4].mxu0  ;;  %v510_v42 = vpop.f32.mrb[4].mxu1 }
 0x123   : > { %641 = vst [vmem:[%s1135_s5 + $0x10] sm:$0xff] %v370_v41  ;;  %669 = vst [vmem:[%s1135_s5 + $0xf0] sm:$0xff] %v510_v42  ;;  %v372_v43 = vpop.f32.mrb[5].mxu0  ;;  %v512_v44 = vpop.f32.mrb[5].mxu1 }
 0x126   : > { %v375_v45 = vpop.f32.mrb[6].mxu0  ;;  %v515_v46 = vpop.f32.mrb[6].mxu1 }
 0x127   : > { %642 = vst [vmem:[%s1135_s5 + $0x18] sm:$0xff] %v375_v45  ;;  %670 = vst [vmem:[%s1135_s5 + $0xf8] sm:$0xff] %v515_v46  ;;  %v377_v47 = vpop.f32.mrb[7].mxu0  ;;  %v517_v48 = vpop.f32.mrb[7].mxu1 }
 0x12a   : > { %v380_v49 = vpop.f32.mrb[8].mxu0  ;;  %v520_v50 = vpop.f32.mrb[8].mxu1 }
 0x12b   : > { %643 = vst [vmem:[%s1135_s5 + $0x20] sm:$0xff] %v380_v49  ;;  %671 = vst [vmem:[%s1135_s5 + $0x100] sm:$0xff] %v520_v50  ;;  %v382_v51 = vpop.f32.mrb[9].mxu0  ;;  %v522_v52 = vpop.f32.mrb[9].mxu1 }
 0x12e   : > { %v385_v53 = vpop.f32.mrb[10].mxu0  ;;  %v525_v54 = vpop.f32.mrb[10].mxu1 }
 0x12f   : > { %644 = vst [vmem:[%s1135_s5 + $0x28] sm:$0xff] %v385_v53  ;;  %672 = vst [vmem:[%s1135_s5 + $0x108] sm:$0xff] %v525_v54  ;;  %v387_v55 = vpop.f32.mrb[11].mxu0  ;;  %v527_v56 = vpop.f32.mrb[11].mxu1 }
 0x132   : > { %v390_v57 = vpop.f32.mrb[12].mxu0  ;;  %v530_v58 = vpop.f32.mrb[12].mxu1 }
 0x133   : > { %645 = vst [vmem:[%s1135_s5 + $0x30] sm:$0xff] %v390_v57  ;;  %673 = vst [vmem:[%s1135_s5 + $0x110] sm:$0xff] %v530_v58  ;;  %v392_v59 = vpop.f32.mrb[13].mxu0  ;;  %v532_v60 = vpop.f32.mrb[13].mxu1 }
 0x136   : > { %v395_v61 = vpop.f32.mrb[14].mxu0  ;;  %v535_v62 = vpop.f32.mrb[14].mxu1 }
 0x137   : > { %646 = vst [vmem:[%s1135_s5 + $0x38] sm:$0xff] %v395_v61  ;;  %674 = vst [vmem:[%s1135_s5 + $0x118] sm:$0xff] %v535_v62  ;;  %v397_v63 = vpop.f32.mrb[15].mxu0  ;;  %v537_v0 = vpop.f32.mrb[15].mxu1 }
 0x13a   : > { %v400_v1 = vpop.f32.mrb[16].mxu0  ;;  %v540_v2 = vpop.f32.mrb[16].mxu1 }
 0x13b   : > { %647 = vst [vmem:[%s1135_s5 + $0x40] sm:$0xff] %v400_v1  ;;  %675 = vst [vmem:[%s1135_s5 + $0x120] sm:$0xff] %v540_v2  ;;  %v402_v3 = vpop.f32.mrb[17].mxu0  ;;  %v542_v4 = vpop.f32.mrb[17].mxu1 }
 0x13e   : > { %v405_v5 = vpop.f32.mrb[18].mxu0  ;;  %v545_v6 = vpop.f32.mrb[18].mxu1 }
 0x13f   : > { %648 = vst [vmem:[%s1135_s5 + $0x48] sm:$0xff] %v405_v5  ;;  %676 = vst [vmem:[%s1135_s5 + $0x128] sm:$0xff] %v545_v6  ;;  %v407_v7 = vpop.f32.mrb[19].mxu0  ;;  %v547_v8 = vpop.f32.mrb[19].mxu1 }
 0x142   : > { %v410_v9 = vpop.f32.mrb[20].mxu0  ;;  %v550_v10 = vpop.f32.mrb[20].mxu1 }
 0x143   : > { %649 = vst [vmem:[%s1135_s5 + $0x50] sm:$0xff] %v410_v9  ;;  %677 = vst [vmem:[%s1135_s5 + $0x130] sm:$0xff] %v550_v10  ;;  %v412_v11 = vpop.f32.mrb[21].mxu0  ;;  %v552_v12 = vpop.f32.mrb[21].mxu1 }
 0x146   : > { %v415_v13 = vpop.f32.mrb[22].mxu0  ;;  %v555_v14 = vpop.f32.mrb[22].mxu1 }
 0x147   : > { %650 = vst [vmem:[%s1135_s5 + $0x58] sm:$0xff] %v415_v13  ;;  %678 = vst [vmem:[%s1135_s5 + $0x138] sm:$0xff] %v555_v14  ;;  %v417_v15 = vpop.f32.mrb[23].mxu0  ;;  %v557_v16 = vpop.f32.mrb[23].mxu1 }
 0x14a   : > { %v420_v17 = vpop.f32.mrb[24].mxu0  ;;  %v560_v18 = vpop.f32.mrb[24].mxu1 }
 0x14b   : > { %651 = vst [vmem:[%s1135_s5 + $0x60] sm:$0xff] %v420_v17  ;;  %679 = vst [vmem:[%s1135_s5 + $0x140] sm:$0xff] %v560_v18  ;;  %v422_v19 = vpop.f32.mrb[25].mxu0  ;;  %v562_v20 = vpop.f32.mrb[25].mxu1 }
 0x14e   : > { %v425_v21 = vpop.f32.mrb[26].mxu0  ;;  %v565_v22 = vpop.f32.mrb[26].mxu1 }
 0x14f   : > { %652 = vst [vmem:[%s1135_s5 + $0x68] sm:$0xff] %v425_v21  ;;  %680 = vst [vmem:[%s1135_s5 + $0x148] sm:$0xff] %v565_v22  ;;  %v427_v23 = vpop.f32.mrb[27].mxu0  ;;  %v567_v24 = vpop.f32.mrb[27].mxu1 }
 0x152   : > { %v430_v25 = vpop.f32.mrb[28].mxu0  ;;  %v570_v26 = vpop.f32.mrb[28].mxu1 }
 0x153   : > { %653 = vst [vmem:[%s1135_s5 + $0x70] sm:$0xff] %v430_v25  ;;  %681 = vst [vmem:[%s1135_s5 + $0x150] sm:$0xff] %v570_v26  ;;  %v432_v27 = vpop.f32.mrb[29].mxu0  ;;  %v572_v28 = vpop.f32.mrb[29].mxu1 }
 0x156   : > { %v435_v29 = vpop.f32.mrb[30].mxu0  ;;  %v575_v30 = vpop.f32.mrb[30].mxu1 }
 0x157   : > { %654 = vst [vmem:[%s1135_s5 + $0x78] sm:$0xff] %v435_v29  ;;  %682 = vst [vmem:[%s1135_s5 + $0x158] sm:$0xff] %v575_v30  ;;  %v437_v31 = vpop.f32.mrb[31].mxu0  ;;  %v577_v32 = vpop.f32.mrb[31].mxu1 }
 0x15a   : > { %v440_v33 = vpop.f32.mrb[32].mxu0  ;;  %v580_v34 = vpop.f32.mrb[32].mxu1 }
 0x15b   : > { %655 = vst [vmem:[%s1135_s5 + $0x80] sm:$0xff] %v440_v33  ;;  %683 = vst [vmem:[%s1135_s5 + $0x160] sm:$0xff] %v580_v34  ;;  %v442_v35 = vpop.f32.mrb[33].mxu0  ;;  %v582_v36 = vpop.f32.mrb[33].mxu1 }
 0x15e   : > { %v445_v37 = vpop.f32.mrb[34].mxu0  ;;  %v585_v38 = vpop.f32.mrb[34].mxu1 }
 0x15f   : > { %656 = vst [vmem:[%s1135_s5 + $0x88] sm:$0xff] %v445_v37  ;;  %684 = vst [vmem:[%s1135_s5 + $0x168] sm:$0xff] %v585_v38  ;;  %v447_v39 = vpop.f32.mrb[35].mxu0  ;;  %v587_v40 = vpop.f32.mrb[35].mxu1 }
 0x162   : > { %v450_v41 = vpop.f32.mrb[36].mxu0  ;;  %v590_v42 = vpop.f32.mrb[36].mxu1 }
 0x163   : > { %657 = vst [vmem:[%s1135_s5 + $0x90] sm:$0xff] %v450_v41  ;;  %685 = vst [vmem:[%s1135_s5 + $0x170] sm:$0xff] %v590_v42  ;;  %v452_v43 = vpop.f32.mrb[37].mxu0  ;;  %v592_v44 = vpop.f32.mrb[37].mxu1 }
 0x166   : > { %v455_v45 = vpop.f32.mrb[38].mxu0  ;;  %v595_v46 = vpop.f32.mrb[38].mxu1 }
 0x167   : > { %658 = vst [vmem:[%s1135_s5 + $0x98] sm:$0xff] %v455_v45  ;;  %686 = vst [vmem:[%s1135_s5 + $0x178] sm:$0xff] %v595_v46  ;;  %v457_v47 = vpop.f32.mrb[39].mxu0  ;;  %v597_v48 = vpop.f32.mrb[39].mxu1 }
 0x16a   : > { %v460_v49 = vpop.f32.mrb[40].mxu0  ;;  %v600_v50 = vpop.f32.mrb[40].mxu1 }
 0x16b   : > { %659 = vst [vmem:[%s1135_s5 + $0xa0] sm:$0xff] %v460_v49  ;;  %687 = vst [vmem:[%s1135_s5 + $0x180] sm:$0xff] %v600_v50  ;;  %v462_v51 = vpop.f32.mrb[41].mxu0  ;;  %v602_v52 = vpop.f32.mrb[41].mxu1 }
 0x16e   : > { %v465_v53 = vpop.f32.mrb[42].mxu0  ;;  %v605_v54 = vpop.f32.mrb[42].mxu1 }
 0x16f   : > { %660 = vst [vmem:[%s1135_s5 + $0xa8] sm:$0xff] %v465_v53  ;;  %688 = vst [vmem:[%s1135_s5 + $0x188] sm:$0xff] %v605_v54  ;;  %v467_v55 = vpop.f32.mrb[43].mxu0  ;;  %v607_v56 = vpop.f32.mrb[43].mxu1 }
 0x172   : > { %v470_v57 = vpop.f32.mrb[44].mxu0  ;;  %v610_v58 = vpop.f32.mrb[44].mxu1 }
 0x173   : > { %661 = vst [vmem:[%s1135_s5 + $0xb0] sm:$0xff] %v470_v57  ;;  %689 = vst [vmem:[%s1135_s5 + $0x190] sm:$0xff] %v610_v58  ;;  %v472_v59 = vpop.f32.mrb[45].mxu0  ;;  %v612_v60 = vpop.f32.mrb[45].mxu1 }
 0x176   : > { %v475_v61 = vpop.f32.mrb[46].mxu0  ;;  %v615_v62 = vpop.f32.mrb[46].mxu1 }
 0x177   : > { %662 = vst [vmem:[%s1135_s5 + $0xb8] sm:$0xff] %v475_v61  ;;  %690 = vst [vmem:[%s1135_s5 + $0x198] sm:$0xff] %v615_v62  ;;  %v477_v63 = vpop.f32.mrb[47].mxu0  ;;  %v617_v0 = vpop.f32.mrb[47].mxu1 }
 0x17a   : > { %v480_v1 = vpop.f32.mrb[48].mxu0  ;;  %v620_v2 = vpop.f32.mrb[48].mxu1 }
 0x17b   : > { %663 = vst [vmem:[%s1135_s5 + $0xc0] sm:$0xff] %v480_v1  ;;  %691 = vst [vmem:[%s1135_s5 + $0x1a0] sm:$0xff] %v620_v2  ;;  %v482_v3 = vpop.f32.mrb[49].mxu0  ;;  %v622_v4 = vpop.f32.mrb[49].mxu1 }
 0x17e   : > { %v485_v5 = vpop.f32.mrb[50].mxu0  ;;  %v625_v6 = vpop.f32.mrb[50].mxu1 }
 0x17f   : > { %664 = vst [vmem:[%s1135_s5 + $0xc8] sm:$0xff] %v485_v5  ;;  %692 = vst [vmem:[%s1135_s5 + $0x1a8] sm:$0xff] %v625_v6  ;;  %v487_v7 = vpop.f32.mrb[51].mxu0  ;;  %v627_v8 = vpop.f32.mrb[51].mxu1 }
 0x182   : > { %v490_v9 = vpop.f32.mrb[52].mxu0  ;;  %v630_v10 = vpop.f32.mrb[52].mxu1 }
 0x183   : > { %665 = vst [vmem:[%s1135_s5 + $0xd0] sm:$0xff] %v490_v9  ;;  %693 = vst [vmem:[%s1135_s5 + $0x1b0] sm:$0xff] %v630_v10  ;;  %v492_v11 = vpop.f32.mrb[53].mxu0  ;;  %v632_v12 = vpop.f32.mrb[53].mxu1 }
 0x186   : > { %v495_v13 = vpop.f32.mrb[54].mxu0  ;;  %v635_v14 = vpop.f32.mrb[54].mxu1 }
 0x187   : > { %666 = vst [vmem:[%s1135_s5 + $0xd8] sm:$0xff] %v495_v13  ;;  %694 = vst [vmem:[%s1135_s5 + $0x1b8] sm:$0xff] %v635_v14  ;;  %v497_v15 = vpop.f32.mrb[55].mxu0  ;;  %v637_v16 = vpop.f32.mrb[55].mxu1 }
 0x188 PF: > { %s12_s9 = sadd.s32 1, %s857_s9  }
 0x189   : > { %p9_p4 = scmp.ge.s32.totalorder %s12_s9, 16  }
 0x18b   :  { %11 = sbr.rel (!%p9_p4) target bundleno = 1 (0x1), region = 58 }

// kernel: densenet_forward_pallas.25
= control target key start
LH: loop header
LB: loop body
LE: loop exit
PB: predicated region body
PF: predicated region fallthrough
CT: control target
= control target key end

     0   :  { %s853_s12 = smov 0   ;;  %s1321_s0 = inlined_call_operand.vmem [shape: f32[6272,128], index: 0, kind: input, shape index: {}]   ;;  %s1322_s1 = inlined_call_operand.vmem [shape: f32[1,128], index: 1, kind: input, shape index: {}]   ;;  %s1323_s2 = inlined_call_operand.vmem [shape: f32[1,128], index: 2, kind: input, shape index: {}]   ;;  %s1324_s3 = inlined_call_operand.vmem [shape: f32[6272,128], index: 3, kind: output, shape index: {}]  }
   0x1 LB: > { %s804_s13 = sadd.s32 4294967295, %s831_s12   ;;  %p808_p0 = scmp.ge.s32.totalorder %s831_s12, 1  ;;  %s831_s12 = sphi %s853_s12, %s13_s12  }
   0x2   : > { %p138_p1 = scmp.lt.s32.totalorder %s831_s12, 8 }
   0x4   : > { %p139_p2 = pnand %p808_p0, %p138_p1 }
   0x5   : > { %s162_s14 = smul.u32 (!%p139_p2), 112, %s804_s13  ;;  %v864_v0 = vld [vmem:[%s1322_s1] ss:$0 sm:$0xff] (!%p139_p2) }
   0x6   : > { %142 = sbr.rel (%p139_p2) target bundleno = 106 (0x6a), region = 32  ;;  %v874_v1 = vld [vmem:[%s1323_s2] ss:$0 sm:$0xff] (!%p139_p2) }
   0x7   : > { %p163_p3 = scmp.lt.s32.totalorder (!%p139_p2), %s162_s14, 783 }
   0xd   : > { %s1326_s14 = smov (!%p163_p3, %s162_s14), 783 }
   0xe   : > { %s809_s15 = sshll.u32 %s1326_s14, 3 }
   0xf   : > { %s869_s20 = scalar_lea.vmem %s1321_s0, %s809_s15  ;;  %s897_s25 = scalar_lea.vmem %s1324_s3, %s809_s15 }
  0x10   : > { %v174_v2 = vld [vmem:[%s869_s20] sm:$0xff]  ;;  %v175_v3 = vld [vmem:[%s869_s20 + $0x8] sm:$0xff]  ;;  %v176_v4 = vld [vmem:[%s869_s20 + $0x10] sm:$0xff] }
  0x11   : > { %v293_v5 = vmul.f32 %v864_v0, %v174_v2  ;;  %v294_v6 = vmul.f32 %v864_v0, %v175_v3  ;;  %v295_v7 = vmul.f32 %v864_v0, %v176_v4  ;;  %v177_v8 = vld [vmem:[%s869_s20 + $0x18] sm:$0xff]  ;;  %v178_v9 = vld [vmem:[%s869_s20 + $0x20] sm:$0xff]  ;;  %v179_v10 = vld [vmem:[%s869_s20 + $0x28] sm:$0xff] }
  0x12   : > { %v296_v11 = vmul.f32 %v864_v0, %v177_v8  ;;  %v297_v12 = vmul.f32 %v864_v0, %v178_v9  ;;  %v298_v13 = vmul.f32 %v864_v0, %v179_v10  ;;  %v180_v14 = vld [vmem:[%s869_s20 + $0x30] sm:$0xff]  ;;  %v181_v15 = vld [vmem:[%s869_s20 + $0x38] sm:$0xff]  ;;  %v182_v24 = vld [vmem:[%s869_s20 + $0x40] sm:$0xff] }
  0x13   : > { %v412_v16 = vadd.f32 %v874_v1, %v293_v5  ;;  %v413_v17 = vadd.f32 %v874_v1, %v294_v6  ;;  %v414_v18 = vadd.f32 %v874_v1, %v295_v7  ;;  %v299_v19 = vmul.f32 %v864_v0, %v180_v14  ;;  %v183_v25 = vld [vmem:[%s869_s20 + $0x48] sm:$0xff]  ;;  %v184_v26 = vld [vmem:[%s869_s20 + $0x50] sm:$0xff]  ;;  %v185_v31 = vld [vmem:[%s869_s20 + $0x58] sm:$0xff] }
  0x14   : > { %v415_v20 = vadd.f32 %v874_v1, %v296_v11  ;;  %v416_v21 = vadd.f32 %v874_v1, %v297_v12  ;;  %v417_v22 = vadd.f32 %v874_v1, %v298_v13  ;;  %v300_v23 = vmul.f32 %v864_v0, %v181_v15  ;;  %v186_v32 = vld [vmem:[%s869_s20 + $0x60] sm:$0xff]  ;;  %v187_v33 = vld [vmem:[%s869_s20 + $0x68] sm:$0xff]  ;;  %v188_v38 = vld [vmem:[%s869_s20 + $0x70] sm:$0xff] }
  0x15   : > { %v524_v27 = vmax.f32 %v412_v16, 0.0  ;;  %v525_v28 = vmax.f32 %v413_v17, 0.0  ;;  %v526_v29 = vmax.f32 %v414_v18, 0.0  ;;  %v418_v30 = vadd.f32 %v874_v1, %v299_v19  ;;  %v189_v43 = vld [vmem:[%s869_s20 + $0x78] sm:$0xff]  ;;  %v190_v56 = vld [vmem:[%s869_s20 + $0x80] sm:$0xff]  ;;  %v191_v57 = vld [vmem:[%s869_s20 + $0x88] sm:$0xff] }
  0x16   : > { %v527_v34 = vmax.f32 %v415_v20, 0.0  ;;  %v528_v35 = vmax.f32 %v416_v21, 0.0  ;;  %v529_v36 = vmax.f32 %v417_v22, 0.0  ;;  %v419_v37 = vadd.f32 %v874_v1, %v300_v23  ;;  %v192_v58 = vld [vmem:[%s869_s20 + $0x90] sm:$0xff]  ;;  %v193_v63 = vld [vmem:[%s869_s20 + $0x98] sm:$0xff]  ;;  %v194_v2 = vld [vmem:[%s869_s20 + $0xa0] sm:$0xff] }
  0x17   : > { %636 = vst [vmem:[%s897_s25] sm:$0xff] %v524_v27  ;;  %637 = vst [vmem:[%s897_s25 + $0x8] sm:$0xff] %v525_v28  ;;  %v530_v39 = vmax.f32 %v418_v30, 0.0  ;;  %v301_v40 = vmul.f32 %v864_v0, %v182_v24  ;;  %v302_v41 = vmul.f32 %v864_v0, %v183_v25  ;;  %v303_v42 = vmul.f32 %v864_v0, %v184_v26  ;;  %v195_v3 = vld [vmem:[%s869_s20 + $0xa8] sm:$0xff]  ;;  %v196_v8 = vld [vmem:[%s869_s20 + $0xb0] sm:$0xff] }
  0x18   : > { %638 = vst [vmem:[%s897_s25 + $0x10] sm:$0xff] %v526_v29  ;;  %639 = vst [vmem:[%s897_s25 + $0x18] sm:$0xff] %v527_v34  ;;  %v531_v44 = vmax.f32 %v419_v37, 0.0  ;;  %v304_v45 = vmul.f32 %v864_v0, %v185_v31  ;;  %v305_v46 = vmul.f32 %v864_v0, %v186_v32  ;;  %v306_v47 = vmul.f32 %v864_v0, %v187_v33  ;;  %v197_v13 = vld [vmem:[%s869_s20 + $0xb8] sm:$0xff]  ;;  %v198_v26 = vld [vmem:[%s869_s20 + $0xc0] sm:$0xff] }
  0x19   : > { %640 = vst [vmem:[%s897_s25 + $0x20] sm:$0xff] %v528_v35  ;;  %641 = vst [vmem:[%s897_s25 + $0x28] sm:$0xff] %v529_v36  ;;  %v420_v48 = vadd.f32 %v874_v1, %v301_v40  ;;  %v421_v49 = vadd.f32 %v874_v1, %v302_v41  ;;  %v422_v50 = vadd.f32 %v874_v1, %v303_v42  ;;  %v199_v27 = vld [vmem:[%s869_s20 + $0xc8] sm:$0xff]  ;;  %v200_v28 = vld [vmem:[%s869_s20 + $0xd0] sm:$0xff] }
  0x1a   : > { %642 = vst [vmem:[%s897_s25 + $0x30] sm:$0xff] %v530_v39  ;;  %v307_v51 = vmul.f32 %v864_v0, %v188_v38  ;;  %643 = vst [vmem:[%s897_s25 + $0x38] sm:$0xff] %v531_v44  ;;  %v423_v52 = vadd.f32 %v874_v1, %v304_v45  ;;  %v424_v53 = vadd.f32 %v874_v1, %v305_v46  ;;  %v201_v33 = vld [vmem:[%s869_s20 + $0xd8] sm:$0xff]  ;;  %v202_v34 = vld [vmem:[%s869_s20 + $0xe0] sm:$0xff] }
  0x1b   : > { %v425_v54 = vadd.f32 %v874_v1, %v306_v47  ;;  %v308_v55 = vmul.f32 %v864_v0, %v189_v43  ;;  %v532_v59 = vmax.f32 %v420_v48, 0.0  ;;  %v533_v60 = vmax.f32 %v421_v49, 0.0  ;;  %v203_v35 = vld [vmem:[%s869_s20 + $0xe8] sm:$0xff]  ;;  %v204_v40 = vld [vmem:[%s869_s20 + $0xf0] sm:$0xff]  ;;  %v205_v45 = vld [vmem:[%s869_s20 + $0xf8] sm:$0xff] }
  0x1c   : > { %v534_v61 = vmax.f32 %v422_v50, 0.0  ;;  %v426_v62 = vadd.f32 %v874_v1, %v307_v51  ;;  %v535_v4 = vmax.f32 %v423_v52, 0.0  ;;  %v536_v5 = vmax.f32 %v424_v53, 0.0 }
  0x1d   : > { %v537_v6 = vmax.f32 %v425_v54, 0.0  ;;  %v427_v7 = vadd.f32 %v874_v1, %v308_v55  ;;  %644 = vst [vmem:[%s897_s25 + $0x40] sm:$0xff] %v532_v59  ;;  %645 = vst [vmem:[%s897_s25 + $0x48] sm:$0xff] %v533_v60  ;;  %v309_v10 = vmul.f32 %v864_v0, %v190_v56  ;;  %v310_v11 = vmul.f32 %v864_v0, %v191_v57  ;;  %v207_v59 = vld [vmem:[%s869_s20 + $0x108] sm:$0xff]  ;;  %v208_v60 = vld [vmem:[%s869_s20 + $0x110] sm:$0xff] }
  0x1e   : > { %646 = vst [vmem:[%s897_s25 + $0x50] sm:$0xff] %v534_v61  ;;  %v538_v9 = vmax.f32 %v426_v62, 0.0  ;;  %v311_v12 = vmul.f32 %v864_v0, %v192_v58  ;;  %647 = vst [vmem:[%s897_s25 + $0x58] sm:$0xff] %v535_v4  ;;  %v312_v15 = vmul.f32 %v864_v0, %v193_v63  ;;  %v313_v16 = vmul.f32 %v864_v0, %v194_v2  ;;  %v206_v58 = vld [vmem:[%s869_s20 + $0x100] sm:$0xff] }
  0x1f   : > { %648 = vst [vmem:[%s897_s25 + $0x60] sm:$0xff] %v536_v5  ;;  %649 = vst [vmem:[%s897_s25 + $0x68] sm:$0xff] %v537_v6  ;;  %v539_v14 = vmax.f32 %v427_v7, 0.0  ;;  %v314_v17 = vmul.f32 %v864_v0, %v195_v3  ;;  %v428_v18 = vadd.f32 %v874_v1, %v309_v10  ;;  %v429_v19 = vadd.f32 %v874_v1, %v310_v11  ;;  %v209_v3 = vld [vmem:[%s869_s20 + $0x118] sm:$0xff]  ;;  %v210_v4 = vld [vmem:[%s869_s20 + $0x120] sm:$0xff] }
  0x20   : > { %650 = vst [vmem:[%s897_s25 + $0x70] sm:$0xff] %v538_v9  ;;  %v430_v20 = vadd.f32 %v874_v1, %v311_v12  ;;  %v315_v21 = vmul.f32 %v864_v0, %v196_v8  ;;  %v431_v22 = vadd.f32 %v874_v1, %v312_v15  ;;  %v432_v23 = vadd.f32 %v874_v1, %v313_v16  ;;  %v211_v5 = vld [vmem:[%s869_s20 + $0x128] sm:$0xff]  ;;  %v212_v10 = vld [vmem:[%s869_s20 + $0x130] sm:$0xff]  ;;  %v213_v15 = vld [vmem:[%s869_s20 + $0x138] sm:$0xff] }
  0x21   : > { %651 = vst [vmem:[%s897_s25 + $0x78] sm:$0xff] %v539_v14  ;;  %v433_v24 = vadd.f32 %v874_v1, %v314_v17  ;;  %v316_v25 = vmul.f32 %v864_v0, %v197_v13  ;;  %v540_v29 = vmax.f32 %v428_v18, 0.0  ;;  %v541_v30 = vmax.f32 %v429_v19, 0.0 }
  0x22   : > { %v542_v31 = vmax.f32 %v430_v20, 0.0  ;;  %v434_v32 = vadd.f32 %v874_v1, %v315_v21  ;;  %v543_v36 = vmax.f32 %v431_v22, 0.0  ;;  %v544_v37 = vmax.f32 %v432_v23, 0.0 }
  0x23   : > { %v545_v38 = vmax.f32 %v433_v24, 0.0  ;;  %v435_v39 = vadd.f32 %v874_v1, %v316_v25  ;;  %652 = vst [vmem:[%s897_s25 + $0x80] sm:$0xff] %v540_v29  ;;  %653 = vst [vmem:[%s897_s25 + $0x88] sm:$0xff] %v541_v30  ;;  %v317_v42 = vmul.f32 %v864_v0, %v198_v26  ;;  %v318_v43 = vmul.f32 %v864_v0, %v199_v27  ;;  %v215_v29 = vld [vmem:[%s869_s20 + $0x148] sm:$0xff]  ;;  %v216_v30 = vld [vmem:[%s869_s20 + $0x150] sm:$0xff] }
  0x24   : > { %654 = vst [vmem:[%s897_s25 + $0x90] sm:$0xff] %v542_v31  ;;  %v546_v41 = vmax.f32 %v434_v32, 0.0  ;;  %v319_v44 = vmul.f32 %v864_v0, %v200_v28  ;;  %655 = vst [vmem:[%s897_s25 + $0x98] sm:$0xff] %v543_v36  ;;  %v320_v47 = vmul.f32 %v864_v0, %v201_v33  ;;  %v321_v48 = vmul.f32 %v864_v0, %v202_v34  ;;  %v214_v28 = vld [vmem:[%s869_s20 + $0x140] sm:$0xff] }
  0x25   : > { %656 = vst [vmem:[%s897_s25 + $0xa0] sm:$0xff] %v544_v37  ;;  %657 = vst [vmem:[%s897_s25 + $0xa8] sm:$0xff] %v545_v38  ;;  %v547_v46 = vmax.f32 %v435_v39, 0.0  ;;  %v322_v49 = vmul.f32 %v864_v0, %v203_v35  ;;  %v436_v50 = vadd.f32 %v874_v1, %v317_v42  ;;  %v437_v51 = vadd.f32 %v874_v1, %v318_v43  ;;  %v217_v35 = vld [vmem:[%s869_s20 + $0x158] sm:$0xff]  ;;  %v218_v36 = vld [vmem:[%s869_s20 + $0x160] sm:$0xff] }
  0x26   : > { %658 = vst [vmem:[%s897_s25 + $0xb0] sm:$0xff] %v546_v41  ;;  %v438_v52 = vadd.f32 %v874_v1, %v319_v44  ;;  %v323_v53 = vmul.f32 %v864_v0, %v204_v40  ;;  %v439_v54 = vadd.f32 %v874_v1, %v320_v47  ;;  %v440_v55 = vadd.f32 %v874_v1, %v321_v48  ;;  %v219_v37 = vld [vmem:[%s869_s20 + $0x168] sm:$0xff]  ;;  %v220_v42 = vld [vmem:[%s869_s20 + $0x170] sm:$0xff]  ;;  %v221_v47 = vld [vmem:[%s869_s20 + $0x178] sm:$0xff] }
  0x27   : > { %659 = vst [vmem:[%s897_s25 + $0xb8] sm:$0xff] %v547_v46  ;;  %v441_v56 = vadd.f32 %v874_v1, %v322_v49  ;;  %v324_v57 = vmul.f32 %v864_v0, %v205_v45  ;;  %v548_v61 = vmax.f32 %v436_v50, 0.0  ;;  %v549_v62 = vmax.f32 %v437_v51, 0.0 }
  0x28   : > { %v550_v63 = vmax.f32 %v438_v52, 0.0  ;;  %v442_v2 = vadd.f32 %v874_v1, %v323_v53  ;;  %v551_v6 = vmax.f32 %v439_v54, 0.0  ;;  %v552_v7 = vmax.f32 %v440_v55, 0.0 }
  0x29   : > { %v553_v8 = vmax.f32 %v441_v56, 0.0  ;;  %v443_v9 = vadd.f32 %v874_v1, %v324_v57  ;;  %660 = vst [vmem:[%s897_s25 + $0xc0] sm:$0xff] %v548_v61  ;;  %661 = vst [vmem:[%s897_s25 + $0xc8] sm:$0xff] %v549_v62  ;;  %v325_v12 = vmul.f32 %v864_v0, %v206_v58  ;;  %v326_v13 = vmul.f32 %v864_v0, %v207_v59  ;;  %v223_v61 = vld [vmem:[%s869_s20 + $0x188] sm:$0xff]  ;;  %v224_v62 = vld [vmem:[%s869_s20 + $0x190] sm:$0xff] }
  0x2a   : > { %662 = vst [vmem:[%s897_s25 + $0xd0] sm:$0xff] %v550_v63  ;;  %v554_v11 = vmax.f32 %v442_v2, 0.0  ;;  %v327_v14 = vmul.f32 %v864_v0, %v208_v60  ;;  %663 = vst [vmem:[%s897_s25 + $0xd8] sm:$0xff] %v551_v6  ;;  %v328_v17 = vmul.f32 %v864_v0, %v209_v3  ;;  %v329_v18 = vmul.f32 %v864_v0, %v210_v4  ;;  %v222_v60 = vld [vmem:[%s869_s20 + $0x180] sm:$0xff] }
  0x2b   : > { %664 = vst [vmem:[%s897_s25 + $0xe0] sm:$0xff] %v552_v7  ;;  %665 = vst [vmem:[%s897_s25 + $0xe8] sm:$0xff] %v553_v8  ;;  %v555_v16 = vmax.f32 %v443_v9, 0.0  ;;  %v330_v19 = vmul.f32 %v864_v0, %v211_v5  ;;  %v444_v20 = vadd.f32 %v874_v1, %v325_v12  ;;  %v445_v21 = vadd.f32 %v874_v1, %v326_v13  ;;  %v225_v5 = vld [vmem:[%s869_s20 + $0x198] sm:$0xff]  ;;  %v226_v6 = vld [vmem:[%s869_s20 + $0x1a0] sm:$0xff] }
  0x2c   : > { %666 = vst [vmem:[%s897_s25 + $0xf0] sm:$0xff] %v554_v11  ;;  %v446_v22 = vadd.f32 %v874_v1, %v327_v14  ;;  %v331_v23 = vmul.f32 %v864_v0, %v212_v10  ;;  %v447_v24 = vadd.f32 %v874_v1, %v328_v17  ;;  %v448_v25 = vadd.f32 %v874_v1, %v329_v18  ;;  %v227_v7 = vld [vmem:[%s869_s20 + $0x1a8] sm:$0xff]  ;;  %v228_v12 = vld [vmem:[%s869_s20 + $0x1b0] sm:$0xff]  ;;  %v229_v17 = vld [vmem:[%s869_s20 + $0x1b8] sm:$0xff] }
  0x2d   : > { %667 = vst [vmem:[%s897_s25 + $0xf8] sm:$0xff] %v555_v16  ;;  %v449_v26 = vadd.f32 %v874_v1, %v330_v19  ;;  %v332_v27 = vmul.f32 %v864_v0, %v213_v15  ;;  %v556_v31 = vmax.f32 %v444_v20, 0.0  ;;  %v557_v32 = vmax.f32 %v445_v21, 0.0 }
  0x2e   : > { %v558_v33 = vmax.f32 %v446_v22, 0.0  ;;  %v450_v34 = vadd.f32 %v874_v1, %v331_v23  ;;  %v559_v38 = vmax.f32 %v447_v24, 0.0  ;;  %v560_v39 = vmax.f32 %v448_v25, 0.0 }
  0x2f   : > { %v561_v40 = vmax.f32 %v449_v26, 0.0  ;;  %v451_v41 = vadd.f32 %v874_v1, %v332_v27  ;;  %668 = vst [vmem:[%s897_s25 + $0x100] sm:$0xff] %v556_v31  ;;  %669 = vst [vmem:[%s897_s25 + $0x108] sm:$0xff] %v557_v32  ;;  %v333_v44 = vmul.f32 %v864_v0, %v214_v28  ;;  %v334_v45 = vmul.f32 %v864_v0, %v215_v29  ;;  %v231_v31 = vld [vmem:[%s869_s20 + $0x1c8] sm:$0xff]  ;;  %v232_v32 = vld [vmem:[%s869_s20 + $0x1d0] sm:$0xff] }
  0x30   : > { %670 = vst [vmem:[%s897_s25 + $0x110] sm:$0xff] %v558_v33  ;;  %v562_v43 = vmax.f32 %v450_v34, 0.0  ;;  %v335_v46 = vmul.f32 %v864_v0, %v216_v30  ;;  %671 = vst [vmem:[%s897_s25 + $0x118] sm:$0xff] %v559_v38  ;;  %v336_v49 = vmul.f32 %v864_v0, %v217_v35  ;;  %v337_v50 = vmul.f32 %v864_v0, %v218_v36  ;;  %v230_v30 = vld [vmem:[%s869_s20 + $0x1c0] sm:$0xff] }
  0x31   : > { %672 = vst [vmem:[%s897_s25 + $0x120] sm:$0xff] %v560_v39  ;;  %673 = vst [vmem:[%s897_s25 + $0x128] sm:$0xff] %v561_v40  ;;  %v563_v48 = vmax.f32 %v451_v41, 0.0  ;;  %v338_v51 = vmul.f32 %v864_v0, %v219_v37  ;;  %v452_v52 = vadd.f32 %v874_v1, %v333_v44  ;;  %v453_v53 = vadd.f32 %v874_v1, %v334_v45  ;;  %v233_v37 = vld [vmem:[%s869_s20 + $0x1d8] sm:$0xff]  ;;  %v234_v38 = vld [vmem:[%s869_s20 + $0x1e0] sm:$0xff] }
  0x32   : > { %674 = vst [vmem:[%s897_s25 + $0x130] sm:$0xff] %v562_v43  ;;  %v454_v54 = vadd.f32 %v874_v1, %v335_v46  ;;  %v339_v55 = vmul.f32 %v864_v0, %v220_v42  ;;  %v455_v56 = vadd.f32 %v874_v1, %v336_v49  ;;  %v456_v57 = vadd.f32 %v874_v1, %v337_v50  ;;  %v235_v39 = vld [vmem:[%s869_s20 + $0x1e8] sm:$0xff]  ;;  %v236_v44 = vld [vmem:[%s869_s20 + $0x1f0] sm:$0xff]  ;;  %v237_v49 = vld [vmem:[%s869_s20 + $0x1f8] sm:$0xff] }
  0x33   : > { %675 = vst [vmem:[%s897_s25 + $0x138] sm:$0xff] %v563_v48  ;;  %v457_v58 = vadd.f32 %v874_v1, %v338_v51  ;;  %v340_v59 = vmul.f32 %v864_v0, %v221_v47  ;;  %v564_v63 = vmax.f32 %v452_v52, 0.0  ;;  %v565_v2 = vmax.f32 %v453_v53, 0.0 }
  0x34   : > { %v566_v3 = vmax.f32 %v454_v54, 0.0  ;;  %v458_v4 = vadd.f32 %v874_v1, %v339_v55  ;;  %v567_v8 = vmax.f32 %v455_v56, 0.0  ;;  %v568_v9 = vmax.f32 %v456_v57, 0.0 }
  0x35   : > { %v569_v10 = vmax.f32 %v457_v58, 0.0  ;;  %v459_v11 = vadd.f32 %v874_v1, %v340_v59  ;;  %676 = vst [vmem:[%s897_s25 + $0x140] sm:$0xff] %v564_v63  ;;  %677 = vst [vmem:[%s897_s25 + $0x148] sm:$0xff] %v565_v2  ;;  %v341_v14 = vmul.f32 %v864_v0, %v222_v60  ;;  %v342_v15 = vmul.f32 %v864_v0, %v223_v61  ;;  %v239_v63 = vld [vmem:[%s869_s20 + $0x208] sm:$0xff]  ;;  %v240_v2 = vld [vmem:[%s869_s20 + $0x210] sm:$0xff] }
  0x36   : > { %678 = vst [vmem:[%s897_s25 + $0x150] sm:$0xff] %v566_v3  ;;  %v570_v13 = vmax.f32 %v458_v4, 0.0  ;;  %v343_v16 = vmul.f32 %v864_v0, %v224_v62  ;;  %679 = vst [vmem:[%s897_s25 + $0x158] sm:$0xff] %v567_v8  ;;  %v344_v19 = vmul.f32 %v864_v0, %v225_v5  ;;  %v345_v20 = vmul.f32 %v864_v0, %v226_v6  ;;  %v238_v62 = vld [vmem:[%s869_s20 + $0x200] sm:$0xff] }
  0x37   : > { %680 = vst [vmem:[%s897_s25 + $0x160] sm:$0xff] %v568_v9  ;;  %681 = vst [vmem:[%s897_s25 + $0x168] sm:$0xff] %v569_v10  ;;  %v571_v18 = vmax.f32 %v459_v11, 0.0  ;;  %v346_v21 = vmul.f32 %v864_v0, %v227_v7  ;;  %v460_v22 = vadd.f32 %v874_v1, %v341_v14  ;;  %v461_v23 = vadd.f32 %v874_v1, %v342_v15  ;;  %v241_v7 = vld [vmem:[%s869_s20 + $0x218] sm:$0xff]  ;;  %v242_v8 = vld [vmem:[%s869_s20 + $0x220] sm:$0xff] }
  0x38   : > { %682 = vst [vmem:[%s897_s25 + $0x170] sm:$0xff] %v570_v13  ;;  %v462_v24 = vadd.f32 %v874_v1, %v343_v16  ;;  %v347_v25 = vmul.f32 %v864_v0, %v228_v12  ;;  %v463_v26 = vadd.f32 %v874_v1, %v344_v19  ;;  %v464_v27 = vadd.f32 %v874_v1, %v345_v20  ;;  %v243_v9 = vld [vmem:[%s869_s20 + $0x228] sm:$0xff]  ;;  %v244_v14 = vld [vmem:[%s869_s20 + $0x230] sm:$0xff]  ;;  %v245_v19 = vld [vmem:[%s869_s20 + $0x238] sm:$0xff] }
  0x39   : > { %683 = vst [vmem:[%s897_s25 + $0x178] sm:$0xff] %v571_v18  ;;  %v465_v28 = vadd.f32 %v874_v1, %v346_v21  ;;  %v348_v29 = vmul.f32 %v864_v0, %v229_v17  ;;  %v572_v33 = vmax.f32 %v460_v22, 0.0  ;;  %v573_v34 = vmax.f32 %v461_v23, 0.0 }
  0x3a   : > { %v574_v35 = vmax.f32 %v462_v24, 0.0  ;;  %v466_v36 = vadd.f32 %v874_v1, %v347_v25  ;;  %v575_v40 = vmax.f32 %v463_v26, 0.0  ;;  %v576_v41 = vmax.f32 %v464_v27, 0.0 }
  0x3b   : > { %v577_v42 = vmax.f32 %v465_v28, 0.0  ;;  %v467_v43 = vadd.f32 %v874_v1, %v348_v29  ;;  %684 = vst [vmem:[%s897_s25 + $0x180] sm:$0xff] %v572_v33  ;;  %685 = vst [vmem:[%s897_s25 + $0x188] sm:$0xff] %v573_v34  ;;  %v349_v46 = vmul.f32 %v864_v0, %v230_v30  ;;  %v350_v47 = vmul.f32 %v864_v0, %v231_v31  ;;  %v247_v33 = vld [vmem:[%s869_s20 + $0x248] sm:$0xff]  ;;  %v248_v34 = vld [vmem:[%s869_s20 + $0x250] sm:$0xff] }
  0x3c   : > { %686 = vst [vmem:[%s897_s25 + $0x190] sm:$0xff] %v574_v35  ;;  %v578_v45 = vmax.f32 %v466_v36, 0.0  ;;  %v351_v48 = vmul.f32 %v864_v0, %v232_v32  ;;  %687 = vst [vmem:[%s897_s25 + $0x198] sm:$0xff] %v575_v40  ;;  %v352_v51 = vmul.f32 %v864_v0, %v233_v37  ;;  %v353_v52 = vmul.f32 %v864_v0, %v234_v38  ;;  %v246_v32 = vld [vmem:[%s869_s20 + $0x240] sm:$0xff] }
  0x3d   : > { %688 = vst [vmem:[%s897_s25 + $0x1a0] sm:$0xff] %v576_v41  ;;  %689 = vst [vmem:[%s897_s25 + $0x1a8] sm:$0xff] %v577_v42  ;;  %v579_v50 = vmax.f32 %v467_v43, 0.0  ;;  %v354_v53 = vmul.f32 %v864_v0, %v235_v39  ;;  %v468_v54 = vadd.f32 %v874_v1, %v349_v46  ;;  %v469_v55 = vadd.f32 %v874_v1, %v350_v47  ;;  %v249_v39 = vld [vmem:[%s869_s20 + $0x258] sm:$0xff]  ;;  %v250_v40 = vld [vmem:[%s869_s20 + $0x260] sm:$0xff] }
  0x3e   : > { %690 = vst [vmem:[%s897_s25 + $0x1b0] sm:$0xff] %v578_v45  ;;  %v470_v56 = vadd.f32 %v874_v1, %v351_v48  ;;  %v355_v57 = vmul.f32 %v864_v0, %v236_v44  ;;  %v471_v58 = vadd.f32 %v874_v1, %v352_v51  ;;  %v472_v59 = vadd.f32 %v874_v1, %v353_v52  ;;  %v251_v41 = vld [vmem:[%s869_s20 + $0x268] sm:$0xff]  ;;  %v252_v46 = vld [vmem:[%s869_s20 + $0x270] sm:$0xff]  ;;  %v253_v51 = vld [vmem:[%s869_s20 + $0x278] sm:$0xff] }
  0x3f   : > { %691 = vst [vmem:[%s897_s25 + $0x1b8] sm:$0xff] %v579_v50  ;;  %v473_v60 = vadd.f32 %v874_v1, %v354_v53  ;;  %v356_v61 = vmul.f32 %v864_v0, %v237_v49  ;;  %v580_v3 = vmax.f32 %v468_v54, 0.0  ;;  %v581_v4 = vmax.f32 %v469_v55, 0.0 }
  0x40   : > { %v582_v5 = vmax.f32 %v470_v56, 0.0  ;;  %v474_v6 = vadd.f32 %v874_v1, %v355_v57  ;;  %v583_v10 = vmax.f32 %v471_v58, 0.0  ;;  %v584_v11 = vmax.f32 %v472_v59, 0.0 }
  0x41   : > { %v585_v12 = vmax.f32 %v473_v60, 0.0  ;;  %v475_v13 = vadd.f32 %v874_v1, %v356_v61  ;;  %692 = vst [vmem:[%s897_s25 + $0x1c0] sm:$0xff] %v580_v3  ;;  %693 = vst [vmem:[%s897_s25 + $0x1c8] sm:$0xff] %v581_v4  ;;  %v357_v16 = vmul.f32 %v864_v0, %v238_v62  ;;  %v358_v17 = vmul.f32 %v864_v0, %v239_v63  ;;  %v255_v3 = vld [vmem:[%s869_s20 + $0x288] sm:$0xff]  ;;  %v256_v4 = vld [vmem:[%s869_s20 + $0x290] sm:$0xff] }
  0x42   : > { %694 = vst [vmem:[%s897_s25 + $0x1d0] sm:$0xff] %v582_v5  ;;  %v586_v15 = vmax.f32 %v474_v6, 0.0  ;;  %v359_v18 = vmul.f32 %v864_v0, %v240_v2  ;;  %695 = vst [vmem:[%s897_s25 + $0x1d8] sm:$0xff] %v583_v10  ;;  %v360_v21 = vmul.f32 %v864_v0, %v241_v7  ;;  %v361_v22 = vmul.f32 %v864_v0, %v242_v8  ;;  %v254_v2 = vld [vmem:[%s869_s20 + $0x280] sm:$0xff] }
  0x43   : > { %696 = vst [vmem:[%s897_s25 + $0x1e0] sm:$0xff] %v584_v11  ;;  %697 = vst [vmem:[%s897_s25 + $0x1e8] sm:$0xff] %v585_v12  ;;  %v587_v20 = vmax.f32 %v475_v13, 0.0  ;;  %v362_v23 = vmul.f32 %v864_v0, %v243_v9  ;;  %v476_v24 = vadd.f32 %v874_v1, %v357_v16  ;;  %v477_v25 = vadd.f32 %v874_v1, %v358_v17  ;;  %v257_v9 = vld [vmem:[%s869_s20 + $0x298] sm:$0xff]  ;;  %v258_v10 = vld [vmem:[%s869_s20 + $0x2a0] sm:$0xff] }
  0x44   : > { %698 = vst [vmem:[%s897_s25 + $0x1f0] sm:$0xff] %v586_v15  ;;  %v478_v26 = vadd.f32 %v874_v1, %v359_v18  ;;  %v363_v27 = vmul.f32 %v864_v0, %v244_v14  ;;  %v479_v28 = vadd.f32 %v874_v1, %v360_v21  ;;  %v480_v29 = vadd.f32 %v874_v1, %v361_v22  ;;  %v259_v11 = vld [vmem:[%s869_s20 + $0x2a8] sm:$0xff]  ;;  %v260_v16 = vld [vmem:[%s869_s20 + $0x2b0] sm:$0xff]  ;;  %v261_v21 = vld [vmem:[%s869_s20 + $0x2b8] sm:$0xff] }
  0x45   : > { %699 = vst [vmem:[%s897_s25 + $0x1f8] sm:$0xff] %v587_v20  ;;  %v481_v30 = vadd.f32 %v874_v1, %v362_v23  ;;  %v364_v31 = vmul.f32 %v864_v0, %v245_v19  ;;  %v588_v35 = vmax.f32 %v476_v24, 0.0  ;;  %v589_v36 = vmax.f32 %v477_v25, 0.0 }
  0x46   : > { %v590_v37 = vmax.f32 %v478_v26, 0.0  ;;  %v482_v38 = vadd.f32 %v874_v1, %v363_v27  ;;  %v591_v42 = vmax.f32 %v479_v28, 0.0  ;;  %v592_v43 = vmax.f32 %v480_v29, 0.0 }
  0x47   : > { %v593_v44 = vmax.f32 %v481_v30, 0.0  ;;  %v483_v45 = vadd.f32 %v874_v1, %v364_v31  ;;  %700 = vst [vmem:[%s897_s25 + $0x200] sm:$0xff] %v588_v35  ;;  %701 = vst [vmem:[%s897_s25 + $0x208] sm:$0xff] %v589_v36  ;;  %v365_v48 = vmul.f32 %v864_v0, %v246_v32  ;;  %v366_v49 = vmul.f32 %v864_v0, %v247_v33  ;;  %v263_v35 = vld [vmem:[%s869_s20 + $0x2c8] sm:$0xff]  ;;  %v264_v36 = vld [vmem:[%s869_s20 + $0x2d0] sm:$0xff] }
  0x48   : > { %702 = vst [vmem:[%s897_s25 + $0x210] sm:$0xff] %v590_v37  ;;  %v594_v47 = vmax.f32 %v482_v38, 0.0  ;;  %v367_v50 = vmul.f32 %v864_v0, %v248_v34  ;;  %703 = vst [vmem:[%s897_s25 + $0x218] sm:$0xff] %v591_v42  ;;  %v368_v53 = vmul.f32 %v864_v0, %v249_v39  ;;  %v369_v54 = vmul.f32 %v864_v0, %v250_v40  ;;  %v262_v34 = vld [vmem:[%s869_s20 + $0x2c0] sm:$0xff] }
  0x49   : > { %704 = vst [vmem:[%s897_s25 + $0x220] sm:$0xff] %v592_v43  ;;  %705 = vst [vmem:[%s897_s25 + $0x228] sm:$0xff] %v593_v44  ;;  %v595_v52 = vmax.f32 %v483_v45, 0.0  ;;  %v370_v55 = vmul.f32 %v864_v0, %v251_v41  ;;  %v484_v56 = vadd.f32 %v874_v1, %v365_v48  ;;  %v485_v57 = vadd.f32 %v874_v1, %v366_v49  ;;  %v265_v41 = vld [vmem:[%s869_s20 + $0x2d8] sm:$0xff]  ;;  %v266_v42 = vld [vmem:[%s869_s20 + $0x2e0] sm:$0xff] }
  0x4a   : > { %706 = vst [vmem:[%s897_s25 + $0x230] sm:$0xff] %v594_v47  ;;  %v486_v58 = vadd.f32 %v874_v1, %v367_v50  ;;  %v371_v59 = vmul.f32 %v864_v0, %v252_v46  ;;  %v487_v60 = vadd.f32 %v874_v1, %v368_v53  ;;  %v488_v61 = vadd.f32 %v874_v1, %v369_v54  ;;  %v267_v43 = vld [vmem:[%s869_s20 + $0x2e8] sm:$0xff]  ;;  %v268_v48 = vld [vmem:[%s869_s20 + $0x2f0] sm:$0xff]  ;;  %v269_v53 = vld [vmem:[%s869_s20 + $0x2f8] sm:$0xff] }
  0x4b   : > { %707 = vst [vmem:[%s897_s25 + $0x238] sm:$0xff] %v595_v52  ;;  %v489_v62 = vadd.f32 %v874_v1, %v370_v55  ;;  %v372_v63 = vmul.f32 %v864_v0, %v253_v51  ;;  %v596_v5 = vmax.f32 %v484_v56, 0.0  ;;  %v597_v6 = vmax.f32 %v485_v57, 0.0 }
  0x4c   : > { %v598_v7 = vmax.f32 %v486_v58, 0.0  ;;  %v490_v8 = vadd.f32 %v874_v1, %v371_v59  ;;  %v599_v12 = vmax.f32 %v487_v60, 0.0  ;;  %v600_v13 = vmax.f32 %v488_v61, 0.0 }
  0x4d   : > { %v601_v14 = vmax.f32 %v489_v62, 0.0  ;;  %v491_v15 = vadd.f32 %v874_v1, %v372_v63  ;;  %708 = vst [vmem:[%s897_s25 + $0x240] sm:$0xff] %v596_v5  ;;  %709 = vst [vmem:[%s897_s25 + $0x248] sm:$0xff] %v597_v6  ;;  %v373_v18 = vmul.f32 %v864_v0, %v254_v2  ;;  %v374_v19 = vmul.f32 %v864_v0, %v255_v3  ;;  %v271_v5 = vld [vmem:[%s869_s20 + $0x308] sm:$0xff]  ;;  %v272_v6 = vld [vmem:[%s869_s20 + $0x310] sm:$0xff] }
  0x4e   : > { %710 = vst [vmem:[%s897_s25 + $0x250] sm:$0xff] %v598_v7  ;;  %v602_v17 = vmax.f32 %v490_v8, 0.0  ;;  %v375_v20 = vmul.f32 %v864_v0, %v256_v4  ;;  %711 = vst [vmem:[%s897_s25 + $0x258] sm:$0xff] %v599_v12  ;;  %v376_v23 = vmul.f32 %v864_v0, %v257_v9  ;;  %v377_v24 = vmul.f32 %v864_v0, %v258_v10  ;;  %v270_v4 = vld [vmem:[%s869_s20 + $0x300] sm:$0xff] }
  0x4f   : > { %712 = vst [vmem:[%s897_s25 + $0x260] sm:$0xff] %v600_v13  ;;  %713 = vst [vmem:[%s897_s25 + $0x268] sm:$0xff] %v601_v14  ;;  %v603_v22 = vmax.f32 %v491_v15, 0.0  ;;  %v378_v25 = vmul.f32 %v864_v0, %v259_v11  ;;  %v492_v26 = vadd.f32 %v874_v1, %v373_v18  ;;  %v493_v27 = vadd.f32 %v874_v1, %v374_v19  ;;  %v273_v11 = vld [vmem:[%s869_s20 + $0x318] sm:$0xff]  ;;  %v274_v12 = vld [vmem:[%s869_s20 + $0x320] sm:$0xff] }
  0x50   : > { %714 = vst [vmem:[%s897_s25 + $0x270] sm:$0xff] %v602_v17  ;;  %v494_v28 = vadd.f32 %v874_v1, %v375_v20  ;;  %v379_v29 = vmul.f32 %v864_v0, %v260_v16  ;;  %v495_v30 = vadd.f32 %v874_v1, %v376_v23  ;;  %v496_v31 = vadd.f32 %v874_v1, %v377_v24  ;;  %v275_v13 = vld [vmem:[%s869_s20 + $0x328] sm:$0xff]  ;;  %v276_v18 = vld [vmem:[%s869_s20 + $0x330] sm:$0xff]  ;;  %v277_v23 = vld [vmem:[%s869_s20 + $0x338] sm:$0xff] }
  0x51   : > { %715 = vst [vmem:[%s897_s25 + $0x278] sm:$0xff] %v603_v22  ;;  %v497_v32 = vadd.f32 %v874_v1, %v378_v25  ;;  %v380_v33 = vmul.f32 %v864_v0, %v261_v21  ;;  %v604_v37 = vmax.f32 %v492_v26, 0.0  ;;  %v605_v38 = vmax.f32 %v493_v27, 0.0 }
  0x52   : > { %v606_v39 = vmax.f32 %v494_v28, 0.0  ;;  %v498_v40 = vadd.f32 %v874_v1, %v379_v29  ;;  %v607_v44 = vmax.f32 %v495_v30, 0.0  ;;  %v608_v45 = vmax.f32 %v496_v31, 0.0 }
  0x53   : > { %v609_v46 = vmax.f32 %v497_v32, 0.0  ;;  %v499_v47 = vadd.f32 %v874_v1, %v380_v33  ;;  %716 = vst [vmem:[%s897_s25 + $0x280] sm:$0xff] %v604_v37  ;;  %717 = vst [vmem:[%s897_s25 + $0x288] sm:$0xff] %v605_v38  ;;  %v381_v50 = vmul.f32 %v864_v0, %v262_v34  ;;  %v382_v51 = vmul.f32 %v864_v0, %v263_v35  ;;  %v279_v37 = vld [vmem:[%s869_s20 + $0x348] sm:$0xff]  ;;  %v280_v38 = vld [vmem:[%s869_s20 + $0x350] sm:$0xff] }
  0x54   : > { %718 = vst [vmem:[%s897_s25 + $0x290] sm:$0xff] %v606_v39  ;;  %v610_v49 = vmax.f32 %v498_v40, 0.0  ;;  %v383_v52 = vmul.f32 %v864_v0, %v264_v36  ;;  %719 = vst [vmem:[%s897_s25 + $0x298] sm:$0xff] %v607_v44  ;;  %v384_v55 = vmul.f32 %v864_v0, %v265_v41  ;;  %v385_v56 = vmul.f32 %v864_v0, %v266_v42  ;;  %v278_v36 = vld [vmem:[%s869_s20 + $0x340] sm:$0xff] }
  0x55   : > { %720 = vst [vmem:[%s897_s25 + $0x2a0] sm:$0xff] %v608_v45  ;;  %721 = vst [vmem:[%s897_s25 + $0x2a8] sm:$0xff] %v609_v46  ;;  %v611_v54 = vmax.f32 %v499_v47, 0.0  ;;  %v386_v57 = vmul.f32 %v864_v0, %v267_v43  ;;  %v500_v58 = vadd.f32 %v874_v1, %v381_v50  ;;  %v501_v59 = vadd.f32 %v874_v1, %v382_v51  ;;  %v281_v43 = vld [vmem:[%s869_s20 + $0x358] sm:$0xff]  ;;  %v282_v44 = vld [vmem:[%s869_s20 + $0x360] sm:$0xff] }
  0x56   : > { %722 = vst [vmem:[%s897_s25 + $0x2b0] sm:$0xff] %v610_v49  ;;  %v502_v60 = vadd.f32 %v874_v1, %v383_v52  ;;  %v387_v61 = vmul.f32 %v864_v0, %v268_v48  ;;  %v503_v62 = vadd.f32 %v874_v1, %v384_v55  ;;  %v504_v63 = vadd.f32 %v874_v1, %v385_v56  ;;  %v283_v45 = vld [vmem:[%s869_s20 + $0x368] sm:$0xff]  ;;  %v823_v48 = vld [vmem:[%s1323_s2] ss:$0 sm:$0xff]  ;;  %v284_v50 = vld [vmem:[%s869_s20 + $0x370] sm:$0xff] }
  0x57   : > { %723 = vst [vmem:[%s897_s25 + $0x2b8] sm:$0xff] %v611_v54  ;;  %v505_v2 = vadd.f32 %v874_v1, %v386_v57  ;;  %v388_v3 = vmul.f32 %v864_v0, %v269_v53  ;;  %v612_v7 = vmax.f32 %v500_v58, 0.0  ;;  %v613_v8 = vmax.f32 %v501_v59, 0.0  ;;  %v824_v51 = vld [vmem:[%s1322_s1] ss:$0 sm:$0xff]  ;;  %v285_v55 = vld [vmem:[%s869_s20 + $0x378] sm:$0xff] }
  0x58   : > { %v614_v9 = vmax.f32 %v502_v60, 0.0  ;;  %v506_v10 = vadd.f32 %v874_v1, %v387_v61  ;;  %v615_v14 = vmax.f32 %v503_v62, 0.0  ;;  %v616_v15 = vmax.f32 %v504_v63, 0.0 }
  0x59   : > { %v617_v16 = vmax.f32 %v505_v2, 0.0  ;;  %v507_v17 = vadd.f32 %v874_v1, %v388_v3  ;;  %724 = vst [vmem:[%s897_s25 + $0x2c0] sm:$0xff] %v612_v7  ;;  %725 = vst [vmem:[%s897_s25 + $0x2c8] sm:$0xff] %v613_v8  ;;  %v389_v20 = vmul.f32 %v864_v0, %v270_v4  ;;  %v390_v21 = vmul.f32 %v864_v0, %v271_v5 }
  0x5a   : > { %726 = vst [vmem:[%s897_s25 + $0x2d0] sm:$0xff] %v614_v9  ;;  %v618_v19 = vmax.f32 %v506_v10, 0.0  ;;  %v391_v22 = vmul.f32 %v864_v0, %v272_v6  ;;  %727 = vst [vmem:[%s897_s25 + $0x2d8] sm:$0xff] %v615_v14  ;;  %v392_v25 = vmul.f32 %v864_v0, %v273_v11  ;;  %v393_v26 = vmul.f32 %v864_v0, %v274_v12 }
  0x5b   : > { %728 = vst [vmem:[%s897_s25 + $0x2e0] sm:$0xff] %v616_v15  ;;  %729 = vst [vmem:[%s897_s25 + $0x2e8] sm:$0xff] %v617_v16  ;;  %v619_v24 = vmax.f32 %v507_v17, 0.0  ;;  %v394_v27 = vmul.f32 %v864_v0, %v275_v13  ;;  %v508_v28 = vadd.f32 %v874_v1, %v389_v20  ;;  %v509_v29 = vadd.f32 %v874_v1, %v390_v21 }
  0x5c   : > { %730 = vst [vmem:[%s897_s25 + $0x2f0] sm:$0xff] %v618_v19  ;;  %v510_v30 = vadd.f32 %v874_v1, %v391_v22  ;;  %v395_v31 = vmul.f32 %v864_v0, %v276_v18  ;;  %v511_v32 = vadd.f32 %v874_v1, %v392_v25  ;;  %v512_v33 = vadd.f32 %v874_v1, %v393_v26 }
  0x5d   : > { %731 = vst [vmem:[%s897_s25 + $0x2f8] sm:$0xff] %v619_v24  ;;  %v513_v34 = vadd.f32 %v874_v1, %v394_v27  ;;  %v396_v35 = vmul.f32 %v864_v0, %v277_v23  ;;  %v620_v39 = vmax.f32 %v508_v28, 0.0  ;;  %v621_v40 = vmax.f32 %v509_v29, 0.0 }
  0x5e   : > { %v622_v41 = vmax.f32 %v510_v30, 0.0  ;;  %v514_v42 = vadd.f32 %v874_v1, %v395_v31  ;;  %v623_v46 = vmax.f32 %v511_v32, 0.0  ;;  %v624_v0 = vmax.f32 %v512_v33, 0.0 }
  0x5f   : > { %v625_v47 = vmax.f32 %v513_v34, 0.0  ;;  %v515_v49 = vadd.f32 %v823_v48, %v396_v35  ;;  %732 = vst [vmem:[%s897_s25 + $0x300] sm:$0xff] %v620_v39  ;;  %733 = vst [vmem:[%s897_s25 + $0x308] sm:$0xff] %v621_v40  ;;  %v397_v52 = vmul.f32 %v824_v51, %v278_v36  ;;  %v398_v53 = vmul.f32 %v824_v51, %v279_v37 }
  0x60   : > { %734 = vst [vmem:[%s897_s25 + $0x310] sm:$0xff] %v622_v41  ;;  %v626_v1 = vmax.f32 %v514_v42, 0.0  ;;  %v399_v54 = vmul.f32 %v824_v51, %v280_v38  ;;  %735 = vst [vmem:[%s897_s25 + $0x318] sm:$0xff] %v623_v46  ;;  %v400_v57 = vmul.f32 %v824_v51, %v281_v43  ;;  %v401_v58 = vmul.f32 %v824_v51, %v282_v44 }
  0x61   : > { %736 = vst [vmem:[%s897_s25 + $0x320] sm:$0xff] %v624_v0  ;;  %737 = vst [vmem:[%s897_s25 + $0x328] sm:$0xff] %v625_v47  ;;  %v627_v56 = vmax.f32 %v515_v49, 0.0  ;;  %v402_v59 = vmul.f32 %v824_v51, %v283_v45  ;;  %v516_v60 = vadd.f32 %v823_v48, %v397_v52  ;;  %v517_v61 = vadd.f32 %v823_v48, %v398_v53 }
  0x62   : > { %738 = vst [vmem:[%s897_s25 + $0x330] sm:$0xff] %v626_v1  ;;  %v518_v62 = vadd.f32 %v823_v48, %v399_v54  ;;  %v403_v63 = vmul.f32 %v824_v51, %v284_v50  ;;  %v519_v2 = vadd.f32 %v823_v48, %v400_v57  ;;  %v520_v3 = vadd.f32 %v823_v48, %v401_v58 }
  0x63   : > { %739 = vst [vmem:[%s897_s25 + $0x338] sm:$0xff] %v627_v56  ;;  %v521_v4 = vadd.f32 %v823_v48, %v402_v59  ;;  %v404_v5 = vmul.f32 %v824_v51, %v285_v55  ;;  %v628_v6 = vmax.f32 %v516_v60, 0.0  ;;  %v629_v7 = vmax.f32 %v517_v61, 0.0 }
  0x64   : > { %v630_v8 = vmax.f32 %v518_v62, 0.0  ;;  %v522_v9 = vadd.f32 %v823_v48, %v403_v63  ;;  %v631_v10 = vmax.f32 %v519_v2, 0.0  ;;  %v632_v11 = vmax.f32 %v520_v3, 0.0 }
  0x65   : > { %v633_v12 = vmax.f32 %v521_v4, 0.0  ;;  %v523_v13 = vadd.f32 %v823_v48, %v404_v5  ;;  %740 = vst [vmem:[%s897_s25 + $0x340] sm:$0xff] %v628_v6  ;;  %741 = vst [vmem:[%s897_s25 + $0x348] sm:$0xff] %v629_v7 }
  0x66   : > { %742 = vst [vmem:[%s897_s25 + $0x350] sm:$0xff] %v630_v8  ;;  %v634_v14 = vmax.f32 %v522_v9, 0.0  ;;  %743 = vst [vmem:[%s897_s25 + $0x358] sm:$0xff] %v631_v10 }
  0x67   : > { %744 = vst [vmem:[%s897_s25 + $0x360] sm:$0xff] %v632_v11  ;;  %745 = vst [vmem:[%s897_s25 + $0x368] sm:$0xff] %v633_v12  ;;  %v635_v15 = vmax.f32 %v523_v13, 0.0 }
  0x68   : > { %746 = vst [vmem:[%s897_s25 + $0x370] sm:$0xff] %v634_v14 }
  0x69   : > { %747 = vst [vmem:[%s897_s25 + $0x378] sm:$0xff] %v635_v15 }
  0x6a PF: > { %s13_s12 = sadd.s32 1, %s831_s12  }
  0x6b   : > { %p10_p4 = scmp.ge.s32.totalorder %s13_s12, 9  }
  0x6d   :  { %12 = sbr.rel (!%p10_p4) target bundleno = 1 (0x1), region = 62 }

// kernel: densenet_forward_pallas.26
= control target key start
LH: loop header
LB: loop body
LE: loop exit
PB: predicated region body
PF: predicated region fallthrough
CT: control target
= control target key end

     0   :  { %s1184_s15 = smov 0   ;;  %s1640_s0 = inlined_call_operand.vmem [shape: f32[1568,128], index: 0, kind: input, shape index: {}]   ;;  %s1641_s1 = inlined_call_operand.vmem [shape: f32[1,128], index: 1, kind: input, shape index: {}]   ;;  %s1642_s2 = inlined_call_operand.vmem [shape: f32[1,128], index: 2, kind: input, shape index: {}]   ;;  %s1643_s3 = inlined_call_operand.vmem [shape: f32[128,128], index: 3, kind: input, shape index: {}]   ;;  %s1644_s4 = inlined_call_operand.vmem [shape: f32[1568,128], index: 4, kind: output, shape index: {}]  }
   0x1 LB: > { %s842_s16 = sadd.s32 4294967295, %s1154_s15   ;;  %p846_p0 = scmp.ge.s32.totalorder %s1154_s15, 1  ;;  %s1154_s15 = sphi %s1184_s15, %s14_s15  }
   0x2   : > { %p163_p1 = scmp.lt.s32.totalorder %s1154_s15, 5 }
   0x4   : > { %p164_p2 = pnand %p846_p0, %p163_p1 }
   0x5   : > { %v411_v0 = vld [vmem:[%s1643_s3] sm:$0xff] (!%p164_p2)  ;;  %v412_v1 = vld [vmem:[%s1643_s3 + $0x8] sm:$0xff] (!%p164_p2)  ;;  %v413_v2 = vld [vmem:[%s1643_s3 + $0x10] sm:$0xff] (!%p164_p2)  ;;  %v1156_v3 = vmov (!%p164_p2), 0.0|0.0   ;;  %s189_s25 = smul.u32 (!%p164_p2), 49, %s842_s16  ;;  %vm1157_vm0 = vmmov (!%p164_p2), 0  }
   0x6   : > { %167 = sbr.rel (%p164_p2) target bundleno = 348 (0x15c), region = 36  ;;  %1097 = vmatprep.subr.bf16.mxu0 (!%p164_p2), %v1156_v3  ;;  %v1098_v4 = vpack.c.bf16 (!%p164_p2), %v412_v1, %v411_v0  ;;  %1121 = vmatprep.subr.bf16.mxu1 (!%p164_p2), %v1156_v3  ;;  %v414_v5 = vld [vmem:[%s1643_s3 + $0x18] sm:$0xff] (!%p164_p2)  ;;  %v1158_v6 = vmov (!%p164_p2), 0.0   ;;  %v415_v8 = vld [vmem:[%s1643_s3 + $0x20] sm:$0xff] (!%p164_p2)  ;;  %v416_v9 = vld [vmem:[%s1643_s3 + $0x28] sm:$0xff] (!%p164_p2) }
   0x7   : > { %950 = vmatprep.mubr.msk.f32.mxu0 (!%p164_p2), %vm1157_vm0, %v1158_v6  ;;  %1025 = vmatprep.mubr.msk.f32.mxu1 (!%p164_p2), %vm1157_vm0, %v1158_v6  ;;  %v1101_v7 = vpack.c.bf16 (!%p164_p2), %v414_v5, %v413_v2  ;;  %p190_p3 = scmp.lt.s32.totalorder (!%p164_p2), %s189_s25, 195  ;;  %v1104_v10 = vpack.c.bf16 (!%p164_p2), %v416_v9, %v415_v8  ;;  %v417_v11 = vld [vmem:[%s1643_s3 + $0x30] sm:$0xff] (!%p164_p2)  ;;  %v418_v12 = vld [vmem:[%s1643_s3 + $0x38] sm:$0xff] (!%p164_p2)  ;;  %v419_v14 = vld [vmem:[%s1643_s3 + $0x40] sm:$0xff] (!%p164_p2) }
   0x8   : > { %1099 = vmatpush3.bf16.msra.mxu0 (!%p164_p2), %v1098_v4  ;;  %1129 = vmatpush3.bf16.msra.mxu1 (!%p164_p2), %v1098_v4  ;;  %v1107_v13 = vpack.c.bf16 (!%p164_p2), %v418_v12, %v417_v11  ;;  %v420_v15 = vld [vmem:[%s1643_s3 + $0x48] sm:$0xff] (!%p164_p2)  ;;  %v421_v17 = vld [vmem:[%s1643_s3 + $0x50] sm:$0xff] (!%p164_p2)  ;;  %v422_v18 = vld [vmem:[%s1643_s3 + $0x58] sm:$0xff] (!%p164_p2) }
   0x9   : > { %1100 = vmatprep.subr.bf16.mxu0 (!%p164_p2), %v1156_v3  ;;  %1122 = vmatprep.subr.bf16.mxu1 (!%p164_p2), %v1156_v3  ;;  %v1110_v16 = vpack.c.bf16 (!%p164_p2), %v420_v15, %v419_v14  ;;  %v1113_v19 = vpack.c.bf16 (!%p164_p2), %v422_v18, %v421_v17  ;;  %v1256_v21 = vld [vmem:[%s1641_s1] ss:$0 sm:$0xff] (!%p164_p2)  ;;  %v424_v24 = vld [vmem:[%s1643_s3 + $0x68] sm:$0xff] (!%p164_p2)  ;;  %v425_v31 = vld [vmem:[%s1643_s3 + $0x70] sm:$0xff] (!%p164_p2) }
   0xa   : > { %v423_v23 = vld [vmem:[%s1643_s3 + $0x60] sm:$0xff] (!%p164_p2)  ;;  %v426_v32 = vld [vmem:[%s1643_s3 + $0x78] sm:$0xff] (!%p164_p2) }
   0xb   : > { %v1116_v28 = vpack.c.bf16 (!%p164_p2), %v424_v24, %v423_v23  ;;  %v1273_v29 = vld [vmem:[%s1642_s2] ss:$0 sm:$0xff] (!%p164_p2)  ;;  %v1119_v39 = vpack.c.bf16 (!%p164_p2), %v426_v32, %v425_v31 }
   0xc   : > { %1102 = vmatpush3.bf16.msra.mxu0 (!%p164_p2), %v1101_v7  ;;  %1130 = vmatpush3.bf16.msra.mxu1 (!%p164_p2), %v1101_v7 }
   0xd   : > { %1103 = vmatprep.subr.bf16.mxu0 %v1156_v3  ;;  %1123 = vmatprep.subr.bf16.mxu1 %v1156_v3  ;;  %s1646_s25 = smov (!%p190_p3, %s189_s25), 195 }
   0xe   : > { %s847_s12 = sshll.u32 %s1646_s25, 3 }
   0xf   : > { %s1250_s20 = scalar_lea.vmem %s1640_s0, %s847_s12  ;;  %s1586_s10 = scalar_lea.vmem %s1644_s4, %s847_s12 }
  0x10   : > { %1105 = vmatpush3.bf16.msra.mxu0 %v1104_v10  ;;  %1131 = vmatpush3.bf16.msra.mxu1 %v1104_v10  ;;  %v201_v20 = vld [vmem:[%s1250_s20] sm:$0xff]  ;;  %v226_v22 = vld [vmem:[%s1250_s20 + $0xc8] sm:$0xff]  ;;  %v227_v30 = vld [vmem:[%s1250_s20 + $0xd0] sm:$0xff] }
  0x11   : > { %1106 = vmatprep.subr.bf16.mxu0 %v1156_v3  ;;  %1124 = vmatprep.subr.bf16.mxu1 %v1156_v3  ;;  %v257_v25 = vmul.f32 %v1256_v21, %v201_v20  ;;  %v282_v26 = vmul.f32 %v1256_v21, %v226_v22  ;;  %v202_v27 = vld [vmem:[%s1250_s20 + $0x8] sm:$0xff]  ;;  %v203_v33 = vld [vmem:[%s1250_s20 + $0x10] sm:$0xff]  ;;  %v283_v37 = vmul.f32 %v1256_v21, %v227_v30  ;;  %v228_v38 = vld [vmem:[%s1250_s20 + $0xd8] sm:$0xff] }
  0x12   : > { %v258_v34 = vmul.f32 %v1256_v21, %v202_v27  ;;  %v259_v40 = vmul.f32 %v1256_v21, %v203_v33  ;;  %v204_v41 = vld [vmem:[%s1250_s20 + $0x18] sm:$0xff]  ;;  %v229_v42 = vld [vmem:[%s1250_s20 + $0xe0] sm:$0xff]  ;;  %v284_v44 = vmul.f32 %v1256_v21, %v228_v38  ;;  %v242_v52 = vld [vmem:[%s1250_s20 + $0x148] sm:$0xff] }
  0x13   : > { %v313_v35 = vadd.f32 %v1273_v29, %v257_v25  ;;  %v338_v36 = vadd.f32 %v1273_v29, %v282_v26  ;;  %v339_v47 = vadd.f32 %v1273_v29, %v283_v37  ;;  %v260_v48 = vmul.f32 %v1256_v21, %v204_v41  ;;  %v217_v51 = vld [vmem:[%s1250_s20 + $0x80] sm:$0xff]  ;;  %v218_v53 = vld [vmem:[%s1250_s20 + $0x88] sm:$0xff]  ;;  %v243_v54 = vld [vmem:[%s1250_s20 + $0x150] sm:$0xff] }
  0x14   : > { %1108 = vmatpush3.bf16.msra.mxu0 %v1107_v13  ;;  %1132 = vmatpush3.bf16.msra.mxu1 %v1107_v13  ;;  %v314_v43 = vadd.f32 %v1273_v29, %v258_v34  ;;  %v1300_v49 = vadd.f32 %v1273_v29, %v259_v40  ;;  %v285_v50 = vmul.f32 %v1256_v21, %v229_v42  ;;  %v205_v57 = vld [vmem:[%s1250_s20 + $0x20] sm:$0xff]  ;;  %v219_v58 = vld [vmem:[%s1250_s20 + $0x90] sm:$0xff]  ;;  %v230_v61 = vld [vmem:[%s1250_s20 + $0xe8] sm:$0xff] }
  0x15   : > { %1109 = vmatprep.subr.bf16.mxu0 %v1156_v3  ;;  %1125 = vmatprep.subr.bf16.mxu1 %v1156_v3  ;;  %v362_v45 = vmax.f32 %v313_v35, 0.0  ;;  %v387_v46 = vmax.f32 %v338_v36, 0.0  ;;  %v340_v56 = vadd.f32 %v1273_v29, %v284_v44  ;;  %v388_v59 = vmax.f32 %v339_v47, 0.0  ;;  %v244_v0 = vld [vmem:[%s1250_s20 + $0x158] sm:$0xff]  ;;  %v231_v9 = vld [vmem:[%s1250_s20 + $0xf0] sm:$0xff]  ;;  %v245_v13 = vld [vmem:[%s1250_s20 + $0x160] sm:$0xff] }
  0x16   : > { %v363_v55 = vmax.f32 %v314_v43, 0.0  ;;  %v1311_v60 = vadd.f32 %v1273_v29, %v260_v48  ;;  %v273_v62 = vmul.f32 %v1256_v21, %v217_v51  ;;  %v298_v63 = vmul.f32 %v1256_v21, %v242_v52  ;;  %v220_v7 = vld [vmem:[%s1250_s20 + $0x98] sm:$0xff]  ;;  %v221_v18 = vld [vmem:[%s1250_s20 + $0xa0] sm:$0xff]  ;;  %v222_v25 = vld [vmem:[%s1250_s20 + $0xa8] sm:$0xff] }
  0x17   : > { %v364_v1 = vmax.f32 %v1300_v49, 0.0  ;;  %v1323_v2 = vadd.f32 %v1273_v29, %v285_v50  ;;  %v274_v4 = vmul.f32 %v1256_v21, %v218_v53  ;;  %v299_v5 = vmul.f32 %v1256_v21, %v243_v54  ;;  %v247_v26 = vld [vmem:[%s1250_s20 + $0x170] sm:$0xff]  ;;  %v248_v37 = vld [vmem:[%s1250_s20 + $0x178] sm:$0xff]  ;;  %v249_v49 = vld [vmem:[%s1250_s20 + $0x180] sm:$0xff] }
  0x18   : > { %1111 = vmatpush3.bf16.msra.mxu0 %v1110_v16  ;;  %1133 = vmatpush3.bf16.msra.mxu1 %v1110_v16  ;;  %v261_v8 = vmul.f32 %v1256_v21, %v205_v57  ;;  %v1332_v10 = vadd.f32 %v1273_v29, %v273_v62  ;;  %v1335_v11 = vadd.f32 %v1273_v29, %v298_v63  ;;  %v389_v20 = vmax.f32 %v340_v56, 0.0  ;;  %v223_v32 = vld [vmem:[%s1250_s20 + $0xb0] sm:$0xff]  ;;  %v232_v40 = vld [vmem:[%s1250_s20 + $0xf8] sm:$0xff]  ;;  %v225_v53 = vld [vmem:[%s1250_s20 + $0xc0] sm:$0xff] }
  0x19   : > { %1112 = vmatprep.subr.bf16.mxu0 %v1156_v3  ;;  %1126 = vmatprep.subr.bf16.mxu1 %v1156_v3  ;;  %v275_v12 = vmul.f32 %v1256_v21, %v219_v58  ;;  %v286_v14 = vmul.f32 %v1256_v21, %v230_v61  ;;  %v1341_v15 = vadd.f32 %v1273_v29, %v274_v4  ;;  %v365_v27 = vmax.f32 %v1311_v60, 0.0  ;;  %v224_v44 = vld [vmem:[%s1250_s20 + $0xb8] sm:$0xff] }
  0x1a   : > { %v1344_v16 = vadd.f32 %v1273_v29, %v299_v5  ;;  %v300_v17 = vmul.f32 %v1256_v21, %v244_v0  ;;  %v276_v24 = vmul.f32 %v1256_v21, %v220_v7  ;;  %v301_v31 = vmul.f32 %v1256_v21, %v245_v13  ;;  %v208_v0 = vld [vmem:[%s1250_s20 + $0x38] sm:$0xff] }
  0x1b   : > { %v1351_v23 = vadd.f32 %v1273_v29, %v275_v12  ;;  %v317_v33 = vadd.f32 %v1273_v29, %v261_v8  ;;  %v277_v35 = vmul.f32 %v1256_v21, %v221_v18  ;;  %v342_v38 = vadd.f32 %v1273_v29, %v286_v14  ;;  %v234_v18 = vld [vmem:[%s1250_s20 + $0x108] sm:$0xff] }
  0x1c   : > { %1114 = vmatpush3.bf16.msra.mxu0 %v1113_v19  ;;  %1134 = vmatpush3.bf16.msra.mxu1 %v1113_v19  ;;  %v246_v19 = vld [vmem:[%s1250_s20 + $0x168] sm:$0xff]  ;;  %v1363_v30 = vadd.f32 %v1273_v29, %v300_v17  ;;  %v1369_v34 = vadd.f32 %v1273_v29, %v276_v24  ;;  %v1378_v41 = vadd.f32 %v1273_v29, %v301_v31  ;;  %v209_v17 = vld [vmem:[%s1250_s20 + $0x40] sm:$0xff] }
  0x1d   : > { %1115 = vmatprep.subr.bf16.mxu0 %v1156_v3  ;;  %1127 = vmatprep.subr.bf16.mxu1 %v1156_v3  ;;  %v302_v36 = vmul.f32 %v1256_v21, %v246_v19  ;;  %v278_v42 = vmul.f32 %v1256_v21, %v222_v25  ;;  %v303_v43 = vmul.f32 %v1256_v21, %v247_v26  ;;  %v366_v62 = vmax.f32 %v317_v33, 0.0 }
  0x1e   : > { %v279_v48 = vmul.f32 %v1256_v21, %v223_v32  ;;  %v304_v52 = vmul.f32 %v1256_v21, %v248_v37  ;;  %v280_v57 = vmul.f32 %v1256_v21, %v224_v44  ;;  %v305_v61 = vmul.f32 %v1256_v21, %v249_v49  ;;  %v212_v49 = vld [vmem:[%s1250_s20 + $0x58] sm:$0xff] }
  0x1f   : > { %v1388_v47 = vadd.f32 %v1273_v29, %v302_v36  ;;  %v1397_v50 = vadd.f32 %v1273_v29, %v278_v42  ;;  %v1400_v51 = vadd.f32 %v1273_v29, %v303_v43  ;;  %v391_v63 = vmax.f32 %v342_v38, 0.0  ;;  %v211_v38 = vld [vmem:[%s1250_s20 + $0x50] sm:$0xff] }
  0x20   : > { %1117 = vmatpush3.bf16.msra.mxu0 %v1116_v28  ;;  %1135 = vmatpush3.bf16.msra.mxu1 %v1116_v28  ;;  %v287_v28 = vmul.f32 %v1256_v21, %v231_v9  ;;  %v1407_v56 = vadd.f32 %v1273_v29, %v279_v48  ;;  %v1413_v60 = vadd.f32 %v1273_v29, %v304_v52  ;;  %v237_v52 = vld [vmem:[%s1250_s20 + $0x120] sm:$0xff] }
  0x21   : > { %1118 = vmatprep.subr.bf16.mxu0 %v1156_v3  ;;  %1128 = vmatprep.subr.bf16.mxu1 %v1156_v3  ;;  %v206_v3 = vld [vmem:[%s1250_s20 + $0x28] sm:$0xff]  ;;  %v1427_v4 = vadd.f32 %v1273_v29, %v305_v61  ;;  %v264_v8 = vmul.f32 %v1256_v21, %v208_v0  ;;  %v265_v25 = vmul.f32 %v1256_v21, %v209_v17  ;;  %v213_v61 = vld [vmem:[%s1250_s20 + $0x60] sm:$0xff] }
  0x22   : > { %v262_v22 = vmul.f32 %v1256_v21, %v206_v3  ;;  %v233_v3 = vld [vmem:[%s1250_s20 + $0x100] sm:$0xff]  ;;  %v290_v26 = vmul.f32 %v1256_v21, %v234_v18  ;;  %v267_v42 = vmul.f32 %v1256_v21, %v211_v38 }
  0x23   : > { %v289_v14 = vmul.f32 %v1256_v21, %v233_v3  ;;  %v321_v36 = vadd.f32 %v1273_v29, %v265_v25 }
  0x24   : > { %1120 = vmatpush3.bf16.msra.mxu0 %v1119_v39  ;;  %1136 = vmatpush3.bf16.msra.mxu1 %v1119_v39  ;;  %v207_v39 = vld [vmem:[%s1250_s20 + $0x30] sm:$0xff]  ;;  %v318_v58 = vadd.f32 %v1273_v29, %v262_v22  ;;  %v346_v37 = vadd.f32 %v1273_v29, %v290_v26 }
  0x25   : > { %v263_v54 = vmul.f32 %v1256_v21, %v207_v39  ;;  %v345_v24 = vadd.f32 %v1273_v29, %v289_v14  ;;  %v236_v39 = vld [vmem:[%s1250_s20 + $0x118] sm:$0xff]  ;;  %v370_v43 = vmax.f32 %v321_v36, 0.0 }
  0x26   : > { %v367_v9 = vmax.f32 %v318_v58, 0.0  ;;  %v395_v44 = vmax.f32 %v346_v37, 0.0  ;;  %v292_v48 = vmul.f32 %v1256_v21, %v236_v39 }
  0x27   : > { %951 = vmatmul.mubr.f32.vlgmr.msra.gmra.mrb[0].mxu0 %v362_v45  ;;  %1026 = vmatmul.mubr.f32.vlgmr.msra.gmra.mrb[0].mxu1 %v387_v46  ;;  %v390_v45 = vmax.f32 %v1323_v2, 0.0  ;;  %v1385_v46 = vadd.f32 %v1273_v29, %v277_v35  ;;  %v281_v2 = vmul.f32 %v1256_v21, %v225_v53  ;;  %v319_v7 = vadd.f32 %v1273_v29, %v263_v54 }
  0x28   : > { %953 = vmatprep.mubr.msk.f32.mxu0 %vm1157_vm0, %v1158_v6  ;;  %1028 = vmatprep.mubr.msk.f32.mxu1 %vm1157_vm0, %v1158_v6  ;;  %v394_v35 = vmax.f32 %v345_v24, 0.0  ;;  %v323_v53 = vadd.f32 %v1273_v29, %v267_v42  ;;  %v268_v54 = vmul.f32 %v1256_v21, %v212_v49  ;;  %v348_v58 = vadd.f32 %v1273_v29, %v292_v48  ;;  %v240_v24 = vld [vmem:[%s1250_s20 + $0x138] sm:$0xff] }
  0x29   : > { %v1430_v5 = vadd.f32 %v1273_v29, %v281_v2  ;;  %v368_v19 = vmax.f32 %v319_v7, 0.0  ;;  %v269_v7 = vmul.f32 %v1256_v21, %v213_v61 }
  0x2a   : > { %v324_v0 = vadd.f32 %v1273_v29, %v268_v54  ;;  %v397_v2 = vmax.f32 %v348_v58, 0.0  ;;  %v404_v54 = vmax.f32 %v1344_v16, 0.0  ;;  %v406_v16 = vmax.f32 %v1378_v41, 0.0 }
  0x2b   : > { %954 = vmatmul.mubr.f32.gmra.mrb[2].mxu0 %v363_v55  ;;  %1029 = vmatmul.mubr.f32.gmra.mrb[2].mxu1 %v388_v59  ;;  %v288_v55 = vmul.f32 %v1256_v21, %v232_v40  ;;  %v343_v59 = vadd.f32 %v1273_v29, %v287_v28  ;;  %v235_v28 = vld [vmem:[%s1250_s20 + $0x110] sm:$0xff]  ;;  %v408_v41 = vmax.f32 %v1400_v51, 0.0  ;;  %v410_v51 = vmax.f32 %v1427_v4, 0.0 }
  0x2c   : > { %956 = vmatprep.mubr.msk.f32.mxu0 %vm1157_vm0, %v1158_v6  ;;  %1031 = vmatprep.mubr.msk.f32.mxu1 %vm1157_vm0, %v1158_v6  ;;  %v291_v32 = vmul.f32 %v1256_v21, %v235_v28  ;;  %v373_v17 = vmax.f32 %v324_v0, 0.0 }
  0x2d   : > { %v392_v12 = vmax.f32 %v343_v59, 0.0  ;;  %v344_v13 = vadd.f32 %v1273_v29, %v288_v55  ;;  %v293_v59 = vmul.f32 %v1256_v21, %v237_v52  ;;  %v403_v52 = vmax.f32 %v1335_v11, 0.0 }
  0x2e   : > { %v405_v11 = vmax.f32 %v1363_v30, 0.0  ;;  %v407_v30 = vmax.f32 %v1388_v47, 0.0  ;;  %v409_v47 = vmax.f32 %v1413_v60, 0.0 }
  0x2f   : > { %957 = vmatmul.mubr.f32.gmra.mrb[4].mxu0 %v364_v1  ;;  %1032 = vmatmul.mubr.f32.gmra.mrb[4].mxu1 %v389_v20  ;;  %v1418_v1 = vadd.f32 %v1273_v29, %v280_v57  ;;  %v320_v20 = vadd.f32 %v1273_v29, %v264_v8  ;;  %v393_v22 = vmax.f32 %v344_v13, 0.0  ;;  %v349_v3 = vadd.f32 %v1273_v29, %v293_v59 }
  0x30   : > { %959 = vmatprep.mubr.msk.f32.mxu0 %vm1157_vm0, %v1158_v6  ;;  %1034 = vmatprep.mubr.msk.f32.mxu1 %vm1157_vm0, %v1158_v6 }
  0x31   : > { %v369_v33 = vmax.f32 %v320_v20, 0.0  ;;  %v398_v18 = vmax.f32 %v349_v3, 0.0 }
  0x33   : > { %960 = vmatmul.mubr.f32.gmra.mrb[6].mxu0 %v365_v27  ;;  %1035 = vmatmul.mubr.f32.gmra.mrb[6].mxu1 %v390_v45  ;;  %v210_v27 = vld [vmem:[%s1250_s20 + $0x48] sm:$0xff]  ;;  %v347_v45 = vadd.f32 %v1273_v29, %v291_v32  ;;  %v296_v32 = vmul.f32 %v1256_v21, %v240_v24 }
  0x34   : > { %962 = vmatprep.mubr.msk.f32.mxu0 %vm1157_vm0, %v1158_v6  ;;  %1037 = vmatprep.mubr.msk.f32.mxu1 %vm1157_vm0, %v1158_v6  ;;  %v266_v31 = vmul.f32 %v1256_v21, %v210_v27 }
  0x35   : > { %v396_v57 = vmax.f32 %v347_v45, 0.0 }
  0x36   : > { %v322_v40 = vadd.f32 %v1273_v29, %v266_v31 }
  0x37   : > { %963 = vmatmul.mubr.f32.gmra.mrb[8].mxu0 %v366_v62  ;;  %1038 = vmatmul.mubr.f32.gmra.mrb[8].mxu1 %v391_v63  ;;  %v238_v62 = vld [vmem:[%s1250_s20 + $0x128] sm:$0xff]  ;;  %v372_v63 = vmax.f32 %v323_v53, 0.0  ;;  %v379_v53 = vmax.f32 %v1341_v15, 0.0  ;;  %v381_v15 = vmax.f32 %v1369_v34, 0.0  ;;  %v383_v34 = vmax.f32 %v1397_v50, 0.0 }
  0x38   : > { %965 = vmatprep.mubr.msk.f32.mxu0 %vm1157_vm0, %v1158_v6  ;;  %1040 = vmatprep.mubr.msk.f32.mxu1 %vm1157_vm0, %v1158_v6  ;;  %v371_v55 = vmax.f32 %v322_v40, 0.0  ;;  %v294_v8 = vmul.f32 %v1256_v21, %v238_v62  ;;  %v352_v40 = vadd.f32 %v1273_v29, %v296_v32  ;;  %v385_v50 = vmax.f32 %v1418_v1, 0.0 }
  0x3a   : > { %v350_v20 = vadd.f32 %v1273_v29, %v294_v8 }
  0x3b   : > { %966 = vmatmul.mubr.f32.gmra.mrb[10].mxu0 %v367_v9  ;;  %1041 = vmatmul.mubr.f32.gmra.mrb[10].mxu1 %v392_v12  ;;  %v214_v9 = vld [vmem:[%s1250_s20 + $0x68] sm:$0xff]  ;;  %v239_v12 = vld [vmem:[%s1250_s20 + $0x130] sm:$0xff] }
  0x3c   : > { %968 = vmatprep.mubr.msk.f32.mxu0 %vm1157_vm0, %v1158_v6  ;;  %1043 = vmatprep.mubr.msk.f32.mxu1 %vm1157_vm0, %v1158_v6  ;;  %v270_v13 = vmul.f32 %v1256_v21, %v214_v9  ;;  %v295_v14 = vmul.f32 %v1256_v21, %v239_v12  ;;  %v399_v28 = vmax.f32 %v350_v20, 0.0 }
  0x3e   : > { %v326_v25 = vadd.f32 %v1273_v29, %v270_v13  ;;  %v351_v31 = vadd.f32 %v1273_v29, %v295_v14 }
  0x3f   : > { %969 = vmatmul.mubr.f32.gmra.mrb[12].mxu0 %v368_v19  ;;  %1044 = vmatmul.mubr.f32.gmra.mrb[12].mxu1 %v393_v22  ;;  %v325_v19 = vadd.f32 %v1273_v29, %v269_v7  ;;  %v215_v22 = vld [vmem:[%s1250_s20 + $0x70] sm:$0xff] }
  0x40   : > { %971 = vmatprep.mubr.msk.f32.mxu0 %vm1157_vm0, %v1158_v6  ;;  %1046 = vmatprep.mubr.msk.f32.mxu1 %vm1157_vm0, %v1158_v6  ;;  %v271_v26 = vmul.f32 %v1256_v21, %v215_v22  ;;  %v375_v38 = vmax.f32 %v326_v25, 0.0  ;;  %v400_v39 = vmax.f32 %v351_v31, 0.0 }
  0x41   : > { %v374_v27 = vmax.f32 %v325_v19, 0.0 }
  0x42   : > { %v327_v36 = vadd.f32 %v1273_v29, %v271_v26 }
  0x43   : > { %972 = vmatmul.mubr.f32.gmra.mrb[14].mxu0 %v369_v33  ;;  %1047 = vmatmul.mubr.f32.gmra.mrb[14].mxu1 %v394_v35  ;;  %v216_v33 = vld [vmem:[%s1250_s20 + $0x78] sm:$0xff]  ;;  %v241_v35 = vld [vmem:[%s1250_s20 + $0x140] sm:$0xff] }
  0x44   : > { %974 = vmatprep.mubr.msk.f32.mxu0 %vm1157_vm0, %v1158_v6  ;;  %1049 = vmatprep.mubr.msk.f32.mxu1 %vm1157_vm0, %v1158_v6  ;;  %v272_v37 = vmul.f32 %v1256_v21, %v216_v33  ;;  %v297_v42 = vmul.f32 %v1256_v21, %v241_v35 }
  0x46   : > { %v328_v45 = vadd.f32 %v1273_v29, %v272_v37  ;;  %v353_v48 = vadd.f32 %v1273_v29, %v297_v42  ;;  %v378_v29 = vmax.f32 %v1332_v10, 0.0  ;;  %v380_v10 = vmax.f32 %v1351_v23, 0.0 }
  0x47   : > { %975 = vmatmul.mubr.f32.gmra.mrb[16].mxu0 %v370_v43  ;;  %1050 = vmatmul.mubr.f32.gmra.mrb[16].mxu1 %v395_v44  ;;  %v376_v43 = vmax.f32 %v327_v36, 0.0  ;;  %v401_v44 = vmax.f32 %v352_v40, 0.0  ;;  %v382_v23 = vmax.f32 %v1385_v46, 0.0  ;;  %v384_v46 = vmax.f32 %v1407_v56, 0.0 }
  0x48   : > { %977 = vmatprep.mubr.msk.f32.mxu0 %vm1157_vm0, %v1158_v6  ;;  %1052 = vmatprep.mubr.msk.f32.mxu1 %vm1157_vm0, %v1158_v6  ;;  %v377_v21 = vmax.f32 %v328_v45, 0.0  ;;  %v402_v49 = vmax.f32 %v353_v48, 0.0  ;;  %v386_v56 = vmax.f32 %v1430_v5, 0.0 }
  0x4b   : > { %978 = vmatmul.mubr.f32.gmra.mrb[18].mxu0 %v371_v55  ;;  %1053 = vmatmul.mubr.f32.gmra.mrb[18].mxu1 %v396_v57 }
  0x4c   : > { %980 = vmatprep.mubr.msk.f32.mxu0 %vm1157_vm0, %v1158_v6  ;;  %1055 = vmatprep.mubr.msk.f32.mxu1 %vm1157_vm0, %v1158_v6 }
  0x4f   : > { %981 = vmatmul.mubr.f32.gmra.mrb[20].mxu0 %v372_v63  ;;  %1056 = vmatmul.mubr.f32.gmra.mrb[20].mxu1 %v397_v2 }
  0x50   : > { %983 = vmatprep.mubr.msk.f32.mxu0 %vm1157_vm0, %v1158_v6  ;;  %1058 = vmatprep.mubr.msk.f32.mxu1 %vm1157_vm0, %v1158_v6 }
  0x53   : > { %984 = vmatmul.mubr.f32.gmra.mrb[22].mxu0 %v373_v17  ;;  %1059 = vmatmul.mubr.f32.gmra.mrb[22].mxu1 %v398_v18 }
  0x54   : > { %986 = vmatprep.mubr.msk.f32.mxu0 %vm1157_vm0, %v1158_v6  ;;  %1061 = vmatprep.mubr.msk.f32.mxu1 %vm1157_vm0, %v1158_v6 }
  0x57   : > { %987 = vmatmul.mubr.f32.gmra.mrb[24].mxu0 %v374_v27  ;;  %1062 = vmatmul.mubr.f32.gmra.mrb[24].mxu1 %v399_v28 }
  0x58   : > { %989 = vmatprep.mubr.msk.f32.mxu0 %vm1157_vm0, %v1158_v6  ;;  %1064 = vmatprep.mubr.msk.f32.mxu1 %vm1157_vm0, %v1158_v6 }
  0x5b   : > { %990 = vmatmul.mubr.f32.gmra.mrb[26].mxu0 %v375_v38  ;;  %1065 = vmatmul.mubr.f32.gmra.mrb[26].mxu1 %v400_v39 }
  0x5c   : > { %992 = vmatprep.mubr.msk.f32.mxu0 %vm1157_vm0, %v1158_v6  ;;  %1067 = vmatprep.mubr.msk.f32.mxu1 %vm1157_vm0, %v1158_v6 }
  0x5f   : > { %993 = vmatmul.mubr.f32.gmra.mrb[28].mxu0 %v376_v43  ;;  %1068 = vmatmul.mubr.f32.gmra.mrb[28].mxu1 %v401_v44 }
  0x60   : > { %995 = vmatprep.mubr.msk.f32.mxu0 %vm1157_vm0, %v1158_v6  ;;  %1070 = vmatprep.mubr.msk.f32.mxu1 %vm1157_vm0, %v1158_v6 }
  0x63   : > { %996 = vmatmul.mubr.f32.gmra.mrb[30].mxu0 %v377_v21  ;;  %1071 = vmatmul.mubr.f32.gmra.mrb[30].mxu1 %v402_v49 }
  0x64   : > { %998 = vmatprep.mubr.msk.f32.mxu0 %vm1157_vm0, %v1158_v6  ;;  %1073 = vmatprep.mubr.msk.f32.mxu1 %vm1157_vm0, %v1158_v6 }
  0x67   : > { %999 = vmatmul.mubr.f32.gmra.mrb[32].mxu0 %v378_v29  ;;  %1074 = vmatmul.mubr.f32.gmra.mrb[32].mxu1 %v403_v52 }
  0x68   : > { %1001 = vmatprep.mubr.msk.f32.mxu0 %vm1157_vm0, %v1158_v6  ;;  %1076 = vmatprep.mubr.msk.f32.mxu1 %vm1157_vm0, %v1158_v6 }
  0x6b   : > { %1002 = vmatmul.mubr.f32.gmra.mrb[34].mxu0 %v379_v53  ;;  %1077 = vmatmul.mubr.f32.gmra.mrb[34].mxu1 %v404_v54 }
  0x6c   : > { %1004 = vmatprep.mubr.msk.f32.mxu0 %vm1157_vm0, %v1158_v6  ;;  %1079 = vmatprep.mubr.msk.f32.mxu1 %vm1157_vm0, %v1158_v6 }
  0x6f   : > { %1005 = vmatmul.mubr.f32.gmra.mrb[36].mxu0 %v380_v10  ;;  %1080 = vmatmul.mubr.f32.gmra.mrb[36].mxu1 %v405_v11 }
  0x70   : > { %1007 = vmatprep.mubr.msk.f32.mxu0 %vm1157_vm0, %v1158_v6  ;;  %1082 = vmatprep.mubr.msk.f32.mxu1 %vm1157_vm0, %v1158_v6 }
  0x73   : > { %1008 = vmatmul.mubr.f32.gmra.mrb[38].mxu0 %v381_v15  ;;  %1083 = vmatmul.mubr.f32.gmra.mrb[38].mxu1 %v406_v16 }
  0x74   : > { %1010 = vmatprep.mubr.msk.f32.mxu0 %vm1157_vm0, %v1158_v6  ;;  %1085 = vmatprep.mubr.msk.f32.mxu1 %vm1157_vm0, %v1158_v6 }
  0x77   : > { %1011 = vmatmul.mubr.f32.gmra.mrb[40].mxu0 %v382_v23  ;;  %1086 = vmatmul.mubr.f32.gmra.mrb[40].mxu1 %v407_v30 }
  0x78   : > { %1013 = vmatprep.mubr.msk.f32.mxu0 %vm1157_vm0, %v1158_v6  ;;  %1088 = vmatprep.mubr.msk.f32.mxu1 %vm1157_vm0, %v1158_v6 }
  0x7b   : > { %1014 = vmatmul.mubr.f32.gmra.mrb[42].mxu0 %v383_v34  ;;  %1089 = vmatmul.mubr.f32.gmra.mrb[42].mxu1 %v408_v41 }
  0x7c   : > { %1016 = vmatprep.mubr.msk.f32.mxu0 %vm1157_vm0, %v1158_v6  ;;  %1091 = vmatprep.mubr.msk.f32.mxu1 %vm1157_vm0, %v1158_v6 }
  0x7f   : > { %1017 = vmatmul.mubr.f32.gmra.mrb[44].mxu0 %v384_v46  ;;  %1092 = vmatmul.mubr.f32.gmra.mrb[44].mxu1 %v409_v47 }
  0x80   : > { %1019 = vmatprep.mubr.msk.f32.mxu0 %vm1157_vm0, %v1158_v6  ;;  %1094 = vmatprep.mubr.msk.f32.mxu1 %vm1157_vm0, %v1158_v6 }
  0x83   : > { %1020 = vmatmul.mubr.f32.gmra.mrb[46].mxu0 %v385_v50  ;;  %1095 = vmatmul.mubr.f32.gmra.mrb[46].mxu1 %v410_v51 }
  0x84   : > { %1022 = vmatprep.mubr.msk.f32.mxu0 %vm1157_vm0, %v1158_v6 }
  0x87   : > { %1023 = vmatmul.mubr.f32.gmra.mrb[48].mxu0 %v386_v56 }
  0xfa   : > { %v493_v60 = vpop.f32.mrb[0].mxu0  ;;  %v618_v1 = vpop.f32.mrb[0].mxu1 }
  0xfb   : > { %737 = vst [vmem:[%s1586_s10] sm:$0xff] %v493_v60  ;;  %v952_v4 = vpop.f32.mrb[1].mxu0  ;;  %762 = vst [vmem:[%s1586_s10 + $0xc8] sm:$0xff] %v618_v1  ;;  %v1027_v6 = vpop.f32.mrb[1].mxu1 }
  0xfe   : > { %v498_v5 = vpop.f32.mrb[2].mxu0  ;;  %v623_v55 = vpop.f32.mrb[2].mxu1 }
  0xff   : > { %738 = vst [vmem:[%s1586_s10 + $0x8] sm:$0xff] %v498_v5  ;;  %v955_v57 = vpop.f32.mrb[3].mxu0  ;;  %763 = vst [vmem:[%s1586_s10 + $0xd0] sm:$0xff] %v623_v55  ;;  %v1030_v58 = vpop.f32.mrb[3].mxu1 }
 0x102   : > { %v503_v59 = vpop.f32.mrb[4].mxu0  ;;  %v628_v61 = vpop.f32.mrb[4].mxu1 }
 0x103   : > { %739 = vst [vmem:[%s1586_s10 + $0x10] sm:$0xff] %v503_v59  ;;  %v958_v62 = vpop.f32.mrb[5].mxu0  ;;  %764 = vst [vmem:[%s1586_s10 + $0xd8] sm:$0xff] %v628_v61  ;;  %v1033_v63 = vpop.f32.mrb[5].mxu1 }
 0x106   : > { %v508_v0 = vpop.f32.mrb[6].mxu0  ;;  %v633_v2 = vpop.f32.mrb[6].mxu1 }
 0x107   : > { %740 = vst [vmem:[%s1586_s10 + $0x18] sm:$0xff] %v508_v0  ;;  %v961_v3 = vpop.f32.mrb[7].mxu0  ;;  %765 = vst [vmem:[%s1586_s10 + $0xe0] sm:$0xff] %v633_v2  ;;  %v1036_v7 = vpop.f32.mrb[7].mxu1 }
 0x10a   : > { %v513_v8 = vpop.f32.mrb[8].mxu0  ;;  %v638_v9 = vpop.f32.mrb[8].mxu1 }
 0x10b   : > { %741 = vst [vmem:[%s1586_s10 + $0x20] sm:$0xff] %v513_v8  ;;  %v964_v12 = vpop.f32.mrb[9].mxu0  ;;  %766 = vst [vmem:[%s1586_s10 + $0xe8] sm:$0xff] %v638_v9  ;;  %v1039_v13 = vpop.f32.mrb[9].mxu1 }
 0x10e   : > { %v518_v14 = vpop.f32.mrb[10].mxu0  ;;  %v643_v17 = vpop.f32.mrb[10].mxu1 }
 0x10f   : > { %742 = vst [vmem:[%s1586_s10 + $0x28] sm:$0xff] %v518_v14  ;;  %v967_v18 = vpop.f32.mrb[11].mxu0  ;;  %767 = vst [vmem:[%s1586_s10 + $0xf0] sm:$0xff] %v643_v17  ;;  %v1042_v19 = vpop.f32.mrb[11].mxu1 }
 0x112   : > { %v523_v20 = vpop.f32.mrb[12].mxu0  ;;  %v648_v22 = vpop.f32.mrb[12].mxu1 }
 0x113   : > { %743 = vst [vmem:[%s1586_s10 + $0x30] sm:$0xff] %v523_v20  ;;  %v970_v24 = vpop.f32.mrb[13].mxu0  ;;  %768 = vst [vmem:[%s1586_s10 + $0xf8] sm:$0xff] %v648_v22  ;;  %v1045_v25 = vpop.f32.mrb[13].mxu1 }
 0x116   : > { %v528_v26 = vpop.f32.mrb[14].mxu0  ;;  %v653_v27 = vpop.f32.mrb[14].mxu1 }
 0x117   : > { %744 = vst [vmem:[%s1586_s10 + $0x38] sm:$0xff] %v528_v26  ;;  %v973_v28 = vpop.f32.mrb[15].mxu0  ;;  %769 = vst [vmem:[%s1586_s10 + $0x100] sm:$0xff] %v653_v27  ;;  %v1048_v31 = vpop.f32.mrb[15].mxu1 }
 0x11a   : > { %v533_v32 = vpop.f32.mrb[16].mxu0  ;;  %v658_v33 = vpop.f32.mrb[16].mxu1 }
 0x11b   : > { %745 = vst [vmem:[%s1586_s10 + $0x40] sm:$0xff] %v533_v32  ;;  %v976_v35 = vpop.f32.mrb[17].mxu0  ;;  %770 = vst [vmem:[%s1586_s10 + $0x108] sm:$0xff] %v658_v33  ;;  %v1051_v36 = vpop.f32.mrb[17].mxu1 }
 0x11e   : > { %v538_v37 = vpop.f32.mrb[18].mxu0  ;;  %v663_v38 = vpop.f32.mrb[18].mxu1 }
 0x11f   : > { %746 = vst [vmem:[%s1586_s10 + $0x48] sm:$0xff] %v538_v37  ;;  %v979_v39 = vpop.f32.mrb[19].mxu0  ;;  %771 = vst [vmem:[%s1586_s10 + $0x110] sm:$0xff] %v663_v38  ;;  %v1054_v40 = vpop.f32.mrb[19].mxu1 }
 0x122   : > { %v543_v42 = vpop.f32.mrb[20].mxu0  ;;  %v668_v43 = vpop.f32.mrb[20].mxu1 }
 0x123   : > { %747 = vst [vmem:[%s1586_s10 + $0x50] sm:$0xff] %v543_v42  ;;  %v982_v44 = vpop.f32.mrb[21].mxu0  ;;  %772 = vst [vmem:[%s1586_s10 + $0x118] sm:$0xff] %v668_v43  ;;  %v1057_v45 = vpop.f32.mrb[21].mxu1 }
 0x126   : > { %v548_v48 = vpop.f32.mrb[22].mxu0  ;;  %v673_v21 = vpop.f32.mrb[22].mxu1 }
 0x127   : > { %748 = vst [vmem:[%s1586_s10 + $0x58] sm:$0xff] %v548_v48  ;;  %v985_v49 = vpop.f32.mrb[23].mxu0  ;;  %773 = vst [vmem:[%s1586_s10 + $0x120] sm:$0xff] %v673_v21  ;;  %v1060_v29 = vpop.f32.mrb[23].mxu1 }
 0x12a   : > { %v553_v52 = vpop.f32.mrb[24].mxu0  ;;  %v678_v53 = vpop.f32.mrb[24].mxu1 }
 0x12b   : > { %749 = vst [vmem:[%s1586_s10 + $0x60] sm:$0xff] %v553_v52  ;;  %v988_v54 = vpop.f32.mrb[25].mxu0  ;;  %774 = vst [vmem:[%s1586_s10 + $0x128] sm:$0xff] %v678_v53  ;;  %v1063_v10 = vpop.f32.mrb[25].mxu1 }
 0x12e   : > { %v558_v11 = vpop.f32.mrb[26].mxu0  ;;  %v683_v15 = vpop.f32.mrb[26].mxu1 }
 0x12f   : > { %750 = vst [vmem:[%s1586_s10 + $0x68] sm:$0xff] %v558_v11  ;;  %v991_v16 = vpop.f32.mrb[27].mxu0  ;;  %775 = vst [vmem:[%s1586_s10 + $0x130] sm:$0xff] %v683_v15  ;;  %v1066_v23 = vpop.f32.mrb[27].mxu1 }
 0x132   : > { %v563_v30 = vpop.f32.mrb[28].mxu0  ;;  %v688_v34 = vpop.f32.mrb[28].mxu1 }
 0x133   : > { %751 = vst [vmem:[%s1586_s10 + $0x70] sm:$0xff] %v563_v30  ;;  %v994_v41 = vpop.f32.mrb[29].mxu0  ;;  %776 = vst [vmem:[%s1586_s10 + $0x138] sm:$0xff] %v688_v34  ;;  %v1069_v46 = vpop.f32.mrb[29].mxu1 }
 0x136   : > { %v568_v47 = vpop.f32.mrb[30].mxu0  ;;  %v693_v50 = vpop.f32.mrb[30].mxu1 }
 0x137   : > { %752 = vst [vmem:[%s1586_s10 + $0x78] sm:$0xff] %v568_v47  ;;  %v997_v51 = vpop.f32.mrb[31].mxu0  ;;  %777 = vst [vmem:[%s1586_s10 + $0x140] sm:$0xff] %v693_v50  ;;  %v1072_v56 = vpop.f32.mrb[31].mxu1 }
 0x13a   : > { %v573_v60 = vpop.f32.mrb[32].mxu0  ;;  %v698_v1 = vpop.f32.mrb[32].mxu1 }
 0x13b   : > { %753 = vst [vmem:[%s1586_s10 + $0x80] sm:$0xff] %v573_v60  ;;  %v1000_v4 = vpop.f32.mrb[33].mxu0  ;;  %778 = vst [vmem:[%s1586_s10 + $0x148] sm:$0xff] %v698_v1  ;;  %v1075_v6 = vpop.f32.mrb[33].mxu1 }
 0x13e   : > { %v578_v5 = vpop.f32.mrb[34].mxu0  ;;  %v703_v55 = vpop.f32.mrb[34].mxu1 }
 0x13f   : > { %754 = vst [vmem:[%s1586_s10 + $0x88] sm:$0xff] %v578_v5  ;;  %v1003_v57 = vpop.f32.mrb[35].mxu0  ;;  %779 = vst [vmem:[%s1586_s10 + $0x150] sm:$0xff] %v703_v55  ;;  %v1078_v58 = vpop.f32.mrb[35].mxu1 }
 0x142   : > { %v583_v59 = vpop.f32.mrb[36].mxu0  ;;  %v708_v61 = vpop.f32.mrb[36].mxu1 }
 0x143   : > { %755 = vst [vmem:[%s1586_s10 + $0x90] sm:$0xff] %v583_v59  ;;  %v1006_v62 = vpop.f32.mrb[37].mxu0  ;;  %780 = vst [vmem:[%s1586_s10 + $0x158] sm:$0xff] %v708_v61  ;;  %v1081_v63 = vpop.f32.mrb[37].mxu1 }
 0x146   : > { %v588_v0 = vpop.f32.mrb[38].mxu0  ;;  %v713_v2 = vpop.f32.mrb[38].mxu1 }
 0x147   : > { %756 = vst [vmem:[%s1586_s10 + $0x98] sm:$0xff] %v588_v0  ;;  %v1009_v3 = vpop.f32.mrb[39].mxu0  ;;  %781 = vst [vmem:[%s1586_s10 + $0x160] sm:$0xff] %v713_v2  ;;  %v1084_v7 = vpop.f32.mrb[39].mxu1 }
 0x14a   : > { %v593_v8 = vpop.f32.mrb[40].mxu0  ;;  %v718_v9 = vpop.f32.mrb[40].mxu1 }
 0x14b   : > { %757 = vst [vmem:[%s1586_s10 + $0xa0] sm:$0xff] %v593_v8  ;;  %v1012_v12 = vpop.f32.mrb[41].mxu0  ;;  %782 = vst [vmem:[%s1586_s10 + $0x168] sm:$0xff] %v718_v9  ;;  %v1087_v13 = vpop.f32.mrb[41].mxu1 }
 0x14e   : > { %v598_v14 = vpop.f32.mrb[42].mxu0  ;;  %v723_v17 = vpop.f32.mrb[42].mxu1 }
 0x14f   : > { %758 = vst [vmem:[%s1586_s10 + $0xa8] sm:$0xff] %v598_v14  ;;  %v1015_v18 = vpop.f32.mrb[43].mxu0  ;;  %783 = vst [vmem:[%s1586_s10 + $0x170] sm:$0xff] %v723_v17  ;;  %v1090_v19 = vpop.f32.mrb[43].mxu1 }
 0x152   : > { %v603_v20 = vpop.f32.mrb[44].mxu0  ;;  %v728_v22 = vpop.f32.mrb[44].mxu1 }
 0x153   : > { %759 = vst [vmem:[%s1586_s10 + $0xb0] sm:$0xff] %v603_v20  ;;  %v1018_v24 = vpop.f32.mrb[45].mxu0  ;;  %784 = vst [vmem:[%s1586_s10 + $0x178] sm:$0xff] %v728_v22  ;;  %v1093_v25 = vpop.f32.mrb[45].mxu1 }
 0x156   : > { %v608_v26 = vpop.f32.mrb[46].mxu0  ;;  %v733_v27 = vpop.f32.mrb[46].mxu1 }
 0x157   : > { %760 = vst [vmem:[%s1586_s10 + $0xb8] sm:$0xff] %v608_v26  ;;  %v1021_v28 = vpop.f32.mrb[47].mxu0  ;;  %785 = vst [vmem:[%s1586_s10 + $0x180] sm:$0xff] %v733_v27  ;;  %v1096_v31 = vpop.f32.mrb[47].mxu1 }
 0x15a   : > { %v613_v32 = vpop.f32.mrb[48].mxu0 }
 0x15b   : > { %761 = vst [vmem:[%s1586_s10 + $0xc0] sm:$0xff] %v613_v32  ;;  %v1024_v33 = vpop.f32.mrb[49].mxu0 }
 0x15c PF: > { %s14_s15 = sadd.s32 1, %s1154_s15  }
 0x15d   : > { %p11_p4 = scmp.ge.s32.totalorder %s14_s15, 6  }
 0x15f   :  { %13 = sbr.rel (!%p11_p4) target bundleno = 1 (0x1), region = 66 }

// kernel: densenet_forward_pallas.27
= control target key start
LH: loop header
LB: loop body
LE: loop exit
PB: predicated region body
PF: predicated region fallthrough
CT: control target
= control target key end

     0   :  { %s781_s12 = smov 0   ;;  %s1204_s0 = inlined_call_operand.vmem [shape: f32[1568,128], index: 0, kind: input, shape index: {}]   ;;  %s1205_s1 = inlined_call_operand.vmem [shape: f32[1,128], index: 1, kind: input, shape index: {}]   ;;  %s1206_s2 = inlined_call_operand.vmem [shape: f32[1,128], index: 2, kind: input, shape index: {}]   ;;  %s1207_s3 = inlined_call_operand.vmem [shape: f32[1568,128], index: 3, kind: output, shape index: {}]  }
   0x1 LB: > { %s734_s13 = sadd.s32 4294967295, %s759_s12   ;;  %p738_p0 = scmp.ge.s32.totalorder %s759_s12, 1  ;;  %s759_s12 = sphi %s781_s12, %s13_s12  }
   0x2   : > { %p138_p1 = scmp.lt.s32.totalorder %s759_s12, 3 }
   0x4   : > { %p139_p2 = pnand %p738_p0, %p138_p1 }
   0x5   : > { %s162_s14 = smul.u32 (!%p139_p2), 98, %s734_s13  ;;  %v792_v0 = vld [vmem:[%s1205_s1] ss:$0 sm:$0xff] (!%p139_p2) }
   0x6   : > { %142 = sbr.rel (%p139_p2) target bundleno = 96 (0x60), region = 32  ;;  %v802_v1 = vld [vmem:[%s1206_s2] ss:$0 sm:$0xff] (!%p139_p2) }
   0x7   : > { %p163_p3 = scmp.lt.s32.totalorder (!%p139_p2), %s162_s14, 195 }
   0xd   : > { %s1209_s14 = smov (!%p163_p3, %s162_s14), 195 }
   0xe   : > { %s739_s15 = sshll.u32 %s1209_s14, 3 }
   0xf   : > { %s797_s20 = scalar_lea.vmem %s1204_s0, %s739_s15  ;;  %s825_s25 = scalar_lea.vmem %s1207_s3, %s739_s15 }
  0x10   : > { %v174_v2 = vld [vmem:[%s797_s20] sm:$0xff]  ;;  %v175_v3 = vld [vmem:[%s797_s20 + $0x8] sm:$0xff]  ;;  %v176_v4 = vld [vmem:[%s797_s20 + $0x10] sm:$0xff] }
  0x11   : > { %v279_v5 = vmul.f32 %v792_v0, %v174_v2  ;;  %v280_v6 = vmul.f32 %v792_v0, %v175_v3  ;;  %v281_v7 = vmul.f32 %v792_v0, %v176_v4  ;;  %v177_v8 = vld [vmem:[%s797_s20 + $0x18] sm:$0xff]  ;;  %v178_v9 = vld [vmem:[%s797_s20 + $0x20] sm:$0xff]  ;;  %v179_v10 = vld [vmem:[%s797_s20 + $0x28] sm:$0xff] }
  0x12   : > { %v282_v11 = vmul.f32 %v792_v0, %v177_v8  ;;  %v283_v12 = vmul.f32 %v792_v0, %v178_v9  ;;  %v284_v13 = vmul.f32 %v792_v0, %v179_v10  ;;  %v180_v14 = vld [vmem:[%s797_s20 + $0x30] sm:$0xff]  ;;  %v181_v15 = vld [vmem:[%s797_s20 + $0x38] sm:$0xff]  ;;  %v182_v24 = vld [vmem:[%s797_s20 + $0x40] sm:$0xff] }
  0x13   : > { %v384_v16 = vadd.f32 %v802_v1, %v279_v5  ;;  %v385_v17 = vadd.f32 %v802_v1, %v280_v6  ;;  %v386_v18 = vadd.f32 %v802_v1, %v281_v7  ;;  %v285_v19 = vmul.f32 %v792_v0, %v180_v14  ;;  %v183_v25 = vld [vmem:[%s797_s20 + $0x48] sm:$0xff]  ;;  %v184_v26 = vld [vmem:[%s797_s20 + $0x50] sm:$0xff]  ;;  %v185_v31 = vld [vmem:[%s797_s20 + $0x58] sm:$0xff] }
  0x14   : > { %v387_v20 = vadd.f32 %v802_v1, %v282_v11  ;;  %v388_v21 = vadd.f32 %v802_v1, %v283_v12  ;;  %v389_v22 = vadd.f32 %v802_v1, %v284_v13  ;;  %v286_v23 = vmul.f32 %v792_v0, %v181_v15  ;;  %v186_v32 = vld [vmem:[%s797_s20 + $0x60] sm:$0xff]  ;;  %v187_v33 = vld [vmem:[%s797_s20 + $0x68] sm:$0xff]  ;;  %v188_v38 = vld [vmem:[%s797_s20 + $0x70] sm:$0xff] }
  0x15   : > { %v482_v27 = vmax.f32 %v384_v16, 0.0  ;;  %v483_v28 = vmax.f32 %v385_v17, 0.0  ;;  %v484_v29 = vmax.f32 %v386_v18, 0.0  ;;  %v390_v30 = vadd.f32 %v802_v1, %v285_v19  ;;  %v189_v43 = vld [vmem:[%s797_s20 + $0x78] sm:$0xff]  ;;  %v190_v56 = vld [vmem:[%s797_s20 + $0x80] sm:$0xff]  ;;  %v191_v57 = vld [vmem:[%s797_s20 + $0x88] sm:$0xff] }
  0x16   : > { %v485_v34 = vmax.f32 %v387_v20, 0.0  ;;  %v486_v35 = vmax.f32 %v388_v21, 0.0  ;;  %v487_v36 = vmax.f32 %v389_v22, 0.0  ;;  %v391_v37 = vadd.f32 %v802_v1, %v286_v23  ;;  %v192_v58 = vld [vmem:[%s797_s20 + $0x90] sm:$0xff]  ;;  %v193_v63 = vld [vmem:[%s797_s20 + $0x98] sm:$0xff]  ;;  %v194_v2 = vld [vmem:[%s797_s20 + $0xa0] sm:$0xff] }
  0x17   : > { %580 = vst [vmem:[%s825_s25] sm:$0xff] %v482_v27  ;;  %581 = vst [vmem:[%s825_s25 + $0x8] sm:$0xff] %v483_v28  ;;  %v488_v39 = vmax.f32 %v390_v30, 0.0  ;;  %v287_v40 = vmul.f32 %v792_v0, %v182_v24  ;;  %v288_v41 = vmul.f32 %v792_v0, %v183_v25  ;;  %v289_v42 = vmul.f32 %v792_v0, %v184_v26  ;;  %v195_v3 = vld [vmem:[%s797_s20 + $0xa8] sm:$0xff]  ;;  %v196_v8 = vld [vmem:[%s797_s20 + $0xb0] sm:$0xff] }
  0x18   : > { %582 = vst [vmem:[%s825_s25 + $0x10] sm:$0xff] %v484_v29  ;;  %583 = vst [vmem:[%s825_s25 + $0x18] sm:$0xff] %v485_v34  ;;  %v489_v44 = vmax.f32 %v391_v37, 0.0  ;;  %v290_v45 = vmul.f32 %v792_v0, %v185_v31  ;;  %v291_v46 = vmul.f32 %v792_v0, %v186_v32  ;;  %v292_v47 = vmul.f32 %v792_v0, %v187_v33  ;;  %v197_v13 = vld [vmem:[%s797_s20 + $0xb8] sm:$0xff]  ;;  %v198_v26 = vld [vmem:[%s797_s20 + $0xc0] sm:$0xff] }
  0x19   : > { %584 = vst [vmem:[%s825_s25 + $0x20] sm:$0xff] %v486_v35  ;;  %585 = vst [vmem:[%s825_s25 + $0x28] sm:$0xff] %v487_v36  ;;  %v392_v48 = vadd.f32 %v802_v1, %v287_v40  ;;  %v393_v49 = vadd.f32 %v802_v1, %v288_v41  ;;  %v394_v50 = vadd.f32 %v802_v1, %v289_v42  ;;  %v199_v27 = vld [vmem:[%s797_s20 + $0xc8] sm:$0xff]  ;;  %v200_v28 = vld [vmem:[%s797_s20 + $0xd0] sm:$0xff] }
  0x1a   : > { %586 = vst [vmem:[%s825_s25 + $0x30] sm:$0xff] %v488_v39  ;;  %v293_v51 = vmul.f32 %v792_v0, %v188_v38  ;;  %587 = vst [vmem:[%s825_s25 + $0x38] sm:$0xff] %v489_v44  ;;  %v395_v52 = vadd.f32 %v802_v1, %v290_v45  ;;  %v396_v53 = vadd.f32 %v802_v1, %v291_v46  ;;  %v201_v33 = vld [vmem:[%s797_s20 + $0xd8] sm:$0xff]  ;;  %v202_v34 = vld [vmem:[%s797_s20 + $0xe0] sm:$0xff] }
  0x1b   : > { %v397_v54 = vadd.f32 %v802_v1, %v292_v47  ;;  %v294_v55 = vmul.f32 %v792_v0, %v189_v43  ;;  %v490_v59 = vmax.f32 %v392_v48, 0.0  ;;  %v491_v60 = vmax.f32 %v393_v49, 0.0  ;;  %v203_v35 = vld [vmem:[%s797_s20 + $0xe8] sm:$0xff]  ;;  %v204_v40 = vld [vmem:[%s797_s20 + $0xf0] sm:$0xff]  ;;  %v205_v45 = vld [vmem:[%s797_s20 + $0xf8] sm:$0xff] }
  0x1c   : > { %v492_v61 = vmax.f32 %v394_v50, 0.0  ;;  %v398_v62 = vadd.f32 %v802_v1, %v293_v51  ;;  %v493_v4 = vmax.f32 %v395_v52, 0.0  ;;  %v494_v5 = vmax.f32 %v396_v53, 0.0 }
  0x1d   : > { %v495_v6 = vmax.f32 %v397_v54, 0.0  ;;  %v399_v7 = vadd.f32 %v802_v1, %v294_v55  ;;  %588 = vst [vmem:[%s825_s25 + $0x40] sm:$0xff] %v490_v59  ;;  %589 = vst [vmem:[%s825_s25 + $0x48] sm:$0xff] %v491_v60  ;;  %v295_v10 = vmul.f32 %v792_v0, %v190_v56  ;;  %v296_v11 = vmul.f32 %v792_v0, %v191_v57  ;;  %v207_v59 = vld [vmem:[%s797_s20 + $0x108] sm:$0xff]  ;;  %v208_v60 = vld [vmem:[%s797_s20 + $0x110] sm:$0xff] }
  0x1e   : > { %590 = vst [vmem:[%s825_s25 + $0x50] sm:$0xff] %v492_v61  ;;  %v496_v9 = vmax.f32 %v398_v62, 0.0  ;;  %v297_v12 = vmul.f32 %v792_v0, %v192_v58  ;;  %591 = vst [vmem:[%s825_s25 + $0x58] sm:$0xff] %v493_v4  ;;  %v298_v15 = vmul.f32 %v792_v0, %v193_v63  ;;  %v299_v16 = vmul.f32 %v792_v0, %v194_v2  ;;  %v206_v58 = vld [vmem:[%s797_s20 + $0x100] sm:$0xff] }
  0x1f   : > { %592 = vst [vmem:[%s825_s25 + $0x60] sm:$0xff] %v494_v5  ;;  %593 = vst [vmem:[%s825_s25 + $0x68] sm:$0xff] %v495_v6  ;;  %v497_v14 = vmax.f32 %v399_v7, 0.0  ;;  %v300_v17 = vmul.f32 %v792_v0, %v195_v3  ;;  %v400_v18 = vadd.f32 %v802_v1, %v295_v10  ;;  %v401_v19 = vadd.f32 %v802_v1, %v296_v11  ;;  %v209_v3 = vld [vmem:[%s797_s20 + $0x118] sm:$0xff]  ;;  %v210_v4 = vld [vmem:[%s797_s20 + $0x120] sm:$0xff] }
  0x20   : > { %594 = vst [vmem:[%s825_s25 + $0x70] sm:$0xff] %v496_v9  ;;  %v402_v20 = vadd.f32 %v802_v1, %v297_v12  ;;  %v301_v21 = vmul.f32 %v792_v0, %v196_v8  ;;  %v403_v22 = vadd.f32 %v802_v1, %v298_v15  ;;  %v404_v23 = vadd.f32 %v802_v1, %v299_v16  ;;  %v211_v5 = vld [vmem:[%s797_s20 + $0x128] sm:$0xff]  ;;  %v212_v10 = vld [vmem:[%s797_s20 + $0x130] sm:$0xff]  ;;  %v213_v15 = vld [vmem:[%s797_s20 + $0x138] sm:$0xff] }
  0x21   : > { %595 = vst [vmem:[%s825_s25 + $0x78] sm:$0xff] %v497_v14  ;;  %v405_v24 = vadd.f32 %v802_v1, %v300_v17  ;;  %v302_v25 = vmul.f32 %v792_v0, %v197_v13  ;;  %v498_v29 = vmax.f32 %v400_v18, 0.0  ;;  %v499_v30 = vmax.f32 %v401_v19, 0.0 }
  0x22   : > { %v500_v31 = vmax.f32 %v402_v20, 0.0  ;;  %v406_v32 = vadd.f32 %v802_v1, %v301_v21  ;;  %v501_v36 = vmax.f32 %v403_v22, 0.0  ;;  %v502_v37 = vmax.f32 %v404_v23, 0.0 }
  0x23   : > { %v503_v38 = vmax.f32 %v405_v24, 0.0  ;;  %v407_v39 = vadd.f32 %v802_v1, %v302_v25  ;;  %596 = vst [vmem:[%s825_s25 + $0x80] sm:$0xff] %v498_v29  ;;  %597 = vst [vmem:[%s825_s25 + $0x88] sm:$0xff] %v499_v30  ;;  %v303_v42 = vmul.f32 %v792_v0, %v198_v26  ;;  %v304_v43 = vmul.f32 %v792_v0, %v199_v27  ;;  %v215_v29 = vld [vmem:[%s797_s20 + $0x148] sm:$0xff]  ;;  %v216_v30 = vld [vmem:[%s797_s20 + $0x150] sm:$0xff] }
  0x24   : > { %598 = vst [vmem:[%s825_s25 + $0x90] sm:$0xff] %v500_v31  ;;  %v504_v41 = vmax.f32 %v406_v32, 0.0  ;;  %v305_v44 = vmul.f32 %v792_v0, %v200_v28  ;;  %599 = vst [vmem:[%s825_s25 + $0x98] sm:$0xff] %v501_v36  ;;  %v306_v47 = vmul.f32 %v792_v0, %v201_v33  ;;  %v307_v48 = vmul.f32 %v792_v0, %v202_v34  ;;  %v214_v28 = vld [vmem:[%s797_s20 + $0x140] sm:$0xff] }
  0x25   : > { %600 = vst [vmem:[%s825_s25 + $0xa0] sm:$0xff] %v502_v37  ;;  %601 = vst [vmem:[%s825_s25 + $0xa8] sm:$0xff] %v503_v38  ;;  %v505_v46 = vmax.f32 %v407_v39, 0.0  ;;  %v308_v49 = vmul.f32 %v792_v0, %v203_v35  ;;  %v408_v50 = vadd.f32 %v802_v1, %v303_v42  ;;  %v409_v51 = vadd.f32 %v802_v1, %v304_v43  ;;  %v217_v35 = vld [vmem:[%s797_s20 + $0x158] sm:$0xff]  ;;  %v218_v36 = vld [vmem:[%s797_s20 + $0x160] sm:$0xff] }
  0x26   : > { %602 = vst [vmem:[%s825_s25 + $0xb0] sm:$0xff] %v504_v41  ;;  %v410_v52 = vadd.f32 %v802_v1, %v305_v44  ;;  %v309_v53 = vmul.f32 %v792_v0, %v204_v40  ;;  %v411_v54 = vadd.f32 %v802_v1, %v306_v47  ;;  %v412_v55 = vadd.f32 %v802_v1, %v307_v48  ;;  %v219_v37 = vld [vmem:[%s797_s20 + $0x168] sm:$0xff]  ;;  %v220_v42 = vld [vmem:[%s797_s20 + $0x170] sm:$0xff]  ;;  %v221_v47 = vld [vmem:[%s797_s20 + $0x178] sm:$0xff] }
  0x27   : > { %603 = vst [vmem:[%s825_s25 + $0xb8] sm:$0xff] %v505_v46  ;;  %v413_v56 = vadd.f32 %v802_v1, %v308_v49  ;;  %v310_v57 = vmul.f32 %v792_v0, %v205_v45  ;;  %v506_v61 = vmax.f32 %v408_v50, 0.0  ;;  %v507_v62 = vmax.f32 %v409_v51, 0.0 }
  0x28   : > { %v508_v63 = vmax.f32 %v410_v52, 0.0  ;;  %v414_v2 = vadd.f32 %v802_v1, %v309_v53  ;;  %v509_v6 = vmax.f32 %v411_v54, 0.0  ;;  %v510_v7 = vmax.f32 %v412_v55, 0.0 }
  0x29   : > { %v511_v8 = vmax.f32 %v413_v56, 0.0  ;;  %v415_v9 = vadd.f32 %v802_v1, %v310_v57  ;;  %604 = vst [vmem:[%s825_s25 + $0xc0] sm:$0xff] %v506_v61  ;;  %605 = vst [vmem:[%s825_s25 + $0xc8] sm:$0xff] %v507_v62  ;;  %v311_v12 = vmul.f32 %v792_v0, %v206_v58  ;;  %v312_v13 = vmul.f32 %v792_v0, %v207_v59  ;;  %v223_v61 = vld [vmem:[%s797_s20 + $0x188] sm:$0xff]  ;;  %v224_v62 = vld [vmem:[%s797_s20 + $0x190] sm:$0xff] }
  0x2a   : > { %606 = vst [vmem:[%s825_s25 + $0xd0] sm:$0xff] %v508_v63  ;;  %v512_v11 = vmax.f32 %v414_v2, 0.0  ;;  %v313_v14 = vmul.f32 %v792_v0, %v208_v60  ;;  %607 = vst [vmem:[%s825_s25 + $0xd8] sm:$0xff] %v509_v6  ;;  %v314_v17 = vmul.f32 %v792_v0, %v209_v3  ;;  %v315_v18 = vmul.f32 %v792_v0, %v210_v4  ;;  %v222_v60 = vld [vmem:[%s797_s20 + $0x180] sm:$0xff] }
  0x2b   : > { %608 = vst [vmem:[%s825_s25 + $0xe0] sm:$0xff] %v510_v7  ;;  %609 = vst [vmem:[%s825_s25 + $0xe8] sm:$0xff] %v511_v8  ;;  %v513_v16 = vmax.f32 %v415_v9, 0.0  ;;  %v316_v19 = vmul.f32 %v792_v0, %v211_v5  ;;  %v416_v20 = vadd.f32 %v802_v1, %v311_v12  ;;  %v417_v21 = vadd.f32 %v802_v1, %v312_v13  ;;  %v225_v5 = vld [vmem:[%s797_s20 + $0x198] sm:$0xff]  ;;  %v226_v6 = vld [vmem:[%s797_s20 + $0x1a0] sm:$0xff] }
  0x2c   : > { %610 = vst [vmem:[%s825_s25 + $0xf0] sm:$0xff] %v512_v11  ;;  %v418_v22 = vadd.f32 %v802_v1, %v313_v14  ;;  %v317_v23 = vmul.f32 %v792_v0, %v212_v10  ;;  %v419_v24 = vadd.f32 %v802_v1, %v314_v17  ;;  %v420_v25 = vadd.f32 %v802_v1, %v315_v18  ;;  %v227_v7 = vld [vmem:[%s797_s20 + $0x1a8] sm:$0xff]  ;;  %v228_v12 = vld [vmem:[%s797_s20 + $0x1b0] sm:$0xff]  ;;  %v229_v17 = vld [vmem:[%s797_s20 + $0x1b8] sm:$0xff] }
  0x2d   : > { %611 = vst [vmem:[%s825_s25 + $0xf8] sm:$0xff] %v513_v16  ;;  %v421_v26 = vadd.f32 %v802_v1, %v316_v19  ;;  %v318_v27 = vmul.f32 %v792_v0, %v213_v15  ;;  %v514_v31 = vmax.f32 %v416_v20, 0.0  ;;  %v515_v32 = vmax.f32 %v417_v21, 0.0 }
  0x2e   : > { %v516_v33 = vmax.f32 %v418_v22, 0.0  ;;  %v422_v34 = vadd.f32 %v802_v1, %v317_v23  ;;  %v517_v38 = vmax.f32 %v419_v24, 0.0  ;;  %v518_v39 = vmax.f32 %v420_v25, 0.0 }
  0x2f   : > { %v519_v40 = vmax.f32 %v421_v26, 0.0  ;;  %v423_v41 = vadd.f32 %v802_v1, %v318_v27  ;;  %612 = vst [vmem:[%s825_s25 + $0x100] sm:$0xff] %v514_v31  ;;  %613 = vst [vmem:[%s825_s25 + $0x108] sm:$0xff] %v515_v32  ;;  %v319_v44 = vmul.f32 %v792_v0, %v214_v28  ;;  %v320_v45 = vmul.f32 %v792_v0, %v215_v29  ;;  %v231_v31 = vld [vmem:[%s797_s20 + $0x1c8] sm:$0xff]  ;;  %v232_v32 = vld [vmem:[%s797_s20 + $0x1d0] sm:$0xff] }
  0x30   : > { %614 = vst [vmem:[%s825_s25 + $0x110] sm:$0xff] %v516_v33  ;;  %v520_v43 = vmax.f32 %v422_v34, 0.0  ;;  %v321_v46 = vmul.f32 %v792_v0, %v216_v30  ;;  %615 = vst [vmem:[%s825_s25 + $0x118] sm:$0xff] %v517_v38  ;;  %v322_v49 = vmul.f32 %v792_v0, %v217_v35  ;;  %v323_v50 = vmul.f32 %v792_v0, %v218_v36  ;;  %v230_v30 = vld [vmem:[%s797_s20 + $0x1c0] sm:$0xff] }
  0x31   : > { %616 = vst [vmem:[%s825_s25 + $0x120] sm:$0xff] %v518_v39  ;;  %617 = vst [vmem:[%s825_s25 + $0x128] sm:$0xff] %v519_v40  ;;  %v521_v48 = vmax.f32 %v423_v41, 0.0  ;;  %v324_v51 = vmul.f32 %v792_v0, %v219_v37  ;;  %v424_v52 = vadd.f32 %v802_v1, %v319_v44  ;;  %v425_v53 = vadd.f32 %v802_v1, %v320_v45  ;;  %v233_v37 = vld [vmem:[%s797_s20 + $0x1d8] sm:$0xff]  ;;  %v234_v38 = vld [vmem:[%s797_s20 + $0x1e0] sm:$0xff] }
  0x32   : > { %618 = vst [vmem:[%s825_s25 + $0x130] sm:$0xff] %v520_v43  ;;  %v426_v54 = vadd.f32 %v802_v1, %v321_v46  ;;  %v325_v55 = vmul.f32 %v792_v0, %v220_v42  ;;  %v427_v56 = vadd.f32 %v802_v1, %v322_v49  ;;  %v428_v57 = vadd.f32 %v802_v1, %v323_v50  ;;  %v235_v39 = vld [vmem:[%s797_s20 + $0x1e8] sm:$0xff]  ;;  %v236_v44 = vld [vmem:[%s797_s20 + $0x1f0] sm:$0xff]  ;;  %v237_v49 = vld [vmem:[%s797_s20 + $0x1f8] sm:$0xff] }
  0x33   : > { %619 = vst [vmem:[%s825_s25 + $0x138] sm:$0xff] %v521_v48  ;;  %v429_v58 = vadd.f32 %v802_v1, %v324_v51  ;;  %v326_v59 = vmul.f32 %v792_v0, %v221_v47  ;;  %v522_v63 = vmax.f32 %v424_v52, 0.0  ;;  %v523_v2 = vmax.f32 %v425_v53, 0.0 }
  0x34   : > { %v524_v3 = vmax.f32 %v426_v54, 0.0  ;;  %v430_v4 = vadd.f32 %v802_v1, %v325_v55  ;;  %v525_v8 = vmax.f32 %v427_v56, 0.0  ;;  %v526_v9 = vmax.f32 %v428_v57, 0.0 }
  0x35   : > { %v527_v10 = vmax.f32 %v429_v58, 0.0  ;;  %v431_v11 = vadd.f32 %v802_v1, %v326_v59  ;;  %620 = vst [vmem:[%s825_s25 + $0x140] sm:$0xff] %v522_v63  ;;  %621 = vst [vmem:[%s825_s25 + $0x148] sm:$0xff] %v523_v2  ;;  %v327_v14 = vmul.f32 %v792_v0, %v222_v60  ;;  %v328_v15 = vmul.f32 %v792_v0, %v223_v61  ;;  %v239_v63 = vld [vmem:[%s797_s20 + $0x208] sm:$0xff]  ;;  %v240_v2 = vld [vmem:[%s797_s20 + $0x210] sm:$0xff] }
  0x36   : > { %622 = vst [vmem:[%s825_s25 + $0x150] sm:$0xff] %v524_v3  ;;  %v528_v13 = vmax.f32 %v430_v4, 0.0  ;;  %v329_v16 = vmul.f32 %v792_v0, %v224_v62  ;;  %623 = vst [vmem:[%s825_s25 + $0x158] sm:$0xff] %v525_v8  ;;  %v330_v19 = vmul.f32 %v792_v0, %v225_v5  ;;  %v331_v20 = vmul.f32 %v792_v0, %v226_v6  ;;  %v238_v62 = vld [vmem:[%s797_s20 + $0x200] sm:$0xff] }
  0x37   : > { %624 = vst [vmem:[%s825_s25 + $0x160] sm:$0xff] %v526_v9  ;;  %625 = vst [vmem:[%s825_s25 + $0x168] sm:$0xff] %v527_v10  ;;  %v529_v18 = vmax.f32 %v431_v11, 0.0  ;;  %v332_v21 = vmul.f32 %v792_v0, %v227_v7  ;;  %v432_v22 = vadd.f32 %v802_v1, %v327_v14  ;;  %v433_v23 = vadd.f32 %v802_v1, %v328_v15  ;;  %v241_v7 = vld [vmem:[%s797_s20 + $0x218] sm:$0xff]  ;;  %v242_v8 = vld [vmem:[%s797_s20 + $0x220] sm:$0xff] }
  0x38   : > { %626 = vst [vmem:[%s825_s25 + $0x170] sm:$0xff] %v528_v13  ;;  %v434_v24 = vadd.f32 %v802_v1, %v329_v16  ;;  %v333_v25 = vmul.f32 %v792_v0, %v228_v12  ;;  %v435_v26 = vadd.f32 %v802_v1, %v330_v19  ;;  %v436_v27 = vadd.f32 %v802_v1, %v331_v20  ;;  %v243_v9 = vld [vmem:[%s797_s20 + $0x228] sm:$0xff]  ;;  %v244_v14 = vld [vmem:[%s797_s20 + $0x230] sm:$0xff]  ;;  %v245_v19 = vld [vmem:[%s797_s20 + $0x238] sm:$0xff] }
  0x39   : > { %627 = vst [vmem:[%s825_s25 + $0x178] sm:$0xff] %v529_v18  ;;  %v437_v28 = vadd.f32 %v802_v1, %v332_v21  ;;  %v334_v29 = vmul.f32 %v792_v0, %v229_v17  ;;  %v530_v33 = vmax.f32 %v432_v22, 0.0  ;;  %v531_v34 = vmax.f32 %v433_v23, 0.0 }
  0x3a   : > { %v532_v35 = vmax.f32 %v434_v24, 0.0  ;;  %v438_v36 = vadd.f32 %v802_v1, %v333_v25  ;;  %v533_v40 = vmax.f32 %v435_v26, 0.0  ;;  %v534_v41 = vmax.f32 %v436_v27, 0.0 }
  0x3b   : > { %v535_v42 = vmax.f32 %v437_v28, 0.0  ;;  %v439_v43 = vadd.f32 %v802_v1, %v334_v29  ;;  %628 = vst [vmem:[%s825_s25 + $0x180] sm:$0xff] %v530_v33  ;;  %629 = vst [vmem:[%s825_s25 + $0x188] sm:$0xff] %v531_v34  ;;  %v335_v46 = vmul.f32 %v792_v0, %v230_v30  ;;  %v336_v47 = vmul.f32 %v792_v0, %v231_v31  ;;  %v247_v33 = vld [vmem:[%s797_s20 + $0x248] sm:$0xff]  ;;  %v248_v34 = vld [vmem:[%s797_s20 + $0x250] sm:$0xff] }
  0x3c   : > { %630 = vst [vmem:[%s825_s25 + $0x190] sm:$0xff] %v532_v35  ;;  %v536_v45 = vmax.f32 %v438_v36, 0.0  ;;  %v337_v48 = vmul.f32 %v792_v0, %v232_v32  ;;  %631 = vst [vmem:[%s825_s25 + $0x198] sm:$0xff] %v533_v40  ;;  %v338_v51 = vmul.f32 %v792_v0, %v233_v37  ;;  %v339_v52 = vmul.f32 %v792_v0, %v234_v38  ;;  %v246_v32 = vld [vmem:[%s797_s20 + $0x240] sm:$0xff] }
  0x3d   : > { %632 = vst [vmem:[%s825_s25 + $0x1a0] sm:$0xff] %v534_v41  ;;  %633 = vst [vmem:[%s825_s25 + $0x1a8] sm:$0xff] %v535_v42  ;;  %v537_v50 = vmax.f32 %v439_v43, 0.0  ;;  %v340_v53 = vmul.f32 %v792_v0, %v235_v39  ;;  %v440_v54 = vadd.f32 %v802_v1, %v335_v46  ;;  %v441_v55 = vadd.f32 %v802_v1, %v336_v47  ;;  %v249_v39 = vld [vmem:[%s797_s20 + $0x258] sm:$0xff]  ;;  %v250_v40 = vld [vmem:[%s797_s20 + $0x260] sm:$0xff] }
  0x3e   : > { %634 = vst [vmem:[%s825_s25 + $0x1b0] sm:$0xff] %v536_v45  ;;  %v442_v56 = vadd.f32 %v802_v1, %v337_v48  ;;  %v341_v57 = vmul.f32 %v792_v0, %v236_v44  ;;  %v443_v58 = vadd.f32 %v802_v1, %v338_v51  ;;  %v444_v59 = vadd.f32 %v802_v1, %v339_v52  ;;  %v251_v41 = vld [vmem:[%s797_s20 + $0x268] sm:$0xff]  ;;  %v252_v46 = vld [vmem:[%s797_s20 + $0x270] sm:$0xff]  ;;  %v253_v51 = vld [vmem:[%s797_s20 + $0x278] sm:$0xff] }
  0x3f   : > { %635 = vst [vmem:[%s825_s25 + $0x1b8] sm:$0xff] %v537_v50  ;;  %v445_v60 = vadd.f32 %v802_v1, %v340_v53  ;;  %v342_v61 = vmul.f32 %v792_v0, %v237_v49  ;;  %v538_v3 = vmax.f32 %v440_v54, 0.0  ;;  %v539_v4 = vmax.f32 %v441_v55, 0.0 }
  0x40   : > { %v540_v5 = vmax.f32 %v442_v56, 0.0  ;;  %v446_v6 = vadd.f32 %v802_v1, %v341_v57  ;;  %v541_v10 = vmax.f32 %v443_v58, 0.0  ;;  %v542_v11 = vmax.f32 %v444_v59, 0.0 }
  0x41   : > { %v543_v12 = vmax.f32 %v445_v60, 0.0  ;;  %v447_v13 = vadd.f32 %v802_v1, %v342_v61  ;;  %636 = vst [vmem:[%s825_s25 + $0x1c0] sm:$0xff] %v538_v3  ;;  %637 = vst [vmem:[%s825_s25 + $0x1c8] sm:$0xff] %v539_v4  ;;  %v343_v16 = vmul.f32 %v792_v0, %v238_v62  ;;  %v344_v17 = vmul.f32 %v792_v0, %v239_v63  ;;  %v255_v3 = vld [vmem:[%s797_s20 + $0x288] sm:$0xff]  ;;  %v256_v4 = vld [vmem:[%s797_s20 + $0x290] sm:$0xff] }
  0x42   : > { %638 = vst [vmem:[%s825_s25 + $0x1d0] sm:$0xff] %v540_v5  ;;  %v544_v15 = vmax.f32 %v446_v6, 0.0  ;;  %v345_v18 = vmul.f32 %v792_v0, %v240_v2  ;;  %639 = vst [vmem:[%s825_s25 + $0x1d8] sm:$0xff] %v541_v10  ;;  %v346_v21 = vmul.f32 %v792_v0, %v241_v7  ;;  %v347_v22 = vmul.f32 %v792_v0, %v242_v8  ;;  %v254_v2 = vld [vmem:[%s797_s20 + $0x280] sm:$0xff] }
  0x43   : > { %640 = vst [vmem:[%s825_s25 + $0x1e0] sm:$0xff] %v542_v11  ;;  %641 = vst [vmem:[%s825_s25 + $0x1e8] sm:$0xff] %v543_v12  ;;  %v545_v20 = vmax.f32 %v447_v13, 0.0  ;;  %v348_v23 = vmul.f32 %v792_v0, %v243_v9  ;;  %v448_v24 = vadd.f32 %v802_v1, %v343_v16  ;;  %v449_v25 = vadd.f32 %v802_v1, %v344_v17  ;;  %v257_v9 = vld [vmem:[%s797_s20 + $0x298] sm:$0xff]  ;;  %v258_v10 = vld [vmem:[%s797_s20 + $0x2a0] sm:$0xff] }
  0x44   : > { %642 = vst [vmem:[%s825_s25 + $0x1f0] sm:$0xff] %v544_v15  ;;  %v450_v26 = vadd.f32 %v802_v1, %v345_v18  ;;  %v349_v27 = vmul.f32 %v792_v0, %v244_v14  ;;  %v451_v28 = vadd.f32 %v802_v1, %v346_v21  ;;  %v452_v29 = vadd.f32 %v802_v1, %v347_v22  ;;  %v259_v11 = vld [vmem:[%s797_s20 + $0x2a8] sm:$0xff]  ;;  %v260_v16 = vld [vmem:[%s797_s20 + $0x2b0] sm:$0xff]  ;;  %v261_v21 = vld [vmem:[%s797_s20 + $0x2b8] sm:$0xff] }
  0x45   : > { %643 = vst [vmem:[%s825_s25 + $0x1f8] sm:$0xff] %v545_v20  ;;  %v453_v30 = vadd.f32 %v802_v1, %v348_v23  ;;  %v350_v31 = vmul.f32 %v792_v0, %v245_v19  ;;  %v546_v35 = vmax.f32 %v448_v24, 0.0  ;;  %v547_v36 = vmax.f32 %v449_v25, 0.0 }
  0x46   : > { %v548_v37 = vmax.f32 %v450_v26, 0.0  ;;  %v454_v38 = vadd.f32 %v802_v1, %v349_v27  ;;  %v549_v42 = vmax.f32 %v451_v28, 0.0  ;;  %v550_v43 = vmax.f32 %v452_v29, 0.0 }
  0x47   : > { %v551_v44 = vmax.f32 %v453_v30, 0.0  ;;  %v455_v45 = vadd.f32 %v802_v1, %v350_v31  ;;  %644 = vst [vmem:[%s825_s25 + $0x200] sm:$0xff] %v546_v35  ;;  %645 = vst [vmem:[%s825_s25 + $0x208] sm:$0xff] %v547_v36  ;;  %v351_v48 = vmul.f32 %v792_v0, %v246_v32  ;;  %v352_v49 = vmul.f32 %v792_v0, %v247_v33  ;;  %v263_v35 = vld [vmem:[%s797_s20 + $0x2c8] sm:$0xff]  ;;  %v264_v36 = vld [vmem:[%s797_s20 + $0x2d0] sm:$0xff] }
  0x48   : > { %646 = vst [vmem:[%s825_s25 + $0x210] sm:$0xff] %v548_v37  ;;  %v552_v47 = vmax.f32 %v454_v38, 0.0  ;;  %v353_v50 = vmul.f32 %v792_v0, %v248_v34  ;;  %647 = vst [vmem:[%s825_s25 + $0x218] sm:$0xff] %v549_v42  ;;  %v354_v53 = vmul.f32 %v792_v0, %v249_v39  ;;  %v355_v54 = vmul.f32 %v792_v0, %v250_v40  ;;  %v262_v34 = vld [vmem:[%s797_s20 + $0x2c0] sm:$0xff] }
  0x49   : > { %648 = vst [vmem:[%s825_s25 + $0x220] sm:$0xff] %v550_v43  ;;  %649 = vst [vmem:[%s825_s25 + $0x228] sm:$0xff] %v551_v44  ;;  %v553_v52 = vmax.f32 %v455_v45, 0.0  ;;  %v356_v55 = vmul.f32 %v792_v0, %v251_v41  ;;  %v456_v56 = vadd.f32 %v802_v1, %v351_v48  ;;  %v457_v57 = vadd.f32 %v802_v1, %v352_v49  ;;  %v265_v41 = vld [vmem:[%s797_s20 + $0x2d8] sm:$0xff]  ;;  %v266_v42 = vld [vmem:[%s797_s20 + $0x2e0] sm:$0xff] }
  0x4a   : > { %650 = vst [vmem:[%s825_s25 + $0x230] sm:$0xff] %v552_v47  ;;  %v458_v58 = vadd.f32 %v802_v1, %v353_v50  ;;  %v357_v59 = vmul.f32 %v792_v0, %v252_v46  ;;  %v459_v60 = vadd.f32 %v802_v1, %v354_v53  ;;  %v460_v61 = vadd.f32 %v802_v1, %v355_v54  ;;  %v267_v43 = vld [vmem:[%s797_s20 + $0x2e8] sm:$0xff]  ;;  %v268_v48 = vld [vmem:[%s797_s20 + $0x2f0] sm:$0xff]  ;;  %v269_v53 = vld [vmem:[%s797_s20 + $0x2f8] sm:$0xff] }
  0x4b   : > { %651 = vst [vmem:[%s825_s25 + $0x238] sm:$0xff] %v553_v52  ;;  %v461_v62 = vadd.f32 %v802_v1, %v356_v55  ;;  %v358_v63 = vmul.f32 %v792_v0, %v253_v51  ;;  %v554_v5 = vmax.f32 %v456_v56, 0.0  ;;  %v555_v6 = vmax.f32 %v457_v57, 0.0 }
  0x4c   : > { %v556_v7 = vmax.f32 %v458_v58, 0.0  ;;  %v462_v8 = vadd.f32 %v802_v1, %v357_v59  ;;  %v557_v12 = vmax.f32 %v459_v60, 0.0  ;;  %v558_v13 = vmax.f32 %v460_v61, 0.0 }
  0x4d   : > { %v559_v14 = vmax.f32 %v461_v62, 0.0  ;;  %v463_v15 = vadd.f32 %v802_v1, %v358_v63  ;;  %652 = vst [vmem:[%s825_s25 + $0x240] sm:$0xff] %v554_v5  ;;  %653 = vst [vmem:[%s825_s25 + $0x248] sm:$0xff] %v555_v6  ;;  %v359_v18 = vmul.f32 %v792_v0, %v254_v2  ;;  %v360_v19 = vmul.f32 %v792_v0, %v255_v3  ;;  %v271_v5 = vld [vmem:[%s797_s20 + $0x308] sm:$0xff] }
  0x4e   : > { %654 = vst [vmem:[%s825_s25 + $0x250] sm:$0xff] %v556_v7  ;;  %v560_v17 = vmax.f32 %v462_v8, 0.0  ;;  %v361_v20 = vmul.f32 %v792_v0, %v256_v4  ;;  %655 = vst [vmem:[%s825_s25 + $0x258] sm:$0xff] %v557_v12  ;;  %v362_v23 = vmul.f32 %v792_v0, %v257_v9  ;;  %v363_v24 = vmul.f32 %v792_v0, %v258_v10  ;;  %v270_v4 = vld [vmem:[%s797_s20 + $0x300] sm:$0xff] }
  0x4f   : > { %656 = vst [vmem:[%s825_s25 + $0x260] sm:$0xff] %v558_v13  ;;  %657 = vst [vmem:[%s825_s25 + $0x268] sm:$0xff] %v559_v14  ;;  %v561_v22 = vmax.f32 %v463_v15, 0.0  ;;  %v364_v25 = vmul.f32 %v792_v0, %v259_v11  ;;  %v464_v26 = vadd.f32 %v802_v1, %v359_v18  ;;  %v465_v27 = vadd.f32 %v802_v1, %v360_v19 }
  0x50   : > { %658 = vst [vmem:[%s825_s25 + $0x270] sm:$0xff] %v560_v17  ;;  %v466_v28 = vadd.f32 %v802_v1, %v361_v20  ;;  %v365_v29 = vmul.f32 %v792_v0, %v260_v16  ;;  %v467_v30 = vadd.f32 %v802_v1, %v362_v23  ;;  %v468_v31 = vadd.f32 %v802_v1, %v363_v24 }
  0x51   : > { %659 = vst [vmem:[%s825_s25 + $0x278] sm:$0xff] %v561_v22  ;;  %v469_v32 = vadd.f32 %v802_v1, %v364_v25  ;;  %v366_v33 = vmul.f32 %v792_v0, %v261_v21  ;;  %v562_v37 = vmax.f32 %v464_v26, 0.0  ;;  %v563_v38 = vmax.f32 %v465_v27, 0.0 }
  0x52   : > { %v564_v39 = vmax.f32 %v466_v28, 0.0  ;;  %v470_v40 = vadd.f32 %v802_v1, %v365_v29  ;;  %v565_v44 = vmax.f32 %v467_v30, 0.0  ;;  %v566_v45 = vmax.f32 %v468_v31, 0.0 }
  0x53   : > { %v567_v46 = vmax.f32 %v469_v32, 0.0  ;;  %v471_v47 = vadd.f32 %v802_v1, %v366_v33  ;;  %660 = vst [vmem:[%s825_s25 + $0x280] sm:$0xff] %v562_v37  ;;  %661 = vst [vmem:[%s825_s25 + $0x288] sm:$0xff] %v563_v38  ;;  %v367_v50 = vmul.f32 %v792_v0, %v262_v34  ;;  %v368_v51 = vmul.f32 %v792_v0, %v263_v35 }
  0x54   : > { %662 = vst [vmem:[%s825_s25 + $0x290] sm:$0xff] %v564_v39  ;;  %v568_v49 = vmax.f32 %v470_v40, 0.0  ;;  %v369_v52 = vmul.f32 %v792_v0, %v264_v36  ;;  %663 = vst [vmem:[%s825_s25 + $0x298] sm:$0xff] %v565_v44  ;;  %v370_v55 = vmul.f32 %v792_v0, %v265_v41  ;;  %v371_v56 = vmul.f32 %v792_v0, %v266_v42 }
  0x55   : > { %664 = vst [vmem:[%s825_s25 + $0x2a0] sm:$0xff] %v566_v45  ;;  %665 = vst [vmem:[%s825_s25 + $0x2a8] sm:$0xff] %v567_v46  ;;  %v569_v54 = vmax.f32 %v471_v47, 0.0  ;;  %v372_v57 = vmul.f32 %v792_v0, %v267_v43  ;;  %v472_v58 = vadd.f32 %v802_v1, %v367_v50  ;;  %v473_v59 = vadd.f32 %v802_v1, %v368_v51 }
  0x56   : > { %666 = vst [vmem:[%s825_s25 + $0x2b0] sm:$0xff] %v568_v49  ;;  %v474_v60 = vadd.f32 %v802_v1, %v369_v52  ;;  %v373_v61 = vmul.f32 %v792_v0, %v268_v48  ;;  %v475_v62 = vadd.f32 %v802_v1, %v370_v55  ;;  %v476_v63 = vadd.f32 %v802_v1, %v371_v56 }
  0x57   : > { %667 = vst [vmem:[%s825_s25 + $0x2b8] sm:$0xff] %v569_v54  ;;  %v477_v2 = vadd.f32 %v802_v1, %v372_v57  ;;  %v374_v3 = vmul.f32 %v792_v0, %v269_v53  ;;  %v570_v6 = vmax.f32 %v472_v58, 0.0  ;;  %v571_v7 = vmax.f32 %v473_v59, 0.0 }
  0x58   : > { %v572_v8 = vmax.f32 %v474_v60, 0.0  ;;  %v478_v9 = vadd.f32 %v802_v1, %v373_v61  ;;  %v573_v10 = vmax.f32 %v475_v62, 0.0  ;;  %v574_v11 = vmax.f32 %v476_v63, 0.0 }
  0x59   : > { %v575_v12 = vmax.f32 %v477_v2, 0.0  ;;  %v479_v13 = vadd.f32 %v802_v1, %v374_v3  ;;  %668 = vst [vmem:[%s825_s25 + $0x2c0] sm:$0xff] %v570_v6  ;;  %669 = vst [vmem:[%s825_s25 + $0x2c8] sm:$0xff] %v571_v7  ;;  %v375_v15 = vmul.f32 %v792_v0, %v270_v4  ;;  %v376_v16 = vmul.f32 %v792_v0, %v271_v5 }
  0x5a   : > { %670 = vst [vmem:[%s825_s25 + $0x2d0] sm:$0xff] %v572_v8  ;;  %v576_v14 = vmax.f32 %v478_v9, 0.0  ;;  %671 = vst [vmem:[%s825_s25 + $0x2d8] sm:$0xff] %v573_v10 }
  0x5b   : > { %672 = vst [vmem:[%s825_s25 + $0x2e0] sm:$0xff] %v574_v11  ;;  %673 = vst [vmem:[%s825_s25 + $0x2e8] sm:$0xff] %v575_v12  ;;  %v577_v17 = vmax.f32 %v479_v13, 0.0  ;;  %v480_v18 = vadd.f32 %v802_v1, %v375_v15  ;;  %v481_v19 = vadd.f32 %v802_v1, %v376_v16 }
  0x5c   : > { %674 = vst [vmem:[%s825_s25 + $0x2f0] sm:$0xff] %v576_v14 }
  0x5d   : > { %675 = vst [vmem:[%s825_s25 + $0x2f8] sm:$0xff] %v577_v17  ;;  %v578_v20 = vmax.f32 %v480_v18, 0.0  ;;  %v579_v21 = vmax.f32 %v481_v19, 0.0 }
  0x5f   : > { %676 = vst [vmem:[%s825_s25 + $0x300] sm:$0xff] %v578_v20  ;;  %677 = vst [vmem:[%s825_s25 + $0x308] sm:$0xff] %v579_v21 }
  0x60 PF: > { %s13_s12 = sadd.s32 1, %s759_s12  }
  0x61   : > { %p10_p4 = scmp.ge.s32.totalorder %s13_s12, 4  }
  0x63   :  { %12 = sbr.rel (!%p10_p4) target bundleno = 1 (0x1), region = 62 }

// kernel: densenet_forward_pallas.28
= control target key start
LH: loop header
LB: loop body
LE: loop exit
PB: predicated region body
PF: predicated region fallthrough
CT: control target
= control target key end

     0   :  { %s2100_s9 = smov 0   ;;  %s2952_s0 = inlined_call_operand.vmem [shape: f32[1568,640], index: 0, kind: input, shape index: {}]   ;;  %s2953_s1 = inlined_call_operand.vmem [shape: f32[640,128], index: 1, kind: input, shape index: {}]   ;;  %s2954_s2 = inlined_call_operand.vmem [shape: f32[1568,128], index: 2, kind: output, shape index: {}]  }
   0x1 LB: > { %s1510_s10 = sadd.s32 4294967295, %s2080_s9   ;;  %p1514_p0 = scmp.ge.s32.totalorder %s2080_s9, 1  ;;  %s2080_s9 = sphi %s2100_s9, %s12_s9  }
   0x2   : > { %p114_p1 = scmp.lt.s32.totalorder %s2080_s9, 5 }
   0x4   : > { %p115_p2 = pnand %p1514_p0, %p114_p1 }
   0x5   : > { %v395_v0 = vld [vmem:[%s2953_s1] sm:$0xff] (!%p115_p2)  ;;  %v396_v1 = vld [vmem:[%s2953_s1 + $0x8] sm:$0xff] (!%p115_p2)  ;;  %v2082_v3 = vmov (!%p115_p2), 0.0|0.0   ;;  %v397_v6 = vld [vmem:[%s2953_s1 + $0x10] sm:$0xff] (!%p115_p2)  ;;  %s137_s27 = smul.u32 (!%p115_p2), 49, %s1510_s10  ;;  %vm2083_vm0 = vmmov (!%p115_p2), 0  }
   0x6   : > { %118 = sbr.rel (%p115_p2) target bundleno = 579 (0x243), region = 28  ;;  %v427_v2 = vld [vmem:[%s2953_s1 + $0x100] sm:$0xff] (!%p115_p2)  ;;  %1763 = vmatprep.subr.bf16.mxu1 (!%p115_p2), %v2082_v3  ;;  %1811 = vmatprep.subr.bf16.mxu0 (!%p115_p2), %v2082_v3  ;;  %v1764_v4 = vpack.c.bf16 (!%p115_p2), %v396_v1, %v395_v0  ;;  %v428_v5 = vld [vmem:[%s2953_s1 + $0x108] sm:$0xff] (!%p115_p2)  ;;  %v398_v7 = vld [vmem:[%s2953_s1 + $0x18] sm:$0xff] (!%p115_p2) }
   0x7   : > { %v2128_v8 = vpack.c.bf16 (!%p115_p2), %v428_v5, %v427_v2  ;;  %v429_v9 = vld [vmem:[%s2953_s1 + $0x110] sm:$0xff] (!%p115_p2)  ;;  %v430_v10 = vld [vmem:[%s2953_s1 + $0x118] sm:$0xff] (!%p115_p2)  ;;  %v1767_v11 = vpack.c.bf16 (!%p115_p2), %v398_v7, %v397_v6  ;;  %v399_v13 = vld [vmem:[%s2953_s1 + $0x20] sm:$0xff] (!%p115_p2)  ;;  %p138_p3 = scmp.lt.s32.totalorder (!%p115_p2), %s137_s27, 195 }
   0x8   : > { %1765 = vmatpush1.bf16.msra.mxu1 (!%p115_p2), %v1764_v4  ;;  %v2138_v12 = vpack.c.bf16 (!%p115_p2), %v430_v10, %v429_v9  ;;  %v400_v14 = vld [vmem:[%s2953_s1 + $0x28] sm:$0xff] (!%p115_p2)  ;;  %v431_v15 = vld [vmem:[%s2953_s1 + $0x120] sm:$0xff] (!%p115_p2)  ;;  %v401_v19 = vld [vmem:[%s2953_s1 + $0x30] sm:$0xff] (!%p115_p2) }
   0x9   : > { %1813 = vmatpush1.bf16.msra.mxu0 (!%p115_p2), %v2128_v8  ;;  %1766 = vmatprep.subr.bf16.mxu1 (!%p115_p2), %v2082_v3  ;;  %v432_v16 = vld [vmem:[%s2953_s1 + $0x128] sm:$0xff] (!%p115_p2)  ;;  %v1770_v17 = vpack.c.bf16 (!%p115_p2), %v400_v14, %v399_v13  ;;  %v402_v20 = vld [vmem:[%s2953_s1 + $0x38] sm:$0xff] (!%p115_p2)  ;;  %v433_v21 = vld [vmem:[%s2953_s1 + $0x130] sm:$0xff] (!%p115_p2) }
   0xa   : > { %1814 = vmatprep.subr.bf16.mxu0 (!%p115_p2), %v2082_v3  ;;  %v2155_v18 = vpack.c.bf16 (!%p115_p2), %v432_v16, %v431_v15  ;;  %v434_v22 = vld [vmem:[%s2953_s1 + $0x138] sm:$0xff] (!%p115_p2)  ;;  %v1773_v23 = vpack.c.bf16 (!%p115_p2), %v402_v20, %v401_v19  ;;  %v403_v25 = vld [vmem:[%s2953_s1 + $0x40] sm:$0xff] (!%p115_p2)  ;;  %v404_v26 = vld [vmem:[%s2953_s1 + $0x48] sm:$0xff] (!%p115_p2) }
   0xb   : > { %v2174_v24 = vpack.c.bf16 (!%p115_p2), %v434_v22, %v433_v21  ;;  %v435_v27 = vld [vmem:[%s2953_s1 + $0x140] sm:$0xff] (!%p115_p2)  ;;  %v436_v28 = vld [vmem:[%s2953_s1 + $0x148] sm:$0xff] (!%p115_p2)  ;;  %v1776_v29 = vpack.c.bf16 (!%p115_p2), %v404_v26, %v403_v25  ;;  %v405_v31 = vld [vmem:[%s2953_s1 + $0x50] sm:$0xff] (!%p115_p2) }
   0xc   : > { %1768 = vmatpush1.bf16.msra.mxu1 (!%p115_p2), %v1767_v11  ;;  %v2192_v30 = vpack.c.bf16 (!%p115_p2), %v436_v28, %v435_v27  ;;  %v406_v32 = vld [vmem:[%s2953_s1 + $0x58] sm:$0xff] (!%p115_p2)  ;;  %v437_v33 = vld [vmem:[%s2953_s1 + $0x150] sm:$0xff] (!%p115_p2)  ;;  %v407_v37 = vld [vmem:[%s2953_s1 + $0x60] sm:$0xff] (!%p115_p2) }
   0xd   : > { %1816 = vmatpush1.bf16.msra.mxu0 %v2138_v12  ;;  %1769 = vmatprep.subr.bf16.mxu1 %v2082_v3  ;;  %s2956_s27 = smov (!%p138_p3, %s137_s27), 195  ;;  %v438_v34 = vld [vmem:[%s2953_s1 + $0x158] sm:$0xff]  ;;  %v1779_v35 = vpack.c.bf16 %v406_v32, %v405_v31  ;;  %v408_v38 = vld [vmem:[%s2953_s1 + $0x68] sm:$0xff]  ;;  %v439_v39 = vld [vmem:[%s2953_s1 + $0x160] sm:$0xff] }
   0xe   : > { %1817 = vmatprep.subr.bf16.mxu0 %v2082_v3  ;;  %s2062_s25 = smul.u32 40, %s2956_s27  ;;  %v2214_v36 = vpack.c.bf16 %v438_v34, %v437_v33  ;;  %v440_v40 = vld [vmem:[%s2953_s1 + $0x168] sm:$0xff]  ;;  %v1782_v43 = vpack.c.bf16 %v408_v38, %v407_v37  ;;  %v409_v45 = vld [vmem:[%s2953_s1 + $0x70] sm:$0xff]  ;;  %v410_v46 = vld [vmem:[%s2953_s1 + $0x78] sm:$0xff]  ;;  %s1516_s23 = sshll.u32 %s2956_s27, 3 }
   0xf   : > { %v2233_v44 = vpack.c.bf16 %v440_v40, %v439_v39  ;;  %v441_v47 = vld [vmem:[%s2953_s1 + $0x170] sm:$0xff]  ;;  %v442_v48 = vld [vmem:[%s2953_s1 + $0x178] sm:$0xff]  ;;  %v1785_v49 = vpack.c.bf16 %v410_v46, %v409_v45  ;;  %v411_v51 = vld [vmem:[%s2953_s1 + $0x80] sm:$0xff] }
  0x10   : > { %1771 = vmatpush1.bf16.msra.mxu1 %v1770_v17  ;;  %s2210_s10 = scalar_lea.vmem %s2952_s0, %s2062_s25  ;;  %v2250_v50 = vpack.c.bf16 %v442_v48, %v441_v47  ;;  %v412_v52 = vld [vmem:[%s2953_s1 + $0x88] sm:$0xff]  ;;  %v443_v53 = vld [vmem:[%s2953_s1 + $0x180] sm:$0xff]  ;;  %v413_v57 = vld [vmem:[%s2953_s1 + $0x90] sm:$0xff] }
  0x11   : > { %1819 = vmatpush1.bf16.msra.mxu0 %v2155_v18  ;;  %1772 = vmatprep.subr.bf16.mxu1 %v2082_v3  ;;  %v151_v41 = vld [vmem:[%s2210_s10 + $0x8] sm:$0xff]  ;;  %v153_v42 = vld [vmem:[%s2210_s10 + $0x18] sm:$0xff]  ;;  %v1788_v55 = vpack.c.bf16 %v412_v52, %v411_v51  ;;  %v445_v59 = vld [vmem:[%s2953_s1 + $0x190] sm:$0xff] }
  0x12   : > { %1820 = vmatprep.subr.bf16.mxu0 %v2082_v3  ;;  %539 = vmatprep.mubr.f32.mxu1 %v151_v41  ;;  %v444_v54 = vld [vmem:[%s2953_s1 + $0x188] sm:$0xff]  ;;  %v414_v58 = vld [vmem:[%s2953_s1 + $0x98] sm:$0xff]  ;;  %v415_v63 = vld [vmem:[%s2953_s1 + $0xa0] sm:$0xff] }
  0x13   : > { %849 = vmatprep.mubr.f32.mxu0 %v153_v42  ;;  %v2267_v56 = vpack.c.bf16 %v444_v54, %v443_v53  ;;  %v446_v60 = vld [vmem:[%s2953_s1 + $0x198] sm:$0xff]  ;;  %v1791_v61 = vpack.c.bf16 %v414_v58, %v413_v57  ;;  %v416_v0 = vld [vmem:[%s2953_s1 + $0xa8] sm:$0xff]  ;;  %v447_v1 = vld [vmem:[%s2953_s1 + $0x1a0] sm:$0xff] }
  0x14   : > { %1774 = vmatpush1.bf16.msra.mxu1 %v1773_v23  ;;  %v2284_v62 = vpack.c.bf16 %v446_v60, %v445_v59  ;;  %v448_v2 = vld [vmem:[%s2953_s1 + $0x1a8] sm:$0xff]  ;;  %v1794_v4 = vpack.c.bf16 %v416_v0, %v415_v63  ;;  %v417_v6 = vld [vmem:[%s2953_s1 + $0xb0] sm:$0xff]  ;;  %v418_v7 = vld [vmem:[%s2953_s1 + $0xb8] sm:$0xff] }
  0x15   : > { %1822 = vmatpush1.bf16.msra.mxu0 %v2174_v24  ;;  %1775 = vmatprep.subr.bf16.mxu1 %v2082_v3  ;;  %v2301_v5 = vpack.c.bf16 %v448_v2, %v447_v1  ;;  %v449_v9 = vld [vmem:[%s2953_s1 + $0x1b0] sm:$0xff]  ;;  %v450_v10 = vld [vmem:[%s2953_s1 + $0x1b8] sm:$0xff]  ;;  %v1797_v11 = vpack.c.bf16 %v418_v7, %v417_v6  ;;  %v419_v14 = vld [vmem:[%s2953_s1 + $0xc0] sm:$0xff] }
  0x16   : > { %1823 = vmatprep.subr.bf16.mxu0 %v2082_v3  ;;  %v2318_v13 = vpack.c.bf16 %v450_v10, %v449_v9  ;;  %v420_v15 = vld [vmem:[%s2953_s1 + $0xc8] sm:$0xff]  ;;  %v451_v16 = vld [vmem:[%s2953_s1 + $0x1c0] sm:$0xff]  ;;  %v421_v21 = vld [vmem:[%s2953_s1 + $0xd0] sm:$0xff] }
  0x17   : > { %v452_v17 = vld [vmem:[%s2953_s1 + $0x1c8] sm:$0xff]  ;;  %v1800_v19 = vpack.c.bf16 %v420_v15, %v419_v14  ;;  %v422_v22 = vld [vmem:[%s2953_s1 + $0xd8] sm:$0xff]  ;;  %v453_v23 = vld [vmem:[%s2953_s1 + $0x1d0] sm:$0xff] }
  0x18   : > { %1777 = vmatpush1.bf16.msra.mxu1 %v1776_v29  ;;  %v2335_v20 = vpack.c.bf16 %v452_v17, %v451_v16  ;;  %v454_v25 = vld [vmem:[%s2953_s1 + $0x1d8] sm:$0xff]  ;;  %v1803_v26 = vpack.c.bf16 %v422_v22, %v421_v21  ;;  %v423_v28 = vld [vmem:[%s2953_s1 + $0xe0] sm:$0xff]  ;;  %v424_v29 = vld [vmem:[%s2953_s1 + $0xe8] sm:$0xff] }
  0x19   : > { %1825 = vmatpush1.bf16.msra.mxu0 %v2192_v30  ;;  %1778 = vmatprep.subr.bf16.mxu1 %v2082_v3  ;;  %v2352_v27 = vpack.c.bf16 %v454_v25, %v453_v23  ;;  %v455_v31 = vld [vmem:[%s2953_s1 + $0x1e0] sm:$0xff]  ;;  %v456_v32 = vld [vmem:[%s2953_s1 + $0x1e8] sm:$0xff]  ;;  %v1806_v33 = vpack.c.bf16 %v424_v29, %v423_v28  ;;  %v426_v37 = vld [vmem:[%s2953_s1 + $0xf8] sm:$0xff] }
  0x1a   : > { %1826 = vmatprep.subr.bf16.mxu0 %v2082_v3  ;;  %v2369_v34 = vpack.c.bf16 %v456_v32, %v455_v31  ;;  %v457_v38 = vld [vmem:[%s2953_s1 + $0x1f0] sm:$0xff]  ;;  %v458_v39 = vld [vmem:[%s2953_s1 + $0x1f8] sm:$0xff]  ;;  %v459_v42 = vld [vmem:[%s2953_s1 + $0x200] sm:$0xff] }
  0x1b   : > { %v2386_v41 = vpack.c.bf16 %v458_v39, %v457_v38  ;;  %v150_v45 = vld [vmem:[%s2210_s10] sm:$0xff]  ;;  %v152_v46 = vld [vmem:[%s2210_s10 + $0x10] sm:$0xff]  ;;  %v462_v52 = vld [vmem:[%s2953_s1 + $0x218] sm:$0xff] }
  0x1c   : > { %1780 = vmatpush1.bf16.msra.mxu1 %v1779_v35  ;;  %v425_v35 = vld [vmem:[%s2953_s1 + $0xf0] sm:$0xff]  ;;  %v155_v53 = vld [vmem:[%s2210_s10 + $0x28] sm:$0xff]  ;;  %v157_v54 = vld [vmem:[%s2210_s10 + $0x38] sm:$0xff] }
  0x1d   : > { %1828 = vmatpush1.bf16.msra.mxu0 %v2214_v36  ;;  %1781 = vmatprep.subr.bf16.mxu1 %v2082_v3  ;;  %v1809_v40 = vpack.c.bf16 %v426_v37, %v425_v35  ;;  %v156_v48 = vld [vmem:[%s2210_s10 + $0x30] sm:$0xff]  ;;  %v163_v58 = vld [vmem:[%s2210_s10 + $0x68] sm:$0xff]  ;;  %v463_v59 = vld [vmem:[%s2953_s1 + $0x220] sm:$0xff] }
  0x1e   : > { %1829 = vmatprep.subr.bf16.mxu0 %v2082_v3  ;;  %v461_v51 = vld [vmem:[%s2953_s1 + $0x210] sm:$0xff]  ;;  %v464_v60 = vld [vmem:[%s2953_s1 + $0x228] sm:$0xff]  ;;  %v166_v63 = vld [vmem:[%s2210_s10 + $0x80] sm:$0xff] }
  0x1f   : > { %v1863_v57 = vpack.c.bf16 %v462_v52, %v461_v51  ;;  %v1866_v0 = vpack.c.bf16 %v464_v60, %v463_v59  ;;  %v168_v1 = vld [vmem:[%s2210_s10 + $0x90] sm:$0xff]  ;;  %v165_v6 = vld [vmem:[%s2210_s10 + $0x78] sm:$0xff]  ;;  %v171_v7 = vld [vmem:[%s2210_s10 + $0xa8] sm:$0xff] }
  0x20   : > { %1783 = vmatpush1.bf16.msra.mxu1 %v1782_v43  ;;  %v460_v43 = vld [vmem:[%s2953_s1 + $0x208] sm:$0xff]  ;;  %v465_v2 = vld [vmem:[%s2953_s1 + $0x230] sm:$0xff]  ;;  %v173_v10 = vld [vmem:[%s2210_s10 + $0xb8] sm:$0xff] }
  0x21   : > { %1831 = vmatpush1.bf16.msra.mxu0 %v2233_v44  ;;  %1784 = vmatprep.subr.bf16.mxu1 %v2082_v3  ;;  %v1860_v47 = vpack.c.bf16 %v460_v43, %v459_v42  ;;  %v468_v14 = vld [vmem:[%s2953_s1 + $0x248] sm:$0xff]  ;;  %v170_v15 = vld [vmem:[%s2210_s10 + $0xa0] sm:$0xff]  ;;  %v176_v16 = vld [vmem:[%s2210_s10 + $0xd0] sm:$0xff] }
  0x22   : > { %1832 = vmatprep.subr.bf16.mxu0 %v2082_v3  ;;  %v469_v21 = vld [vmem:[%s2953_s1 + $0x250] sm:$0xff]  ;;  %v470_v22 = vld [vmem:[%s2953_s1 + $0x258] sm:$0xff]  ;;  %v175_v23 = vld [vmem:[%s2210_s10 + $0xc8] sm:$0xff] }
  0x23   : > { %v181_v25 = vld [vmem:[%s2210_s10 + $0xf8] sm:$0xff]  ;;  %v183_v28 = vld [vmem:[%s2210_s10 + $0x108] sm:$0xff]  ;;  %v471_v29 = vld [vmem:[%s2953_s1 + $0x260] sm:$0xff] }
  0x24   : > { %1786 = vmatpush1.bf16.msra.mxu1 %v1785_v49  ;;  %v158_v49 = vld [vmem:[%s2210_s10 + $0x40] sm:$0xff]  ;;  %v472_v31 = vld [vmem:[%s2953_s1 + $0x268] sm:$0xff]  ;;  %v180_v32 = vld [vmem:[%s2210_s10 + $0xf0] sm:$0xff] }
  0x25   : > { %1834 = vmatpush1.bf16.msra.mxu0 %v2250_v50  ;;  %1787 = vmatprep.subr.bf16.mxu1 %v2082_v3  ;;  %v1878_v35 = vpack.c.bf16 %v472_v31, %v471_v29  ;;  %v188_v37 = vld [vmem:[%s2210_s10 + $0x130] sm:$0xff]  ;;  %v474_v39 = vld [vmem:[%s2953_s1 + $0x278] sm:$0xff]  ;;  %v191_v42 = vld [vmem:[%s2210_s10 + $0x148] sm:$0xff] }
  0x26   : > { %1835 = vmatprep.subr.bf16.mxu0 %v2082_v3  ;;  %v473_v38 = vld [vmem:[%s2953_s1 + $0x270] sm:$0xff]  ;;  %v197_v51 = vld [vmem:[%s2210_s10 + $0x178] sm:$0xff]  ;;  %v211_v59 = vld [vmem:[%s2210_s10 + $0x1e8] sm:$0xff] }
  0x27   : > { %v1881_v43 = vpack.c.bf16 %v474_v39, %v473_v38  ;;  %v201_v52 = vld [vmem:[%s2210_s10 + $0x198] sm:$0xff]  ;;  %v256_v29 = vld [vmem:[%s2210_s10 + $0x350] sm:$0xff]  ;;  %v258_v31 = vld [vmem:[%s2210_s10 + $0x360] sm:$0xff] }
  0x28   : > { %1789 = vmatpush1.bf16.msra.mxu1 %v1788_v55  ;;  %v161_v55 = vld [vmem:[%s2210_s10 + $0x58] sm:$0xff]  ;;  %v262_v38 = vld [vmem:[%s2210_s10 + $0x380] sm:$0xff] }
  0x29   : > { %1837 = vmatpush1.bf16.msra.mxu0 %v2267_v56  ;;  %1790 = vmatprep.subr.bf16.mxu1 %v2082_v3  ;;  %v213_v60 = vld [vmem:[%s2210_s10 + $0x1f8] sm:$0xff]  ;;  %v266_v39 = vld [vmem:[%s2210_s10 + $0x3a0] sm:$0xff] }
  0x2a   : > { %1838 = vmatprep.subr.bf16.mxu0 %v2082_v3 }
  0x2c   : > { %1792 = vmatpush1.bf16.msra.mxu1 %v1791_v61  ;;  %v160_v61 = vld [vmem:[%s2210_s10 + $0x50] sm:$0xff] }
  0x2d   : > { %1840 = vmatpush1.bf16.msra.mxu0 %v2284_v62  ;;  %1793 = vmatprep.subr.bf16.mxu1 %v2082_v3 }
  0x2e   : > { %1841 = vmatprep.subr.bf16.mxu0 %v2082_v3 }
  0x30   : > { %1795 = vmatpush1.bf16.msra.mxu1 %v1794_v4  ;;  %v466_v4 = vld [vmem:[%s2953_s1 + $0x238] sm:$0xff] }
  0x31   : > { %1843 = vmatpush1.bf16.msra.mxu0 %v2301_v5  ;;  %1796 = vmatprep.subr.bf16.mxu1 %v2082_v3  ;;  %v1869_v9 = vpack.c.bf16 %v466_v4, %v465_v2  ;;  %v223_v2 = vld [vmem:[%s2210_s10 + $0x248] sm:$0xff]  ;;  %v222_v4 = vld [vmem:[%s2210_s10 + $0x240] sm:$0xff] }
  0x32   : > { %1844 = vmatprep.subr.bf16.mxu0 %v2082_v3 }
  0x34   : > { %1798 = vmatpush1.bf16.msra.mxu1 %v1797_v11  ;;  %v467_v11 = vld [vmem:[%s2953_s1 + $0x240] sm:$0xff] }
  0x35   : > { %1846 = vmatpush1.bf16.msra.mxu0 %v2318_v13  ;;  %1799 = vmatprep.subr.bf16.mxu1 %v2082_v3  ;;  %v1872_v17 = vpack.c.bf16 %v468_v14, %v467_v11  ;;  %v232_v11 = vld [vmem:[%s2210_s10 + $0x290] sm:$0xff] }
  0x36   : > { %1847 = vmatprep.subr.bf16.mxu0 %v2082_v3  ;;  %v236_v14 = vld [vmem:[%s2210_s10 + $0x2b0] sm:$0xff] }
  0x38   : > { %1801 = vmatpush1.bf16.msra.mxu1 %v1800_v19  ;;  %v178_v19 = vld [vmem:[%s2210_s10 + $0xe0] sm:$0xff] }
  0x39   : > { %1849 = vmatpush1.bf16.msra.mxu0 %v2335_v20  ;;  %1802 = vmatprep.subr.bf16.mxu1 %v2082_v3 }
  0x3a   : > { %1850 = vmatprep.subr.bf16.mxu0 %v2082_v3 }
  0x3c   : > { %1804 = vmatpush1.bf16.msra.mxu1 %v1803_v26  ;;  %v1875_v26 = vpack.c.bf16 %v470_v22, %v469_v21  ;;  %v248_v21 = vld [vmem:[%s2210_s10 + $0x310] sm:$0xff]  ;;  %v245_v22 = vld [vmem:[%s2210_s10 + $0x2f8] sm:$0xff] }
  0x3d   : > { %1852 = vmatpush1.bf16.msra.mxu0 %v2352_v27  ;;  %1805 = vmatprep.subr.bf16.mxu1 %v2082_v3 }
  0x3e   : > { %1853 = vmatprep.subr.bf16.mxu0 %v2082_v3 }
  0x40   : > { %1807 = vmatpush1.bf16.msra.mxu1 %v1806_v33  ;;  %v186_v33 = vld [vmem:[%s2210_s10 + $0x120] sm:$0xff] }
  0x41   : > { %1855 = vmatpush1.bf16.msra.mxu0 %v2369_v34  ;;  %1808 = vmatprep.subr.bf16.mxu1 %v2082_v3 }
  0x42   : > { %1856 = vmatprep.subr.bf16.mxu0 %v2082_v3 }
  0x44   : > { %1810 = vmatpush1.bf16.msra.mxu1 %v1809_v40  ;;  %v185_v40 = vld [vmem:[%s2210_s10 + $0x118] sm:$0xff] }
  0x45   : > { %1858 = vmatpush1.bf16.msra.mxu0 %v2386_v41  ;;  %1883 = vmatprep.subr.bf16.mxu1 %v2082_v3 }
  0x46   : > { %1859 = vmatprep.subr.bf16.mxu0 %v2082_v3 }
  0x47   : > { %540 = vmatmul.mubr.f32.vlgmr.msra.gmra.mrb[0].mxu1 %v150_v45  ;;  %v193_v45 = vld [vmem:[%s2210_s10 + $0x158] sm:$0xff] }
  0x48   : > { %850 = vmatmul.mubr.f32.vlgmr.msra.gmra.mrb[0].mxu0 %v152_v46  ;;  %544 = vmatprep.mubr.f32.mxu1 %v156_v48  ;;  %v190_v46 = vld [vmem:[%s2210_s10 + $0x140] sm:$0xff]  ;;  %v196_v48 = vld [vmem:[%s2210_s10 + $0x170] sm:$0xff] }
  0x49   : > { %1861 = vmatpush3.bf16.msra.mxu0 %v1860_v47  ;;  %854 = vmatprep.mubr.f32.mxu0 %v158_v49  ;;  %v192_v47 = vld [vmem:[%s2210_s10 + $0x150] sm:$0xff]  ;;  %v198_v49 = vld [vmem:[%s2210_s10 + $0x180] sm:$0xff] }
  0x4a   : > { %1899 = vmatpush1.bf16.msra.mxu1 %v2128_v8  ;;  %1862 = vmatprep.subr.bf16.mxu0 %v2082_v3  ;;  %v162_v8 = vld [vmem:[%s2210_s10 + $0x60] sm:$0xff] }
  0x4b   : > { %545 = vmatmul.mubr.f32.gmra.mrb[2].mxu1 %v155_v53  ;;  %1884 = vmatprep.subr.bf16.mxu1 %v2082_v3  ;;  %v203_v53 = vld [vmem:[%s2210_s10 + $0x1a8] sm:$0xff] }
  0x4c   : > { %855 = vmatmul.mubr.f32.gmra.mrb[2].mxu0 %v157_v54  ;;  %549 = vmatprep.mubr.f32.mxu1 %v161_v55  ;;  %v202_v54 = vld [vmem:[%s2210_s10 + $0x1a0] sm:$0xff] }
  0x4d   : > { %859 = vmatprep.mubr.f32.mxu0 %v163_v58  ;;  %1864 = vmatpush3.bf16.msra.mxu0 %v1863_v57  ;;  %v206_v55 = vld [vmem:[%s2210_s10 + $0x1c0] sm:$0xff]  ;;  %v208_v57 = vld [vmem:[%s2210_s10 + $0x1d0] sm:$0xff]  ;;  %v207_v58 = vld [vmem:[%s2210_s10 + $0x1c8] sm:$0xff] }
  0x4e   : > { %1900 = vmatpush1.bf16.msra.mxu1 %v2138_v12  ;;  %1865 = vmatprep.subr.bf16.mxu0 %v2082_v3  ;;  %v167_v12 = vld [vmem:[%s2210_s10 + $0x88] sm:$0xff] }
  0x4f   : > { %550 = vmatmul.mubr.f32.gmra.mrb[4].mxu1 %v160_v61  ;;  %1885 = vmatprep.subr.bf16.mxu1 %v2082_v3  ;;  %v212_v61 = vld [vmem:[%s2210_s10 + $0x1f0] sm:$0xff] }
  0x50   : > { %860 = vmatmul.mubr.f32.gmra.mrb[4].mxu0 %v162_v8  ;;  %554 = vmatprep.mubr.f32.mxu1 %v166_v63  ;;  %v216_v8 = vld [vmem:[%s2210_s10 + $0x210] sm:$0xff]  ;;  %v218_v63 = vld [vmem:[%s2210_s10 + $0x220] sm:$0xff] }
  0x51   : > { %864 = vmatprep.mubr.f32.mxu0 %v168_v1  ;;  %1867 = vmatpush3.bf16.msra.mxu0 %v1866_v0  ;;  %v217_v0 = vld [vmem:[%s2210_s10 + $0x218] sm:$0xff] }
  0x52   : > { %1901 = vmatpush1.bf16.msra.mxu1 %v2155_v18  ;;  %1868 = vmatprep.subr.bf16.mxu0 %v2082_v3  ;;  %v172_v18 = vld [vmem:[%s2210_s10 + $0xb0] sm:$0xff]  ;;  %v221_v1 = vld [vmem:[%s2210_s10 + $0x238] sm:$0xff] }
  0x53   : > { %555 = vmatmul.mubr.f32.gmra.mrb[6].mxu1 %v165_v6  ;;  %1886 = vmatprep.subr.bf16.mxu1 %v2082_v3  ;;  %v226_v6 = vld [vmem:[%s2210_s10 + $0x260] sm:$0xff] }
  0x54   : > { %865 = vmatmul.mubr.f32.gmra.mrb[6].mxu0 %v167_v12  ;;  %559 = vmatprep.mubr.f32.mxu1 %v171_v7  ;;  %v228_v12 = vld [vmem:[%s2210_s10 + $0x270] sm:$0xff]  ;;  %v227_v7 = vld [vmem:[%s2210_s10 + $0x268] sm:$0xff] }
  0x55   : > { %869 = vmatprep.mubr.f32.mxu0 %v173_v10  ;;  %1870 = vmatpush3.bf16.msra.mxu0 %v1869_v9  ;;  %v231_v9 = vld [vmem:[%s2210_s10 + $0x288] sm:$0xff]  ;;  %v233_v10 = vld [vmem:[%s2210_s10 + $0x298] sm:$0xff] }
  0x56   : > { %1902 = vmatpush1.bf16.msra.mxu1 %v2174_v24  ;;  %1871 = vmatprep.subr.bf16.mxu0 %v2082_v3  ;;  %v177_v24 = vld [vmem:[%s2210_s10 + $0xd8] sm:$0xff] }
  0x57   : > { %560 = vmatmul.mubr.f32.gmra.mrb[8].mxu1 %v170_v15  ;;  %1887 = vmatprep.subr.bf16.mxu1 %v2082_v3  ;;  %v238_v15 = vld [vmem:[%s2210_s10 + $0x2c0] sm:$0xff] }
  0x58   : > { %870 = vmatmul.mubr.f32.gmra.mrb[8].mxu0 %v172_v18  ;;  %564 = vmatprep.mubr.f32.mxu1 %v176_v16  ;;  %v241_v18 = vld [vmem:[%s2210_s10 + $0x2d8] sm:$0xff]  ;;  %v243_v16 = vld [vmem:[%s2210_s10 + $0x2e8] sm:$0xff] }
  0x59   : > { %874 = vmatprep.mubr.f32.mxu0 %v178_v19  ;;  %1873 = vmatpush3.bf16.msra.mxu0 %v1872_v17  ;;  %v240_v17 = vld [vmem:[%s2210_s10 + $0x2d0] sm:$0xff]  ;;  %v246_v19 = vld [vmem:[%s2210_s10 + $0x300] sm:$0xff] }
  0x5a   : > { %1903 = vmatpush1.bf16.msra.mxu1 %v2192_v30  ;;  %1874 = vmatprep.subr.bf16.mxu0 %v2082_v3  ;;  %v182_v30 = vld [vmem:[%s2210_s10 + $0x100] sm:$0xff] }
  0x5b   : > { %565 = vmatmul.mubr.f32.gmra.mrb[10].mxu1 %v175_v23  ;;  %1888 = vmatprep.subr.bf16.mxu1 %v2082_v3  ;;  %v247_v23 = vld [vmem:[%s2210_s10 + $0x308] sm:$0xff] }
  0x5c   : > { %875 = vmatmul.mubr.f32.gmra.mrb[10].mxu0 %v177_v24  ;;  %569 = vmatprep.mubr.f32.mxu1 %v181_v25  ;;  %v251_v24 = vld [vmem:[%s2210_s10 + $0x328] sm:$0xff]  ;;  %v253_v25 = vld [vmem:[%s2210_s10 + $0x338] sm:$0xff] }
  0x5d   : > { %879 = vmatprep.mubr.f32.mxu0 %v183_v28  ;;  %1876 = vmatpush3.bf16.msra.mxu0 %v1875_v26  ;;  %v250_v26 = vld [vmem:[%s2210_s10 + $0x320] sm:$0xff]  ;;  %v252_v28 = vld [vmem:[%s2210_s10 + $0x330] sm:$0xff] }
  0x5e   : > { %1904 = vmatpush1.bf16.msra.mxu1 %v2214_v36  ;;  %1877 = vmatprep.subr.bf16.mxu0 %v2082_v3  ;;  %v187_v36 = vld [vmem:[%s2210_s10 + $0x128] sm:$0xff] }
  0x5f   : > { %570 = vmatmul.mubr.f32.gmra.mrb[12].mxu1 %v180_v32  ;;  %1889 = vmatprep.subr.bf16.mxu1 %v2082_v3  ;;  %v255_v32 = vld [vmem:[%s2210_s10 + $0x348] sm:$0xff] }
  0x60   : > { %880 = vmatmul.mubr.f32.gmra.mrb[12].mxu0 %v182_v30  ;;  %574 = vmatprep.mubr.f32.mxu1 %v186_v33  ;;  %v257_v30 = vld [vmem:[%s2210_s10 + $0x358] sm:$0xff] }
  0x61   : > { %884 = vmatprep.mubr.f32.mxu0 %v188_v37  ;;  %1879 = vmatpush3.bf16.msra.mxu0 %v1878_v35  ;;  %v261_v33 = vld [vmem:[%s2210_s10 + $0x378] sm:$0xff]  ;;  %v263_v35 = vld [vmem:[%s2210_s10 + $0x388] sm:$0xff]  ;;  %v260_v37 = vld [vmem:[%s2210_s10 + $0x370] sm:$0xff] }
  0x62   : > { %1905 = vmatpush1.bf16.msra.mxu1 %v2233_v44  ;;  %1880 = vmatprep.subr.bf16.mxu0 %v2082_v3  ;;  %v195_v44 = vld [vmem:[%s2210_s10 + $0x168] sm:$0xff] }
  0x63   : > { %575 = vmatmul.mubr.f32.gmra.mrb[14].mxu1 %v185_v40  ;;  %1890 = vmatprep.subr.bf16.mxu1 %v2082_v3  ;;  %v268_v40 = vld [vmem:[%s2210_s10 + $0x3b0] sm:$0xff] }
  0x64   : > { %885 = vmatmul.mubr.f32.gmra.mrb[14].mxu0 %v187_v36  ;;  %579 = vmatprep.mubr.f32.mxu1 %v191_v42  ;;  %v265_v36 = vld [vmem:[%s2210_s10 + $0x398] sm:$0xff]  ;;  %v267_v42 = vld [vmem:[%s2210_s10 + $0x3a8] sm:$0xff] }
  0x65   : > { %889 = vmatprep.mubr.f32.mxu0 %v193_v45  ;;  %1882 = vmatpush3.bf16.msra.mxu0 %v1881_v43  ;;  %v271_v43 = vld [vmem:[%s2210_s10 + $0x3c8] sm:$0xff]  ;;  %v273_v45 = vld [vmem:[%s2210_s10 + $0x3d8] sm:$0xff] }
  0x66   : > { %1906 = vmatpush1.bf16.msra.mxu1 %v2250_v50  ;;  %v200_v50 = vld [vmem:[%s2210_s10 + $0x190] sm:$0xff] }
  0x67   : > { %580 = vmatmul.mubr.f32.gmra.mrb[16].mxu1 %v190_v46  ;;  %1891 = vmatprep.subr.bf16.mxu1 %v2082_v3  ;;  %v270_v46 = vld [vmem:[%s2210_s10 + $0x3c0] sm:$0xff] }
  0x68   : > { %890 = vmatmul.mubr.f32.gmra.mrb[16].mxu0 %v192_v47  ;;  %584 = vmatprep.mubr.f32.mxu1 %v196_v48  ;;  %v272_v47 = vld [vmem:[%s2210_s10 + $0x3d0] sm:$0xff] }
  0x69   : > { %894 = vmatprep.mubr.f32.mxu0 %v198_v49  ;;  %v276_v48 = vld [vmem:[%s2210_s10 + $0x3f0] sm:$0xff]  ;;  %v275_v49 = vld [vmem:[%s2210_s10 + $0x3e8] sm:$0xff] }
  0x6a   : > { %1907 = vmatpush1.bf16.msra.mxu1 %v2267_v56  ;;  %v205_v56 = vld [vmem:[%s2210_s10 + $0x1b8] sm:$0xff] }
  0x6b   : > { %585 = vmatmul.mubr.f32.gmra.mrb[18].mxu1 %v195_v44  ;;  %1892 = vmatprep.subr.bf16.mxu1 %v2082_v3  ;;  %v2084_v44 = vmov 0.0  }
  0x6c   : > { %895 = vmatmul.mubr.f32.gmra.mrb[18].mxu0 %v197_v51  ;;  %589 = vmatprep.mubr.f32.mxu1 %v201_v52  ;;  %v154_v51 = vld [vmem:[%s2210_s10 + $0x20] sm:$0xff]  ;;  %v281_v52 = vld [vmem:[%s2210_s10 + $0x418] sm:$0xff] }
  0x6d   : > { %899 = vmatprep.mubr.f32.mxu0 %v203_v53  ;;  %v280_v53 = vld [vmem:[%s2210_s10 + $0x410] sm:$0xff] }
  0x6e   : > { %1908 = vmatpush1.bf16.msra.mxu1 %v2284_v62  ;;  %v210_v62 = vld [vmem:[%s2210_s10 + $0x1e0] sm:$0xff] }
  0x6f   : > { %590 = vmatmul.mubr.f32.gmra.mrb[20].mxu1 %v200_v50  ;;  %1893 = vmatprep.subr.bf16.mxu1 %v2082_v3  ;;  %v159_v50 = vld [vmem:[%s2210_s10 + $0x48] sm:$0xff] }
  0x70   : > { %900 = vmatmul.mubr.f32.gmra.mrb[20].mxu0 %v202_v54  ;;  %594 = vmatprep.mubr.f32.mxu1 %v206_v55  ;;  %v286_v54 = vld [vmem:[%s2210_s10 + $0x440] sm:$0xff]  ;;  %v285_v55 = vld [vmem:[%s2210_s10 + $0x438] sm:$0xff] }
  0x71   : > { %904 = vmatprep.mubr.f32.mxu0 %v208_v57  ;;  %v164_v57 = vld [vmem:[%s2210_s10 + $0x70] sm:$0xff] }
  0x72   : > { %1909 = vmatpush1.bf16.msra.mxu1 %v2301_v5  ;;  %v215_v5 = vld [vmem:[%s2210_s10 + $0x208] sm:$0xff] }
  0x73   : > { %595 = vmatmul.mubr.f32.gmra.mrb[22].mxu1 %v205_v56  ;;  %1894 = vmatprep.subr.bf16.mxu1 %v2082_v3  ;;  %v291_v56 = vld [vmem:[%s2210_s10 + $0x468] sm:$0xff] }
  0x74   : > { %905 = vmatmul.mubr.f32.gmra.mrb[22].mxu0 %v207_v58  ;;  %599 = vmatprep.mubr.f32.mxu1 %v211_v59  ;;  %v290_v58 = vld [vmem:[%s2210_s10 + $0x460] sm:$0xff]  ;;  %v169_v59 = vld [vmem:[%s2210_s10 + $0x98] sm:$0xff] }
  0x75   : > { %909 = vmatprep.mubr.f32.mxu0 %v213_v60  ;;  %v296_v60 = vld [vmem:[%s2210_s10 + $0x490] sm:$0xff] }
  0x76   : > { %1910 = vmatpush1.bf16.msra.mxu1 %v2318_v13  ;;  %v220_v13 = vld [vmem:[%s2210_s10 + $0x230] sm:$0xff] }
  0x77   : > { %600 = vmatmul.mubr.f32.gmra.mrb[24].mxu1 %v210_v62  ;;  %1895 = vmatprep.subr.bf16.mxu1 %v2082_v3  ;;  %v295_v62 = vld [vmem:[%s2210_s10 + $0x488] sm:$0xff] }
  0x78   : > { %910 = vmatmul.mubr.f32.gmra.mrb[24].mxu0 %v212_v61  ;;  %604 = vmatprep.mubr.f32.mxu1 %v216_v8  ;;  %v174_v61 = vld [vmem:[%s2210_s10 + $0xc0] sm:$0xff]  ;;  %v301_v8 = vld [vmem:[%s2210_s10 + $0x4b8] sm:$0xff] }
  0x79   : > { %914 = vmatprep.mubr.f32.mxu0 %v218_v63  ;;  %v300_v63 = vld [vmem:[%s2210_s10 + $0x4b0] sm:$0xff] }
  0x7a   : > { %1911 = vmatpush1.bf16.msra.mxu1 %v2335_v20  ;;  %v225_v20 = vld [vmem:[%s2210_s10 + $0x258] sm:$0xff] }
  0x7b   : > { %605 = vmatmul.mubr.f32.gmra.mrb[26].mxu1 %v215_v5  ;;  %1896 = vmatprep.subr.bf16.mxu1 %v2082_v3  ;;  %v179_v5 = vld [vmem:[%s2210_s10 + $0xe8] sm:$0xff] }
  0x7c   : > { %915 = vmatmul.mubr.f32.gmra.mrb[26].mxu0 %v217_v0  ;;  %609 = vmatprep.mubr.f32.mxu1 %v221_v1  ;;  %v306_v0 = vld [vmem:[%s2210_s10 + $0x4e0] sm:$0xff]  ;;  %v305_v1 = vld [vmem:[%s2210_s10 + $0x4d8] sm:$0xff] }
  0x7d   : > { %919 = vmatprep.mubr.f32.mxu0 %v223_v2  ;;  %v184_v2 = vld [vmem:[%s2210_s10 + $0x110] sm:$0xff] }
  0x7e   : > { %1912 = vmatpush1.bf16.msra.mxu1 %v2352_v27  ;;  %v230_v27 = vld [vmem:[%s2210_s10 + $0x280] sm:$0xff] }
  0x7f   : > { %610 = vmatmul.mubr.f32.gmra.mrb[28].mxu1 %v220_v13  ;;  %1897 = vmatprep.subr.bf16.mxu1 %v2082_v3  ;;  %v311_v13 = vld [vmem:[%s2210_s10 + $0x508] sm:$0xff] }
  0x80   : > { %920 = vmatmul.mubr.f32.gmra.mrb[28].mxu0 %v222_v4  ;;  %614 = vmatprep.mubr.f32.mxu1 %v226_v6  ;;  %v310_v4 = vld [vmem:[%s2210_s10 + $0x500] sm:$0xff]  ;;  %v189_v6 = vld [vmem:[%s2210_s10 + $0x138] sm:$0xff] }
  0x81   : > { %924 = vmatprep.mubr.f32.mxu0 %v228_v12  ;;  %v316_v12 = vld [vmem:[%s2210_s10 + $0x530] sm:$0xff] }
  0x82   : > { %1913 = vmatpush1.bf16.msra.mxu1 %v2369_v34  ;;  %v235_v34 = vld [vmem:[%s2210_s10 + $0x2a8] sm:$0xff] }
  0x83   : > { %615 = vmatmul.mubr.f32.gmra.mrb[30].mxu1 %v225_v20  ;;  %1898 = vmatprep.subr.bf16.mxu1 %v2082_v3  ;;  %v237_v3 = vld [vmem:[%s2210_s10 + $0x2b8] sm:$0xff]  ;;  %v315_v20 = vld [vmem:[%s2210_s10 + $0x528] sm:$0xff] }
  0x84   : > { %925 = vmatmul.mubr.f32.gmra.mrb[30].mxu0 %v227_v7  ;;  %619 = vmatprep.mubr.f32.mxu1 %v231_v9  ;;  %v194_v7 = vld [vmem:[%s2210_s10 + $0x160] sm:$0xff]  ;;  %v321_v9 = vld [vmem:[%s2210_s10 + $0x558] sm:$0xff] }
  0x85   : > { %929 = vmatprep.mubr.f32.mxu0 %v233_v10  ;;  %v320_v10 = vld [vmem:[%s2210_s10 + $0x550] sm:$0xff] }
  0x86   : > { %1914 = vmatpush1.bf16.msra.mxu1 %v2386_v41  ;;  %v242_v41 = vld [vmem:[%s2210_s10 + $0x2e0] sm:$0xff] }
  0x87   : > { %620 = vmatmul.mubr.f32.gmra.mrb[32].mxu1 %v230_v27  ;;  %v199_v27 = vld [vmem:[%s2210_s10 + $0x188] sm:$0xff] }
  0x88   : > { %930 = vmatmul.mubr.f32.gmra.mrb[32].mxu0 %v232_v11  ;;  %624 = vmatprep.mubr.f32.mxu1 %v236_v14  ;;  %v326_v11 = vld [vmem:[%s2210_s10 + $0x580] sm:$0xff]  ;;  %v325_v14 = vld [vmem:[%s2210_s10 + $0x578] sm:$0xff] }
  0x89   : > { %934 = vmatprep.mubr.f32.mxu0 %v238_v15  ;;  %v204_v15 = vld [vmem:[%s2210_s10 + $0x1b0] sm:$0xff] }
  0x8b   : > { %625 = vmatmul.mubr.f32.gmra.mrb[34].mxu1 %v235_v34  ;;  %v331_v34 = vld [vmem:[%s2210_s10 + $0x5a8] sm:$0xff] }
  0x8c   : > { %935 = vmatmul.mubr.f32.gmra.mrb[34].mxu0 %v237_v3  ;;  %629 = vmatprep.mubr.f32.mxu1 %v241_v18  ;;  %v330_v3 = vld [vmem:[%s2210_s10 + $0x5a0] sm:$0xff]  ;;  %v209_v18 = vld [vmem:[%s2210_s10 + $0x1d8] sm:$0xff] }
  0x8d   : > { %939 = vmatprep.mubr.f32.mxu0 %v243_v16  ;;  %v336_v16 = vld [vmem:[%s2210_s10 + $0x5d0] sm:$0xff] }
  0x8f   : > { %630 = vmatmul.mubr.f32.gmra.mrb[36].mxu1 %v240_v17  ;;  %v335_v17 = vld [vmem:[%s2210_s10 + $0x5c8] sm:$0xff] }
  0x90   : > { %940 = vmatmul.mubr.f32.gmra.mrb[36].mxu0 %v242_v41  ;;  %634 = vmatprep.mubr.f32.mxu1 %v246_v19  ;;  %v214_v41 = vld [vmem:[%s2210_s10 + $0x200] sm:$0xff]  ;;  %v341_v19 = vld [vmem:[%s2210_s10 + $0x5f8] sm:$0xff] }
  0x91   : > { %944 = vmatprep.mubr.f32.mxu0 %v248_v21  ;;  %v340_v21 = vld [vmem:[%s2210_s10 + $0x5f0] sm:$0xff] }
  0x93   : > { %635 = vmatmul.mubr.f32.gmra.mrb[38].mxu1 %v245_v22  ;;  %v219_v22 = vld [vmem:[%s2210_s10 + $0x228] sm:$0xff] }
  0x94   : > { %945 = vmatmul.mubr.f32.gmra.mrb[38].mxu0 %v247_v23  ;;  %639 = vmatprep.mubr.f32.mxu1 %v251_v24  ;;  %v346_v23 = vld [vmem:[%s2210_s10 + $0x620] sm:$0xff]  ;;  %v345_v24 = vld [vmem:[%s2210_s10 + $0x618] sm:$0xff] }
  0x95   : > { %949 = vmatprep.mubr.f32.mxu0 %v253_v25  ;;  %v224_v25 = vld [vmem:[%s2210_s10 + $0x250] sm:$0xff] }
  0x97   : > { %640 = vmatmul.mubr.f32.gmra.mrb[40].mxu1 %v250_v26  ;;  %v351_v26 = vld [vmem:[%s2210_s10 + $0x648] sm:$0xff] }
  0x98   : > { %950 = vmatmul.mubr.f32.gmra.mrb[40].mxu0 %v252_v28  ;;  %644 = vmatprep.mubr.f32.mxu1 %v256_v29  ;;  %v350_v28 = vld [vmem:[%s2210_s10 + $0x640] sm:$0xff]  ;;  %v229_v29 = vld [vmem:[%s2210_s10 + $0x278] sm:$0xff] }
  0x99   : > { %954 = vmatprep.mubr.f32.mxu0 %v258_v31  ;;  %v356_v31 = vld [vmem:[%s2210_s10 + $0x670] sm:$0xff] }
  0x9b   : > { %645 = vmatmul.mubr.f32.gmra.mrb[42].mxu1 %v255_v32  ;;  %v355_v32 = vld [vmem:[%s2210_s10 + $0x668] sm:$0xff] }
  0x9c   : > { %955 = vmatmul.mubr.f32.gmra.mrb[42].mxu0 %v257_v30  ;;  %649 = vmatprep.mubr.f32.mxu1 %v261_v33  ;;  %v234_v30 = vld [vmem:[%s2210_s10 + $0x2a0] sm:$0xff]  ;;  %v361_v33 = vld [vmem:[%s2210_s10 + $0x698] sm:$0xff] }
  0x9d   : > { %959 = vmatprep.mubr.f32.mxu0 %v263_v35  ;;  %v360_v35 = vld [vmem:[%s2210_s10 + $0x690] sm:$0xff] }
  0x9f   : > { %650 = vmatmul.mubr.f32.gmra.mrb[44].mxu1 %v260_v37  ;;  %v239_v37 = vld [vmem:[%s2210_s10 + $0x2c8] sm:$0xff] }
  0xa0   : > { %960 = vmatmul.mubr.f32.gmra.mrb[44].mxu0 %v262_v38  ;;  %654 = vmatprep.mubr.f32.mxu1 %v266_v39  ;;  %v366_v38 = vld [vmem:[%s2210_s10 + $0x6c0] sm:$0xff]  ;;  %v365_v39 = vld [vmem:[%s2210_s10 + $0x6b8] sm:$0xff] }
  0xa1   : > { %964 = vmatprep.mubr.f32.mxu0 %v268_v40  ;;  %v244_v40 = vld [vmem:[%s2210_s10 + $0x2f0] sm:$0xff] }
  0xa3   : > { %655 = vmatmul.mubr.f32.gmra.mrb[46].mxu1 %v265_v36  ;;  %v371_v36 = vld [vmem:[%s2210_s10 + $0x6e8] sm:$0xff] }
  0xa4   : > { %965 = vmatmul.mubr.f32.gmra.mrb[46].mxu0 %v267_v42  ;;  %659 = vmatprep.mubr.f32.mxu1 %v271_v43  ;;  %v370_v42 = vld [vmem:[%s2210_s10 + $0x6e0] sm:$0xff]  ;;  %v249_v43 = vld [vmem:[%s2210_s10 + $0x318] sm:$0xff] }
  0xa5   : > { %969 = vmatprep.mubr.f32.mxu0 %v273_v45  ;;  %v376_v45 = vld [vmem:[%s2210_s10 + $0x710] sm:$0xff] }
  0xa7   : > { %660 = vmatmul.mubr.f32.gmra.mrb[48].mxu1 %v270_v46  ;;  %v375_v46 = vld [vmem:[%s2210_s10 + $0x708] sm:$0xff] }
  0xa8   : > { %970 = vmatmul.mubr.f32.gmra.mrb[48].mxu0 %v272_v47  ;;  %664 = vmatprep.mubr.f32.mxu1 %v276_v48  ;;  %v254_v47 = vld [vmem:[%s2210_s10 + $0x340] sm:$0xff]  ;;  %v381_v48 = vld [vmem:[%s2210_s10 + $0x738] sm:$0xff] }
  0xa9   : > { %1616 = vmatprep.mubr.msk.f32.mxu0 %vm2083_vm0, %v2084_v44 }
  0xab   : > { %665 = vmatmul.mubr.f32.gmra.mrb[50].mxu1 %v275_v49  ;;  %v380_v49 = vld [vmem:[%s2210_s10 + $0x730] sm:$0xff] }
  0xac   : > { %1617 = vmatmul.mubr.f32.vlgmr.msra.gmra.mrb[0].mxu0 %v154_v51  ;;  %669 = vmatprep.mubr.f32.mxu1 %v281_v52  ;;  %v259_v51 = vld [vmem:[%s2210_s10 + $0x368] sm:$0xff]  ;;  %v386_v52 = vld [vmem:[%s2210_s10 + $0x760] sm:$0xff] }
  0xad   : > { %1619 = vmatprep.mubr.msk.f32.mxu0 %vm2083_vm0, %v2084_v44 }
  0xaf   : > { %670 = vmatmul.mubr.f32.gmra.mrb[52].mxu1 %v280_v53  ;;  %v385_v53 = vld [vmem:[%s2210_s10 + $0x758] sm:$0xff] }
  0xb0   : > { %1620 = vmatmul.mubr.f32.gmra.mrb[2].mxu0 %v159_v50  ;;  %674 = vmatprep.mubr.f32.mxu1 %v286_v54  ;;  %v264_v50 = vld [vmem:[%s2210_s10 + $0x390] sm:$0xff]  ;;  %v391_v54 = vld [vmem:[%s2210_s10 + $0x788] sm:$0xff] }
  0xb1   : > { %1622 = vmatprep.mubr.msk.f32.mxu0 %vm2083_vm0, %v2084_v44 }
  0xb3   : > { %675 = vmatmul.mubr.f32.gmra.mrb[54].mxu1 %v285_v55  ;;  %v390_v55 = vld [vmem:[%s2210_s10 + $0x780] sm:$0xff] }
  0xb4   : > { %1623 = vmatmul.mubr.f32.gmra.mrb[4].mxu0 %v164_v57  ;;  %679 = vmatprep.mubr.f32.mxu1 %v291_v56  ;;  %v269_v57 = vld [vmem:[%s2210_s10 + $0x3b8] sm:$0xff]  ;;  %v278_v56 = vld [vmem:[%s2210_s10 + $0x400] sm:$0xff] }
  0xb5   : > { %1625 = vmatprep.mubr.msk.f32.mxu0 %vm2083_vm0, %v2084_v44 }
  0xb7   : > { %680 = vmatmul.mubr.f32.gmra.mrb[56].mxu1 %v290_v58  ;;  %v277_v58 = vld [vmem:[%s2210_s10 + $0x3f8] sm:$0xff] }
  0xb8   : > { %1626 = vmatmul.mubr.f32.gmra.mrb[6].mxu0 %v169_v59  ;;  %684 = vmatprep.mubr.f32.mxu1 %v296_v60  ;;  %v274_v59 = vld [vmem:[%s2210_s10 + $0x3e0] sm:$0xff]  ;;  %v283_v60 = vld [vmem:[%s2210_s10 + $0x428] sm:$0xff] }
  0xb9   : > { %1628 = vmatprep.mubr.msk.f32.mxu0 %vm2083_vm0, %v2084_v44 }
  0xbb   : > { %685 = vmatmul.mubr.f32.gmra.mrb[58].mxu1 %v295_v62  ;;  %v282_v62 = vld [vmem:[%s2210_s10 + $0x420] sm:$0xff] }
  0xbc   : > { %1629 = vmatmul.mubr.f32.gmra.mrb[8].mxu0 %v174_v61  ;;  %689 = vmatprep.mubr.f32.mxu1 %v301_v8  ;;  %v279_v61 = vld [vmem:[%s2210_s10 + $0x408] sm:$0xff]  ;;  %v288_v8 = vld [vmem:[%s2210_s10 + $0x450] sm:$0xff] }
  0xbd   : > { %1631 = vmatprep.mubr.msk.f32.mxu0 %vm2083_vm0, %v2084_v44 }
  0xbf   : > { %690 = vmatmul.mubr.f32.gmra.mrb[60].mxu1 %v300_v63  ;;  %v287_v63 = vld [vmem:[%s2210_s10 + $0x448] sm:$0xff] }
  0xc0   : > { %1632 = vmatmul.mubr.f32.gmra.mrb[10].mxu0 %v179_v5  ;;  %694 = vmatprep.mubr.f32.mxu1 %v306_v0  ;;  %v284_v5 = vld [vmem:[%s2210_s10 + $0x430] sm:$0xff]  ;;  %v293_v0 = vld [vmem:[%s2210_s10 + $0x478] sm:$0xff] }
  0xc1   : > { %1634 = vmatprep.mubr.msk.f32.mxu0 %vm2083_vm0, %v2084_v44 }
  0xc3   : > { %695 = vmatmul.mubr.f32.gmra.mrb[62].mxu1 %v305_v1  ;;  %v292_v1 = vld [vmem:[%s2210_s10 + $0x470] sm:$0xff] }
  0xc4   : > { %1635 = vmatmul.mubr.f32.gmra.mrb[12].mxu0 %v184_v2  ;;  %699 = vmatprep.mubr.f32.mxu1 %v311_v13  ;;  %v289_v2 = vld [vmem:[%s2210_s10 + $0x458] sm:$0xff]  ;;  %v298_v13 = vld [vmem:[%s2210_s10 + $0x4a0] sm:$0xff] }
  0xc5   : > { %1637 = vmatprep.mubr.msk.f32.mxu0 %vm2083_vm0, %v2084_v44 }
  0xc7   : > { %700 = vmatmul.mubr.f32.gmra.mrb[64].mxu1 %v310_v4  ;;  %v297_v4 = vld [vmem:[%s2210_s10 + $0x498] sm:$0xff] }
  0xc8   : > { %1638 = vmatmul.mubr.f32.gmra.mrb[14].mxu0 %v189_v6  ;;  %704 = vmatprep.mubr.f32.mxu1 %v316_v12  ;;  %v294_v6 = vld [vmem:[%s2210_s10 + $0x480] sm:$0xff]  ;;  %v303_v12 = vld [vmem:[%s2210_s10 + $0x4c8] sm:$0xff] }
  0xc9   : > { %1640 = vmatprep.mubr.msk.f32.mxu0 %vm2083_vm0, %v2084_v44 }
  0xcb   : > { %705 = vmatmul.mubr.f32.gmra.mrb[66].mxu1 %v315_v20 }
  0xcc   : > { %1641 = vmatmul.mubr.f32.gmra.mrb[16].mxu0 %v194_v7  ;;  %709 = vmatprep.mubr.f32.mxu1 %v321_v9  ;;  %v302_v9 = vld [vmem:[%s2210_s10 + $0x4c0] sm:$0xff] }
  0xcd   : > { %1643 = vmatprep.mubr.msk.f32.mxu0 %vm2083_vm0, %v2084_v44 }
  0xcf   : > { %710 = vmatmul.mubr.f32.gmra.mrb[68].mxu1 %v320_v10  ;;  %v299_v10 = vld [vmem:[%s2210_s10 + $0x4a8] sm:$0xff] }
  0xd0   : > { %1644 = vmatmul.mubr.f32.gmra.mrb[18].mxu0 %v199_v27  ;;  %714 = vmatprep.mubr.f32.mxu1 %v326_v11  ;;  %v308_v27 = vld [vmem:[%s2210_s10 + $0x4f0] sm:$0xff] }
  0xd1   : > { %1646 = vmatprep.mubr.msk.f32.mxu0 %vm2083_vm0, %v2084_v44 }
  0xd3   : > { %715 = vmatmul.mubr.f32.gmra.mrb[70].mxu1 %v325_v14 }
  0xd4   : > { %1647 = vmatmul.mubr.f32.gmra.mrb[20].mxu0 %v204_v15  ;;  %719 = vmatprep.mubr.f32.mxu1 %v331_v34  ;;  %v307_v15 = vld [vmem:[%s2210_s10 + $0x4e8] sm:$0xff]  ;;  %v304_v34 = vld [vmem:[%s2210_s10 + $0x4d0] sm:$0xff] }
  0xd5   : > { %1649 = vmatprep.mubr.msk.f32.mxu0 %vm2083_vm0, %v2084_v44 }
  0xd7   : > { %720 = vmatmul.mubr.f32.gmra.mrb[72].mxu1 %v330_v3  ;;  %v313_v3 = vld [vmem:[%s2210_s10 + $0x518] sm:$0xff] }
  0xd8   : > { %1650 = vmatmul.mubr.f32.gmra.mrb[22].mxu0 %v209_v18  ;;  %724 = vmatprep.mubr.f32.mxu1 %v336_v16 }
  0xd9   : > { %1652 = vmatprep.mubr.msk.f32.mxu0 %vm2083_vm0, %v2084_v44 }
  0xdb   : > { %725 = vmatmul.mubr.f32.gmra.mrb[74].mxu1 %v335_v17  ;;  %v312_v17 = vld [vmem:[%s2210_s10 + $0x510] sm:$0xff] }
  0xdc   : > { %1653 = vmatmul.mubr.f32.gmra.mrb[24].mxu0 %v214_v41  ;;  %729 = vmatprep.mubr.f32.mxu1 %v341_v19  ;;  %v309_v41 = vld [vmem:[%s2210_s10 + $0x4f8] sm:$0xff]  ;;  %v318_v19 = vld [vmem:[%s2210_s10 + $0x540] sm:$0xff] }
  0xdd   : > { %1655 = vmatprep.mubr.msk.f32.mxu0 %vm2083_vm0, %v2084_v44 }
  0xdf   : > { %730 = vmatmul.mubr.f32.gmra.mrb[76].mxu1 %v340_v21 }
  0xe0   : > { %1656 = vmatmul.mubr.f32.gmra.mrb[26].mxu0 %v219_v22  ;;  %734 = vmatprep.mubr.f32.mxu1 %v346_v23  ;;  %v317_v23 = vld [vmem:[%s2210_s10 + $0x538] sm:$0xff] }
  0xe1   : > { %1658 = vmatprep.mubr.msk.f32.mxu0 %vm2083_vm0, %v2084_v44 }
  0xe3   : > { %735 = vmatmul.mubr.f32.gmra.mrb[78].mxu1 %v345_v24  ;;  %v314_v24 = vld [vmem:[%s2210_s10 + $0x520] sm:$0xff] }
  0xe4   : > { %1659 = vmatmul.mubr.f32.gmra.mrb[28].mxu0 %v224_v25  ;;  %739 = vmatprep.mubr.f32.mxu1 %v351_v26  ;;  %v323_v25 = vld [vmem:[%s2210_s10 + $0x568] sm:$0xff] }
  0xe5   : > { %1661 = vmatprep.mubr.msk.f32.mxu0 %vm2083_vm0, %v2084_v44 }
  0xe7   : > { %740 = vmatmul.mubr.f32.gmra.mrb[80].mxu1 %v350_v28 }
  0xe8   : > { %1662 = vmatmul.mubr.f32.gmra.mrb[30].mxu0 %v229_v29  ;;  %744 = vmatprep.mubr.f32.mxu1 %v356_v31  ;;  %v322_v29 = vld [vmem:[%s2210_s10 + $0x560] sm:$0xff]  ;;  %v319_v31 = vld [vmem:[%s2210_s10 + $0x548] sm:$0xff] }
  0xe9   : > { %1664 = vmatprep.mubr.msk.f32.mxu0 %vm2083_vm0, %v2084_v44 }
  0xeb   : > { %745 = vmatmul.mubr.f32.gmra.mrb[82].mxu1 %v355_v32  ;;  %v328_v32 = vld [vmem:[%s2210_s10 + $0x590] sm:$0xff] }
  0xec   : > { %1665 = vmatmul.mubr.f32.gmra.mrb[32].mxu0 %v234_v30  ;;  %749 = vmatprep.mubr.f32.mxu1 %v361_v33 }
  0xed   : > { %1667 = vmatprep.mubr.msk.f32.mxu0 %vm2083_vm0, %v2084_v44 }
  0xef   : > { %750 = vmatmul.mubr.f32.gmra.mrb[84].mxu1 %v360_v35  ;;  %v327_v35 = vld [vmem:[%s2210_s10 + $0x588] sm:$0xff] }
  0xf0   : > { %1668 = vmatmul.mubr.f32.gmra.mrb[34].mxu0 %v239_v37  ;;  %754 = vmatprep.mubr.f32.mxu1 %v366_v38  ;;  %v324_v37 = vld [vmem:[%s2210_s10 + $0x570] sm:$0xff]  ;;  %v333_v38 = vld [vmem:[%s2210_s10 + $0x5b8] sm:$0xff] }
  0xf1   : > { %1670 = vmatprep.mubr.msk.f32.mxu0 %vm2083_vm0, %v2084_v44 }
  0xf3   : > { %755 = vmatmul.mubr.f32.gmra.mrb[86].mxu1 %v365_v39 }
  0xf4   : > { %1671 = vmatmul.mubr.f32.gmra.mrb[36].mxu0 %v244_v40  ;;  %759 = vmatprep.mubr.f32.mxu1 %v371_v36  ;;  %v332_v36 = vld [vmem:[%s2210_s10 + $0x5b0] sm:$0xff] }
  0xf5   : > { %1673 = vmatprep.mubr.msk.f32.mxu0 %vm2083_vm0, %v2084_v44 }
  0xf7   : > { %760 = vmatmul.mubr.f32.gmra.mrb[88].mxu1 %v370_v42  ;;  %v329_v42 = vld [vmem:[%s2210_s10 + $0x598] sm:$0xff] }
  0xf8   : > { %1674 = vmatmul.mubr.f32.gmra.mrb[38].mxu0 %v249_v43  ;;  %764 = vmatprep.mubr.f32.mxu1 %v376_v45  ;;  %v338_v43 = vld [vmem:[%s2210_s10 + $0x5e0] sm:$0xff] }
  0xf9   : > { %1676 = vmatprep.mubr.msk.f32.mxu0 %vm2083_vm0, %v2084_v44 }
  0xfb   : > { %765 = vmatmul.mubr.f32.gmra.mrb[90].mxu1 %v375_v46 }
  0xfc   : > { %1677 = vmatmul.mubr.f32.gmra.mrb[40].mxu0 %v254_v47  ;;  %769 = vmatprep.mubr.f32.mxu1 %v381_v48  ;;  %v337_v47 = vld [vmem:[%s2210_s10 + $0x5d8] sm:$0xff]  ;;  %v334_v48 = vld [vmem:[%s2210_s10 + $0x5c0] sm:$0xff] }
  0xfd   : > { %1679 = vmatprep.mubr.msk.f32.mxu0 %vm2083_vm0, %v2084_v44 }
  0xff   : > { %770 = vmatmul.mubr.f32.gmra.mrb[92].mxu1 %v380_v49  ;;  %v343_v49 = vld [vmem:[%s2210_s10 + $0x608] sm:$0xff] }
 0x100   : > { %1680 = vmatmul.mubr.f32.gmra.mrb[42].mxu0 %v259_v51  ;;  %774 = vmatprep.mubr.f32.mxu1 %v386_v52 }
 0x101   : > { %1682 = vmatprep.mubr.msk.f32.mxu0 %vm2083_vm0, %v2084_v44 }
 0x103   : > { %775 = vmatmul.mubr.f32.gmra.mrb[94].mxu1 %v385_v53  ;;  %v342_v53 = vld [vmem:[%s2210_s10 + $0x600] sm:$0xff] }
 0x104   : > { %1683 = vmatmul.mubr.f32.gmra.mrb[44].mxu0 %v264_v50  ;;  %779 = vmatprep.mubr.f32.mxu1 %v391_v54  ;;  %v339_v50 = vld [vmem:[%s2210_s10 + $0x5e8] sm:$0xff]  ;;  %v348_v54 = vld [vmem:[%s2210_s10 + $0x630] sm:$0xff] }
 0x105   : > { %1685 = vmatprep.mubr.msk.f32.mxu0 %vm2083_vm0, %v2084_v44 }
 0x107   : > { %780 = vmatmul.mubr.f32.gmra.mrb[96].mxu1 %v390_v55 }
 0x108   : > { %1686 = vmatmul.mubr.f32.gmra.mrb[46].mxu0 %v269_v57  ;;  %974 = vmatprep.mubr.f32.mxu1 %v278_v56  ;;  %v347_v56 = vld [vmem:[%s2210_s10 + $0x628] sm:$0xff] }
 0x109   : > { %1688 = vmatprep.mubr.msk.f32.mxu0 %vm2083_vm0, %v2084_v44 }
 0x10b   : > { %975 = vmatmul.mubr.f32.vlgmr.msra.gmra.mrb[50].mxu1 %v277_v58  ;;  %v344_v58 = vld [vmem:[%s2210_s10 + $0x610] sm:$0xff] }
 0x10c   : > { %1689 = vmatmul.mubr.f32.gmra.mrb[48].mxu0 %v274_v59  ;;  %979 = vmatprep.mubr.f32.mxu1 %v283_v60  ;;  %v353_v59 = vld [vmem:[%s2210_s10 + $0x658] sm:$0xff] }
 0x10d   : > { %1691 = vmatprep.mubr.msk.f32.mxu0 %vm2083_vm0, %v2084_v44 }
 0x10f   : > { %980 = vmatmul.mubr.f32.gmra.mrb[52].mxu1 %v282_v62 }
 0x110   : > { %1692 = vmatmul.mubr.f32.gmra.mrb[50].mxu0 %v279_v61  ;;  %984 = vmatprep.mubr.f32.mxu1 %v288_v8  ;;  %v352_v61 = vld [vmem:[%s2210_s10 + $0x650] sm:$0xff]  ;;  %v349_v8 = vld [vmem:[%s2210_s10 + $0x638] sm:$0xff] }
 0x111   : > { %1694 = vmatprep.mubr.msk.f32.mxu0 %vm2083_vm0, %v2084_v44 }
 0x113   : > { %985 = vmatmul.mubr.f32.gmra.mrb[54].mxu1 %v287_v63  ;;  %v358_v63 = vld [vmem:[%s2210_s10 + $0x680] sm:$0xff] }
 0x114   : > { %1695 = vmatmul.mubr.f32.gmra.mrb[52].mxu0 %v284_v5  ;;  %989 = vmatprep.mubr.f32.mxu1 %v293_v0 }
 0x115   : > { %1697 = vmatprep.mubr.msk.f32.mxu0 %vm2083_vm0, %v2084_v44 }
 0x117   : > { %990 = vmatmul.mubr.f32.gmra.mrb[56].mxu1 %v292_v1  ;;  %v357_v1 = vld [vmem:[%s2210_s10 + $0x678] sm:$0xff] }
 0x118   : > { %1698 = vmatmul.mubr.f32.gmra.mrb[54].mxu0 %v289_v2  ;;  %994 = vmatprep.mubr.f32.mxu1 %v298_v13  ;;  %v354_v2 = vld [vmem:[%s2210_s10 + $0x660] sm:$0xff]  ;;  %v363_v13 = vld [vmem:[%s2210_s10 + $0x6a8] sm:$0xff] }
 0x119   : > { %1700 = vmatprep.mubr.msk.f32.mxu0 %vm2083_vm0, %v2084_v44 }
 0x11a   : > { %v2722_v20 = vpop.f32.mrb[0].mxu1 }
 0x11b   : > { %995 = vmatmul.mubr.f32.gmra.mrb[58].mxu1 %v297_v4  ;;  %v543_v7 = vpop.f32.mrb[1].mxu1 }
 0x11c   : > { %1701 = vmatmul.mubr.f32.gmra.mrb[56].mxu0 %v294_v6  ;;  %999 = vmatprep.mubr.f32.mxu1 %v303_v12  ;;  %v362_v12 = vld [vmem:[%s2210_s10 + $0x6a0] sm:$0xff]  ;;  %v359_v7 = vld [vmem:[%s2210_s10 + $0x688] sm:$0xff] }
 0x11d   : > { %1703 = vmatprep.mubr.msk.f32.mxu0 %vm2083_vm0, %v2084_v44 }
 0x11e   : > { %v2729_v11 = vpop.f32.mrb[2].mxu1 }
 0x11f   : > { %1000 = vmatmul.mubr.f32.gmra.mrb[60].mxu1 %v302_v9  ;;  %v548_v14 = vpop.f32.mrb[3].mxu1  ;;  %v368_v9 = vld [vmem:[%s2210_s10 + $0x6d0] sm:$0xff] }
 0x120   : > { %1704 = vmatmul.mubr.f32.gmra.mrb[58].mxu0 %v299_v10  ;;  %1004 = vmatprep.mubr.f32.mxu1 %v308_v27  ;;  %v367_v14 = vld [vmem:[%s2210_s10 + $0x6c8] sm:$0xff] }
 0x121   : > { %1706 = vmatprep.mubr.msk.f32.mxu0 %vm2083_vm0, %v2084_v44 }
 0x122   : > { %v2736_v18 = vpop.f32.mrb[4].mxu1 }
 0x123   : > { %1005 = vmatmul.mubr.f32.gmra.mrb[62].mxu1 %v307_v15  ;;  %v553_v16 = vpop.f32.mrb[5].mxu1  ;;  %v364_v15 = vld [vmem:[%s2210_s10 + $0x6b0] sm:$0xff] }
 0x124   : > { %1707 = vmatmul.mubr.f32.gmra.mrb[60].mxu0 %v304_v34  ;;  %1009 = vmatprep.mubr.f32.mxu1 %v313_v3  ;;  %v373_v34 = vld [vmem:[%s2210_s10 + $0x6f8] sm:$0xff] }
 0x125   : > { %1709 = vmatprep.mubr.msk.f32.mxu0 %vm2083_vm0, %v2084_v44 }
 0x126   : > { %v2743_v21 = vpop.f32.mrb[6].mxu1 }
 0x127   : > { %1010 = vmatmul.mubr.f32.gmra.mrb[64].mxu1 %v312_v17  ;;  %v558_v22 = vpop.f32.mrb[7].mxu1  ;;  %v372_v17 = vld [vmem:[%s2210_s10 + $0x6f0] sm:$0xff] }
 0x128   : > { %1710 = vmatmul.mubr.f32.gmra.mrb[62].mxu0 %v309_v41  ;;  %1014 = vmatprep.mubr.f32.mxu1 %v318_v19  ;;  %v369_v41 = vld [vmem:[%s2210_s10 + $0x6d8] sm:$0xff]  ;;  %v378_v19 = vld [vmem:[%s2210_s10 + $0x720] sm:$0xff] }
 0x129   : > { %1712 = vmatprep.mubr.msk.f32.mxu0 %vm2083_vm0, %v2084_v44 }
 0x12a   : > { %v2750_v26 = vpop.f32.mrb[8].mxu1 }
 0x12b   : > { %1015 = vmatmul.mubr.f32.gmra.mrb[66].mxu1 %v317_v23  ;;  %v563_v28 = vpop.f32.mrb[9].mxu1 }
 0x12c   : > { %1713 = vmatmul.mubr.f32.gmra.mrb[64].mxu0 %v314_v24  ;;  %1019 = vmatprep.mubr.f32.mxu1 %v323_v25  ;;  %v377_v24 = vld [vmem:[%s2210_s10 + $0x718] sm:$0xff]  ;;  %v374_v25 = vld [vmem:[%s2210_s10 + $0x700] sm:$0xff]  ;;  %v383_v28 = vld [vmem:[%s2210_s10 + $0x748] sm:$0xff] }
 0x12d   : > { %1715 = vmatprep.mubr.msk.f32.mxu0 %vm2083_vm0, %v2084_v44 }
 0x12e   : > { %v2757_v30 = vpop.f32.mrb[10].mxu1 }
 0x12f   : > { %1020 = vmatmul.mubr.f32.gmra.mrb[68].mxu1 %v322_v29  ;;  %v568_v33 = vpop.f32.mrb[11].mxu1 }
 0x130   : > { %1716 = vmatmul.mubr.f32.gmra.mrb[66].mxu0 %v319_v31  ;;  %1024 = vmatprep.mubr.f32.mxu1 %v328_v32  ;;  %v382_v32 = vld [vmem:[%s2210_s10 + $0x740] sm:$0xff]  ;;  %v379_v33 = vld [vmem:[%s2210_s10 + $0x728] sm:$0xff] }
 0x131   : > { %1718 = vmatprep.mubr.msk.f32.mxu0 %vm2083_vm0, %v2084_v44 }
 0x132   : > { %v2764_v39 = vpop.f32.mrb[12].mxu1 }
 0x133   : > { %1025 = vmatmul.mubr.f32.gmra.mrb[70].mxu1 %v327_v35  ;;  %v573_v40 = vpop.f32.mrb[13].mxu1  ;;  %v388_v35 = vld [vmem:[%s2210_s10 + $0x770] sm:$0xff] }
 0x134   : > { %1719 = vmatmul.mubr.f32.gmra.mrb[68].mxu0 %v324_v37  ;;  %1029 = vmatprep.mubr.f32.mxu1 %v333_v38  ;;  %v387_v40 = vld [vmem:[%s2210_s10 + $0x768] sm:$0xff] }
 0x135   : > { %1721 = vmatprep.mubr.msk.f32.mxu0 %vm2083_vm0, %v2084_v44 }
 0x136   : > { %v2771_v45 = vpop.f32.mrb[14].mxu1 }
 0x137   : > { %1030 = vmatmul.mubr.f32.gmra.mrb[72].mxu1 %v332_v36  ;;  %v578_v46 = vpop.f32.mrb[15].mxu1  ;;  %v384_v36 = vld [vmem:[%s2210_s10 + $0x750] sm:$0xff] }
 0x138   : > { %1722 = vmatmul.mubr.f32.gmra.mrb[70].mxu0 %v329_v42  ;;  %1034 = vmatprep.mubr.f32.mxu1 %v338_v43  ;;  %v393_v42 = vld [vmem:[%s2210_s10 + $0x798] sm:$0xff] }
 0x139   : > { %1724 = vmatprep.mubr.msk.f32.mxu0 %vm2083_vm0, %v2084_v44 }
 0x13a   : > { %v2778_v51 = vpop.f32.mrb[16].mxu1 }
 0x13b   : > { %1035 = vmatmul.mubr.f32.gmra.mrb[74].mxu1 %v337_v47  ;;  %v583_v52 = vpop.f32.mrb[17].mxu1  ;;  %v392_v47 = vld [vmem:[%s2210_s10 + $0x790] sm:$0xff] }
 0x13c   : > { %1725 = vmatmul.mubr.f32.gmra.mrb[72].mxu0 %v334_v48  ;;  %1039 = vmatprep.mubr.f32.mxu1 %v343_v49  ;;  %v389_v48 = vld [vmem:[%s2210_s10 + $0x778] sm:$0xff] }
 0x13d   : > { %1727 = vmatprep.mubr.msk.f32.mxu0 %vm2083_vm0, %v2084_v44 }
 0x13e   : > { %v2785_v55 = vpop.f32.mrb[18].mxu1 }
 0x13f   : > { %1040 = vmatmul.mubr.f32.gmra.mrb[76].mxu1 %v342_v53  ;;  %v588_v57 = vpop.f32.mrb[19].mxu1  ;;  %v394_v53 = vld [vmem:[%s2210_s10 + $0x7a0] sm:$0xff]  ;;  %s2873_s10 = scalar_lea.vmem %s2954_s2, %s1516_s23 }
 0x140   : > { %1728 = vmatmul.mubr.f32.gmra.mrb[74].mxu0 %v339_v50  ;;  %1044 = vmatprep.mubr.f32.mxu1 %v348_v54 }
 0x141   : > { %1730 = vmatprep.mubr.msk.f32.mxu0 %vm2083_vm0, %v2084_v44 }
 0x142   : > { %v2792_v60 = vpop.f32.mrb[20].mxu1 }
 0x143   : > { %1045 = vmatmul.mubr.f32.gmra.mrb[78].mxu1 %v347_v56  ;;  %v593_v62 = vpop.f32.mrb[21].mxu1 }
 0x144   : > { %1731 = vmatmul.mubr.f32.gmra.mrb[76].mxu0 %v344_v58  ;;  %1049 = vmatprep.mubr.f32.mxu1 %v353_v59 }
 0x145   : > { %1733 = vmatprep.mubr.msk.f32.mxu0 %vm2083_vm0, %v2084_v44 }
 0x146   : > { %v2799_v5 = vpop.f32.mrb[22].mxu1 }
 0x147   : > { %1050 = vmatmul.mubr.f32.gmra.mrb[80].mxu1 %v352_v61  ;;  %v598_v0 = vpop.f32.mrb[23].mxu1 }
 0x148   : > { %1734 = vmatmul.mubr.f32.gmra.mrb[78].mxu0 %v349_v8  ;;  %1054 = vmatprep.mubr.f32.mxu1 %v358_v63 }
 0x149   : > { %1736 = vmatprep.mubr.msk.f32.mxu0 %vm2083_vm0, %v2084_v44 }
 0x14a   : > { %v2806_v4 = vpop.f32.mrb[24].mxu1 }
 0x14b   : > { %1055 = vmatmul.mubr.f32.gmra.mrb[82].mxu1 %v357_v1  ;;  %v603_v6 = vpop.f32.mrb[25].mxu1 }
 0x14c   : > { %1737 = vmatmul.mubr.f32.gmra.mrb[80].mxu0 %v354_v2  ;;  %1059 = vmatprep.mubr.f32.mxu1 %v363_v13 }
 0x14d   : > { %1739 = vmatprep.mubr.msk.f32.mxu0 %vm2083_vm0, %v2084_v44 }
 0x14e   : > { %v2813_v10 = vpop.f32.mrb[26].mxu1 }
 0x14f   : > { %1060 = vmatmul.mubr.f32.gmra.mrb[84].mxu1 %v362_v12  ;;  %v608_v27 = vpop.f32.mrb[27].mxu1 }
 0x150   : > { %1740 = vmatmul.mubr.f32.gmra.mrb[82].mxu0 %v359_v7  ;;  %1064 = vmatprep.mubr.f32.mxu1 %v368_v9 }
 0x151   : > { %1742 = vmatprep.mubr.msk.f32.mxu0 %vm2083_vm0, %v2084_v44 }
 0x152   : > { %v2820_v3 = vpop.f32.mrb[28].mxu1 }
 0x153   : > { %1065 = vmatmul.mubr.f32.gmra.mrb[86].mxu1 %v367_v14  ;;  %v613_v16 = vpop.f32.mrb[29].mxu1 }
 0x154   : > { %1743 = vmatmul.mubr.f32.gmra.mrb[84].mxu0 %v364_v15  ;;  %1069 = vmatprep.mubr.f32.mxu1 %v373_v34 }
 0x155   : > { %1745 = vmatprep.mubr.msk.f32.mxu0 %vm2083_vm0, %v2084_v44 }
 0x156   : > { %v2827_v22 = vpop.f32.mrb[30].mxu1 }
 0x157   : > { %1070 = vmatmul.mubr.f32.gmra.mrb[88].mxu1 %v372_v17  ;;  %v618_v23 = vpop.f32.mrb[31].mxu1 }
 0x158   : > { %1746 = vmatmul.mubr.f32.gmra.mrb[86].mxu0 %v369_v41  ;;  %1074 = vmatprep.mubr.f32.mxu1 %v378_v19 }
 0x159   : > { %1748 = vmatprep.mubr.msk.f32.mxu0 %vm2083_vm0, %v2084_v44 }
 0x15a   : > { %v2834_v29 = vpop.f32.mrb[32].mxu1 }
 0x15b   : > { %1075 = vmatmul.mubr.f32.gmra.mrb[90].mxu1 %v377_v24  ;;  %v623_v31 = vpop.f32.mrb[33].mxu1 }
 0x15c   : > { %1749 = vmatmul.mubr.f32.gmra.mrb[88].mxu0 %v374_v25  ;;  %1079 = vmatprep.mubr.f32.mxu1 %v383_v28 }
 0x15d   : > { %1751 = vmatprep.mubr.msk.f32.mxu0 %vm2083_vm0, %v2084_v44 }
 0x15e   : > { %v2841_v37 = vpop.f32.mrb[34].mxu1 }
 0x15f   : > { %1080 = vmatmul.mubr.f32.gmra.mrb[92].mxu1 %v382_v32  ;;  %v628_v38 = vpop.f32.mrb[35].mxu1 }
 0x160   : > { %1752 = vmatmul.mubr.f32.gmra.mrb[90].mxu0 %v379_v33  ;;  %1084 = vmatprep.mubr.f32.mxu1 %v388_v35 }
 0x161   : > { %1754 = vmatprep.mubr.msk.f32.mxu0 %vm2083_vm0, %v2084_v44 }
 0x162   : > { %v2848_v43 = vpop.f32.mrb[36].mxu1 }
 0x163   : > { %1085 = vmatmul.mubr.f32.gmra.mrb[94].mxu1 %v387_v40  ;;  %v633_v46 = vpop.f32.mrb[37].mxu1 }
 0x164   : > { %1755 = vmatmul.mubr.f32.gmra.mrb[92].mxu0 %v384_v36  ;;  %1089 = vmatprep.mubr.f32.mxu1 %v393_v42 }
 0x165   : > { %1757 = vmatprep.mubr.msk.f32.mxu0 %vm2083_vm0, %v2084_v44 }
 0x166   : > { %v2854_v49 = vpop.f32.mrb[38].mxu1 }
 0x167   : > { %1090 = vmatmul.mubr.f32.gmra.mrb[96].mxu1 %v392_v47  ;;  %v638_v52 = vpop.f32.mrb[39].mxu1 }
 0x168   : > { %1758 = vmatmul.mubr.f32.gmra.mrb[94].mxu0 %v389_v48 }
 0x169   : > { %1760 = vmatprep.mubr.msk.f32.mxu0 %vm2083_vm0, %v2084_v44 }
 0x16a   : > { %v2859_v50 = vpop.f32.mrb[40].mxu1 }
 0x16b   : > { %v643_v54 = vpop.f32.mrb[41].mxu1 }
 0x16c   : > { %1761 = vmatmul.mubr.f32.gmra.mrb[96].mxu0 %v394_v53 }
 0x16e   : > { %v2861_v57 = vpop.f32.mrb[42].mxu1 }
 0x16f   : > { %v648_v56 = vpop.f32.mrb[43].mxu1 }
 0x172   : > { %v2863_v58 = vpop.f32.mrb[44].mxu1 }
 0x173   : > { %v653_v59 = vpop.f32.mrb[45].mxu1 }
 0x176   : > { %v2865_v62 = vpop.f32.mrb[46].mxu1 }
 0x177   : > { %v658_v61 = vpop.f32.mrb[47].mxu1 }
 0x17a   : > { %v2867_v8 = vpop.f32.mrb[48].mxu1 }
 0x17b   : > { %v663_v63 = vpop.f32.mrb[49].mxu1 }
 0x17f   : > { %v1161_v44 = vpop.f32.mrb[0].mxu0 }
 0x180   : > { %v1915_v0 = vadd.f32 %v1161_v44, %v2722_v20  ;;  %v1618_v1 = vpop.f32.mrb[1].mxu0 }
 0x182   : > { %1405 = vst [vmem:[%s2873_s10] sm:$0xff] %v1915_v0 }
 0x183   : > { %v1166_v2 = vpop.f32.mrb[2].mxu0 }
 0x184   : > { %v1916_v13 = vadd.f32 %v1166_v2, %v2729_v11  ;;  %v1621_v6 = vpop.f32.mrb[3].mxu0 }
 0x186   : > { %1406 = vst [vmem:[%s2873_s10 + $0x8] sm:$0xff] %v1916_v13 }
 0x187   : > { %v1171_v12 = vpop.f32.mrb[4].mxu0 }
 0x188   : > { %v1917_v7 = vadd.f32 %v1171_v12, %v2736_v18  ;;  %v1624_v9 = vpop.f32.mrb[5].mxu0 }
 0x18a   : > { %1407 = vst [vmem:[%s2873_s10 + $0x10] sm:$0xff] %v1917_v7 }
 0x18b   : > { %v1176_v27 = vpop.f32.mrb[6].mxu0 }
 0x18c   : > { %v1918_v14 = vadd.f32 %v1176_v27, %v2743_v21  ;;  %v1627_v15 = vpop.f32.mrb[7].mxu0 }
 0x18e   : > { %1408 = vst [vmem:[%s2873_s10 + $0x18] sm:$0xff] %v1918_v14 }
 0x18f   : > { %v1181_v20 = vpop.f32.mrb[8].mxu0 }
 0x190   : > { %v1919_v34 = vadd.f32 %v1181_v20, %v2750_v26  ;;  %v1630_v16 = vpop.f32.mrb[9].mxu0 }
 0x192   : > { %1409 = vst [vmem:[%s2873_s10 + $0x20] sm:$0xff] %v1919_v34 }
 0x193   : > { %v1186_v11 = vpop.f32.mrb[10].mxu0 }
 0x194   : > { %v1920_v17 = vadd.f32 %v1186_v11, %v2757_v30  ;;  %v1633_v41 = vpop.f32.mrb[11].mxu0 }
 0x196   : > { %1410 = vst [vmem:[%s2873_s10 + $0x28] sm:$0xff] %v1920_v17 }
 0x197   : > { %v1191_v18 = vpop.f32.mrb[12].mxu0 }
 0x198   : > { %v1921_v19 = vadd.f32 %v1191_v18, %v2764_v39  ;;  %v1636_v23 = vpop.f32.mrb[13].mxu0 }
 0x19a   : > { %1411 = vst [vmem:[%s2873_s10 + $0x30] sm:$0xff] %v1921_v19 }
 0x19b   : > { %v1196_v21 = vpop.f32.mrb[14].mxu0 }
 0x19c   : > { %v1922_v24 = vadd.f32 %v1196_v21, %v2771_v45  ;;  %v1639_v25 = vpop.f32.mrb[15].mxu0 }
 0x19e   : > { %1412 = vst [vmem:[%s2873_s10 + $0x38] sm:$0xff] %v1922_v24 }
 0x19f   : > { %v1201_v26 = vpop.f32.mrb[16].mxu0 }
 0x1a0   : > { %v1923_v28 = vadd.f32 %v1201_v26, %v2778_v51  ;;  %v1642_v31 = vpop.f32.mrb[17].mxu0 }
 0x1a2   : > { %1413 = vst [vmem:[%s2873_s10 + $0x40] sm:$0xff] %v1923_v28 }
 0x1a3   : > { %v1206_v30 = vpop.f32.mrb[18].mxu0 }
 0x1a4   : > { %v1924_v32 = vadd.f32 %v1206_v30, %v2785_v55  ;;  %v1645_v33 = vpop.f32.mrb[19].mxu0 }
 0x1a6   : > { %1414 = vst [vmem:[%s2873_s10 + $0x48] sm:$0xff] %v1924_v32 }
 0x1a7   : > { %v1211_v39 = vpop.f32.mrb[20].mxu0 }
 0x1a8   : > { %v1925_v35 = vadd.f32 %v1211_v39, %v2792_v60  ;;  %v1648_v38 = vpop.f32.mrb[21].mxu0 }
 0x1aa   : > { %1415 = vst [vmem:[%s2873_s10 + $0x50] sm:$0xff] %v1925_v35 }
 0x1ab   : > { %v1216_v45 = vpop.f32.mrb[22].mxu0 }
 0x1ac   : > { %v1926_v40 = vadd.f32 %v1216_v45, %v2799_v5  ;;  %v1651_v36 = vpop.f32.mrb[23].mxu0 }
 0x1ae   : > { %1416 = vst [vmem:[%s2873_s10 + $0x58] sm:$0xff] %v1926_v40 }
 0x1af   : > { %v1221_v51 = vpop.f32.mrb[24].mxu0 }
 0x1b0   : > { %v1927_v42 = vadd.f32 %v1221_v51, %v2806_v4  ;;  %v1654_v46 = vpop.f32.mrb[25].mxu0 }
 0x1b2   : > { %1417 = vst [vmem:[%s2873_s10 + $0x60] sm:$0xff] %v1927_v42 }
 0x1b3   : > { %v1226_v55 = vpop.f32.mrb[26].mxu0 }
 0x1b4   : > { %v1928_v47 = vadd.f32 %v1226_v55, %v2813_v10  ;;  %v1657_v48 = vpop.f32.mrb[27].mxu0 }
 0x1b6   : > { %1418 = vst [vmem:[%s2873_s10 + $0x68] sm:$0xff] %v1928_v47 }
 0x1b7   : > { %v1231_v60 = vpop.f32.mrb[28].mxu0 }
 0x1b8   : > { %v1929_v52 = vadd.f32 %v1231_v60, %v2820_v3  ;;  %v1660_v53 = vpop.f32.mrb[29].mxu0 }
 0x1ba   : > { %1419 = vst [vmem:[%s2873_s10 + $0x70] sm:$0xff] %v1929_v52 }
 0x1bb   : > { %v1236_v5 = vpop.f32.mrb[30].mxu0 }
 0x1bc   : > { %v1930_v54 = vadd.f32 %v1236_v5, %v2827_v22  ;;  %v1663_v56 = vpop.f32.mrb[31].mxu0 }
 0x1be   : > { %1420 = vst [vmem:[%s2873_s10 + $0x78] sm:$0xff] %v1930_v54 }
 0x1bf   : > { %v1241_v4 = vpop.f32.mrb[32].mxu0 }
 0x1c0   : > { %v1931_v59 = vadd.f32 %v1241_v4, %v2834_v29  ;;  %v1666_v61 = vpop.f32.mrb[33].mxu0 }
 0x1c2   : > { %1421 = vst [vmem:[%s2873_s10 + $0x80] sm:$0xff] %v1931_v59 }
 0x1c3   : > { %v1246_v10 = vpop.f32.mrb[34].mxu0 }
 0x1c4   : > { %v1932_v63 = vadd.f32 %v1246_v10, %v2841_v37  ;;  %v1669_v44 = vpop.f32.mrb[35].mxu0 }
 0x1c6   : > { %1422 = vst [vmem:[%s2873_s10 + $0x88] sm:$0xff] %v1932_v63 }
 0x1c7   : > { %v1251_v3 = vpop.f32.mrb[36].mxu0 }
 0x1c8   : > { %v1933_v0 = vadd.f32 %v1251_v3, %v2848_v43  ;;  %v1672_v1 = vpop.f32.mrb[37].mxu0 }
 0x1ca   : > { %1423 = vst [vmem:[%s2873_s10 + $0x90] sm:$0xff] %v1933_v0 }
 0x1cb   : > { %v1256_v22 = vpop.f32.mrb[38].mxu0 }
 0x1cc   : > { %v1934_v2 = vadd.f32 %v1256_v22, %v2854_v49  ;;  %v1675_v13 = vpop.f32.mrb[39].mxu0 }
 0x1ce   : > { %1424 = vst [vmem:[%s2873_s10 + $0x98] sm:$0xff] %v1934_v2 }
 0x1cf   : > { %v1261_v29 = vpop.f32.mrb[40].mxu0 }
 0x1d0   : > { %v1935_v6 = vadd.f32 %v1261_v29, %v2859_v50  ;;  %v1678_v12 = vpop.f32.mrb[41].mxu0 }
 0x1d2   : > { %1425 = vst [vmem:[%s2873_s10 + $0xa0] sm:$0xff] %v1935_v6 }
 0x1d3   : > { %v1266_v37 = vpop.f32.mrb[42].mxu0 }
 0x1d4   : > { %v1936_v7 = vadd.f32 %v1266_v37, %v2861_v57  ;;  %v1681_v9 = vpop.f32.mrb[43].mxu0 }
 0x1d6   : > { %1426 = vst [vmem:[%s2873_s10 + $0xa8] sm:$0xff] %v1936_v7 }
 0x1d7   : > { %v1271_v43 = vpop.f32.mrb[44].mxu0 }
 0x1d8   : > { %v1937_v27 = vadd.f32 %v1271_v43, %v2863_v58  ;;  %v1684_v14 = vpop.f32.mrb[45].mxu0 }
 0x1da   : > { %1427 = vst [vmem:[%s2873_s10 + $0xb0] sm:$0xff] %v1937_v27 }
 0x1db   : > { %v1276_v49 = vpop.f32.mrb[46].mxu0 }
 0x1dc   : > { %v1938_v15 = vadd.f32 %v1276_v49, %v2865_v62  ;;  %v1687_v20 = vpop.f32.mrb[47].mxu0 }
 0x1de   : > { %1428 = vst [vmem:[%s2873_s10 + $0xb8] sm:$0xff] %v1938_v15  ;;  %v976_v50 = vpop.f32.mrb[50].mxu1 }
 0x1df   : > { %v1281_v34 = vpop.f32.mrb[48].mxu0  ;;  %v978_v16 = vpop.f32.mrb[51].mxu1 }
 0x1e0   : > { %v1939_v57 = vadd.f32 %v1281_v34, %v2867_v8  ;;  %v1690_v11 = vpop.f32.mrb[49].mxu0 }
 0x1e2   : > { %1429 = vst [vmem:[%s2873_s10 + $0xc0] sm:$0xff] %v1939_v57  ;;  %v981_v17 = vpop.f32.mrb[52].mxu1 }
 0x1e3   : > { %v1286_v41 = vpop.f32.mrb[50].mxu0  ;;  %v983_v58 = vpop.f32.mrb[53].mxu1 }
 0x1e4   : > { %v1940_v18 = vadd.f32 %v1286_v41, %v976_v50  ;;  %v1693_v19 = vpop.f32.mrb[51].mxu0 }
 0x1e6   : > { %1430 = vst [vmem:[%s2873_s10 + $0xc8] sm:$0xff] %v1940_v18  ;;  %v986_v23 = vpop.f32.mrb[54].mxu1 }
 0x1e7   : > { %v1291_v21 = vpop.f32.mrb[52].mxu0  ;;  %v988_v62 = vpop.f32.mrb[55].mxu1 }
 0x1e8   : > { %v1941_v24 = vadd.f32 %v1291_v21, %v981_v17  ;;  %v1696_v25 = vpop.f32.mrb[53].mxu0 }
 0x1ea   : > { %1431 = vst [vmem:[%s2873_s10 + $0xd0] sm:$0xff] %v1941_v24  ;;  %v991_v26 = vpop.f32.mrb[56].mxu1 }
 0x1eb   : > { %v1296_v28 = vpop.f32.mrb[54].mxu0  ;;  %v993_v8 = vpop.f32.mrb[57].mxu1 }
 0x1ec   : > { %v1942_v31 = vadd.f32 %v1296_v28, %v986_v23  ;;  %v1699_v30 = vpop.f32.mrb[55].mxu0 }
 0x1ee   : > { %1432 = vst [vmem:[%s2873_s10 + $0xd8] sm:$0xff] %v1942_v31  ;;  %v996_v32 = vpop.f32.mrb[58].mxu1 }
 0x1ef   : > { %v1301_v33 = vpop.f32.mrb[56].mxu0  ;;  %v998_v39 = vpop.f32.mrb[59].mxu1 }
 0x1f0   : > { %v1943_v35 = vadd.f32 %v1301_v33, %v991_v26  ;;  %v1702_v38 = vpop.f32.mrb[57].mxu0 }
 0x1f2   : > { %1433 = vst [vmem:[%s2873_s10 + $0xe0] sm:$0xff] %v1943_v35  ;;  %v1001_v45 = vpop.f32.mrb[60].mxu1 }
 0x1f3   : > { %v1306_v40 = vpop.f32.mrb[58].mxu0  ;;  %v1003_v36 = vpop.f32.mrb[61].mxu1 }
 0x1f4   : > { %v1944_v51 = vadd.f32 %v1306_v40, %v996_v32  ;;  %v1705_v42 = vpop.f32.mrb[59].mxu0 }
 0x1f6   : > { %1434 = vst [vmem:[%s2873_s10 + $0xe8] sm:$0xff] %v1944_v51  ;;  %v1006_v46 = vpop.f32.mrb[62].mxu1 }
 0x1f7   : > { %v1311_v55 = vpop.f32.mrb[60].mxu0  ;;  %v1008_v47 = vpop.f32.mrb[63].mxu1 }
 0x1f8   : > { %v1945_v48 = vadd.f32 %v1311_v55, %v1001_v45  ;;  %v1708_v60 = vpop.f32.mrb[61].mxu0 }
 0x1fa   : > { %1435 = vst [vmem:[%s2873_s10 + $0xf0] sm:$0xff] %v1945_v48  ;;  %v1011_v52 = vpop.f32.mrb[64].mxu1 }
 0x1fb   : > { %v1316_v53 = vpop.f32.mrb[62].mxu0  ;;  %v1013_v5 = vpop.f32.mrb[65].mxu1 }
 0x1fc   : > { %v1946_v54 = vadd.f32 %v1316_v53, %v1006_v46  ;;  %v1711_v56 = vpop.f32.mrb[63].mxu0 }
 0x1fe   : > { %1436 = vst [vmem:[%s2873_s10 + $0xf8] sm:$0xff] %v1946_v54  ;;  %v1016_v4 = vpop.f32.mrb[66].mxu1 }
 0x1ff   : > { %v1321_v59 = vpop.f32.mrb[64].mxu0  ;;  %v1018_v61 = vpop.f32.mrb[67].mxu1 }
 0x200   : > { %v1947_v10 = vadd.f32 %v1321_v59, %v1011_v52  ;;  %v1714_v63 = vpop.f32.mrb[65].mxu0 }
 0x202   : > { %1437 = vst [vmem:[%s2873_s10 + $0x100] sm:$0xff] %v1947_v10  ;;  %v1021_v44 = vpop.f32.mrb[68].mxu1 }
 0x203   : > { %v1326_v3 = vpop.f32.mrb[66].mxu0  ;;  %v1023_v0 = vpop.f32.mrb[69].mxu1 }
 0x204   : > { %v1948_v1 = vadd.f32 %v1326_v3, %v1016_v4  ;;  %v1717_v22 = vpop.f32.mrb[67].mxu0 }
 0x206   : > { %1438 = vst [vmem:[%s2873_s10 + $0x108] sm:$0xff] %v1948_v1  ;;  %v1026_v2 = vpop.f32.mrb[70].mxu1 }
 0x207   : > { %v1331_v13 = vpop.f32.mrb[68].mxu0  ;;  %v1028_v29 = vpop.f32.mrb[71].mxu1 }
 0x208   : > { %v1949_v6 = vadd.f32 %v1331_v13, %v1021_v44  ;;  %v1720_v12 = vpop.f32.mrb[69].mxu0 }
 0x20a   : > { %1439 = vst [vmem:[%s2873_s10 + $0x110] sm:$0xff] %v1949_v6  ;;  %v1031_v37 = vpop.f32.mrb[72].mxu1 }
 0x20b   : > { %v1336_v7 = vpop.f32.mrb[70].mxu0  ;;  %v1033_v9 = vpop.f32.mrb[73].mxu1 }
 0x20c   : > { %v1950_v43 = vadd.f32 %v1336_v7, %v1026_v2  ;;  %v1723_v27 = vpop.f32.mrb[71].mxu0 }
 0x20e   : > { %1440 = vst [vmem:[%s2873_s10 + $0x118] sm:$0xff] %v1950_v43  ;;  %v1036_v14 = vpop.f32.mrb[74].mxu1 }
 0x20f   : > { %v1341_v49 = vpop.f32.mrb[72].mxu0  ;;  %v1038_v15 = vpop.f32.mrb[75].mxu1 }
 0x210   : > { %v1951_v20 = vadd.f32 %v1341_v49, %v1031_v37  ;;  %v1726_v50 = vpop.f32.mrb[73].mxu0 }
 0x212   : > { %1441 = vst [vmem:[%s2873_s10 + $0x120] sm:$0xff] %v1951_v20  ;;  %v1041_v34 = vpop.f32.mrb[76].mxu1 }
 0x213   : > { %v1346_v16 = vpop.f32.mrb[74].mxu0  ;;  %v1043_v57 = vpop.f32.mrb[77].mxu1 }
 0x214   : > { %v1952_v11 = vadd.f32 %v1346_v16, %v1036_v14  ;;  %v1729_v17 = vpop.f32.mrb[75].mxu0 }
 0x216   : > { %1442 = vst [vmem:[%s2873_s10 + $0x128] sm:$0xff] %v1952_v11  ;;  %v1046_v41 = vpop.f32.mrb[78].mxu1 }
 0x217   : > { %v1351_v58 = vpop.f32.mrb[76].mxu0  ;;  %v1048_v18 = vpop.f32.mrb[79].mxu1 }
 0x218   : > { %v1953_v19 = vadd.f32 %v1351_v58, %v1041_v34  ;;  %v1732_v23 = vpop.f32.mrb[77].mxu0 }
 0x21a   : > { %1443 = vst [vmem:[%s2873_s10 + $0x130] sm:$0xff] %v1953_v19  ;;  %v1051_v21 = vpop.f32.mrb[80].mxu1 }
 0x21b   : > { %v1356_v62 = vpop.f32.mrb[78].mxu0  ;;  %v1053_v24 = vpop.f32.mrb[81].mxu1 }
 0x21c   : > { %v1954_v25 = vadd.f32 %v1356_v62, %v1046_v41  ;;  %v1735_v26 = vpop.f32.mrb[79].mxu0 }
 0x21e   : > { %1444 = vst [vmem:[%s2873_s10 + $0x138] sm:$0xff] %v1954_v25  ;;  %v1056_v28 = vpop.f32.mrb[82].mxu1 }
 0x21f   : > { %v1361_v8 = vpop.f32.mrb[80].mxu0  ;;  %v1058_v31 = vpop.f32.mrb[83].mxu1 }
 0x220   : > { %v1955_v30 = vadd.f32 %v1361_v8, %v1051_v21  ;;  %v1738_v32 = vpop.f32.mrb[81].mxu0 }
 0x222   : > { %1445 = vst [vmem:[%s2873_s10 + $0x140] sm:$0xff] %v1955_v30  ;;  %v1061_v33 = vpop.f32.mrb[84].mxu1 }
 0x223   : > { %v1366_v39 = vpop.f32.mrb[82].mxu0  ;;  %v1063_v35 = vpop.f32.mrb[85].mxu1 }
 0x224   : > { %v1956_v38 = vadd.f32 %v1366_v39, %v1056_v28  ;;  %v1741_v45 = vpop.f32.mrb[83].mxu0 }
 0x226   : > { %1446 = vst [vmem:[%s2873_s10 + $0x148] sm:$0xff] %v1956_v38  ;;  %v1066_v40 = vpop.f32.mrb[86].mxu1 }
 0x227   : > { %v1371_v36 = vpop.f32.mrb[84].mxu0  ;;  %v1068_v51 = vpop.f32.mrb[87].mxu1 }
 0x228   : > { %v1957_v42 = vadd.f32 %v1371_v36, %v1061_v33  ;;  %v1744_v46 = vpop.f32.mrb[85].mxu0 }
 0x22a   : > { %1447 = vst [vmem:[%s2873_s10 + $0x150] sm:$0xff] %v1957_v42  ;;  %v1071_v55 = vpop.f32.mrb[88].mxu1 }
 0x22b   : > { %v1376_v47 = vpop.f32.mrb[86].mxu0  ;;  %v1073_v48 = vpop.f32.mrb[89].mxu1 }
 0x22c   : > { %v1958_v60 = vadd.f32 %v1376_v47, %v1066_v40  ;;  %v1747_v52 = vpop.f32.mrb[87].mxu0 }
 0x22e   : > { %1448 = vst [vmem:[%s2873_s10 + $0x158] sm:$0xff] %v1958_v60  ;;  %v1076_v53 = vpop.f32.mrb[90].mxu1 }
 0x22f   : > { %v1381_v5 = vpop.f32.mrb[88].mxu0  ;;  %v1078_v54 = vpop.f32.mrb[91].mxu1 }
 0x230   : > { %v1959_v56 = vadd.f32 %v1381_v5, %v1071_v55  ;;  %v1750_v4 = vpop.f32.mrb[89].mxu0 }
 0x232   : > { %1449 = vst [vmem:[%s2873_s10 + $0x160] sm:$0xff] %v1959_v56  ;;  %v1081_v59 = vpop.f32.mrb[92].mxu1 }
 0x233   : > { %v1386_v61 = vpop.f32.mrb[90].mxu0  ;;  %v1083_v10 = vpop.f32.mrb[93].mxu1 }
 0x234   : > { %v1960_v63 = vadd.f32 %v1386_v61, %v1076_v53  ;;  %v1753_v44 = vpop.f32.mrb[91].mxu0 }
 0x236   : > { %1450 = vst [vmem:[%s2873_s10 + $0x168] sm:$0xff] %v1960_v63  ;;  %v1086_v3 = vpop.f32.mrb[94].mxu1 }
 0x237   : > { %v1391_v0 = vpop.f32.mrb[92].mxu0  ;;  %v1088_v1 = vpop.f32.mrb[95].mxu1 }
 0x238   : > { %v1961_v22 = vadd.f32 %v1391_v0, %v1081_v59  ;;  %v1756_v2 = vpop.f32.mrb[93].mxu0 }
 0x23a   : > { %1451 = vst [vmem:[%s2873_s10 + $0x170] sm:$0xff] %v1961_v22  ;;  %v1091_v13 = vpop.f32.mrb[96].mxu1 }
 0x23b   : > { %v1396_v29 = vpop.f32.mrb[94].mxu0  ;;  %v1093_v6 = vpop.f32.mrb[97].mxu1 }
 0x23c   : > { %v1962_v12 = vadd.f32 %v1396_v29, %v1086_v3  ;;  %v1759_v37 = vpop.f32.mrb[95].mxu0 }
 0x23e   : > { %1452 = vst [vmem:[%s2873_s10 + $0x178] sm:$0xff] %v1962_v12 }
 0x23f   : > { %v1401_v7 = vpop.f32.mrb[96].mxu0 }
 0x240   : > { %v1963_v9 = vadd.f32 %v1401_v7, %v1091_v13  ;;  %v1762_v43 = vpop.f32.mrb[97].mxu0 }
 0x242   : > { %1453 = vst [vmem:[%s2873_s10 + $0x180] sm:$0xff] %v1963_v9 }
 0x243 PF: > { %s12_s9 = sadd.s32 1, %s2080_s9  }
 0x244   : > { %p9_p4 = scmp.ge.s32.totalorder %s12_s9, 6  }
 0x246   :  { %11 = sbr.rel (!%p9_p4) target bundleno = 1 (0x1), region = 58 }

// kernel: densenet_forward_pallas.33
= control target key start
LH: loop header
LB: loop body
LE: loop exit
PB: predicated region body
PF: predicated region fallthrough
CT: control target
= control target key end

     0   :  { %v895_v0 = vmov 0.0|0.0   ;;  %vm896_vm0 = vmmov 0   ;;  %v897_v6 = vmov 0.0   ;;  %s1541_s3 = inlined_call_operand.vmem [shape: f32[128,128], index: 3, kind: input, shape index: {}]   ;;  %s1542_s0 = inlined_call_operand.vmem [shape: f32[392,128], index: 0, kind: input, shape index: {}]   ;;  %s1543_s1 = inlined_call_operand.vmem [shape: f32[1,128], index: 1, kind: input, shape index: {}]   ;;  %s1544_s2 = inlined_call_operand.vmem [shape: f32[1,128], index: 2, kind: input, shape index: {}]   ;;  %s1545_s4 = inlined_call_operand.vmem [shape: f32[392,128], index: 4, kind: output, shape index: {}]  }
   0x1   :  { %852 = vmatprep.subr.bf16.mxu0 %v895_v0  ;;  %v227_v1 = vld [vmem:[%s1541_s3] sm:$0xff]  ;;  %v228_v2 = vld [vmem:[%s1541_s3 + $0x8] sm:$0xff]  ;;  %876 = vmatprep.subr.bf16.mxu1 %v895_v0  ;;  %v229_v3 = vld [vmem:[%s1541_s3 + $0x10] sm:$0xff] }
   0x2   :  { %v853_v4 = vpack.c.bf16 %v228_v2, %v227_v1  ;;  %v230_v5 = vld [vmem:[%s1541_s3 + $0x18] sm:$0xff]  ;;  %705 = vmatprep.mubr.msk.f32.mxu0 %vm896_vm0, %v897_v6  ;;  %780 = vmatprep.mubr.msk.f32.mxu1 %vm896_vm0, %v897_v6  ;;  %v231_v8 = vld [vmem:[%s1541_s3 + $0x20] sm:$0xff]  ;;  %v232_v9 = vld [vmem:[%s1541_s3 + $0x28] sm:$0xff] }
   0x3   :  { %v856_v7 = vpack.c.bf16 %v230_v5, %v229_v3  ;;  %v859_v10 = vpack.c.bf16 %v232_v9, %v231_v8  ;;  %v233_v11 = vld [vmem:[%s1541_s3 + $0x30] sm:$0xff]  ;;  %v234_v12 = vld [vmem:[%s1541_s3 + $0x38] sm:$0xff]  ;;  %v235_v14 = vld [vmem:[%s1541_s3 + $0x40] sm:$0xff] }
   0x4   :  { %854 = vmatpush3.bf16.msra.mxu0 %v853_v4  ;;  %884 = vmatpush3.bf16.msra.mxu1 %v853_v4  ;;  %v862_v13 = vpack.c.bf16 %v234_v12, %v233_v11  ;;  %v236_v15 = vld [vmem:[%s1541_s3 + $0x48] sm:$0xff]  ;;  %v237_v17 = vld [vmem:[%s1541_s3 + $0x50] sm:$0xff]  ;;  %v238_v18 = vld [vmem:[%s1541_s3 + $0x58] sm:$0xff] }
   0x5   :  { %855 = vmatprep.subr.bf16.mxu0 %v895_v0  ;;  %877 = vmatprep.subr.bf16.mxu1 %v895_v0  ;;  %v865_v16 = vpack.c.bf16 %v236_v15, %v235_v14  ;;  %v17_v19 = vld [vmem:[%s1542_s0] sm:$0xff]  ;;  %v868_v21 = vpack.c.bf16 %v238_v18, %v237_v17  ;;  %v42_v22 = vld [vmem:[%s1542_s0 + $0xc8] sm:$0xff]  ;;  %v43_v30 = vld [vmem:[%s1542_s0 + $0xd0] sm:$0xff] }
   0x6   :  { %v979_v20 = vld [vmem:[%s1543_s1] ss:$0 sm:$0xff]  ;;  %v240_v24 = vld [vmem:[%s1541_s3 + $0x68] sm:$0xff]  ;;  %v19_v31 = vld [vmem:[%s1542_s0 + $0x10] sm:$0xff] }
   0x7   :  { %v239_v23 = vld [vmem:[%s1541_s3 + $0x60] sm:$0xff]  ;;  %v73_v25 = vmul.f32 %v979_v20, %v17_v19  ;;  %v18_v26 = vld [vmem:[%s1542_s0 + $0x8] sm:$0xff]  ;;  %v98_v28 = vmul.f32 %v979_v20, %v42_v22  ;;  %v241_v32 = vld [vmem:[%s1541_s3 + $0x70] sm:$0xff]  ;;  %v99_v37 = vmul.f32 %v979_v20, %v43_v30  ;;  %v75_v38 = vmul.f32 %v979_v20, %v19_v31 }
   0x8   :  { %857 = vmatpush3.bf16.msra.mxu0 %v856_v7  ;;  %885 = vmatpush3.bf16.msra.mxu1 %v856_v7  ;;  %v999_v27 = vld [vmem:[%s1544_s2] ss:$0 sm:$0xff]  ;;  %v871_v29 = vpack.c.bf16 %v240_v24, %v239_v23  ;;  %v242_v33 = vld [vmem:[%s1541_s3 + $0x78] sm:$0xff]  ;;  %v74_v34 = vmul.f32 %v979_v20, %v18_v26  ;;  %v58_v45 = vld [vmem:[%s1542_s0 + $0x148] sm:$0xff] }
   0x9   :  { %858 = vmatprep.subr.bf16.mxu0 %v895_v0  ;;  %878 = vmatprep.subr.bf16.mxu1 %v895_v0  ;;  %v129_v35 = vadd.f32 %v999_v27, %v73_v25  ;;  %v154_v36 = vadd.f32 %v999_v27, %v98_v28  ;;  %v44_v39 = vld [vmem:[%s1542_s0 + $0xd8] sm:$0xff]  ;;  %v874_v41 = vpack.c.bf16 %v242_v33, %v241_v32  ;;  %v33_v42 = vld [vmem:[%s1542_s0 + $0x80] sm:$0xff]  ;;  %v34_v46 = vld [vmem:[%s1542_s0 + $0x88] sm:$0xff] }
   0xa   :  { %v20_v40 = vld [vmem:[%s1542_s0 + $0x18] sm:$0xff]  ;;  %v130_v43 = vadd.f32 %v999_v27, %v74_v34  ;;  %v45_v44 = vld [vmem:[%s1542_s0 + $0xe0] sm:$0xff]  ;;  %v100_v48 = vmul.f32 %v979_v20, %v44_v39  ;;  %v59_v50 = vld [vmem:[%s1542_s0 + $0x150] sm:$0xff]  ;;  %v155_v53 = vadd.f32 %v999_v27, %v99_v37  ;;  %v1052_v54 = vadd.f32 %v999_v27, %v75_v38 }
   0xb   :  { %v178_v47 = vmax.f32 %v129_v35, 0.0  ;;  %v76_v49 = vmul.f32 %v979_v20, %v20_v40  ;;  %v35_v51 = vld [vmem:[%s1542_s0 + $0x90] sm:$0xff]  ;;  %v203_v52 = vmax.f32 %v154_v36, 0.0  ;;  %v89_v55 = vmul.f32 %v979_v20, %v33_v42  ;;  %v60_v56 = vld [vmem:[%s1542_s0 + $0x158] sm:$0xff]  ;;  %v61_v1 = vld [vmem:[%s1542_s0 + $0x160] sm:$0xff] }
   0xc   :  { %860 = vmatpush3.bf16.msra.mxu0 %v859_v10  ;;  %886 = vmatpush3.bf16.msra.mxu1 %v859_v10  ;;  %v101_v57 = vmul.f32 %v979_v20, %v45_v44  ;;  %v114_v58 = vmul.f32 %v979_v20, %v58_v45  ;;  %v90_v59 = vmul.f32 %v979_v20, %v34_v46  ;;  %v36_v60 = vld [vmem:[%s1542_s0 + $0x98] sm:$0xff]  ;;  %v179_v61 = vmax.f32 %v130_v43, 0.0  ;;  %v21_v3 = vld [vmem:[%s1542_s0 + $0x20] sm:$0xff]  ;;  %v46_v10 = vld [vmem:[%s1542_s0 + $0xe8] sm:$0xff] }
   0xd   :  { %861 = vmatprep.subr.bf16.mxu0 %v895_v0  ;;  %879 = vmatprep.subr.bf16.mxu1 %v895_v0  ;;  %v1065_v62 = vadd.f32 %v999_v27, %v89_v55  ;;  %v115_v63 = vmul.f32 %v979_v20, %v59_v50  ;;  %v156_v2 = vadd.f32 %v999_v27, %v100_v48  ;;  %v37_v8 = vld [vmem:[%s1542_s0 + $0xa0] sm:$0xff]  ;;  %v204_v9 = vmax.f32 %v155_v53, 0.0  ;;  %v62_v14 = vld [vmem:[%s1542_s0 + $0x168] sm:$0xff]  ;;  %v39_v22 = vld [vmem:[%s1542_s0 + $0xb0] sm:$0xff] }
   0xe   :  { %v1077_v4 = vadd.f32 %v999_v27, %v114_v58  ;;  %v1080_v5 = vadd.f32 %v999_v27, %v90_v59  ;;  %v116_v7 = vmul.f32 %v979_v20, %v60_v56  ;;  %v38_v15 = vld [vmem:[%s1542_s0 + $0xa8] sm:$0xff]  ;;  %v132_v17 = vadd.f32 %v999_v27, %v76_v49  ;;  %v64_v28 = vld [vmem:[%s1542_s0 + $0x178] sm:$0xff]  ;;  %v47_v36 = vld [vmem:[%s1542_s0 + $0xf0] sm:$0xff] }
   0xf   :  { %v1090_v11 = vadd.f32 %v999_v27, %v115_v63  ;;  %v117_v19 = vmul.f32 %v979_v20, %v61_v1  ;;  %v157_v23 = vadd.f32 %v999_v27, %v101_v57  ;;  %v77_v24 = vmul.f32 %v979_v20, %v21_v3  ;;  %v22_v30 = vld [vmem:[%s1542_s0 + $0x28] sm:$0xff]  ;;  %v40_v34 = vld [vmem:[%s1542_s0 + $0xb8] sm:$0xff]  ;;  %v65_v40 = vld [vmem:[%s1542_s0 + $0x180] sm:$0xff] }
  0x10   :  { %863 = vmatpush3.bf16.msra.mxu0 %v862_v13  ;;  %887 = vmatpush3.bf16.msra.mxu1 %v862_v13  ;;  %v92_v13 = vmul.f32 %v979_v20, %v36_v60  ;;  %v1109_v18 = vadd.f32 %v999_v27, %v116_v7  ;;  %v93_v26 = vmul.f32 %v979_v20, %v37_v8  ;;  %v205_v35 = vmax.f32 %v156_v2, 0.0  ;;  %v41_v45 = vld [vmem:[%s1542_s0 + $0xc0] sm:$0xff]  ;;  %v23_v56 = vld [vmem:[%s1542_s0 + $0x30] sm:$0xff]  ;;  %v48_v59 = vld [vmem:[%s1542_s0 + $0xf8] sm:$0xff] }
  0x11   :  { %864 = vmatprep.subr.bf16.mxu0 %v895_v0  ;;  %880 = vmatprep.subr.bf16.mxu1 %v895_v0  ;;  %v1132_v31 = vadd.f32 %v999_v27, %v117_v19  ;;  %v118_v32 = vmul.f32 %v979_v20, %v62_v14  ;;  %v94_v33 = vmul.f32 %v979_v20, %v38_v15  ;;  %v24_v8 = vld [vmem:[%s1542_s0 + $0x38] sm:$0xff]  ;;  %v25_v19 = vld [vmem:[%s1542_s0 + $0x40] sm:$0xff] }
  0x12   :  { %v1121_v25 = vadd.f32 %v999_v27, %v92_v13  ;;  %v1143_v37 = vadd.f32 %v999_v27, %v93_v26  ;;  %v95_v39 = vmul.f32 %v979_v20, %v39_v22  ;;  %v120_v44 = vmul.f32 %v979_v20, %v64_v28 }
  0x13   :  { %v1155_v42 = vadd.f32 %v999_v27, %v118_v32  ;;  %v1158_v43 = vadd.f32 %v999_v27, %v94_v33  ;;  %v78_v46 = vmul.f32 %v979_v20, %v22_v30  ;;  %v96_v49 = vmul.f32 %v979_v20, %v40_v34  ;;  %v26_v30 = vld [vmem:[%s1542_s0 + $0x48] sm:$0xff]  ;;  %v51_v32 = vld [vmem:[%s1542_s0 + $0x110] sm:$0xff] }
  0x14   :  { %866 = vmatpush3.bf16.msra.mxu0 %v865_v16  ;;  %888 = vmatpush3.bf16.msra.mxu1 %v865_v16  ;;  %v180_v16 = vmax.f32 %v1052_v54, 0.0  ;;  %v1169_v48 = vadd.f32 %v999_v27, %v95_v39  ;;  %v133_v50 = vadd.f32 %v999_v27, %v77_v24  ;;  %v121_v53 = vmul.f32 %v979_v20, %v65_v40  ;;  %v27_v40 = vld [vmem:[%s1542_s0 + $0x50] sm:$0xff] }
  0x15   :  { %867 = vmatprep.subr.bf16.mxu0 %v895_v0  ;;  %881 = vmatprep.subr.bf16.mxu1 %v895_v0  ;;  %v206_v54 = vmax.f32 %v157_v23, 0.0  ;;  %v1183_v57 = vadd.f32 %v999_v27, %v96_v49  ;;  %v97_v58 = vmul.f32 %v979_v20, %v41_v45  ;;  %v134_v63 = vadd.f32 %v999_v27, %v78_v46 }
  0x16   :  { %v1194_v60 = vadd.f32 %v999_v27, %v121_v53  ;;  %v182_v1 = vmax.f32 %v133_v50, 0.0  ;;  %v104_v7 = vmul.f32 %v979_v20, %v48_v59  ;;  %v80_v13 = vmul.f32 %v979_v20, %v24_v8  ;;  %v28_v53 = vld [vmem:[%s1542_s0 + $0x58] sm:$0xff] }
  0x17   :  { %v183_v14 = vmax.f32 %v134_v63, 0.0  ;;  %v81_v28 = vmul.f32 %v979_v20, %v25_v19  ;;  %v82_v34 = vmul.f32 %v979_v20, %v26_v30  ;;  %v107_v39 = vmul.f32 %v979_v20, %v51_v32 }
  0x18   :  { %869 = vmatpush3.bf16.msra.mxu0 %v868_v21  ;;  %889 = vmatpush3.bf16.msra.mxu1 %v868_v21  ;;  %v63_v21 = vld [vmem:[%s1542_s0 + $0x170] sm:$0xff]  ;;  %v136_v23 = vadd.f32 %v999_v27, %v80_v13  ;;  %v83_v45 = vmul.f32 %v979_v20, %v27_v40 }
  0x19   :  { %870 = vmatprep.subr.bf16.mxu0 %v895_v0  ;;  %882 = vmatprep.subr.bf16.mxu1 %v895_v0  ;;  %v119_v38 = vmul.f32 %v979_v20, %v63_v21  ;;  %v50_v21 = vld [vmem:[%s1542_s0 + $0x108] sm:$0xff]  ;;  %v163_v50 = vadd.f32 %v999_v27, %v107_v39 }
  0x1a   :  { %v185_v33 = vmax.f32 %v136_v23, 0.0 }
  0x1b   :  { %v212_v59 = vmax.f32 %v163_v50, 0.0 }
  0x1c   :  { %872 = vmatpush3.bf16.msra.mxu0 %v871_v29  ;;  %890 = vmatpush3.bf16.msra.mxu1 %v871_v29  ;;  %v102_v29 = vmul.f32 %v979_v20, %v46_v10 }
  0x1d   :  { %873 = vmatprep.subr.bf16.mxu0 %v895_v0  ;;  %883 = vmatprep.subr.bf16.mxu1 %v895_v0  ;;  %v91_v0 = vmul.f32 %v979_v20, %v35_v51  ;;  %v103_v51 = vmul.f32 %v979_v20, %v47_v36  ;;  %v137_v36 = vadd.f32 %v999_v27, %v81_v28 }
  0x1e   :  { %v158_v55 = vadd.f32 %v999_v27, %v102_v29  ;;  %v106_v29 = vmul.f32 %v979_v20, %v50_v21 }
  0x1f   :  { %v1093_v12 = vadd.f32 %v999_v27, %v91_v0  ;;  %v79_v0 = vmul.f32 %v979_v20, %v23_v56  ;;  %v159_v3 = vadd.f32 %v999_v27, %v103_v51  ;;  %v186_v46 = vmax.f32 %v137_v36, 0.0  ;;  %v57_v36 = vld [vmem:[%s1542_s0 + $0x140] sm:$0xff] }
  0x20   :  { %875 = vmatpush3.bf16.msra.mxu0 %v874_v41  ;;  %891 = vmatpush3.bf16.msra.mxu1 %v874_v41  ;;  %v181_v41 = vmax.f32 %v132_v17, 0.0  ;;  %v207_v2 = vmax.f32 %v158_v55, 0.0  ;;  %v139_v55 = vadd.f32 %v999_v27, %v83_v45  ;;  %v84_v56 = vmul.f32 %v979_v20, %v28_v53 }
  0x21   :  { %v135_v10 = vadd.f32 %v999_v27, %v79_v0  ;;  %v208_v15 = vmax.f32 %v159_v3, 0.0  ;;  %v113_v45 = vmul.f32 %v979_v20, %v57_v36 }
  0x22   :  { %v188_v3 = vmax.f32 %v139_v55, 0.0  ;;  %v195_v55 = vmax.f32 %v1080_v5, 0.0  ;;  %v197_v5 = vmax.f32 %v1121_v25, 0.0  ;;  %v199_v25 = vmax.f32 %v1158_v43, 0.0 }
  0x23   :  { %706 = vmatmul.mubr.f32.vlgmr.msra.gmra.mrb[0].mxu0 %v178_v47  ;;  %781 = vmatmul.mubr.f32.vlgmr.msra.gmra.mrb[0].mxu1 %v203_v52  ;;  %v1166_v47 = vadd.f32 %v999_v27, %v119_v38  ;;  %v1175_v52 = vadd.f32 %v999_v27, %v120_v44  ;;  %v184_v22 = vmax.f32 %v135_v10, 0.0  ;;  %v162_v38 = vadd.f32 %v999_v27, %v106_v29 }
  0x24   :  { %708 = vmatprep.mubr.msk.f32.mxu0 %vm896_vm0, %v897_v6  ;;  %783 = vmatprep.mubr.msk.f32.mxu1 %vm896_vm0, %v897_v6  ;;  %v138_v44 = vadd.f32 %v999_v27, %v82_v34  ;;  %v201_v43 = vmax.f32 %v1183_v57, 0.0 }
  0x25   :  { %v211_v49 = vmax.f32 %v162_v38, 0.0 }
  0x27   :  { %709 = vmatmul.mubr.f32.gmra.mrb[2].mxu0 %v179_v61  ;;  %784 = vmatmul.mubr.f32.gmra.mrb[2].mxu1 %v204_v9  ;;  %v1197_v61 = vadd.f32 %v999_v27, %v97_v58  ;;  %v49_v9 = vld [vmem:[%s1542_s0 + $0x100] sm:$0xff]  ;;  %v187_v58 = vmax.f32 %v138_v44, 0.0 }
  0x28   :  { %711 = vmatprep.mubr.msk.f32.mxu0 %vm896_vm0, %v897_v6  ;;  %786 = vmatprep.mubr.msk.f32.mxu1 %vm896_vm0, %v897_v6  ;;  %v105_v17 = vmul.f32 %v979_v20, %v49_v9 }
  0x2a   :  { %v161_v26 = vadd.f32 %v999_v27, %v105_v17 }
  0x2b   :  { %712 = vmatmul.mubr.f32.gmra.mrb[4].mxu0 %v180_v16  ;;  %787 = vmatmul.mubr.f32.gmra.mrb[4].mxu1 %v205_v35  ;;  %v160_v16 = vadd.f32 %v999_v27, %v104_v7  ;;  %v140_v7 = vadd.f32 %v999_v27, %v84_v56  ;;  %v220_v56 = vmax.f32 %v1090_v11, 0.0  ;;  %v222_v11 = vmax.f32 %v1132_v31, 0.0 }
  0x2c   :  { %714 = vmatprep.mubr.msk.f32.mxu0 %vm896_vm0, %v897_v6  ;;  %789 = vmatprep.mubr.msk.f32.mxu1 %vm896_vm0, %v897_v6  ;;  %v210_v35 = vmax.f32 %v161_v26, 0.0  ;;  %v56_v26 = vld [vmem:[%s1542_s0 + $0x138] sm:$0xff]  ;;  %v224_v31 = vmax.f32 %v1166_v47, 0.0  ;;  %v226_v47 = vmax.f32 %v1194_v60, 0.0 }
  0x2d   :  { %v209_v24 = vmax.f32 %v160_v16, 0.0  ;;  %v189_v16 = vmax.f32 %v140_v7, 0.0  ;;  %v112_v34 = vmul.f32 %v979_v20, %v56_v26 }
  0x2f   :  { %715 = vmatmul.mubr.f32.gmra.mrb[6].mxu0 %v181_v41  ;;  %790 = vmatmul.mubr.f32.gmra.mrb[6].mxu1 %v206_v54  ;;  %v52_v41 = vld [vmem:[%s1542_s0 + $0x118] sm:$0xff]  ;;  %v53_v54 = vld [vmem:[%s1542_s0 + $0x120] sm:$0xff]  ;;  %v168_v44 = vadd.f32 %v999_v27, %v112_v34 }
  0x30   :  { %717 = vmatprep.mubr.msk.f32.mxu0 %vm896_vm0, %v897_v6  ;;  %792 = vmatprep.mubr.msk.f32.mxu1 %vm896_vm0, %v897_v6  ;;  %v108_v51 = vmul.f32 %v979_v20, %v52_v41  ;;  %v109_v0 = vmul.f32 %v979_v20, %v53_v54  ;;  %v219_v54 = vmax.f32 %v1077_v4, 0.0  ;;  %v221_v4 = vmax.f32 %v1109_v18, 0.0 }
  0x31   :  { %v223_v18 = vmax.f32 %v1155_v42, 0.0  ;;  %v225_v42 = vmax.f32 %v1175_v52, 0.0 }
  0x32   :  { %v164_v63 = vadd.f32 %v999_v27, %v108_v51  ;;  %v165_v9 = vadd.f32 %v999_v27, %v109_v0  ;;  %v169_v51 = vadd.f32 %v999_v27, %v113_v45 }
  0x33   :  { %718 = vmatmul.mubr.f32.gmra.mrb[8].mxu0 %v182_v1  ;;  %793 = vmatmul.mubr.f32.gmra.mrb[8].mxu1 %v207_v2  ;;  %v29_v1 = vld [vmem:[%s1542_s0 + $0x60] sm:$0xff]  ;;  %v54_v2 = vld [vmem:[%s1542_s0 + $0x128] sm:$0xff] }
  0x34   :  { %720 = vmatprep.mubr.msk.f32.mxu0 %vm896_vm0, %v897_v6  ;;  %795 = vmatprep.mubr.msk.f32.mxu1 %vm896_vm0, %v897_v6  ;;  %v213_v8 = vmax.f32 %v164_v63, 0.0  ;;  %v85_v10 = vmul.f32 %v979_v20, %v29_v1  ;;  %v110_v13 = vmul.f32 %v979_v20, %v54_v2  ;;  %v214_v19 = vmax.f32 %v165_v9, 0.0 }
  0x35   :  { %v218_v53 = vmax.f32 %v169_v51, 0.0 }
  0x36   :  { %v141_v21 = vadd.f32 %v999_v27, %v85_v10 }
  0x37   :  { %721 = vmatmul.mubr.f32.gmra.mrb[10].mxu0 %v183_v14  ;;  %796 = vmatmul.mubr.f32.gmra.mrb[10].mxu1 %v208_v15  ;;  %v30_v14 = vld [vmem:[%s1542_s0 + $0x68] sm:$0xff]  ;;  %v55_v15 = vld [vmem:[%s1542_s0 + $0x130] sm:$0xff] }
  0x38   :  { %723 = vmatprep.mubr.msk.f32.mxu0 %vm896_vm0, %v897_v6  ;;  %798 = vmatprep.mubr.msk.f32.mxu1 %vm896_vm0, %v897_v6  ;;  %v86_v17 = vmul.f32 %v979_v20, %v30_v14  ;;  %v111_v23 = vmul.f32 %v979_v20, %v55_v15  ;;  %v190_v30 = vmax.f32 %v141_v21, 0.0 }
  0x3a   :  { %v142_v28 = vadd.f32 %v999_v27, %v86_v17 }
  0x3b   :  { %724 = vmatmul.mubr.f32.gmra.mrb[12].mxu0 %v184_v22  ;;  %799 = vmatmul.mubr.f32.gmra.mrb[12].mxu1 %v209_v24  ;;  %v166_v22 = vadd.f32 %v999_v27, %v110_v13  ;;  %v31_v24 = vld [vmem:[%s1542_s0 + $0x70] sm:$0xff] }
  0x3c   :  { %726 = vmatprep.mubr.msk.f32.mxu0 %vm896_vm0, %v897_v6  ;;  %801 = vmatprep.mubr.msk.f32.mxu1 %vm896_vm0, %v897_v6  ;;  %v87_v29 = vmul.f32 %v979_v20, %v31_v24  ;;  %v191_v40 = vmax.f32 %v142_v28, 0.0 }
  0x3d   :  { %v215_v32 = vmax.f32 %v166_v22, 0.0 }
  0x3e   :  { %v143_v38 = vadd.f32 %v999_v27, %v87_v29 }
  0x3f   :  { %727 = vmatmul.mubr.f32.gmra.mrb[14].mxu0 %v185_v33  ;;  %802 = vmatmul.mubr.f32.gmra.mrb[14].mxu1 %v210_v35  ;;  %v167_v33 = vadd.f32 %v999_v27, %v111_v23  ;;  %v32_v35 = vld [vmem:[%s1542_s0 + $0x78] sm:$0xff] }
  0x40   :  { %729 = vmatprep.mubr.msk.f32.mxu0 %vm896_vm0, %v897_v6  ;;  %804 = vmatprep.mubr.msk.f32.mxu1 %vm896_vm0, %v897_v6  ;;  %v88_v39 = vmul.f32 %v979_v20, %v32_v35 }
  0x41   :  { %v216_v41 = vmax.f32 %v167_v33, 0.0 }
  0x42   :  { %v144_v50 = vadd.f32 %v999_v27, %v88_v39  ;;  %v194_v27 = vmax.f32 %v1065_v62, 0.0  ;;  %v196_v62 = vmax.f32 %v1093_v12, 0.0  ;;  %v198_v12 = vmax.f32 %v1143_v37, 0.0 }
  0x43   :  { %730 = vmatmul.mubr.f32.gmra.mrb[16].mxu0 %v186_v46  ;;  %805 = vmatmul.mubr.f32.gmra.mrb[16].mxu1 %v211_v49  ;;  %v192_v46 = vmax.f32 %v143_v38, 0.0  ;;  %v217_v49 = vmax.f32 %v168_v44, 0.0  ;;  %v200_v37 = vmax.f32 %v1169_v48, 0.0  ;;  %v202_v48 = vmax.f32 %v1197_v61, 0.0 }
  0x44   :  { %732 = vmatprep.mubr.msk.f32.mxu0 %vm896_vm0, %v897_v6  ;;  %807 = vmatprep.mubr.msk.f32.mxu1 %vm896_vm0, %v897_v6  ;;  %v193_v20 = vmax.f32 %v144_v50, 0.0 }
  0x47   :  { %733 = vmatmul.mubr.f32.gmra.mrb[18].mxu0 %v187_v58  ;;  %808 = vmatmul.mubr.f32.gmra.mrb[18].mxu1 %v212_v59 }
  0x48   :  { %735 = vmatprep.mubr.msk.f32.mxu0 %vm896_vm0, %v897_v6  ;;  %810 = vmatprep.mubr.msk.f32.mxu1 %vm896_vm0, %v897_v6 }
  0x4b   :  { %736 = vmatmul.mubr.f32.gmra.mrb[20].mxu0 %v188_v3  ;;  %811 = vmatmul.mubr.f32.gmra.mrb[20].mxu1 %v213_v8 }
  0x4c   :  { %738 = vmatprep.mubr.msk.f32.mxu0 %vm896_vm0, %v897_v6  ;;  %813 = vmatprep.mubr.msk.f32.mxu1 %vm896_vm0, %v897_v6 }
  0x4f   :  { %739 = vmatmul.mubr.f32.gmra.mrb[22].mxu0 %v189_v16  ;;  %814 = vmatmul.mubr.f32.gmra.mrb[22].mxu1 %v214_v19 }
  0x50   :  { %741 = vmatprep.mubr.msk.f32.mxu0 %vm896_vm0, %v897_v6  ;;  %816 = vmatprep.mubr.msk.f32.mxu1 %vm896_vm0, %v897_v6 }
  0x53   :  { %742 = vmatmul.mubr.f32.gmra.mrb[24].mxu0 %v190_v30  ;;  %817 = vmatmul.mubr.f32.gmra.mrb[24].mxu1 %v215_v32 }
  0x54   :  { %744 = vmatprep.mubr.msk.f32.mxu0 %vm896_vm0, %v897_v6  ;;  %819 = vmatprep.mubr.msk.f32.mxu1 %vm896_vm0, %v897_v6 }
  0x57   :  { %745 = vmatmul.mubr.f32.gmra.mrb[26].mxu0 %v191_v40  ;;  %820 = vmatmul.mubr.f32.gmra.mrb[26].mxu1 %v216_v41 }
  0x58   :  { %747 = vmatprep.mubr.msk.f32.mxu0 %vm896_vm0, %v897_v6  ;;  %822 = vmatprep.mubr.msk.f32.mxu1 %vm896_vm0, %v897_v6 }
  0x5b   :  { %748 = vmatmul.mubr.f32.gmra.mrb[28].mxu0 %v192_v46  ;;  %823 = vmatmul.mubr.f32.gmra.mrb[28].mxu1 %v217_v49 }
  0x5c   :  { %750 = vmatprep.mubr.msk.f32.mxu0 %vm896_vm0, %v897_v6  ;;  %825 = vmatprep.mubr.msk.f32.mxu1 %vm896_vm0, %v897_v6 }
  0x5f   :  { %751 = vmatmul.mubr.f32.gmra.mrb[30].mxu0 %v193_v20  ;;  %826 = vmatmul.mubr.f32.gmra.mrb[30].mxu1 %v218_v53 }
  0x60   :  { %753 = vmatprep.mubr.msk.f32.mxu0 %vm896_vm0, %v897_v6  ;;  %828 = vmatprep.mubr.msk.f32.mxu1 %vm896_vm0, %v897_v6 }
  0x63   :  { %754 = vmatmul.mubr.f32.gmra.mrb[32].mxu0 %v194_v27  ;;  %829 = vmatmul.mubr.f32.gmra.mrb[32].mxu1 %v219_v54 }
  0x64   :  { %756 = vmatprep.mubr.msk.f32.mxu0 %vm896_vm0, %v897_v6  ;;  %831 = vmatprep.mubr.msk.f32.mxu1 %vm896_vm0, %v897_v6 }
  0x67   :  { %757 = vmatmul.mubr.f32.gmra.mrb[34].mxu0 %v195_v55  ;;  %832 = vmatmul.mubr.f32.gmra.mrb[34].mxu1 %v220_v56 }
  0x68   :  { %759 = vmatprep.mubr.msk.f32.mxu0 %vm896_vm0, %v897_v6  ;;  %834 = vmatprep.mubr.msk.f32.mxu1 %vm896_vm0, %v897_v6 }
  0x6b   :  { %760 = vmatmul.mubr.f32.gmra.mrb[36].mxu0 %v196_v62  ;;  %835 = vmatmul.mubr.f32.gmra.mrb[36].mxu1 %v221_v4 }
  0x6c   :  { %762 = vmatprep.mubr.msk.f32.mxu0 %vm896_vm0, %v897_v6  ;;  %837 = vmatprep.mubr.msk.f32.mxu1 %vm896_vm0, %v897_v6 }
  0x6f   :  { %763 = vmatmul.mubr.f32.gmra.mrb[38].mxu0 %v197_v5  ;;  %838 = vmatmul.mubr.f32.gmra.mrb[38].mxu1 %v222_v11 }
  0x70   :  { %765 = vmatprep.mubr.msk.f32.mxu0 %vm896_vm0, %v897_v6  ;;  %840 = vmatprep.mubr.msk.f32.mxu1 %vm896_vm0, %v897_v6 }
  0x73   :  { %766 = vmatmul.mubr.f32.gmra.mrb[40].mxu0 %v198_v12  ;;  %841 = vmatmul.mubr.f32.gmra.mrb[40].mxu1 %v223_v18 }
  0x74   :  { %768 = vmatprep.mubr.msk.f32.mxu0 %vm896_vm0, %v897_v6  ;;  %843 = vmatprep.mubr.msk.f32.mxu1 %vm896_vm0, %v897_v6 }
  0x77   :  { %769 = vmatmul.mubr.f32.gmra.mrb[42].mxu0 %v199_v25  ;;  %844 = vmatmul.mubr.f32.gmra.mrb[42].mxu1 %v224_v31 }
  0x78   :  { %771 = vmatprep.mubr.msk.f32.mxu0 %vm896_vm0, %v897_v6  ;;  %846 = vmatprep.mubr.msk.f32.mxu1 %vm896_vm0, %v897_v6 }
  0x7b   :  { %772 = vmatmul.mubr.f32.gmra.mrb[44].mxu0 %v200_v37  ;;  %847 = vmatmul.mubr.f32.gmra.mrb[44].mxu1 %v225_v42 }
  0x7c   :  { %774 = vmatprep.mubr.msk.f32.mxu0 %vm896_vm0, %v897_v6  ;;  %849 = vmatprep.mubr.msk.f32.mxu1 %vm896_vm0, %v897_v6 }
  0x7f   :  { %775 = vmatmul.mubr.f32.gmra.mrb[46].mxu0 %v201_v43  ;;  %850 = vmatmul.mubr.f32.gmra.mrb[46].mxu1 %v226_v47 }
  0x80   :  { %777 = vmatprep.mubr.msk.f32.mxu0 %vm896_vm0, %v897_v6 }
  0x83   :  { %778 = vmatmul.mubr.f32.gmra.mrb[48].mxu0 %v202_v48 }
  0xf6   :  { %v309_v52 = vpop.f32.mrb[0].mxu0  ;;  %v434_v58 = vpop.f32.mrb[0].mxu1 }
  0xf7   :  { %553 = vst [vmem:[%s1545_s4] sm:$0xff] %v309_v52  ;;  %v707_v57 = vpop.f32.mrb[1].mxu0  ;;  %578 = vst [vmem:[%s1545_s4 + $0xc8] sm:$0xff] %v434_v58  ;;  %v782_v60 = vpop.f32.mrb[1].mxu1 }
  0xfa   :  { %v314_v59 = vpop.f32.mrb[2].mxu0  ;;  %v439_v63 = vpop.f32.mrb[2].mxu1 }
  0xfb   :  { %554 = vst [vmem:[%s1545_s4 + $0x8] sm:$0xff] %v314_v59  ;;  %v710_v6 = vpop.f32.mrb[3].mxu0  ;;  %579 = vst [vmem:[%s1545_s4 + $0xd0] sm:$0xff] %v439_v63  ;;  %v785_v61 = vpop.f32.mrb[3].mxu1 }
  0xfe   :  { %v319_v0 = vpop.f32.mrb[4].mxu0  ;;  %v444_v1 = vpop.f32.mrb[4].mxu1 }
  0xff   :  { %555 = vst [vmem:[%s1545_s4 + $0x10] sm:$0xff] %v319_v0  ;;  %v713_v2 = vpop.f32.mrb[5].mxu0  ;;  %580 = vst [vmem:[%s1545_s4 + $0xd8] sm:$0xff] %v444_v1  ;;  %v788_v3 = vpop.f32.mrb[5].mxu1 }
 0x102   :  { %v324_v7 = vpop.f32.mrb[6].mxu0  ;;  %v449_v8 = vpop.f32.mrb[6].mxu1 }
 0x103   :  { %556 = vst [vmem:[%s1545_s4 + $0x18] sm:$0xff] %v324_v7  ;;  %v716_v9 = vpop.f32.mrb[7].mxu0  ;;  %581 = vst [vmem:[%s1545_s4 + $0xe0] sm:$0xff] %v449_v8  ;;  %v791_v10 = vpop.f32.mrb[7].mxu1 }
 0x106   :  { %v329_v13 = vpop.f32.mrb[8].mxu0  ;;  %v454_v14 = vpop.f32.mrb[8].mxu1 }
 0x107   :  { %557 = vst [vmem:[%s1545_s4 + $0x20] sm:$0xff] %v329_v13  ;;  %v719_v15 = vpop.f32.mrb[9].mxu0  ;;  %582 = vst [vmem:[%s1545_s4 + $0xe8] sm:$0xff] %v454_v14  ;;  %v794_v16 = vpop.f32.mrb[9].mxu1 }
 0x10a   :  { %v334_v17 = vpop.f32.mrb[10].mxu0  ;;  %v459_v19 = vpop.f32.mrb[10].mxu1 }
 0x10b   :  { %558 = vst [vmem:[%s1545_s4 + $0x28] sm:$0xff] %v334_v17  ;;  %v722_v21 = vpop.f32.mrb[11].mxu0  ;;  %583 = vst [vmem:[%s1545_s4 + $0xf0] sm:$0xff] %v459_v19  ;;  %v797_v22 = vpop.f32.mrb[11].mxu1 }
 0x10e   :  { %v339_v23 = vpop.f32.mrb[12].mxu0  ;;  %v464_v24 = vpop.f32.mrb[12].mxu1 }
 0x10f   :  { %559 = vst [vmem:[%s1545_s4 + $0x30] sm:$0xff] %v339_v23  ;;  %v725_v26 = vpop.f32.mrb[13].mxu0  ;;  %584 = vst [vmem:[%s1545_s4 + $0xf8] sm:$0xff] %v464_v24  ;;  %v800_v28 = vpop.f32.mrb[13].mxu1 }
 0x112   :  { %v344_v29 = vpop.f32.mrb[14].mxu0  ;;  %v469_v30 = vpop.f32.mrb[14].mxu1 }
 0x113   :  { %560 = vst [vmem:[%s1545_s4 + $0x38] sm:$0xff] %v344_v29  ;;  %v728_v32 = vpop.f32.mrb[15].mxu0  ;;  %585 = vst [vmem:[%s1545_s4 + $0x100] sm:$0xff] %v469_v30  ;;  %v803_v33 = vpop.f32.mrb[15].mxu1 }
 0x116   :  { %v349_v34 = vpop.f32.mrb[16].mxu0  ;;  %v474_v35 = vpop.f32.mrb[16].mxu1 }
 0x117   :  { %561 = vst [vmem:[%s1545_s4 + $0x40] sm:$0xff] %v349_v34  ;;  %v731_v36 = vpop.f32.mrb[17].mxu0  ;;  %586 = vst [vmem:[%s1545_s4 + $0x108] sm:$0xff] %v474_v35  ;;  %v806_v38 = vpop.f32.mrb[17].mxu1 }
 0x11a   :  { %v354_v39 = vpop.f32.mrb[18].mxu0  ;;  %v479_v40 = vpop.f32.mrb[18].mxu1 }
 0x11b   :  { %562 = vst [vmem:[%s1545_s4 + $0x48] sm:$0xff] %v354_v39  ;;  %v734_v41 = vpop.f32.mrb[19].mxu0  ;;  %587 = vst [vmem:[%s1545_s4 + $0x110] sm:$0xff] %v479_v40  ;;  %v809_v44 = vpop.f32.mrb[19].mxu1 }
 0x11e   :  { %v359_v45 = vpop.f32.mrb[20].mxu0  ;;  %v484_v46 = vpop.f32.mrb[20].mxu1 }
 0x11f   :  { %563 = vst [vmem:[%s1545_s4 + $0x50] sm:$0xff] %v359_v45  ;;  %v737_v49 = vpop.f32.mrb[21].mxu0  ;;  %588 = vst [vmem:[%s1545_s4 + $0x118] sm:$0xff] %v484_v46  ;;  %v812_v50 = vpop.f32.mrb[21].mxu1 }
 0x122   :  { %v364_v51 = vpop.f32.mrb[22].mxu0  ;;  %v489_v20 = vpop.f32.mrb[22].mxu1 }
 0x123   :  { %564 = vst [vmem:[%s1545_s4 + $0x58] sm:$0xff] %v364_v51  ;;  %v740_v53 = vpop.f32.mrb[23].mxu0  ;;  %589 = vst [vmem:[%s1545_s4 + $0x120] sm:$0xff] %v489_v20  ;;  %v815_v27 = vpop.f32.mrb[23].mxu1 }
 0x126   :  { %v369_v54 = vpop.f32.mrb[24].mxu0  ;;  %v494_v55 = vpop.f32.mrb[24].mxu1 }
 0x127   :  { %565 = vst [vmem:[%s1545_s4 + $0x60] sm:$0xff] %v369_v54  ;;  %v743_v56 = vpop.f32.mrb[25].mxu0  ;;  %590 = vst [vmem:[%s1545_s4 + $0x128] sm:$0xff] %v494_v55  ;;  %v818_v62 = vpop.f32.mrb[25].mxu1 }
 0x12a   :  { %v374_v4 = vpop.f32.mrb[26].mxu0  ;;  %v499_v5 = vpop.f32.mrb[26].mxu1 }
 0x12b   :  { %566 = vst [vmem:[%s1545_s4 + $0x68] sm:$0xff] %v374_v4  ;;  %v746_v11 = vpop.f32.mrb[27].mxu0  ;;  %591 = vst [vmem:[%s1545_s4 + $0x130] sm:$0xff] %v499_v5  ;;  %v821_v12 = vpop.f32.mrb[27].mxu1 }
 0x12e   :  { %v379_v18 = vpop.f32.mrb[28].mxu0  ;;  %v504_v25 = vpop.f32.mrb[28].mxu1 }
 0x12f   :  { %567 = vst [vmem:[%s1545_s4 + $0x70] sm:$0xff] %v379_v18  ;;  %v749_v31 = vpop.f32.mrb[29].mxu0  ;;  %592 = vst [vmem:[%s1545_s4 + $0x138] sm:$0xff] %v504_v25  ;;  %v824_v37 = vpop.f32.mrb[29].mxu1 }
 0x132   :  { %v384_v42 = vpop.f32.mrb[30].mxu0  ;;  %v509_v43 = vpop.f32.mrb[30].mxu1 }
 0x133   :  { %568 = vst [vmem:[%s1545_s4 + $0x78] sm:$0xff] %v384_v42  ;;  %v752_v47 = vpop.f32.mrb[31].mxu0  ;;  %593 = vst [vmem:[%s1545_s4 + $0x140] sm:$0xff] %v509_v43  ;;  %v827_v48 = vpop.f32.mrb[31].mxu1 }
 0x136   :  { %v389_v52 = vpop.f32.mrb[32].mxu0  ;;  %v514_v58 = vpop.f32.mrb[32].mxu1 }
 0x137   :  { %569 = vst [vmem:[%s1545_s4 + $0x80] sm:$0xff] %v389_v52  ;;  %v755_v57 = vpop.f32.mrb[33].mxu0  ;;  %594 = vst [vmem:[%s1545_s4 + $0x148] sm:$0xff] %v514_v58  ;;  %v830_v60 = vpop.f32.mrb[33].mxu1 }
 0x13a   :  { %v394_v59 = vpop.f32.mrb[34].mxu0  ;;  %v519_v63 = vpop.f32.mrb[34].mxu1 }
 0x13b   :  { %570 = vst [vmem:[%s1545_s4 + $0x88] sm:$0xff] %v394_v59  ;;  %v758_v6 = vpop.f32.mrb[35].mxu0  ;;  %595 = vst [vmem:[%s1545_s4 + $0x150] sm:$0xff] %v519_v63  ;;  %v833_v61 = vpop.f32.mrb[35].mxu1 }
 0x13e   :  { %v399_v0 = vpop.f32.mrb[36].mxu0  ;;  %v524_v1 = vpop.f32.mrb[36].mxu1 }
 0x13f   :  { %571 = vst [vmem:[%s1545_s4 + $0x90] sm:$0xff] %v399_v0  ;;  %v761_v2 = vpop.f32.mrb[37].mxu0  ;;  %596 = vst [vmem:[%s1545_s4 + $0x158] sm:$0xff] %v524_v1  ;;  %v836_v3 = vpop.f32.mrb[37].mxu1 }
 0x142   :  { %v404_v7 = vpop.f32.mrb[38].mxu0  ;;  %v529_v8 = vpop.f32.mrb[38].mxu1 }
 0x143   :  { %572 = vst [vmem:[%s1545_s4 + $0x98] sm:$0xff] %v404_v7  ;;  %v764_v9 = vpop.f32.mrb[39].mxu0  ;;  %597 = vst [vmem:[%s1545_s4 + $0x160] sm:$0xff] %v529_v8  ;;  %v839_v10 = vpop.f32.mrb[39].mxu1 }
 0x146   :  { %v409_v13 = vpop.f32.mrb[40].mxu0  ;;  %v534_v14 = vpop.f32.mrb[40].mxu1 }
 0x147   :  { %573 = vst [vmem:[%s1545_s4 + $0xa0] sm:$0xff] %v409_v13  ;;  %v767_v15 = vpop.f32.mrb[41].mxu0  ;;  %598 = vst [vmem:[%s1545_s4 + $0x168] sm:$0xff] %v534_v14  ;;  %v842_v16 = vpop.f32.mrb[41].mxu1 }
 0x14a   :  { %v414_v17 = vpop.f32.mrb[42].mxu0  ;;  %v539_v19 = vpop.f32.mrb[42].mxu1 }
 0x14b   :  { %574 = vst [vmem:[%s1545_s4 + $0xa8] sm:$0xff] %v414_v17  ;;  %v770_v21 = vpop.f32.mrb[43].mxu0  ;;  %599 = vst [vmem:[%s1545_s4 + $0x170] sm:$0xff] %v539_v19  ;;  %v845_v22 = vpop.f32.mrb[43].mxu1 }
 0x14e   :  { %v419_v23 = vpop.f32.mrb[44].mxu0  ;;  %v544_v24 = vpop.f32.mrb[44].mxu1 }
 0x14f   :  { %575 = vst [vmem:[%s1545_s4 + $0xb0] sm:$0xff] %v419_v23  ;;  %v773_v26 = vpop.f32.mrb[45].mxu0  ;;  %600 = vst [vmem:[%s1545_s4 + $0x178] sm:$0xff] %v544_v24  ;;  %v848_v28 = vpop.f32.mrb[45].mxu1 }
 0x152   :  { %v424_v29 = vpop.f32.mrb[46].mxu0  ;;  %v549_v30 = vpop.f32.mrb[46].mxu1 }
 0x153   :  { %576 = vst [vmem:[%s1545_s4 + $0xb8] sm:$0xff] %v424_v29  ;;  %v776_v32 = vpop.f32.mrb[47].mxu0  ;;  %601 = vst [vmem:[%s1545_s4 + $0x180] sm:$0xff] %v549_v30  ;;  %v851_v33 = vpop.f32.mrb[47].mxu1 }
 0x156   :  { %v429_v34 = vpop.f32.mrb[48].mxu0 }
 0x157   :  { %577 = vst [vmem:[%s1545_s4 + $0xc0] sm:$0xff] %v429_v34  ;;  %v779_v35 = vpop.f32.mrb[49].mxu0 }

// kernel: densenet_forward_pallas.34
= control target key start
LH: loop header
LB: loop body
LE: loop exit
PB: predicated region body
PF: predicated region fallthrough
CT: control target
= control target key end

     0   :  { %s701_s0 = inlined_call_operand.vmem [shape: f32[392,128], index: 0, kind: input, shape index: {}]   ;;  %s702_s1 = inlined_call_operand.vmem [shape: f32[1,128], index: 1, kind: input, shape index: {}]   ;;  %s703_s2 = inlined_call_operand.vmem [shape: f32[1,128], index: 2, kind: input, shape index: {}]   ;;  %s704_s3 = inlined_call_operand.vmem [shape: f32[392,128], index: 3, kind: output, shape index: {}]  }
   0x1   :  { %v14_v0 = vld [vmem:[%s701_s0] sm:$0xff]  ;;  %v15_v4 = vld [vmem:[%s701_s0 + $0x8] sm:$0xff]  ;;  %v16_v5 = vld [vmem:[%s701_s0 + $0x10] sm:$0xff] }
   0x2   :  { %v305_v1 = vld [vmem:[%s702_s1] ss:$0 sm:$0xff]  ;;  %v17_v6 = vld [vmem:[%s701_s0 + $0x18] sm:$0xff]  ;;  %v19_v11 = vld [vmem:[%s701_s0 + $0x28] sm:$0xff] }
   0x3   :  { %v310_v2 = vld [vmem:[%s703_s2] ss:$0 sm:$0xff]  ;;  %v70_v3 = vmul.f32 %v305_v1, %v14_v0  ;;  %v71_v7 = vmul.f32 %v305_v1, %v15_v4  ;;  %v72_v8 = vmul.f32 %v305_v1, %v16_v5  ;;  %v73_v9 = vmul.f32 %v305_v1, %v17_v6  ;;  %v20_v12 = vld [vmem:[%s701_s0 + $0x30] sm:$0xff]  ;;  %v21_v17 = vld [vmem:[%s701_s0 + $0x38] sm:$0xff] }
   0x4   :  { %v18_v10 = vld [vmem:[%s701_s0 + $0x20] sm:$0xff]  ;;  %v75_v15 = vmul.f32 %v305_v1, %v19_v11  ;;  %v76_v16 = vmul.f32 %v305_v1, %v20_v12  ;;  %v77_v21 = vmul.f32 %v305_v1, %v21_v17  ;;  %v23_v27 = vld [vmem:[%s701_s0 + $0x48] sm:$0xff]  ;;  %v24_v28 = vld [vmem:[%s701_s0 + $0x50] sm:$0xff] }
   0x5   :  { %v126_v13 = vadd.f32 %v310_v2, %v70_v3  ;;  %v74_v14 = vmul.f32 %v305_v1, %v18_v10  ;;  %v127_v18 = vadd.f32 %v310_v2, %v71_v7  ;;  %v128_v19 = vadd.f32 %v310_v2, %v72_v8  ;;  %v22_v22 = vld [vmem:[%s701_s0 + $0x40] sm:$0xff]  ;;  %v25_v29 = vld [vmem:[%s701_s0 + $0x58] sm:$0xff]  ;;  %v27_v35 = vld [vmem:[%s701_s0 + $0x68] sm:$0xff] }
   0x6   :  { %v129_v20 = vadd.f32 %v310_v2, %v73_v9  ;;  %v131_v25 = vadd.f32 %v310_v2, %v75_v15  ;;  %v132_v26 = vadd.f32 %v310_v2, %v76_v16  ;;  %v133_v33 = vadd.f32 %v310_v2, %v77_v21  ;;  %v26_v34 = vld [vmem:[%s701_s0 + $0x60] sm:$0xff]  ;;  %v28_v36 = vld [vmem:[%s701_s0 + $0x70] sm:$0xff]  ;;  %v29_v41 = vld [vmem:[%s701_s0 + $0x78] sm:$0xff] }
   0x7   :  { %v175_v23 = vmax.f32 %v126_v13, 0.0  ;;  %v130_v24 = vadd.f32 %v310_v2, %v74_v14  ;;  %v176_v30 = vmax.f32 %v127_v18, 0.0  ;;  %v177_v31 = vmax.f32 %v128_v19, 0.0  ;;  %v30_v54 = vld [vmem:[%s701_s0 + $0x80] sm:$0xff]  ;;  %v31_v59 = vld [vmem:[%s701_s0 + $0x88] sm:$0xff]  ;;  %v32_v60 = vld [vmem:[%s701_s0 + $0x90] sm:$0xff] }
   0x8   :  { %v178_v32 = vmax.f32 %v129_v20, 0.0  ;;  %v180_v38 = vmax.f32 %v131_v25, 0.0  ;;  %v181_v39 = vmax.f32 %v132_v26, 0.0  ;;  %v78_v40 = vmul.f32 %v305_v1, %v22_v22  ;;  %v33_v61 = vld [vmem:[%s701_s0 + $0x98] sm:$0xff]  ;;  %v34_v4 = vld [vmem:[%s701_s0 + $0xa0] sm:$0xff]  ;;  %v35_v5 = vld [vmem:[%s701_s0 + $0xa8] sm:$0xff] }
   0x9   :  { %224 = vst [vmem:[%s704_s3] sm:$0xff] %v175_v23  ;;  %v179_v37 = vmax.f32 %v130_v24, 0.0  ;;  %225 = vst [vmem:[%s704_s3 + $0x8] sm:$0xff] %v176_v30  ;;  %v182_v42 = vmax.f32 %v133_v33, 0.0  ;;  %v79_v43 = vmul.f32 %v305_v1, %v23_v27  ;;  %v80_v44 = vmul.f32 %v305_v1, %v24_v28  ;;  %v36_v6 = vld [vmem:[%s701_s0 + $0xb0] sm:$0xff]  ;;  %v37_v11 = vld [vmem:[%s701_s0 + $0xb8] sm:$0xff] }
   0xa   :  { %226 = vst [vmem:[%s704_s3 + $0x10] sm:$0xff] %v177_v31  ;;  %227 = vst [vmem:[%s704_s3 + $0x18] sm:$0xff] %v178_v32  ;;  %v81_v45 = vmul.f32 %v305_v1, %v25_v29  ;;  %v134_v46 = vadd.f32 %v310_v2, %v78_v40  ;;  %v82_v47 = vmul.f32 %v305_v1, %v26_v34  ;;  %v38_v24 = vld [vmem:[%s701_s0 + $0xc0] sm:$0xff]  ;;  %v39_v29 = vld [vmem:[%s701_s0 + $0xc8] sm:$0xff] }
   0xb   :  { %228 = vst [vmem:[%s704_s3 + $0x20] sm:$0xff] %v179_v37  ;;  %229 = vst [vmem:[%s704_s3 + $0x28] sm:$0xff] %v180_v38  ;;  %v83_v48 = vmul.f32 %v305_v1, %v27_v35  ;;  %v84_v49 = vmul.f32 %v305_v1, %v28_v36  ;;  %v135_v50 = vadd.f32 %v310_v2, %v79_v43  ;;  %v40_v30 = vld [vmem:[%s701_s0 + $0xd0] sm:$0xff]  ;;  %v41_v31 = vld [vmem:[%s701_s0 + $0xd8] sm:$0xff] }
   0xc   :  { %230 = vst [vmem:[%s704_s3 + $0x30] sm:$0xff] %v181_v39  ;;  %231 = vst [vmem:[%s704_s3 + $0x38] sm:$0xff] %v182_v42  ;;  %v136_v51 = vadd.f32 %v310_v2, %v80_v44  ;;  %v137_v52 = vadd.f32 %v310_v2, %v81_v45  ;;  %v85_v53 = vmul.f32 %v305_v1, %v29_v41  ;;  %v183_v55 = vmax.f32 %v134_v46, 0.0  ;;  %v42_v36 = vld [vmem:[%s701_s0 + $0xe0] sm:$0xff]  ;;  %v43_v37 = vld [vmem:[%s701_s0 + $0xe8] sm:$0xff] }
   0xd   :  { %v138_v56 = vadd.f32 %v310_v2, %v82_v47  ;;  %v139_v57 = vadd.f32 %v310_v2, %v83_v48  ;;  %v140_v58 = vadd.f32 %v310_v2, %v84_v49  ;;  %v184_v62 = vmax.f32 %v135_v50, 0.0  ;;  %v44_v38 = vld [vmem:[%s701_s0 + $0xf0] sm:$0xff]  ;;  %v45_v43 = vld [vmem:[%s701_s0 + $0xf8] sm:$0xff] }
   0xe   :  { %v185_v63 = vmax.f32 %v136_v51, 0.0  ;;  %v186_v0 = vmax.f32 %v137_v52, 0.0  ;;  %v141_v3 = vadd.f32 %v310_v2, %v85_v53  ;;  %232 = vst [vmem:[%s704_s3 + $0x40] sm:$0xff] %v183_v55  ;;  %v86_v10 = vmul.f32 %v305_v1, %v30_v54 }
   0xf   :  { %v187_v7 = vmax.f32 %v138_v56, 0.0  ;;  %v188_v8 = vmax.f32 %v139_v57, 0.0  ;;  %v189_v9 = vmax.f32 %v140_v58, 0.0  ;;  %233 = vst [vmem:[%s704_s3 + $0x48] sm:$0xff] %v184_v62  ;;  %v87_v13 = vmul.f32 %v305_v1, %v31_v59  ;;  %v46_v56 = vld [vmem:[%s701_s0 + $0x100] sm:$0xff]  ;;  %v48_v62 = vld [vmem:[%s701_s0 + $0x110] sm:$0xff] }
  0x10   :  { %234 = vst [vmem:[%s704_s3 + $0x50] sm:$0xff] %v185_v63  ;;  %235 = vst [vmem:[%s704_s3 + $0x58] sm:$0xff] %v186_v0  ;;  %v190_v12 = vmax.f32 %v141_v3, 0.0  ;;  %v88_v14 = vmul.f32 %v305_v1, %v32_v60  ;;  %v89_v15 = vmul.f32 %v305_v1, %v33_v61  ;;  %v142_v16 = vadd.f32 %v310_v2, %v86_v10  ;;  %v47_v61 = vld [vmem:[%s701_s0 + $0x108] sm:$0xff]  ;;  %v49_v63 = vld [vmem:[%s701_s0 + $0x118] sm:$0xff] }
  0x11   :  { %236 = vst [vmem:[%s704_s3 + $0x60] sm:$0xff] %v187_v7  ;;  %237 = vst [vmem:[%s704_s3 + $0x68] sm:$0xff] %v188_v8  ;;  %v90_v17 = vmul.f32 %v305_v1, %v34_v4  ;;  %v91_v18 = vmul.f32 %v305_v1, %v35_v5  ;;  %v92_v19 = vmul.f32 %v305_v1, %v36_v6  ;;  %v50_v6 = vld [vmem:[%s701_s0 + $0x120] sm:$0xff]  ;;  %v51_v7 = vld [vmem:[%s701_s0 + $0x128] sm:$0xff] }
  0x12   :  { %238 = vst [vmem:[%s704_s3 + $0x70] sm:$0xff] %v189_v9  ;;  %239 = vst [vmem:[%s704_s3 + $0x78] sm:$0xff] %v190_v12  ;;  %v143_v20 = vadd.f32 %v310_v2, %v87_v13  ;;  %v144_v21 = vadd.f32 %v310_v2, %v88_v14  ;;  %v145_v22 = vadd.f32 %v310_v2, %v89_v15  ;;  %v191_v25 = vmax.f32 %v142_v16, 0.0  ;;  %v52_v8 = vld [vmem:[%s701_s0 + $0x130] sm:$0xff]  ;;  %v53_v13 = vld [vmem:[%s701_s0 + $0x138] sm:$0xff] }
  0x13   :  { %v93_v23 = vmul.f32 %v305_v1, %v37_v11  ;;  %v146_v26 = vadd.f32 %v310_v2, %v90_v17  ;;  %v147_v27 = vadd.f32 %v310_v2, %v91_v18  ;;  %v148_v28 = vadd.f32 %v310_v2, %v92_v19 }
  0x14   :  { %v192_v32 = vmax.f32 %v143_v20, 0.0  ;;  %v193_v33 = vmax.f32 %v144_v21, 0.0  ;;  %v194_v34 = vmax.f32 %v145_v22, 0.0  ;;  %240 = vst [vmem:[%s704_s3 + $0x80] sm:$0xff] %v191_v25  ;;  %v94_v42 = vmul.f32 %v305_v1, %v38_v24 }
  0x15   :  { %v149_v35 = vadd.f32 %v310_v2, %v93_v23  ;;  %v195_v39 = vmax.f32 %v146_v26, 0.0  ;;  %v196_v40 = vmax.f32 %v147_v27, 0.0  ;;  %v197_v41 = vmax.f32 %v148_v28, 0.0  ;;  %v54_v26 = vld [vmem:[%s701_s0 + $0x140] sm:$0xff] }
  0x16   :  { %241 = vst [vmem:[%s704_s3 + $0x88] sm:$0xff] %v192_v32  ;;  %242 = vst [vmem:[%s704_s3 + $0x90] sm:$0xff] %v193_v33  ;;  %v95_v45 = vmul.f32 %v305_v1, %v39_v29  ;;  %v96_v46 = vmul.f32 %v305_v1, %v40_v30  ;;  %v97_v47 = vmul.f32 %v305_v1, %v41_v31  ;;  %v55_v31 = vld [vmem:[%s701_s0 + $0x148] sm:$0xff]  ;;  %v56_v32 = vld [vmem:[%s701_s0 + $0x150] sm:$0xff] }
  0x17   :  { %243 = vst [vmem:[%s704_s3 + $0x98] sm:$0xff] %v194_v34  ;;  %v198_v44 = vmax.f32 %v149_v35, 0.0  ;;  %244 = vst [vmem:[%s704_s3 + $0xa0] sm:$0xff] %v195_v39  ;;  %v150_v48 = vadd.f32 %v310_v2, %v94_v42  ;;  %v98_v49 = vmul.f32 %v305_v1, %v42_v36  ;;  %v99_v50 = vmul.f32 %v305_v1, %v43_v37  ;;  %v57_v33 = vld [vmem:[%s701_s0 + $0x158] sm:$0xff]  ;;  %v59_v39 = vld [vmem:[%s701_s0 + $0x168] sm:$0xff] }
  0x18   :  { %245 = vst [vmem:[%s704_s3 + $0xa8] sm:$0xff] %v196_v40  ;;  %246 = vst [vmem:[%s704_s3 + $0xb0] sm:$0xff] %v197_v41  ;;  %v100_v51 = vmul.f32 %v305_v1, %v44_v38  ;;  %v151_v52 = vadd.f32 %v310_v2, %v95_v45  ;;  %v152_v53 = vadd.f32 %v310_v2, %v96_v46  ;;  %v58_v38 = vld [vmem:[%s701_s0 + $0x160] sm:$0xff]  ;;  %v60_v40 = vld [vmem:[%s701_s0 + $0x170] sm:$0xff] }
  0x19   :  { %247 = vst [vmem:[%s704_s3 + $0xb8] sm:$0xff] %v198_v44  ;;  %v153_v54 = vadd.f32 %v310_v2, %v97_v47  ;;  %v101_v55 = vmul.f32 %v305_v1, %v45_v43  ;;  %v199_v57 = vmax.f32 %v150_v48, 0.0  ;;  %v154_v58 = vadd.f32 %v310_v2, %v98_v49  ;;  %v61_v45 = vld [vmem:[%s701_s0 + $0x178] sm:$0xff] }
  0x1a   :  { %v155_v59 = vadd.f32 %v310_v2, %v99_v50  ;;  %v156_v60 = vadd.f32 %v310_v2, %v100_v51  ;;  %v200_v0 = vmax.f32 %v151_v52, 0.0  ;;  %v201_v3 = vmax.f32 %v152_v53, 0.0 }
  0x1b   :  { %v202_v4 = vmax.f32 %v153_v54, 0.0  ;;  %v157_v5 = vadd.f32 %v310_v2, %v101_v55  ;;  %248 = vst [vmem:[%s704_s3 + $0xc0] sm:$0xff] %v199_v57  ;;  %v203_v9 = vmax.f32 %v154_v58, 0.0  ;;  %v102_v12 = vmul.f32 %v305_v1, %v46_v56  ;;  %v62_v58 = vld [vmem:[%s701_s0 + $0x180] sm:$0xff] }
  0x1c   :  { %v204_v10 = vmax.f32 %v155_v59, 0.0  ;;  %v205_v11 = vmax.f32 %v156_v60, 0.0  ;;  %249 = vst [vmem:[%s704_s3 + $0xc8] sm:$0xff] %v200_v0  ;;  %250 = vst [vmem:[%s704_s3 + $0xd0] sm:$0xff] %v201_v3  ;;  %v103_v15 = vmul.f32 %v305_v1, %v47_v61  ;;  %v104_v16 = vmul.f32 %v305_v1, %v48_v62 }
  0x1d   :  { %251 = vst [vmem:[%s704_s3 + $0xd8] sm:$0xff] %v202_v4  ;;  %v206_v14 = vmax.f32 %v157_v5, 0.0  ;;  %v105_v17 = vmul.f32 %v305_v1, %v49_v63  ;;  %252 = vst [vmem:[%s704_s3 + $0xe0] sm:$0xff] %v203_v9  ;;  %v158_v18 = vadd.f32 %v310_v2, %v102_v12  ;;  %v106_v19 = vmul.f32 %v305_v1, %v50_v6 }
  0x1e   :  { %253 = vst [vmem:[%s704_s3 + $0xe8] sm:$0xff] %v204_v10  ;;  %254 = vst [vmem:[%s704_s3 + $0xf0] sm:$0xff] %v205_v11  ;;  %v107_v20 = vmul.f32 %v305_v1, %v51_v7  ;;  %v108_v21 = vmul.f32 %v305_v1, %v52_v8  ;;  %v159_v22 = vadd.f32 %v310_v2, %v103_v15 }
  0x1f   :  { %255 = vst [vmem:[%s704_s3 + $0xf8] sm:$0xff] %v206_v14  ;;  %v160_v23 = vadd.f32 %v310_v2, %v104_v16  ;;  %v161_v24 = vadd.f32 %v310_v2, %v105_v17  ;;  %v109_v25 = vmul.f32 %v305_v1, %v53_v13  ;;  %v207_v27 = vmax.f32 %v158_v18, 0.0 }
  0x20   :  { %v162_v28 = vadd.f32 %v310_v2, %v106_v19  ;;  %v163_v29 = vadd.f32 %v310_v2, %v107_v20  ;;  %v164_v30 = vadd.f32 %v310_v2, %v108_v21  ;;  %v208_v34 = vmax.f32 %v159_v22, 0.0 }
  0x21   :  { %v209_v35 = vmax.f32 %v160_v23, 0.0  ;;  %v210_v36 = vmax.f32 %v161_v24, 0.0  ;;  %v165_v37 = vadd.f32 %v310_v2, %v109_v25  ;;  %256 = vst [vmem:[%s704_s3 + $0x100] sm:$0xff] %v207_v27  ;;  %v110_v44 = vmul.f32 %v305_v1, %v54_v26 }
  0x22   :  { %v211_v41 = vmax.f32 %v162_v28, 0.0  ;;  %v212_v42 = vmax.f32 %v163_v29, 0.0  ;;  %v213_v43 = vmax.f32 %v164_v30, 0.0  ;;  %257 = vst [vmem:[%s704_s3 + $0x108] sm:$0xff] %v208_v34  ;;  %v111_v47 = vmul.f32 %v305_v1, %v55_v31 }
  0x23   :  { %258 = vst [vmem:[%s704_s3 + $0x110] sm:$0xff] %v209_v35  ;;  %259 = vst [vmem:[%s704_s3 + $0x118] sm:$0xff] %v210_v36  ;;  %v214_v46 = vmax.f32 %v165_v37, 0.0  ;;  %v112_v48 = vmul.f32 %v305_v1, %v56_v32  ;;  %v113_v49 = vmul.f32 %v305_v1, %v57_v33  ;;  %v166_v50 = vadd.f32 %v310_v2, %v110_v44 }
  0x24   :  { %260 = vst [vmem:[%s704_s3 + $0x120] sm:$0xff] %v211_v41  ;;  %261 = vst [vmem:[%s704_s3 + $0x128] sm:$0xff] %v212_v42  ;;  %v114_v51 = vmul.f32 %v305_v1, %v58_v38  ;;  %v115_v52 = vmul.f32 %v305_v1, %v59_v39  ;;  %v116_v53 = vmul.f32 %v305_v1, %v60_v40 }
  0x25   :  { %262 = vst [vmem:[%s704_s3 + $0x130] sm:$0xff] %v213_v43  ;;  %263 = vst [vmem:[%s704_s3 + $0x138] sm:$0xff] %v214_v46  ;;  %v167_v54 = vadd.f32 %v310_v2, %v111_v47  ;;  %v168_v55 = vadd.f32 %v310_v2, %v112_v48  ;;  %v169_v56 = vadd.f32 %v310_v2, %v113_v49  ;;  %v215_v59 = vmax.f32 %v166_v50, 0.0 }
  0x26   :  { %v117_v57 = vmul.f32 %v305_v1, %v61_v45  ;;  %v170_v60 = vadd.f32 %v310_v2, %v114_v51  ;;  %v171_v61 = vadd.f32 %v310_v2, %v115_v52  ;;  %v172_v62 = vadd.f32 %v310_v2, %v116_v53 }
  0x27   :  { %v216_v63 = vmax.f32 %v167_v54, 0.0  ;;  %v217_v0 = vmax.f32 %v168_v55, 0.0  ;;  %v218_v3 = vmax.f32 %v169_v56, 0.0  ;;  %264 = vst [vmem:[%s704_s3 + $0x140] sm:$0xff] %v215_v59  ;;  %v118_v8 = vmul.f32 %v305_v1, %v62_v58 }
  0x28   :  { %v173_v4 = vadd.f32 %v310_v2, %v117_v57  ;;  %v219_v5 = vmax.f32 %v170_v60, 0.0  ;;  %v220_v6 = vmax.f32 %v171_v61, 0.0  ;;  %v221_v7 = vmax.f32 %v172_v62, 0.0 }
  0x29   :  { %265 = vst [vmem:[%s704_s3 + $0x148] sm:$0xff] %v216_v63  ;;  %266 = vst [vmem:[%s704_s3 + $0x150] sm:$0xff] %v217_v0  ;;  %v174_v1 = vadd.f32 %v310_v2, %v118_v8 }
  0x2a   :  { %267 = vst [vmem:[%s704_s3 + $0x158] sm:$0xff] %v218_v3  ;;  %v222_v9 = vmax.f32 %v173_v4, 0.0  ;;  %268 = vst [vmem:[%s704_s3 + $0x160] sm:$0xff] %v219_v5 }
  0x2b   :  { %269 = vst [vmem:[%s704_s3 + $0x168] sm:$0xff] %v220_v6  ;;  %270 = vst [vmem:[%s704_s3 + $0x170] sm:$0xff] %v221_v7  ;;  %v223_v10 = vmax.f32 %v174_v1, 0.0 }
  0x2c   :  { %271 = vst [vmem:[%s704_s3 + $0x178] sm:$0xff] %v222_v9 }
  0x2d   :  { %272 = vst [vmem:[%s704_s3 + $0x180] sm:$0xff] %v223_v10 }

// kernel: densenet_forward_pallas.35
= control target key start
LH: loop header
LB: loop body
LE: loop exit
PB: predicated region body
PF: predicated region fallthrough
CT: control target
= control target key end

     0   :  { %v1865_v0 = vmov 0.0|0.0   ;;  %vm1866_vm0 = vmmov 0   ;;  %s3298_s1 = inlined_call_operand.vmem [shape: f32[640,128], index: 1, kind: input, shape index: {}]   ;;  %s3299_s0 = inlined_call_operand.vmem [shape: f32[392,640], index: 0, kind: input, shape index: {}]   ;;  %s3300_s2 = inlined_call_operand.vmem [shape: f32[392,128], index: 2, kind: output, shape index: {}]  }
   0x1   :  { %1563 = vmatprep.subr.bf16.mxu1 %v1865_v0  ;;  %1611 = vmatprep.subr.bf16.mxu0 %v1865_v0  ;;  %v256_v1 = vld [vmem:[%s3298_s1] sm:$0xff]  ;;  %v257_v2 = vld [vmem:[%s3298_s1 + $0x8] sm:$0xff]  ;;  %v258_v6 = vld [vmem:[%s3298_s1 + $0x10] sm:$0xff] }
   0x2   :  { %v288_v3 = vld [vmem:[%s3298_s1 + $0x100] sm:$0xff]  ;;  %v1564_v4 = vpack.c.bf16 %v257_v2, %v256_v1  ;;  %v289_v5 = vld [vmem:[%s3298_s1 + $0x108] sm:$0xff]  ;;  %v259_v7 = vld [vmem:[%s3298_s1 + $0x18] sm:$0xff] }
   0x3   :  { %v1903_v8 = vpack.c.bf16 %v289_v5, %v288_v3  ;;  %v290_v9 = vld [vmem:[%s3298_s1 + $0x110] sm:$0xff]  ;;  %v291_v10 = vld [vmem:[%s3298_s1 + $0x118] sm:$0xff]  ;;  %v1567_v11 = vpack.c.bf16 %v259_v7, %v258_v6  ;;  %v260_v13 = vld [vmem:[%s3298_s1 + $0x20] sm:$0xff] }
   0x4   :  { %1565 = vmatpush1.bf16.msra.mxu1 %v1564_v4  ;;  %v1913_v12 = vpack.c.bf16 %v291_v10, %v290_v9  ;;  %v261_v14 = vld [vmem:[%s3298_s1 + $0x28] sm:$0xff]  ;;  %v292_v15 = vld [vmem:[%s3298_s1 + $0x120] sm:$0xff]  ;;  %v262_v19 = vld [vmem:[%s3298_s1 + $0x30] sm:$0xff] }
   0x5   :  { %1613 = vmatpush1.bf16.msra.mxu0 %v1903_v8  ;;  %1566 = vmatprep.subr.bf16.mxu1 %v1865_v0  ;;  %v293_v16 = vld [vmem:[%s3298_s1 + $0x128] sm:$0xff]  ;;  %v1570_v17 = vpack.c.bf16 %v261_v14, %v260_v13  ;;  %v263_v20 = vld [vmem:[%s3298_s1 + $0x38] sm:$0xff]  ;;  %v294_v21 = vld [vmem:[%s3298_s1 + $0x130] sm:$0xff] }
   0x6   :  { %1614 = vmatprep.subr.bf16.mxu0 %v1865_v0  ;;  %v1930_v18 = vpack.c.bf16 %v293_v16, %v292_v15  ;;  %v295_v22 = vld [vmem:[%s3298_s1 + $0x138] sm:$0xff]  ;;  %v1573_v23 = vpack.c.bf16 %v263_v20, %v262_v19  ;;  %v264_v25 = vld [vmem:[%s3298_s1 + $0x40] sm:$0xff]  ;;  %v265_v26 = vld [vmem:[%s3298_s1 + $0x48] sm:$0xff] }
   0x7   :  { %v1947_v24 = vpack.c.bf16 %v295_v22, %v294_v21  ;;  %v296_v27 = vld [vmem:[%s3298_s1 + $0x140] sm:$0xff]  ;;  %v297_v28 = vld [vmem:[%s3298_s1 + $0x148] sm:$0xff]  ;;  %v1576_v29 = vpack.c.bf16 %v265_v26, %v264_v25  ;;  %v266_v31 = vld [vmem:[%s3298_s1 + $0x50] sm:$0xff] }
   0x8   :  { %1568 = vmatpush1.bf16.msra.mxu1 %v1567_v11  ;;  %v1964_v30 = vpack.c.bf16 %v297_v28, %v296_v27  ;;  %v267_v32 = vld [vmem:[%s3298_s1 + $0x58] sm:$0xff]  ;;  %v298_v33 = vld [vmem:[%s3298_s1 + $0x150] sm:$0xff]  ;;  %v268_v37 = vld [vmem:[%s3298_s1 + $0x60] sm:$0xff] }
   0x9   :  { %1616 = vmatpush1.bf16.msra.mxu0 %v1913_v12  ;;  %1569 = vmatprep.subr.bf16.mxu1 %v1865_v0  ;;  %v299_v34 = vld [vmem:[%s3298_s1 + $0x158] sm:$0xff]  ;;  %v1579_v35 = vpack.c.bf16 %v267_v32, %v266_v31  ;;  %v269_v38 = vld [vmem:[%s3298_s1 + $0x68] sm:$0xff]  ;;  %v300_v39 = vld [vmem:[%s3298_s1 + $0x160] sm:$0xff] }
   0xa   :  { %1617 = vmatprep.subr.bf16.mxu0 %v1865_v0  ;;  %v1981_v36 = vpack.c.bf16 %v299_v34, %v298_v33  ;;  %v301_v40 = vld [vmem:[%s3298_s1 + $0x168] sm:$0xff]  ;;  %v14_v42 = vld [vmem:[%s3299_s0 + $0x18] sm:$0xff]  ;;  %v1582_v43 = vpack.c.bf16 %v269_v38, %v268_v37  ;;  %v270_v45 = vld [vmem:[%s3298_s1 + $0x70] sm:$0xff] }
   0xb   :  { %v12_v41 = vld [vmem:[%s3299_s0 + $0x8] sm:$0xff]  ;;  %710 = vmatprep.mubr.f32.mxu0 %v14_v42  ;;  %v2004_v44 = vpack.c.bf16 %v301_v40, %v300_v39  ;;  %v271_v46 = vld [vmem:[%s3298_s1 + $0x78] sm:$0xff]  ;;  %v302_v47 = vld [vmem:[%s3298_s1 + $0x170] sm:$0xff] }
   0xc   :  { %1571 = vmatpush1.bf16.msra.mxu1 %v1570_v17  ;;  %400 = vmatprep.mubr.f32.mxu1 %v12_v41  ;;  %v303_v48 = vld [vmem:[%s3298_s1 + $0x178] sm:$0xff]  ;;  %v1585_v49 = vpack.c.bf16 %v271_v46, %v270_v45  ;;  %v272_v51 = vld [vmem:[%s3298_s1 + $0x80] sm:$0xff]  ;;  %v273_v52 = vld [vmem:[%s3298_s1 + $0x88] sm:$0xff] }
   0xd   :  { %1619 = vmatpush1.bf16.msra.mxu0 %v1930_v18  ;;  %1572 = vmatprep.subr.bf16.mxu1 %v1865_v0  ;;  %v2021_v50 = vpack.c.bf16 %v303_v48, %v302_v47  ;;  %v304_v53 = vld [vmem:[%s3298_s1 + $0x180] sm:$0xff]  ;;  %v305_v54 = vld [vmem:[%s3298_s1 + $0x188] sm:$0xff]  ;;  %v1588_v55 = vpack.c.bf16 %v273_v52, %v272_v51  ;;  %v274_v57 = vld [vmem:[%s3298_s1 + $0x90] sm:$0xff] }
   0xe   :  { %1620 = vmatprep.subr.bf16.mxu0 %v1865_v0  ;;  %v2038_v56 = vpack.c.bf16 %v305_v54, %v304_v53  ;;  %v275_v58 = vld [vmem:[%s3298_s1 + $0x98] sm:$0xff]  ;;  %v306_v59 = vld [vmem:[%s3298_s1 + $0x190] sm:$0xff]  ;;  %v276_v63 = vld [vmem:[%s3298_s1 + $0xa0] sm:$0xff] }
   0xf   :  { %v307_v60 = vld [vmem:[%s3298_s1 + $0x198] sm:$0xff]  ;;  %v1591_v61 = vpack.c.bf16 %v275_v58, %v274_v57  ;;  %v277_v1 = vld [vmem:[%s3298_s1 + $0xa8] sm:$0xff]  ;;  %v308_v2 = vld [vmem:[%s3298_s1 + $0x1a0] sm:$0xff] }
  0x10   :  { %1574 = vmatpush1.bf16.msra.mxu1 %v1573_v23  ;;  %v2055_v62 = vpack.c.bf16 %v307_v60, %v306_v59  ;;  %v309_v3 = vld [vmem:[%s3298_s1 + $0x1a8] sm:$0xff]  ;;  %v1594_v4 = vpack.c.bf16 %v277_v1, %v276_v63  ;;  %v278_v6 = vld [vmem:[%s3298_s1 + $0xb0] sm:$0xff]  ;;  %v279_v7 = vld [vmem:[%s3298_s1 + $0xb8] sm:$0xff] }
  0x11   :  { %1622 = vmatpush1.bf16.msra.mxu0 %v1947_v24  ;;  %1575 = vmatprep.subr.bf16.mxu1 %v1865_v0  ;;  %v2072_v5 = vpack.c.bf16 %v309_v3, %v308_v2  ;;  %v310_v9 = vld [vmem:[%s3298_s1 + $0x1b0] sm:$0xff]  ;;  %v311_v10 = vld [vmem:[%s3298_s1 + $0x1b8] sm:$0xff]  ;;  %v1597_v11 = vpack.c.bf16 %v279_v7, %v278_v6  ;;  %v280_v14 = vld [vmem:[%s3298_s1 + $0xc0] sm:$0xff] }
  0x12   :  { %1623 = vmatprep.subr.bf16.mxu0 %v1865_v0  ;;  %v2089_v13 = vpack.c.bf16 %v311_v10, %v310_v9  ;;  %v281_v15 = vld [vmem:[%s3298_s1 + $0xc8] sm:$0xff]  ;;  %v312_v16 = vld [vmem:[%s3298_s1 + $0x1c0] sm:$0xff]  ;;  %v282_v21 = vld [vmem:[%s3298_s1 + $0xd0] sm:$0xff] }
  0x13   :  { %v313_v17 = vld [vmem:[%s3298_s1 + $0x1c8] sm:$0xff]  ;;  %v1600_v19 = vpack.c.bf16 %v281_v15, %v280_v14  ;;  %v283_v22 = vld [vmem:[%s3298_s1 + $0xd8] sm:$0xff]  ;;  %v314_v23 = vld [vmem:[%s3298_s1 + $0x1d0] sm:$0xff] }
  0x14   :  { %1577 = vmatpush1.bf16.msra.mxu1 %v1576_v29  ;;  %v2106_v20 = vpack.c.bf16 %v313_v17, %v312_v16  ;;  %v315_v25 = vld [vmem:[%s3298_s1 + $0x1d8] sm:$0xff]  ;;  %v1603_v26 = vpack.c.bf16 %v283_v22, %v282_v21  ;;  %v284_v28 = vld [vmem:[%s3298_s1 + $0xe0] sm:$0xff]  ;;  %v285_v29 = vld [vmem:[%s3298_s1 + $0xe8] sm:$0xff] }
  0x15   :  { %1625 = vmatpush1.bf16.msra.mxu0 %v1964_v30  ;;  %1578 = vmatprep.subr.bf16.mxu1 %v1865_v0  ;;  %v2123_v27 = vpack.c.bf16 %v315_v25, %v314_v23  ;;  %v316_v31 = vld [vmem:[%s3298_s1 + $0x1e0] sm:$0xff]  ;;  %v317_v32 = vld [vmem:[%s3298_s1 + $0x1e8] sm:$0xff]  ;;  %v1606_v33 = vpack.c.bf16 %v285_v29, %v284_v28  ;;  %v287_v37 = vld [vmem:[%s3298_s1 + $0xf8] sm:$0xff] }
  0x16   :  { %1626 = vmatprep.subr.bf16.mxu0 %v1865_v0  ;;  %v2140_v34 = vpack.c.bf16 %v317_v32, %v316_v31  ;;  %v318_v38 = vld [vmem:[%s3298_s1 + $0x1f0] sm:$0xff]  ;;  %v319_v39 = vld [vmem:[%s3298_s1 + $0x1f8] sm:$0xff]  ;;  %v320_v42 = vld [vmem:[%s3298_s1 + $0x200] sm:$0xff] }
  0x17   :  { %v2157_v41 = vpack.c.bf16 %v319_v39, %v318_v38  ;;  %v11_v45 = vld [vmem:[%s3299_s0] sm:$0xff]  ;;  %v13_v46 = vld [vmem:[%s3299_s0 + $0x10] sm:$0xff]  ;;  %v323_v52 = vld [vmem:[%s3298_s1 + $0x218] sm:$0xff] }
  0x18   :  { %1580 = vmatpush1.bf16.msra.mxu1 %v1579_v35  ;;  %v286_v35 = vld [vmem:[%s3298_s1 + $0xf0] sm:$0xff]  ;;  %v16_v53 = vld [vmem:[%s3299_s0 + $0x28] sm:$0xff]  ;;  %v18_v54 = vld [vmem:[%s3299_s0 + $0x38] sm:$0xff] }
  0x19   :  { %1628 = vmatpush1.bf16.msra.mxu0 %v1981_v36  ;;  %1581 = vmatprep.subr.bf16.mxu1 %v1865_v0  ;;  %v1609_v40 = vpack.c.bf16 %v287_v37, %v286_v35  ;;  %v17_v48 = vld [vmem:[%s3299_s0 + $0x30] sm:$0xff]  ;;  %v24_v58 = vld [vmem:[%s3299_s0 + $0x68] sm:$0xff]  ;;  %v324_v59 = vld [vmem:[%s3298_s1 + $0x220] sm:$0xff] }
  0x1a   :  { %1629 = vmatprep.subr.bf16.mxu0 %v1865_v0  ;;  %v322_v51 = vld [vmem:[%s3298_s1 + $0x210] sm:$0xff]  ;;  %v325_v60 = vld [vmem:[%s3298_s1 + $0x228] sm:$0xff]  ;;  %v27_v63 = vld [vmem:[%s3299_s0 + $0x80] sm:$0xff] }
  0x1b   :  { %v1663_v57 = vpack.c.bf16 %v323_v52, %v322_v51  ;;  %v1666_v1 = vpack.c.bf16 %v325_v60, %v324_v59  ;;  %v29_v2 = vld [vmem:[%s3299_s0 + $0x90] sm:$0xff]  ;;  %v26_v6 = vld [vmem:[%s3299_s0 + $0x78] sm:$0xff]  ;;  %v32_v7 = vld [vmem:[%s3299_s0 + $0xa8] sm:$0xff] }
  0x1c   :  { %1583 = vmatpush1.bf16.msra.mxu1 %v1582_v43  ;;  %v321_v43 = vld [vmem:[%s3298_s1 + $0x208] sm:$0xff]  ;;  %v326_v3 = vld [vmem:[%s3298_s1 + $0x230] sm:$0xff]  ;;  %v34_v10 = vld [vmem:[%s3299_s0 + $0xb8] sm:$0xff] }
  0x1d   :  { %1631 = vmatpush1.bf16.msra.mxu0 %v2004_v44  ;;  %1584 = vmatprep.subr.bf16.mxu1 %v1865_v0  ;;  %v1660_v47 = vpack.c.bf16 %v321_v43, %v320_v42  ;;  %v329_v14 = vld [vmem:[%s3298_s1 + $0x248] sm:$0xff]  ;;  %v31_v15 = vld [vmem:[%s3299_s0 + $0xa0] sm:$0xff]  ;;  %v37_v16 = vld [vmem:[%s3299_s0 + $0xd0] sm:$0xff] }
  0x1e   :  { %1632 = vmatprep.subr.bf16.mxu0 %v1865_v0  ;;  %v330_v21 = vld [vmem:[%s3298_s1 + $0x250] sm:$0xff]  ;;  %v331_v22 = vld [vmem:[%s3298_s1 + $0x258] sm:$0xff]  ;;  %v36_v23 = vld [vmem:[%s3299_s0 + $0xc8] sm:$0xff] }
  0x1f   :  { %v42_v25 = vld [vmem:[%s3299_s0 + $0xf8] sm:$0xff]  ;;  %v44_v28 = vld [vmem:[%s3299_s0 + $0x108] sm:$0xff]  ;;  %v332_v29 = vld [vmem:[%s3298_s1 + $0x260] sm:$0xff] }
  0x20   :  { %1586 = vmatpush1.bf16.msra.mxu1 %v1585_v49  ;;  %v19_v49 = vld [vmem:[%s3299_s0 + $0x40] sm:$0xff]  ;;  %v333_v31 = vld [vmem:[%s3298_s1 + $0x268] sm:$0xff]  ;;  %v41_v32 = vld [vmem:[%s3299_s0 + $0xf0] sm:$0xff] }
  0x21   :  { %1634 = vmatpush1.bf16.msra.mxu0 %v2021_v50  ;;  %1587 = vmatprep.subr.bf16.mxu1 %v1865_v0  ;;  %v1678_v35 = vpack.c.bf16 %v333_v31, %v332_v29  ;;  %v49_v37 = vld [vmem:[%s3299_s0 + $0x130] sm:$0xff]  ;;  %v335_v39 = vld [vmem:[%s3298_s1 + $0x278] sm:$0xff]  ;;  %v52_v42 = vld [vmem:[%s3299_s0 + $0x148] sm:$0xff] }
  0x22   :  { %1635 = vmatprep.subr.bf16.mxu0 %v1865_v0  ;;  %v334_v38 = vld [vmem:[%s3298_s1 + $0x270] sm:$0xff]  ;;  %v58_v51 = vld [vmem:[%s3299_s0 + $0x178] sm:$0xff]  ;;  %v72_v59 = vld [vmem:[%s3299_s0 + $0x1e8] sm:$0xff] }
  0x23   :  { %v1681_v43 = vpack.c.bf16 %v335_v39, %v334_v38  ;;  %v62_v52 = vld [vmem:[%s3299_s0 + $0x198] sm:$0xff]  ;;  %v71_v60 = vld [vmem:[%s3299_s0 + $0x1e0] sm:$0xff]  ;;  %v117_v29 = vld [vmem:[%s3299_s0 + $0x350] sm:$0xff] }
  0x24   :  { %1589 = vmatpush1.bf16.msra.mxu1 %v1588_v55  ;;  %v22_v55 = vld [vmem:[%s3299_s0 + $0x58] sm:$0xff]  ;;  %v119_v31 = vld [vmem:[%s3299_s0 + $0x360] sm:$0xff] }
  0x25   :  { %1637 = vmatpush1.bf16.msra.mxu0 %v2038_v56  ;;  %1590 = vmatprep.subr.bf16.mxu1 %v1865_v0  ;;  %v123_v38 = vld [vmem:[%s3299_s0 + $0x380] sm:$0xff] }
  0x26   :  { %1638 = vmatprep.subr.bf16.mxu0 %v1865_v0  ;;  %v127_v39 = vld [vmem:[%s3299_s0 + $0x3a0] sm:$0xff] }
  0x28   :  { %1592 = vmatpush1.bf16.msra.mxu1 %v1591_v61  ;;  %v23_v61 = vld [vmem:[%s3299_s0 + $0x60] sm:$0xff] }
  0x29   :  { %1640 = vmatpush1.bf16.msra.mxu0 %v2055_v62  ;;  %1593 = vmatprep.subr.bf16.mxu1 %v1865_v0 }
  0x2a   :  { %1641 = vmatprep.subr.bf16.mxu0 %v1865_v0 }
  0x2c   :  { %1595 = vmatpush1.bf16.msra.mxu1 %v1594_v4  ;;  %v327_v4 = vld [vmem:[%s3298_s1 + $0x238] sm:$0xff] }
  0x2d   :  { %1643 = vmatpush1.bf16.msra.mxu0 %v2072_v5  ;;  %1596 = vmatprep.subr.bf16.mxu1 %v1865_v0  ;;  %v1669_v9 = vpack.c.bf16 %v327_v4, %v326_v3  ;;  %v81_v3 = vld [vmem:[%s3299_s0 + $0x230] sm:$0xff]  ;;  %v83_v4 = vld [vmem:[%s3299_s0 + $0x240] sm:$0xff] }
  0x2e   :  { %1644 = vmatprep.subr.bf16.mxu0 %v1865_v0 }
  0x30   :  { %1598 = vmatpush1.bf16.msra.mxu1 %v1597_v11  ;;  %v328_v11 = vld [vmem:[%s3298_s1 + $0x240] sm:$0xff] }
  0x31   :  { %1646 = vmatpush1.bf16.msra.mxu0 %v2089_v13  ;;  %1599 = vmatprep.subr.bf16.mxu1 %v1865_v0  ;;  %v1672_v17 = vpack.c.bf16 %v329_v14, %v328_v11  ;;  %v93_v11 = vld [vmem:[%s3299_s0 + $0x290] sm:$0xff] }
  0x32   :  { %1647 = vmatprep.subr.bf16.mxu0 %v1865_v0  ;;  %v97_v14 = vld [vmem:[%s3299_s0 + $0x2b0] sm:$0xff] }
  0x34   :  { %1601 = vmatpush1.bf16.msra.mxu1 %v1600_v19  ;;  %v39_v19 = vld [vmem:[%s3299_s0 + $0xe0] sm:$0xff] }
  0x35   :  { %1649 = vmatpush1.bf16.msra.mxu0 %v2106_v20  ;;  %1602 = vmatprep.subr.bf16.mxu1 %v1865_v0 }
  0x36   :  { %1650 = vmatprep.subr.bf16.mxu0 %v1865_v0 }
  0x38   :  { %1604 = vmatpush1.bf16.msra.mxu1 %v1603_v26  ;;  %v1675_v26 = vpack.c.bf16 %v331_v22, %v330_v21  ;;  %v109_v21 = vld [vmem:[%s3299_s0 + $0x310] sm:$0xff]  ;;  %v106_v22 = vld [vmem:[%s3299_s0 + $0x2f8] sm:$0xff] }
  0x39   :  { %1652 = vmatpush1.bf16.msra.mxu0 %v2123_v27  ;;  %1605 = vmatprep.subr.bf16.mxu1 %v1865_v0 }
  0x3a   :  { %1653 = vmatprep.subr.bf16.mxu0 %v1865_v0 }
  0x3c   :  { %1607 = vmatpush1.bf16.msra.mxu1 %v1606_v33  ;;  %v47_v33 = vld [vmem:[%s3299_s0 + $0x120] sm:$0xff] }
  0x3d   :  { %1655 = vmatpush1.bf16.msra.mxu0 %v2140_v34  ;;  %1608 = vmatprep.subr.bf16.mxu1 %v1865_v0 }
  0x3e   :  { %1656 = vmatprep.subr.bf16.mxu0 %v1865_v0 }
  0x40   :  { %1610 = vmatpush1.bf16.msra.mxu1 %v1609_v40  ;;  %v46_v40 = vld [vmem:[%s3299_s0 + $0x118] sm:$0xff] }
  0x41   :  { %1658 = vmatpush1.bf16.msra.mxu0 %v2157_v41  ;;  %1683 = vmatprep.subr.bf16.mxu1 %v1865_v0 }
  0x42   :  { %1659 = vmatprep.subr.bf16.mxu0 %v1865_v0 }
  0x43   :  { %401 = vmatmul.mubr.f32.vlgmr.msra.gmra.mrb[0].mxu1 %v11_v45  ;;  %v54_v45 = vld [vmem:[%s3299_s0 + $0x158] sm:$0xff] }
  0x44   :  { %711 = vmatmul.mubr.f32.vlgmr.msra.gmra.mrb[0].mxu0 %v13_v46  ;;  %405 = vmatprep.mubr.f32.mxu1 %v17_v48  ;;  %v51_v46 = vld [vmem:[%s3299_s0 + $0x140] sm:$0xff] }
  0x45   :  { %1661 = vmatpush3.bf16.msra.mxu0 %v1660_v47  ;;  %715 = vmatprep.mubr.f32.mxu0 %v19_v49  ;;  %v53_v47 = vld [vmem:[%s3299_s0 + $0x150] sm:$0xff]  ;;  %v59_v48 = vld [vmem:[%s3299_s0 + $0x180] sm:$0xff]  ;;  %v56_v49 = vld [vmem:[%s3299_s0 + $0x168] sm:$0xff] }
  0x46   :  { %1699 = vmatpush1.bf16.msra.mxu1 %v1903_v8  ;;  %1662 = vmatprep.subr.bf16.mxu0 %v1865_v0  ;;  %v21_v8 = vld [vmem:[%s3299_s0 + $0x50] sm:$0xff] }
  0x47   :  { %406 = vmatmul.mubr.f32.gmra.mrb[2].mxu1 %v16_v53  ;;  %1684 = vmatprep.subr.bf16.mxu1 %v1865_v0  ;;  %v61_v53 = vld [vmem:[%s3299_s0 + $0x190] sm:$0xff] }
  0x48   :  { %716 = vmatmul.mubr.f32.gmra.mrb[2].mxu0 %v18_v54  ;;  %410 = vmatprep.mubr.f32.mxu1 %v22_v55  ;;  %v63_v54 = vld [vmem:[%s3299_s0 + $0x1a0] sm:$0xff] }
  0x49   :  { %720 = vmatprep.mubr.f32.mxu0 %v24_v58  ;;  %1664 = vmatpush3.bf16.msra.mxu0 %v1663_v57  ;;  %v67_v55 = vld [vmem:[%s3299_s0 + $0x1c0] sm:$0xff]  ;;  %v66_v57 = vld [vmem:[%s3299_s0 + $0x1b8] sm:$0xff]  ;;  %v68_v58 = vld [vmem:[%s3299_s0 + $0x1c8] sm:$0xff] }
  0x4a   :  { %1700 = vmatpush1.bf16.msra.mxu1 %v1913_v12  ;;  %1665 = vmatprep.subr.bf16.mxu0 %v1865_v0  ;;  %v28_v12 = vld [vmem:[%s3299_s0 + $0x88] sm:$0xff] }
  0x4b   :  { %411 = vmatmul.mubr.f32.gmra.mrb[4].mxu1 %v21_v8  ;;  %1685 = vmatprep.subr.bf16.mxu1 %v1865_v0  ;;  %v73_v8 = vld [vmem:[%s3299_s0 + $0x1f0] sm:$0xff] }
  0x4c   :  { %721 = vmatmul.mubr.f32.gmra.mrb[4].mxu0 %v23_v61  ;;  %415 = vmatprep.mubr.f32.mxu1 %v27_v63  ;;  %v77_v61 = vld [vmem:[%s3299_s0 + $0x210] sm:$0xff]  ;;  %v76_v63 = vld [vmem:[%s3299_s0 + $0x208] sm:$0xff] }
  0x4d   :  { %725 = vmatprep.mubr.f32.mxu0 %v29_v2  ;;  %1667 = vmatpush3.bf16.msra.mxu0 %v1666_v1  ;;  %v78_v1 = vld [vmem:[%s3299_s0 + $0x218] sm:$0xff] }
  0x4e   :  { %1701 = vmatpush1.bf16.msra.mxu1 %v1930_v18  ;;  %1668 = vmatprep.subr.bf16.mxu0 %v1865_v0  ;;  %v33_v18 = vld [vmem:[%s3299_s0 + $0xb0] sm:$0xff]  ;;  %v82_v2 = vld [vmem:[%s3299_s0 + $0x238] sm:$0xff] }
  0x4f   :  { %416 = vmatmul.mubr.f32.gmra.mrb[6].mxu1 %v26_v6  ;;  %1686 = vmatprep.subr.bf16.mxu1 %v1865_v0  ;;  %v87_v6 = vld [vmem:[%s3299_s0 + $0x260] sm:$0xff] }
  0x50   :  { %726 = vmatmul.mubr.f32.gmra.mrb[6].mxu0 %v28_v12  ;;  %420 = vmatprep.mubr.f32.mxu1 %v32_v7  ;;  %v86_v12 = vld [vmem:[%s3299_s0 + $0x258] sm:$0xff]  ;;  %v88_v7 = vld [vmem:[%s3299_s0 + $0x268] sm:$0xff] }
  0x51   :  { %730 = vmatprep.mubr.f32.mxu0 %v34_v10  ;;  %1670 = vmatpush3.bf16.msra.mxu0 %v1669_v9  ;;  %v92_v9 = vld [vmem:[%s3299_s0 + $0x288] sm:$0xff]  ;;  %v91_v10 = vld [vmem:[%s3299_s0 + $0x280] sm:$0xff] }
  0x52   :  { %1702 = vmatpush1.bf16.msra.mxu1 %v1947_v24  ;;  %1671 = vmatprep.subr.bf16.mxu0 %v1865_v0  ;;  %v38_v24 = vld [vmem:[%s3299_s0 + $0xd8] sm:$0xff] }
  0x53   :  { %421 = vmatmul.mubr.f32.gmra.mrb[8].mxu1 %v31_v15  ;;  %1687 = vmatprep.subr.bf16.mxu1 %v1865_v0  ;;  %v98_v15 = vld [vmem:[%s3299_s0 + $0x2b8] sm:$0xff] }
  0x54   :  { %731 = vmatmul.mubr.f32.gmra.mrb[8].mxu0 %v33_v18  ;;  %425 = vmatprep.mubr.f32.mxu1 %v37_v16  ;;  %v102_v18 = vld [vmem:[%s3299_s0 + $0x2d8] sm:$0xff]  ;;  %v101_v16 = vld [vmem:[%s3299_s0 + $0x2d0] sm:$0xff] }
  0x55   :  { %735 = vmatprep.mubr.f32.mxu0 %v39_v19  ;;  %1673 = vmatpush3.bf16.msra.mxu0 %v1672_v17  ;;  %v103_v17 = vld [vmem:[%s3299_s0 + $0x2e0] sm:$0xff] }
  0x56   :  { %1703 = vmatpush1.bf16.msra.mxu1 %v1964_v30  ;;  %1674 = vmatprep.subr.bf16.mxu0 %v1865_v0  ;;  %v43_v30 = vld [vmem:[%s3299_s0 + $0x100] sm:$0xff] }
  0x57   :  { %426 = vmatmul.mubr.f32.gmra.mrb[10].mxu1 %v36_v23  ;;  %1688 = vmatprep.subr.bf16.mxu1 %v1865_v0  ;;  %v107_v19 = vld [vmem:[%s3299_s0 + $0x300] sm:$0xff]  ;;  %v108_v23 = vld [vmem:[%s3299_s0 + $0x308] sm:$0xff] }
  0x58   :  { %736 = vmatmul.mubr.f32.gmra.mrb[10].mxu0 %v38_v24  ;;  %430 = vmatprep.mubr.f32.mxu1 %v42_v25  ;;  %v112_v24 = vld [vmem:[%s3299_s0 + $0x328] sm:$0xff]  ;;  %v114_v25 = vld [vmem:[%s3299_s0 + $0x338] sm:$0xff] }
  0x59   :  { %740 = vmatprep.mubr.f32.mxu0 %v44_v28  ;;  %1676 = vmatpush3.bf16.msra.mxu0 %v1675_v26  ;;  %v111_v26 = vld [vmem:[%s3299_s0 + $0x320] sm:$0xff]  ;;  %v113_v28 = vld [vmem:[%s3299_s0 + $0x330] sm:$0xff] }
  0x5a   :  { %1704 = vmatpush1.bf16.msra.mxu1 %v1981_v36  ;;  %1677 = vmatprep.subr.bf16.mxu0 %v1865_v0  ;;  %v48_v36 = vld [vmem:[%s3299_s0 + $0x128] sm:$0xff] }
  0x5b   :  { %431 = vmatmul.mubr.f32.gmra.mrb[12].mxu1 %v41_v32  ;;  %1689 = vmatprep.subr.bf16.mxu1 %v1865_v0  ;;  %v116_v32 = vld [vmem:[%s3299_s0 + $0x348] sm:$0xff] }
  0x5c   :  { %741 = vmatmul.mubr.f32.gmra.mrb[12].mxu0 %v43_v30  ;;  %435 = vmatprep.mubr.f32.mxu1 %v47_v33  ;;  %v118_v30 = vld [vmem:[%s3299_s0 + $0x358] sm:$0xff] }
  0x5d   :  { %745 = vmatprep.mubr.f32.mxu0 %v49_v37  ;;  %1679 = vmatpush3.bf16.msra.mxu0 %v1678_v35  ;;  %v122_v33 = vld [vmem:[%s3299_s0 + $0x378] sm:$0xff]  ;;  %v124_v35 = vld [vmem:[%s3299_s0 + $0x388] sm:$0xff]  ;;  %v121_v37 = vld [vmem:[%s3299_s0 + $0x370] sm:$0xff] }
  0x5e   :  { %1705 = vmatpush1.bf16.msra.mxu1 %v2004_v44  ;;  %1680 = vmatprep.subr.bf16.mxu0 %v1865_v0  ;;  %v57_v44 = vld [vmem:[%s3299_s0 + $0x170] sm:$0xff] }
  0x5f   :  { %436 = vmatmul.mubr.f32.gmra.mrb[14].mxu1 %v46_v40  ;;  %1690 = vmatprep.subr.bf16.mxu1 %v1865_v0  ;;  %v129_v40 = vld [vmem:[%s3299_s0 + $0x3b0] sm:$0xff] }
  0x60   :  { %746 = vmatmul.mubr.f32.gmra.mrb[14].mxu0 %v48_v36  ;;  %440 = vmatprep.mubr.f32.mxu1 %v52_v42  ;;  %v126_v36 = vld [vmem:[%s3299_s0 + $0x398] sm:$0xff]  ;;  %v128_v42 = vld [vmem:[%s3299_s0 + $0x3a8] sm:$0xff] }
  0x61   :  { %750 = vmatprep.mubr.f32.mxu0 %v54_v45  ;;  %1682 = vmatpush3.bf16.msra.mxu0 %v1681_v43  ;;  %v132_v43 = vld [vmem:[%s3299_s0 + $0x3c8] sm:$0xff]  ;;  %v134_v45 = vld [vmem:[%s3299_s0 + $0x3d8] sm:$0xff] }
  0x62   :  { %1706 = vmatpush1.bf16.msra.mxu1 %v2021_v50  ;;  %v64_v50 = vld [vmem:[%s3299_s0 + $0x1a8] sm:$0xff] }
  0x63   :  { %441 = vmatmul.mubr.f32.gmra.mrb[16].mxu1 %v51_v46  ;;  %1691 = vmatprep.subr.bf16.mxu1 %v1865_v0  ;;  %v131_v46 = vld [vmem:[%s3299_s0 + $0x3c0] sm:$0xff] }
  0x64   :  { %751 = vmatmul.mubr.f32.gmra.mrb[16].mxu0 %v53_v47  ;;  %445 = vmatprep.mubr.f32.mxu1 %v57_v44  ;;  %v133_v47 = vld [vmem:[%s3299_s0 + $0x3d0] sm:$0xff] }
  0x65   :  { %755 = vmatprep.mubr.f32.mxu0 %v59_v48  ;;  %v137_v44 = vld [vmem:[%s3299_s0 + $0x3f0] sm:$0xff]  ;;  %v136_v48 = vld [vmem:[%s3299_s0 + $0x3e8] sm:$0xff] }
  0x66   :  { %1707 = vmatpush1.bf16.msra.mxu1 %v2038_v56  ;;  %v69_v56 = vld [vmem:[%s3299_s0 + $0x1d0] sm:$0xff] }
  0x67   :  { %446 = vmatmul.mubr.f32.gmra.mrb[18].mxu1 %v56_v49  ;;  %1692 = vmatprep.subr.bf16.mxu1 %v1865_v0  ;;  %v1867_v49 = vmov 0.0  }
  0x68   :  { %756 = vmatmul.mubr.f32.gmra.mrb[18].mxu0 %v58_v51  ;;  %450 = vmatprep.mubr.f32.mxu1 %v62_v52  ;;  %v15_v51 = vld [vmem:[%s3299_s0 + $0x20] sm:$0xff]  ;;  %v142_v52 = vld [vmem:[%s3299_s0 + $0x418] sm:$0xff] }
  0x69   :  { %760 = vmatprep.mubr.f32.mxu0 %v64_v50  ;;  %v141_v50 = vld [vmem:[%s3299_s0 + $0x410] sm:$0xff] }
  0x6a   :  { %1708 = vmatpush1.bf16.msra.mxu1 %v2055_v62  ;;  %v74_v62 = vld [vmem:[%s3299_s0 + $0x1f8] sm:$0xff] }
  0x6b   :  { %451 = vmatmul.mubr.f32.gmra.mrb[20].mxu1 %v61_v53  ;;  %1693 = vmatprep.subr.bf16.mxu1 %v1865_v0  ;;  %v20_v53 = vld [vmem:[%s3299_s0 + $0x48] sm:$0xff] }
  0x6c   :  { %761 = vmatmul.mubr.f32.gmra.mrb[20].mxu0 %v63_v54  ;;  %455 = vmatprep.mubr.f32.mxu1 %v67_v55  ;;  %v147_v54 = vld [vmem:[%s3299_s0 + $0x440] sm:$0xff]  ;;  %v146_v55 = vld [vmem:[%s3299_s0 + $0x438] sm:$0xff] }
  0x6d   :  { %765 = vmatprep.mubr.f32.mxu0 %v69_v56  ;;  %v25_v56 = vld [vmem:[%s3299_s0 + $0x70] sm:$0xff] }
  0x6e   :  { %1709 = vmatpush1.bf16.msra.mxu1 %v2072_v5  ;;  %v79_v5 = vld [vmem:[%s3299_s0 + $0x220] sm:$0xff] }
  0x6f   :  { %456 = vmatmul.mubr.f32.gmra.mrb[22].mxu1 %v66_v57  ;;  %1694 = vmatprep.subr.bf16.mxu1 %v1865_v0  ;;  %v152_v57 = vld [vmem:[%s3299_s0 + $0x468] sm:$0xff] }
  0x70   :  { %766 = vmatmul.mubr.f32.gmra.mrb[22].mxu0 %v68_v58  ;;  %460 = vmatprep.mubr.f32.mxu1 %v72_v59  ;;  %v151_v58 = vld [vmem:[%s3299_s0 + $0x460] sm:$0xff]  ;;  %v30_v59 = vld [vmem:[%s3299_s0 + $0x98] sm:$0xff] }
  0x71   :  { %770 = vmatprep.mubr.f32.mxu0 %v74_v62  ;;  %v157_v62 = vld [vmem:[%s3299_s0 + $0x490] sm:$0xff] }
  0x72   :  { %1710 = vmatpush1.bf16.msra.mxu1 %v2089_v13  ;;  %v84_v13 = vld [vmem:[%s3299_s0 + $0x248] sm:$0xff] }
  0x73   :  { %461 = vmatmul.mubr.f32.gmra.mrb[24].mxu1 %v71_v60  ;;  %1695 = vmatprep.subr.bf16.mxu1 %v1865_v0  ;;  %v156_v60 = vld [vmem:[%s3299_s0 + $0x488] sm:$0xff] }
  0x74   :  { %771 = vmatmul.mubr.f32.gmra.mrb[24].mxu0 %v73_v8  ;;  %465 = vmatprep.mubr.f32.mxu1 %v77_v61  ;;  %v35_v8 = vld [vmem:[%s3299_s0 + $0xc0] sm:$0xff]  ;;  %v162_v61 = vld [vmem:[%s3299_s0 + $0x4b8] sm:$0xff] }
  0x75   :  { %775 = vmatprep.mubr.f32.mxu0 %v79_v5  ;;  %v161_v5 = vld [vmem:[%s3299_s0 + $0x4b0] sm:$0xff] }
  0x76   :  { %1711 = vmatpush1.bf16.msra.mxu1 %v2106_v20  ;;  %v89_v20 = vld [vmem:[%s3299_s0 + $0x270] sm:$0xff] }
  0x77   :  { %466 = vmatmul.mubr.f32.gmra.mrb[26].mxu1 %v76_v63  ;;  %1696 = vmatprep.subr.bf16.mxu1 %v1865_v0  ;;  %v40_v63 = vld [vmem:[%s3299_s0 + $0xe8] sm:$0xff] }
  0x78   :  { %776 = vmatmul.mubr.f32.gmra.mrb[26].mxu0 %v78_v1  ;;  %470 = vmatprep.mubr.f32.mxu1 %v82_v2  ;;  %v167_v1 = vld [vmem:[%s3299_s0 + $0x4e0] sm:$0xff]  ;;  %v166_v2 = vld [vmem:[%s3299_s0 + $0x4d8] sm:$0xff] }
  0x79   :  { %780 = vmatprep.mubr.f32.mxu0 %v84_v13  ;;  %v45_v13 = vld [vmem:[%s3299_s0 + $0x110] sm:$0xff] }
  0x7a   :  { %1712 = vmatpush1.bf16.msra.mxu1 %v2123_v27  ;;  %v94_v27 = vld [vmem:[%s3299_s0 + $0x298] sm:$0xff] }
  0x7b   :  { %471 = vmatmul.mubr.f32.gmra.mrb[28].mxu1 %v81_v3  ;;  %1697 = vmatprep.subr.bf16.mxu1 %v1865_v0  ;;  %v172_v3 = vld [vmem:[%s3299_s0 + $0x508] sm:$0xff] }
  0x7c   :  { %781 = vmatmul.mubr.f32.gmra.mrb[28].mxu0 %v83_v4  ;;  %475 = vmatprep.mubr.f32.mxu1 %v87_v6  ;;  %v171_v4 = vld [vmem:[%s3299_s0 + $0x500] sm:$0xff]  ;;  %v50_v6 = vld [vmem:[%s3299_s0 + $0x138] sm:$0xff] }
  0x7d   :  { %785 = vmatprep.mubr.f32.mxu0 %v89_v20  ;;  %v177_v20 = vld [vmem:[%s3299_s0 + $0x530] sm:$0xff] }
  0x7e   :  { %1713 = vmatpush1.bf16.msra.mxu1 %v2140_v34  ;;  %v99_v34 = vld [vmem:[%s3299_s0 + $0x2c0] sm:$0xff] }
  0x7f   :  { %476 = vmatmul.mubr.f32.gmra.mrb[30].mxu1 %v86_v12  ;;  %1698 = vmatprep.subr.bf16.mxu1 %v1865_v0  ;;  %v96_v0 = vld [vmem:[%s3299_s0 + $0x2a8] sm:$0xff] }
  0x80   :  { %786 = vmatmul.mubr.f32.gmra.mrb[30].mxu0 %v88_v7  ;;  %480 = vmatprep.mubr.f32.mxu1 %v92_v9  ;;  %v176_v12 = vld [vmem:[%s3299_s0 + $0x528] sm:$0xff]  ;;  %v55_v7 = vld [vmem:[%s3299_s0 + $0x160] sm:$0xff]  ;;  %v182_v9 = vld [vmem:[%s3299_s0 + $0x558] sm:$0xff] }
  0x81   :  { %790 = vmatprep.mubr.f32.mxu0 %v94_v27  ;;  %v181_v27 = vld [vmem:[%s3299_s0 + $0x550] sm:$0xff] }
  0x82   :  { %1714 = vmatpush1.bf16.msra.mxu1 %v2157_v41  ;;  %v104_v41 = vld [vmem:[%s3299_s0 + $0x2e8] sm:$0xff] }
  0x83   :  { %481 = vmatmul.mubr.f32.gmra.mrb[32].mxu1 %v91_v10  ;;  %v60_v10 = vld [vmem:[%s3299_s0 + $0x188] sm:$0xff] }
  0x84   :  { %791 = vmatmul.mubr.f32.gmra.mrb[32].mxu0 %v93_v11  ;;  %485 = vmatprep.mubr.f32.mxu1 %v97_v14  ;;  %v187_v11 = vld [vmem:[%s3299_s0 + $0x580] sm:$0xff]  ;;  %v186_v14 = vld [vmem:[%s3299_s0 + $0x578] sm:$0xff] }
  0x85   :  { %795 = vmatprep.mubr.f32.mxu0 %v99_v34  ;;  %v65_v34 = vld [vmem:[%s3299_s0 + $0x1b0] sm:$0xff] }
  0x87   :  { %486 = vmatmul.mubr.f32.gmra.mrb[34].mxu1 %v96_v0  ;;  %v192_v0 = vld [vmem:[%s3299_s0 + $0x5a8] sm:$0xff] }
  0x88   :  { %796 = vmatmul.mubr.f32.gmra.mrb[34].mxu0 %v98_v15  ;;  %490 = vmatprep.mubr.f32.mxu1 %v102_v18  ;;  %v191_v15 = vld [vmem:[%s3299_s0 + $0x5a0] sm:$0xff]  ;;  %v70_v18 = vld [vmem:[%s3299_s0 + $0x1d8] sm:$0xff] }
  0x89   :  { %800 = vmatprep.mubr.f32.mxu0 %v104_v41  ;;  %v197_v41 = vld [vmem:[%s3299_s0 + $0x5d0] sm:$0xff] }
  0x8b   :  { %491 = vmatmul.mubr.f32.gmra.mrb[36].mxu1 %v101_v16  ;;  %v196_v16 = vld [vmem:[%s3299_s0 + $0x5c8] sm:$0xff] }
  0x8c   :  { %801 = vmatmul.mubr.f32.gmra.mrb[36].mxu0 %v103_v17  ;;  %495 = vmatprep.mubr.f32.mxu1 %v107_v19  ;;  %v75_v17 = vld [vmem:[%s3299_s0 + $0x200] sm:$0xff]  ;;  %v202_v19 = vld [vmem:[%s3299_s0 + $0x5f8] sm:$0xff] }
  0x8d   :  { %805 = vmatprep.mubr.f32.mxu0 %v109_v21  ;;  %v201_v21 = vld [vmem:[%s3299_s0 + $0x5f0] sm:$0xff] }
  0x8f   :  { %496 = vmatmul.mubr.f32.gmra.mrb[38].mxu1 %v106_v22  ;;  %v80_v22 = vld [vmem:[%s3299_s0 + $0x228] sm:$0xff] }
  0x90   :  { %806 = vmatmul.mubr.f32.gmra.mrb[38].mxu0 %v108_v23  ;;  %500 = vmatprep.mubr.f32.mxu1 %v112_v24  ;;  %v207_v23 = vld [vmem:[%s3299_s0 + $0x620] sm:$0xff]  ;;  %v206_v24 = vld [vmem:[%s3299_s0 + $0x618] sm:$0xff] }
  0x91   :  { %810 = vmatprep.mubr.f32.mxu0 %v114_v25  ;;  %v85_v25 = vld [vmem:[%s3299_s0 + $0x250] sm:$0xff] }
  0x93   :  { %501 = vmatmul.mubr.f32.gmra.mrb[40].mxu1 %v111_v26  ;;  %v212_v26 = vld [vmem:[%s3299_s0 + $0x648] sm:$0xff] }
  0x94   :  { %811 = vmatmul.mubr.f32.gmra.mrb[40].mxu0 %v113_v28  ;;  %505 = vmatprep.mubr.f32.mxu1 %v117_v29  ;;  %v211_v28 = vld [vmem:[%s3299_s0 + $0x640] sm:$0xff]  ;;  %v90_v29 = vld [vmem:[%s3299_s0 + $0x278] sm:$0xff] }
  0x95   :  { %815 = vmatprep.mubr.f32.mxu0 %v119_v31  ;;  %v217_v31 = vld [vmem:[%s3299_s0 + $0x670] sm:$0xff] }
  0x97   :  { %506 = vmatmul.mubr.f32.gmra.mrb[42].mxu1 %v116_v32  ;;  %v216_v32 = vld [vmem:[%s3299_s0 + $0x668] sm:$0xff] }
  0x98   :  { %816 = vmatmul.mubr.f32.gmra.mrb[42].mxu0 %v118_v30  ;;  %510 = vmatprep.mubr.f32.mxu1 %v122_v33  ;;  %v95_v30 = vld [vmem:[%s3299_s0 + $0x2a0] sm:$0xff]  ;;  %v222_v33 = vld [vmem:[%s3299_s0 + $0x698] sm:$0xff] }
  0x99   :  { %820 = vmatprep.mubr.f32.mxu0 %v124_v35  ;;  %v221_v35 = vld [vmem:[%s3299_s0 + $0x690] sm:$0xff] }
  0x9b   :  { %511 = vmatmul.mubr.f32.gmra.mrb[44].mxu1 %v121_v37  ;;  %v100_v37 = vld [vmem:[%s3299_s0 + $0x2c8] sm:$0xff] }
  0x9c   :  { %821 = vmatmul.mubr.f32.gmra.mrb[44].mxu0 %v123_v38  ;;  %515 = vmatprep.mubr.f32.mxu1 %v127_v39  ;;  %v227_v38 = vld [vmem:[%s3299_s0 + $0x6c0] sm:$0xff]  ;;  %v226_v39 = vld [vmem:[%s3299_s0 + $0x6b8] sm:$0xff] }
  0x9d   :  { %825 = vmatprep.mubr.f32.mxu0 %v129_v40  ;;  %v105_v40 = vld [vmem:[%s3299_s0 + $0x2f0] sm:$0xff] }
  0x9f   :  { %516 = vmatmul.mubr.f32.gmra.mrb[46].mxu1 %v126_v36  ;;  %v232_v36 = vld [vmem:[%s3299_s0 + $0x6e8] sm:$0xff] }
  0xa0   :  { %826 = vmatmul.mubr.f32.gmra.mrb[46].mxu0 %v128_v42  ;;  %520 = vmatprep.mubr.f32.mxu1 %v132_v43  ;;  %v231_v42 = vld [vmem:[%s3299_s0 + $0x6e0] sm:$0xff]  ;;  %v110_v43 = vld [vmem:[%s3299_s0 + $0x318] sm:$0xff] }
  0xa1   :  { %830 = vmatprep.mubr.f32.mxu0 %v134_v45  ;;  %v237_v45 = vld [vmem:[%s3299_s0 + $0x710] sm:$0xff] }
  0xa3   :  { %521 = vmatmul.mubr.f32.gmra.mrb[48].mxu1 %v131_v46  ;;  %v236_v46 = vld [vmem:[%s3299_s0 + $0x708] sm:$0xff] }
  0xa4   :  { %831 = vmatmul.mubr.f32.gmra.mrb[48].mxu0 %v133_v47  ;;  %525 = vmatprep.mubr.f32.mxu1 %v137_v44  ;;  %v115_v47 = vld [vmem:[%s3299_s0 + $0x340] sm:$0xff]  ;;  %v242_v44 = vld [vmem:[%s3299_s0 + $0x738] sm:$0xff] }
  0xa5   :  { %1416 = vmatprep.mubr.msk.f32.mxu0 %vm1866_vm0, %v1867_v49 }
  0xa7   :  { %526 = vmatmul.mubr.f32.gmra.mrb[50].mxu1 %v136_v48  ;;  %v241_v48 = vld [vmem:[%s3299_s0 + $0x730] sm:$0xff] }
  0xa8   :  { %1417 = vmatmul.mubr.f32.vlgmr.msra.gmra.mrb[0].mxu0 %v15_v51  ;;  %530 = vmatprep.mubr.f32.mxu1 %v142_v52  ;;  %v120_v51 = vld [vmem:[%s3299_s0 + $0x368] sm:$0xff]  ;;  %v247_v52 = vld [vmem:[%s3299_s0 + $0x760] sm:$0xff] }
  0xa9   :  { %1419 = vmatprep.mubr.msk.f32.mxu0 %vm1866_vm0, %v1867_v49 }
  0xab   :  { %531 = vmatmul.mubr.f32.gmra.mrb[52].mxu1 %v141_v50  ;;  %v246_v50 = vld [vmem:[%s3299_s0 + $0x758] sm:$0xff] }
  0xac   :  { %1420 = vmatmul.mubr.f32.gmra.mrb[2].mxu0 %v20_v53  ;;  %535 = vmatprep.mubr.f32.mxu1 %v147_v54  ;;  %v125_v53 = vld [vmem:[%s3299_s0 + $0x390] sm:$0xff]  ;;  %v252_v54 = vld [vmem:[%s3299_s0 + $0x788] sm:$0xff] }
  0xad   :  { %1422 = vmatprep.mubr.msk.f32.mxu0 %vm1866_vm0, %v1867_v49 }
  0xaf   :  { %536 = vmatmul.mubr.f32.gmra.mrb[54].mxu1 %v146_v55  ;;  %v251_v55 = vld [vmem:[%s3299_s0 + $0x780] sm:$0xff] }
  0xb0   :  { %1423 = vmatmul.mubr.f32.gmra.mrb[4].mxu0 %v25_v56  ;;  %540 = vmatprep.mubr.f32.mxu1 %v152_v57  ;;  %v130_v56 = vld [vmem:[%s3299_s0 + $0x3b8] sm:$0xff]  ;;  %v139_v57 = vld [vmem:[%s3299_s0 + $0x400] sm:$0xff] }
  0xb1   :  { %1425 = vmatprep.mubr.msk.f32.mxu0 %vm1866_vm0, %v1867_v49 }
  0xb3   :  { %541 = vmatmul.mubr.f32.gmra.mrb[56].mxu1 %v151_v58  ;;  %v138_v58 = vld [vmem:[%s3299_s0 + $0x3f8] sm:$0xff] }
  0xb4   :  { %1426 = vmatmul.mubr.f32.gmra.mrb[6].mxu0 %v30_v59  ;;  %545 = vmatprep.mubr.f32.mxu1 %v157_v62  ;;  %v135_v59 = vld [vmem:[%s3299_s0 + $0x3e0] sm:$0xff]  ;;  %v144_v62 = vld [vmem:[%s3299_s0 + $0x428] sm:$0xff] }
  0xb5   :  { %1428 = vmatprep.mubr.msk.f32.mxu0 %vm1866_vm0, %v1867_v49 }
  0xb7   :  { %546 = vmatmul.mubr.f32.gmra.mrb[58].mxu1 %v156_v60  ;;  %v143_v60 = vld [vmem:[%s3299_s0 + $0x420] sm:$0xff] }
  0xb8   :  { %1429 = vmatmul.mubr.f32.gmra.mrb[8].mxu0 %v35_v8  ;;  %550 = vmatprep.mubr.f32.mxu1 %v162_v61  ;;  %v140_v8 = vld [vmem:[%s3299_s0 + $0x408] sm:$0xff]  ;;  %v149_v61 = vld [vmem:[%s3299_s0 + $0x450] sm:$0xff] }
  0xb9   :  { %1431 = vmatprep.mubr.msk.f32.mxu0 %vm1866_vm0, %v1867_v49 }
  0xbb   :  { %551 = vmatmul.mubr.f32.gmra.mrb[60].mxu1 %v161_v5  ;;  %v148_v5 = vld [vmem:[%s3299_s0 + $0x448] sm:$0xff] }
  0xbc   :  { %1432 = vmatmul.mubr.f32.gmra.mrb[10].mxu0 %v40_v63  ;;  %555 = vmatprep.mubr.f32.mxu1 %v167_v1  ;;  %v145_v63 = vld [vmem:[%s3299_s0 + $0x430] sm:$0xff]  ;;  %v154_v1 = vld [vmem:[%s3299_s0 + $0x478] sm:$0xff] }
  0xbd   :  { %1434 = vmatprep.mubr.msk.f32.mxu0 %vm1866_vm0, %v1867_v49 }
  0xbf   :  { %556 = vmatmul.mubr.f32.gmra.mrb[62].mxu1 %v166_v2  ;;  %v153_v2 = vld [vmem:[%s3299_s0 + $0x470] sm:$0xff] }
  0xc0   :  { %1435 = vmatmul.mubr.f32.gmra.mrb[12].mxu0 %v45_v13  ;;  %560 = vmatprep.mubr.f32.mxu1 %v172_v3  ;;  %v150_v13 = vld [vmem:[%s3299_s0 + $0x458] sm:$0xff]  ;;  %v159_v3 = vld [vmem:[%s3299_s0 + $0x4a0] sm:$0xff] }
  0xc1   :  { %1437 = vmatprep.mubr.msk.f32.mxu0 %vm1866_vm0, %v1867_v49 }
  0xc3   :  { %561 = vmatmul.mubr.f32.gmra.mrb[64].mxu1 %v171_v4  ;;  %v158_v4 = vld [vmem:[%s3299_s0 + $0x498] sm:$0xff] }
  0xc4   :  { %1438 = vmatmul.mubr.f32.gmra.mrb[14].mxu0 %v50_v6  ;;  %565 = vmatprep.mubr.f32.mxu1 %v177_v20  ;;  %v155_v6 = vld [vmem:[%s3299_s0 + $0x480] sm:$0xff]  ;;  %v164_v20 = vld [vmem:[%s3299_s0 + $0x4c8] sm:$0xff] }
  0xc5   :  { %1440 = vmatprep.mubr.msk.f32.mxu0 %vm1866_vm0, %v1867_v49 }
  0xc7   :  { %566 = vmatmul.mubr.f32.gmra.mrb[66].mxu1 %v176_v12 }
  0xc8   :  { %1441 = vmatmul.mubr.f32.gmra.mrb[16].mxu0 %v55_v7  ;;  %570 = vmatprep.mubr.f32.mxu1 %v182_v9  ;;  %v163_v9 = vld [vmem:[%s3299_s0 + $0x4c0] sm:$0xff] }
  0xc9   :  { %1443 = vmatprep.mubr.msk.f32.mxu0 %vm1866_vm0, %v1867_v49 }
  0xcb   :  { %571 = vmatmul.mubr.f32.gmra.mrb[68].mxu1 %v181_v27  ;;  %v160_v27 = vld [vmem:[%s3299_s0 + $0x4a8] sm:$0xff] }
  0xcc   :  { %1444 = vmatmul.mubr.f32.gmra.mrb[18].mxu0 %v60_v10  ;;  %575 = vmatprep.mubr.f32.mxu1 %v187_v11  ;;  %v169_v10 = vld [vmem:[%s3299_s0 + $0x4f0] sm:$0xff] }
  0xcd   :  { %1446 = vmatprep.mubr.msk.f32.mxu0 %vm1866_vm0, %v1867_v49 }
  0xcf   :  { %576 = vmatmul.mubr.f32.gmra.mrb[70].mxu1 %v186_v14 }
  0xd0   :  { %1447 = vmatmul.mubr.f32.gmra.mrb[20].mxu0 %v65_v34  ;;  %580 = vmatprep.mubr.f32.mxu1 %v192_v0  ;;  %v168_v34 = vld [vmem:[%s3299_s0 + $0x4e8] sm:$0xff]  ;;  %v165_v0 = vld [vmem:[%s3299_s0 + $0x4d0] sm:$0xff] }
  0xd1   :  { %1449 = vmatprep.mubr.msk.f32.mxu0 %vm1866_vm0, %v1867_v49 }
  0xd3   :  { %581 = vmatmul.mubr.f32.gmra.mrb[72].mxu1 %v191_v15  ;;  %v174_v15 = vld [vmem:[%s3299_s0 + $0x518] sm:$0xff] }
  0xd4   :  { %1450 = vmatmul.mubr.f32.gmra.mrb[22].mxu0 %v70_v18  ;;  %585 = vmatprep.mubr.f32.mxu1 %v197_v41 }
  0xd5   :  { %1452 = vmatprep.mubr.msk.f32.mxu0 %vm1866_vm0, %v1867_v49 }
  0xd7   :  { %586 = vmatmul.mubr.f32.gmra.mrb[74].mxu1 %v196_v16  ;;  %v173_v16 = vld [vmem:[%s3299_s0 + $0x510] sm:$0xff] }
  0xd8   :  { %1453 = vmatmul.mubr.f32.gmra.mrb[24].mxu0 %v75_v17  ;;  %590 = vmatprep.mubr.f32.mxu1 %v202_v19  ;;  %v170_v17 = vld [vmem:[%s3299_s0 + $0x4f8] sm:$0xff]  ;;  %v179_v19 = vld [vmem:[%s3299_s0 + $0x540] sm:$0xff] }
  0xd9   :  { %1455 = vmatprep.mubr.msk.f32.mxu0 %vm1866_vm0, %v1867_v49 }
  0xdb   :  { %591 = vmatmul.mubr.f32.gmra.mrb[76].mxu1 %v201_v21 }
  0xdc   :  { %1456 = vmatmul.mubr.f32.gmra.mrb[26].mxu0 %v80_v22  ;;  %595 = vmatprep.mubr.f32.mxu1 %v207_v23  ;;  %v178_v23 = vld [vmem:[%s3299_s0 + $0x538] sm:$0xff] }
  0xdd   :  { %1458 = vmatprep.mubr.msk.f32.mxu0 %vm1866_vm0, %v1867_v49 }
  0xdf   :  { %596 = vmatmul.mubr.f32.gmra.mrb[78].mxu1 %v206_v24  ;;  %v175_v24 = vld [vmem:[%s3299_s0 + $0x520] sm:$0xff] }
  0xe0   :  { %1459 = vmatmul.mubr.f32.gmra.mrb[28].mxu0 %v85_v25  ;;  %600 = vmatprep.mubr.f32.mxu1 %v212_v26  ;;  %v184_v25 = vld [vmem:[%s3299_s0 + $0x568] sm:$0xff] }
  0xe1   :  { %1461 = vmatprep.mubr.msk.f32.mxu0 %vm1866_vm0, %v1867_v49 }
  0xe3   :  { %601 = vmatmul.mubr.f32.gmra.mrb[80].mxu1 %v211_v28 }
  0xe4   :  { %1462 = vmatmul.mubr.f32.gmra.mrb[30].mxu0 %v90_v29  ;;  %605 = vmatprep.mubr.f32.mxu1 %v217_v31  ;;  %v183_v29 = vld [vmem:[%s3299_s0 + $0x560] sm:$0xff]  ;;  %v180_v31 = vld [vmem:[%s3299_s0 + $0x548] sm:$0xff] }
  0xe5   :  { %1464 = vmatprep.mubr.msk.f32.mxu0 %vm1866_vm0, %v1867_v49 }
  0xe7   :  { %606 = vmatmul.mubr.f32.gmra.mrb[82].mxu1 %v216_v32  ;;  %v189_v32 = vld [vmem:[%s3299_s0 + $0x590] sm:$0xff] }
  0xe8   :  { %1465 = vmatmul.mubr.f32.gmra.mrb[32].mxu0 %v95_v30  ;;  %610 = vmatprep.mubr.f32.mxu1 %v222_v33 }
  0xe9   :  { %1467 = vmatprep.mubr.msk.f32.mxu0 %vm1866_vm0, %v1867_v49 }
  0xeb   :  { %611 = vmatmul.mubr.f32.gmra.mrb[84].mxu1 %v221_v35  ;;  %v188_v35 = vld [vmem:[%s3299_s0 + $0x588] sm:$0xff] }
  0xec   :  { %1468 = vmatmul.mubr.f32.gmra.mrb[34].mxu0 %v100_v37  ;;  %615 = vmatprep.mubr.f32.mxu1 %v227_v38  ;;  %v185_v37 = vld [vmem:[%s3299_s0 + $0x570] sm:$0xff]  ;;  %v194_v38 = vld [vmem:[%s3299_s0 + $0x5b8] sm:$0xff] }
  0xed   :  { %1470 = vmatprep.mubr.msk.f32.mxu0 %vm1866_vm0, %v1867_v49 }
  0xef   :  { %616 = vmatmul.mubr.f32.gmra.mrb[86].mxu1 %v226_v39 }
  0xf0   :  { %1471 = vmatmul.mubr.f32.gmra.mrb[36].mxu0 %v105_v40  ;;  %620 = vmatprep.mubr.f32.mxu1 %v232_v36  ;;  %v193_v36 = vld [vmem:[%s3299_s0 + $0x5b0] sm:$0xff] }
  0xf1   :  { %1473 = vmatprep.mubr.msk.f32.mxu0 %vm1866_vm0, %v1867_v49 }
  0xf3   :  { %621 = vmatmul.mubr.f32.gmra.mrb[88].mxu1 %v231_v42  ;;  %v190_v42 = vld [vmem:[%s3299_s0 + $0x598] sm:$0xff] }
  0xf4   :  { %1474 = vmatmul.mubr.f32.gmra.mrb[38].mxu0 %v110_v43  ;;  %625 = vmatprep.mubr.f32.mxu1 %v237_v45  ;;  %v199_v43 = vld [vmem:[%s3299_s0 + $0x5e0] sm:$0xff] }
  0xf5   :  { %1476 = vmatprep.mubr.msk.f32.mxu0 %vm1866_vm0, %v1867_v49 }
  0xf7   :  { %626 = vmatmul.mubr.f32.gmra.mrb[90].mxu1 %v236_v46 }
  0xf8   :  { %1477 = vmatmul.mubr.f32.gmra.mrb[40].mxu0 %v115_v47  ;;  %630 = vmatprep.mubr.f32.mxu1 %v242_v44  ;;  %v198_v47 = vld [vmem:[%s3299_s0 + $0x5d8] sm:$0xff]  ;;  %v195_v44 = vld [vmem:[%s3299_s0 + $0x5c0] sm:$0xff] }
  0xf9   :  { %1479 = vmatprep.mubr.msk.f32.mxu0 %vm1866_vm0, %v1867_v49 }
  0xfb   :  { %631 = vmatmul.mubr.f32.gmra.mrb[92].mxu1 %v241_v48  ;;  %v204_v48 = vld [vmem:[%s3299_s0 + $0x608] sm:$0xff] }
  0xfc   :  { %1480 = vmatmul.mubr.f32.gmra.mrb[42].mxu0 %v120_v51  ;;  %635 = vmatprep.mubr.f32.mxu1 %v247_v52 }
  0xfd   :  { %1482 = vmatprep.mubr.msk.f32.mxu0 %vm1866_vm0, %v1867_v49 }
  0xff   :  { %636 = vmatmul.mubr.f32.gmra.mrb[94].mxu1 %v246_v50  ;;  %v203_v50 = vld [vmem:[%s3299_s0 + $0x600] sm:$0xff] }
 0x100   :  { %1483 = vmatmul.mubr.f32.gmra.mrb[44].mxu0 %v125_v53  ;;  %640 = vmatprep.mubr.f32.mxu1 %v252_v54  ;;  %v200_v53 = vld [vmem:[%s3299_s0 + $0x5e8] sm:$0xff]  ;;  %v209_v54 = vld [vmem:[%s3299_s0 + $0x630] sm:$0xff] }
 0x101   :  { %1485 = vmatprep.mubr.msk.f32.mxu0 %vm1866_vm0, %v1867_v49 }
 0x103   :  { %641 = vmatmul.mubr.f32.gmra.mrb[96].mxu1 %v251_v55 }
 0x104   :  { %1486 = vmatmul.mubr.f32.gmra.mrb[46].mxu0 %v130_v56  ;;  %835 = vmatprep.mubr.f32.mxu1 %v139_v57  ;;  %v208_v57 = vld [vmem:[%s3299_s0 + $0x628] sm:$0xff] }
 0x105   :  { %1488 = vmatprep.mubr.msk.f32.mxu0 %vm1866_vm0, %v1867_v49 }
 0x107   :  { %836 = vmatmul.mubr.f32.vlgmr.msra.gmra.mrb[50].mxu1 %v138_v58  ;;  %v205_v58 = vld [vmem:[%s3299_s0 + $0x610] sm:$0xff] }
 0x108   :  { %1489 = vmatmul.mubr.f32.gmra.mrb[48].mxu0 %v135_v59  ;;  %840 = vmatprep.mubr.f32.mxu1 %v144_v62  ;;  %v214_v59 = vld [vmem:[%s3299_s0 + $0x658] sm:$0xff] }
 0x109   :  { %1491 = vmatprep.mubr.msk.f32.mxu0 %vm1866_vm0, %v1867_v49 }
 0x10b   :  { %841 = vmatmul.mubr.f32.gmra.mrb[52].mxu1 %v143_v60 }
 0x10c   :  { %1492 = vmatmul.mubr.f32.gmra.mrb[50].mxu0 %v140_v8  ;;  %845 = vmatprep.mubr.f32.mxu1 %v149_v61  ;;  %v213_v8 = vld [vmem:[%s3299_s0 + $0x650] sm:$0xff]  ;;  %v210_v61 = vld [vmem:[%s3299_s0 + $0x638] sm:$0xff] }
 0x10d   :  { %1494 = vmatprep.mubr.msk.f32.mxu0 %vm1866_vm0, %v1867_v49 }
 0x10f   :  { %846 = vmatmul.mubr.f32.gmra.mrb[54].mxu1 %v148_v5  ;;  %v219_v5 = vld [vmem:[%s3299_s0 + $0x680] sm:$0xff] }
 0x110   :  { %1495 = vmatmul.mubr.f32.gmra.mrb[52].mxu0 %v145_v63  ;;  %850 = vmatprep.mubr.f32.mxu1 %v154_v1 }
 0x111   :  { %1497 = vmatprep.mubr.msk.f32.mxu0 %vm1866_vm0, %v1867_v49 }
 0x113   :  { %851 = vmatmul.mubr.f32.gmra.mrb[56].mxu1 %v153_v2  ;;  %v218_v2 = vld [vmem:[%s3299_s0 + $0x678] sm:$0xff] }
 0x114   :  { %1498 = vmatmul.mubr.f32.gmra.mrb[54].mxu0 %v150_v13  ;;  %855 = vmatprep.mubr.f32.mxu1 %v159_v3  ;;  %v215_v13 = vld [vmem:[%s3299_s0 + $0x660] sm:$0xff]  ;;  %v224_v3 = vld [vmem:[%s3299_s0 + $0x6a8] sm:$0xff] }
 0x115   :  { %1500 = vmatprep.mubr.msk.f32.mxu0 %vm1866_vm0, %v1867_v49 }
 0x116   :  { %v2865_v12 = vpop.f32.mrb[0].mxu1 }
 0x117   :  { %856 = vmatmul.mubr.f32.gmra.mrb[58].mxu1 %v158_v4  ;;  %v404_v7 = vpop.f32.mrb[1].mxu1 }
 0x118   :  { %1501 = vmatmul.mubr.f32.gmra.mrb[56].mxu0 %v155_v6  ;;  %860 = vmatprep.mubr.f32.mxu1 %v164_v20  ;;  %v223_v20 = vld [vmem:[%s3299_s0 + $0x6a0] sm:$0xff]  ;;  %v220_v7 = vld [vmem:[%s3299_s0 + $0x688] sm:$0xff] }
 0x119   :  { %1503 = vmatprep.mubr.msk.f32.mxu0 %vm1866_vm0, %v1867_v49 }
 0x11a   :  { %v2878_v11 = vpop.f32.mrb[2].mxu1 }
 0x11b   :  { %861 = vmatmul.mubr.f32.gmra.mrb[60].mxu1 %v163_v9  ;;  %v409_v14 = vpop.f32.mrb[3].mxu1  ;;  %v229_v9 = vld [vmem:[%s3299_s0 + $0x6d0] sm:$0xff] }
 0x11c   :  { %1504 = vmatmul.mubr.f32.gmra.mrb[58].mxu0 %v160_v27  ;;  %865 = vmatprep.mubr.f32.mxu1 %v169_v10  ;;  %v228_v14 = vld [vmem:[%s3299_s0 + $0x6c8] sm:$0xff] }
 0x11d   :  { %1506 = vmatprep.mubr.msk.f32.mxu0 %vm1866_vm0, %v1867_v49 }
 0x11e   :  { %v2891_v18 = vpop.f32.mrb[4].mxu1 }
 0x11f   :  { %866 = vmatmul.mubr.f32.gmra.mrb[62].mxu1 %v168_v34  ;;  %v414_v41 = vpop.f32.mrb[5].mxu1  ;;  %v225_v34 = vld [vmem:[%s3299_s0 + $0x6b0] sm:$0xff] }
 0x120   :  { %1507 = vmatmul.mubr.f32.gmra.mrb[60].mxu0 %v165_v0  ;;  %870 = vmatprep.mubr.f32.mxu1 %v174_v15  ;;  %v234_v0 = vld [vmem:[%s3299_s0 + $0x6f8] sm:$0xff] }
 0x121   :  { %1509 = vmatprep.mubr.msk.f32.mxu0 %vm1866_vm0, %v1867_v49 }
 0x122   :  { %v2904_v21 = vpop.f32.mrb[6].mxu1 }
 0x123   :  { %871 = vmatmul.mubr.f32.gmra.mrb[64].mxu1 %v173_v16  ;;  %v419_v22 = vpop.f32.mrb[7].mxu1  ;;  %v233_v16 = vld [vmem:[%s3299_s0 + $0x6f0] sm:$0xff] }
 0x124   :  { %1510 = vmatmul.mubr.f32.gmra.mrb[62].mxu0 %v170_v17  ;;  %875 = vmatprep.mubr.f32.mxu1 %v179_v19  ;;  %v230_v17 = vld [vmem:[%s3299_s0 + $0x6d8] sm:$0xff]  ;;  %v239_v19 = vld [vmem:[%s3299_s0 + $0x720] sm:$0xff] }
 0x125   :  { %1512 = vmatprep.mubr.msk.f32.mxu0 %vm1866_vm0, %v1867_v49 }
 0x126   :  { %v2917_v26 = vpop.f32.mrb[8].mxu1 }
 0x127   :  { %876 = vmatmul.mubr.f32.gmra.mrb[66].mxu1 %v178_v23  ;;  %v424_v28 = vpop.f32.mrb[9].mxu1 }
 0x128   :  { %1513 = vmatmul.mubr.f32.gmra.mrb[64].mxu0 %v175_v24  ;;  %880 = vmatprep.mubr.f32.mxu1 %v184_v25  ;;  %v238_v24 = vld [vmem:[%s3299_s0 + $0x718] sm:$0xff]  ;;  %v235_v25 = vld [vmem:[%s3299_s0 + $0x700] sm:$0xff]  ;;  %v244_v28 = vld [vmem:[%s3299_s0 + $0x748] sm:$0xff] }
 0x129   :  { %1515 = vmatprep.mubr.msk.f32.mxu0 %vm1866_vm0, %v1867_v49 }
 0x12a   :  { %v2930_v30 = vpop.f32.mrb[10].mxu1 }
 0x12b   :  { %881 = vmatmul.mubr.f32.gmra.mrb[68].mxu1 %v183_v29  ;;  %v429_v33 = vpop.f32.mrb[11].mxu1 }
 0x12c   :  { %1516 = vmatmul.mubr.f32.gmra.mrb[66].mxu0 %v180_v31  ;;  %885 = vmatprep.mubr.f32.mxu1 %v189_v32  ;;  %v243_v32 = vld [vmem:[%s3299_s0 + $0x740] sm:$0xff]  ;;  %v240_v33 = vld [vmem:[%s3299_s0 + $0x728] sm:$0xff] }
 0x12d   :  { %1518 = vmatprep.mubr.msk.f32.mxu0 %vm1866_vm0, %v1867_v49 }
 0x12e   :  { %v2943_v39 = vpop.f32.mrb[12].mxu1 }
 0x12f   :  { %886 = vmatmul.mubr.f32.gmra.mrb[70].mxu1 %v188_v35  ;;  %v434_v40 = vpop.f32.mrb[13].mxu1  ;;  %v249_v35 = vld [vmem:[%s3299_s0 + $0x770] sm:$0xff] }
 0x130   :  { %1519 = vmatmul.mubr.f32.gmra.mrb[68].mxu0 %v185_v37  ;;  %890 = vmatprep.mubr.f32.mxu1 %v194_v38  ;;  %v248_v40 = vld [vmem:[%s3299_s0 + $0x768] sm:$0xff] }
 0x131   :  { %1521 = vmatprep.mubr.msk.f32.mxu0 %vm1866_vm0, %v1867_v49 }
 0x132   :  { %v2956_v45 = vpop.f32.mrb[14].mxu1 }
 0x133   :  { %891 = vmatmul.mubr.f32.gmra.mrb[72].mxu1 %v193_v36  ;;  %v439_v46 = vpop.f32.mrb[15].mxu1  ;;  %v245_v36 = vld [vmem:[%s3299_s0 + $0x750] sm:$0xff] }
 0x134   :  { %1522 = vmatmul.mubr.f32.gmra.mrb[70].mxu0 %v190_v42  ;;  %895 = vmatprep.mubr.f32.mxu1 %v199_v43  ;;  %v254_v42 = vld [vmem:[%s3299_s0 + $0x798] sm:$0xff] }
 0x135   :  { %1524 = vmatprep.mubr.msk.f32.mxu0 %vm1866_vm0, %v1867_v49 }
 0x136   :  { %v2969_v51 = vpop.f32.mrb[16].mxu1 }
 0x137   :  { %896 = vmatmul.mubr.f32.gmra.mrb[74].mxu1 %v198_v47  ;;  %v444_v52 = vpop.f32.mrb[17].mxu1  ;;  %v253_v47 = vld [vmem:[%s3299_s0 + $0x790] sm:$0xff] }
 0x138   :  { %1525 = vmatmul.mubr.f32.gmra.mrb[72].mxu0 %v195_v44  ;;  %900 = vmatprep.mubr.f32.mxu1 %v204_v48  ;;  %v250_v44 = vld [vmem:[%s3299_s0 + $0x778] sm:$0xff] }
 0x139   :  { %1527 = vmatprep.mubr.msk.f32.mxu0 %vm1866_vm0, %v1867_v49 }
 0x13a   :  { %v2982_v55 = vpop.f32.mrb[18].mxu1 }
 0x13b   :  { %901 = vmatmul.mubr.f32.gmra.mrb[76].mxu1 %v203_v50  ;;  %v449_v56 = vpop.f32.mrb[19].mxu1  ;;  %v255_v50 = vld [vmem:[%s3299_s0 + $0x7a0] sm:$0xff] }
 0x13c   :  { %1528 = vmatmul.mubr.f32.gmra.mrb[74].mxu0 %v200_v53  ;;  %905 = vmatprep.mubr.f32.mxu1 %v209_v54 }
 0x13d   :  { %1530 = vmatprep.mubr.msk.f32.mxu0 %vm1866_vm0, %v1867_v49 }
 0x13e   :  { %v2995_v62 = vpop.f32.mrb[20].mxu1 }
 0x13f   :  { %906 = vmatmul.mubr.f32.gmra.mrb[78].mxu1 %v208_v57  ;;  %v454_v60 = vpop.f32.mrb[21].mxu1 }
 0x140   :  { %1531 = vmatmul.mubr.f32.gmra.mrb[76].mxu0 %v205_v58  ;;  %910 = vmatprep.mubr.f32.mxu1 %v214_v59 }
 0x141   :  { %1533 = vmatprep.mubr.msk.f32.mxu0 %vm1866_vm0, %v1867_v49 }
 0x142   :  { %v3008_v63 = vpop.f32.mrb[22].mxu1 }
 0x143   :  { %911 = vmatmul.mubr.f32.gmra.mrb[80].mxu1 %v213_v8  ;;  %v459_v1 = vpop.f32.mrb[23].mxu1 }
 0x144   :  { %1534 = vmatmul.mubr.f32.gmra.mrb[78].mxu0 %v210_v61  ;;  %915 = vmatprep.mubr.f32.mxu1 %v219_v5 }
 0x145   :  { %1536 = vmatprep.mubr.msk.f32.mxu0 %vm1866_vm0, %v1867_v49 }
 0x146   :  { %v3021_v4 = vpop.f32.mrb[24].mxu1 }
 0x147   :  { %916 = vmatmul.mubr.f32.gmra.mrb[82].mxu1 %v218_v2  ;;  %v464_v6 = vpop.f32.mrb[25].mxu1 }
 0x148   :  { %1537 = vmatmul.mubr.f32.gmra.mrb[80].mxu0 %v215_v13  ;;  %920 = vmatprep.mubr.f32.mxu1 %v224_v3 }
 0x149   :  { %1539 = vmatprep.mubr.msk.f32.mxu0 %vm1866_vm0, %v1867_v49 }
 0x14a   :  { %v3034_v27 = vpop.f32.mrb[26].mxu1 }
 0x14b   :  { %921 = vmatmul.mubr.f32.gmra.mrb[84].mxu1 %v223_v20  ;;  %v469_v10 = vpop.f32.mrb[27].mxu1 }
 0x14c   :  { %1540 = vmatmul.mubr.f32.gmra.mrb[82].mxu0 %v220_v7  ;;  %925 = vmatprep.mubr.f32.mxu1 %v229_v9 }
 0x14d   :  { %1542 = vmatprep.mubr.msk.f32.mxu0 %vm1866_vm0, %v1867_v49 }
 0x14e   :  { %v3047_v15 = vpop.f32.mrb[28].mxu1 }
 0x14f   :  { %926 = vmatmul.mubr.f32.gmra.mrb[86].mxu1 %v228_v14  ;;  %v474_v41 = vpop.f32.mrb[29].mxu1 }
 0x150   :  { %1543 = vmatmul.mubr.f32.gmra.mrb[84].mxu0 %v225_v34  ;;  %930 = vmatprep.mubr.f32.mxu1 %v234_v0 }
 0x151   :  { %1545 = vmatprep.mubr.msk.f32.mxu0 %vm1866_vm0, %v1867_v49 }
 0x152   :  { %v3060_v22 = vpop.f32.mrb[30].mxu1 }
 0x153   :  { %931 = vmatmul.mubr.f32.gmra.mrb[88].mxu1 %v233_v16  ;;  %v479_v23 = vpop.f32.mrb[31].mxu1 }
 0x154   :  { %1546 = vmatmul.mubr.f32.gmra.mrb[86].mxu0 %v230_v17  ;;  %935 = vmatprep.mubr.f32.mxu1 %v239_v19 }
 0x155   :  { %1548 = vmatprep.mubr.msk.f32.mxu0 %vm1866_vm0, %v1867_v49 }
 0x156   :  { %v3073_v29 = vpop.f32.mrb[32].mxu1 }
 0x157   :  { %936 = vmatmul.mubr.f32.gmra.mrb[90].mxu1 %v238_v24  ;;  %v484_v31 = vpop.f32.mrb[33].mxu1 }
 0x158   :  { %1549 = vmatmul.mubr.f32.gmra.mrb[88].mxu0 %v235_v25  ;;  %940 = vmatprep.mubr.f32.mxu1 %v244_v28 }
 0x159   :  { %1551 = vmatprep.mubr.msk.f32.mxu0 %vm1866_vm0, %v1867_v49 }
 0x15a   :  { %v3086_v37 = vpop.f32.mrb[34].mxu1 }
 0x15b   :  { %941 = vmatmul.mubr.f32.gmra.mrb[92].mxu1 %v243_v32  ;;  %v489_v38 = vpop.f32.mrb[35].mxu1 }
 0x15c   :  { %1552 = vmatmul.mubr.f32.gmra.mrb[90].mxu0 %v240_v33  ;;  %945 = vmatprep.mubr.f32.mxu1 %v249_v35 }
 0x15d   :  { %1554 = vmatprep.mubr.msk.f32.mxu0 %vm1866_vm0, %v1867_v49 }
 0x15e   :  { %v3099_v43 = vpop.f32.mrb[36].mxu1 }
 0x15f   :  { %946 = vmatmul.mubr.f32.gmra.mrb[94].mxu1 %v248_v40  ;;  %v494_v46 = vpop.f32.mrb[37].mxu1 }
 0x160   :  { %1555 = vmatmul.mubr.f32.gmra.mrb[92].mxu0 %v245_v36  ;;  %950 = vmatprep.mubr.f32.mxu1 %v254_v42 }
 0x161   :  { %1557 = vmatprep.mubr.msk.f32.mxu0 %vm1866_vm0, %v1867_v49 }
 0x162   :  { %v3109_v48 = vpop.f32.mrb[38].mxu1 }
 0x163   :  { %951 = vmatmul.mubr.f32.gmra.mrb[96].mxu1 %v253_v47  ;;  %v499_v52 = vpop.f32.mrb[39].mxu1 }
 0x164   :  { %1558 = vmatmul.mubr.f32.gmra.mrb[94].mxu0 %v250_v44 }
 0x165   :  { %1560 = vmatprep.mubr.msk.f32.mxu0 %vm1866_vm0, %v1867_v49 }
 0x166   :  { %v3116_v53 = vpop.f32.mrb[40].mxu1 }
 0x167   :  { %v504_v54 = vpop.f32.mrb[41].mxu1 }
 0x168   :  { %1561 = vmatmul.mubr.f32.gmra.mrb[96].mxu0 %v255_v50 }
 0x16a   :  { %v3118_v56 = vpop.f32.mrb[42].mxu1 }
 0x16b   :  { %v509_v57 = vpop.f32.mrb[43].mxu1 }
 0x16e   :  { %v3120_v58 = vpop.f32.mrb[44].mxu1 }
 0x16f   :  { %v514_v59 = vpop.f32.mrb[45].mxu1 }
 0x172   :  { %v3122_v60 = vpop.f32.mrb[46].mxu1 }
 0x173   :  { %v519_v8 = vpop.f32.mrb[47].mxu1 }
 0x176   :  { %v3124_v61 = vpop.f32.mrb[48].mxu1 }
 0x177   :  { %v524_v49 = vpop.f32.mrb[49].mxu1 }
 0x17b   :  { %v1022_v5 = vpop.f32.mrb[0].mxu0 }
 0x17c   :  { %v1715_v1 = vadd.f32 %v1022_v5, %v2865_v12  ;;  %v1418_v2 = vpop.f32.mrb[1].mxu0 }
 0x17e   :  { %1266 = vst [vmem:[%s3300_s2] sm:$0xff] %v1715_v1 }
 0x17f   :  { %v1027_v13 = vpop.f32.mrb[2].mxu0 }
 0x180   :  { %v1716_v3 = vadd.f32 %v1027_v13, %v2878_v11  ;;  %v1421_v6 = vpop.f32.mrb[3].mxu0 }
 0x182   :  { %1267 = vst [vmem:[%s3300_s2 + $0x8] sm:$0xff] %v1716_v3 }
 0x183   :  { %v1032_v20 = vpop.f32.mrb[4].mxu0 }
 0x184   :  { %v1717_v7 = vadd.f32 %v1032_v20, %v2891_v18  ;;  %v1424_v9 = vpop.f32.mrb[5].mxu0 }
 0x186   :  { %1268 = vst [vmem:[%s3300_s2 + $0x10] sm:$0xff] %v1717_v7 }
 0x187   :  { %v1037_v12 = vpop.f32.mrb[6].mxu0 }
 0x188   :  { %v1718_v10 = vadd.f32 %v1037_v12, %v2904_v21  ;;  %v1427_v14 = vpop.f32.mrb[7].mxu0 }
 0x18a   :  { %1269 = vst [vmem:[%s3300_s2 + $0x18] sm:$0xff] %v1718_v10 }
 0x18b   :  { %v1042_v11 = vpop.f32.mrb[8].mxu0 }
 0x18c   :  { %v1719_v34 = vadd.f32 %v1042_v11, %v2917_v26  ;;  %v1430_v0 = vpop.f32.mrb[9].mxu0 }
 0x18e   :  { %1270 = vst [vmem:[%s3300_s2 + $0x20] sm:$0xff] %v1719_v34 }
 0x18f   :  { %v1047_v18 = vpop.f32.mrb[10].mxu0 }
 0x190   :  { %v1720_v41 = vadd.f32 %v1047_v18, %v2930_v30  ;;  %v1433_v16 = vpop.f32.mrb[11].mxu0 }
 0x192   :  { %1271 = vst [vmem:[%s3300_s2 + $0x28] sm:$0xff] %v1720_v41 }
 0x193   :  { %v1052_v21 = vpop.f32.mrb[12].mxu0 }
 0x194   :  { %v1721_v17 = vadd.f32 %v1052_v21, %v2943_v39  ;;  %v1436_v19 = vpop.f32.mrb[13].mxu0 }
 0x196   :  { %1272 = vst [vmem:[%s3300_s2 + $0x30] sm:$0xff] %v1721_v17 }
 0x197   :  { %v1057_v26 = vpop.f32.mrb[14].mxu0 }
 0x198   :  { %v1722_v23 = vadd.f32 %v1057_v26, %v2956_v45  ;;  %v1439_v24 = vpop.f32.mrb[15].mxu0 }
 0x19a   :  { %1273 = vst [vmem:[%s3300_s2 + $0x38] sm:$0xff] %v1722_v23 }
 0x19b   :  { %v1062_v30 = vpop.f32.mrb[16].mxu0 }
 0x19c   :  { %v1723_v25 = vadd.f32 %v1062_v30, %v2969_v51  ;;  %v1442_v28 = vpop.f32.mrb[17].mxu0 }
 0x19e   :  { %1274 = vst [vmem:[%s3300_s2 + $0x40] sm:$0xff] %v1723_v25 }
 0x19f   :  { %v1067_v39 = vpop.f32.mrb[18].mxu0 }
 0x1a0   :  { %v1724_v31 = vadd.f32 %v1067_v39, %v2982_v55  ;;  %v1445_v32 = vpop.f32.mrb[19].mxu0 }
 0x1a2   :  { %1275 = vst [vmem:[%s3300_s2 + $0x48] sm:$0xff] %v1724_v31 }
 0x1a3   :  { %v1072_v45 = vpop.f32.mrb[20].mxu0 }
 0x1a4   :  { %v1725_v33 = vadd.f32 %v1072_v45, %v2995_v62  ;;  %v1448_v35 = vpop.f32.mrb[21].mxu0 }
 0x1a6   :  { %1276 = vst [vmem:[%s3300_s2 + $0x50] sm:$0xff] %v1725_v33 }
 0x1a7   :  { %v1077_v51 = vpop.f32.mrb[22].mxu0 }
 0x1a8   :  { %v1726_v38 = vadd.f32 %v1077_v51, %v3008_v63  ;;  %v1451_v40 = vpop.f32.mrb[23].mxu0 }
 0x1aa   :  { %1277 = vst [vmem:[%s3300_s2 + $0x58] sm:$0xff] %v1726_v38 }
 0x1ab   :  { %v1082_v55 = vpop.f32.mrb[24].mxu0 }
 0x1ac   :  { %v1727_v36 = vadd.f32 %v1082_v55, %v3021_v4  ;;  %v1454_v42 = vpop.f32.mrb[25].mxu0 }
 0x1ae   :  { %1278 = vst [vmem:[%s3300_s2 + $0x60] sm:$0xff] %v1727_v36 }
 0x1af   :  { %v1087_v62 = vpop.f32.mrb[26].mxu0 }
 0x1b0   :  { %v1728_v46 = vadd.f32 %v1087_v62, %v3034_v27  ;;  %v1457_v47 = vpop.f32.mrb[27].mxu0 }
 0x1b2   :  { %1279 = vst [vmem:[%s3300_s2 + $0x68] sm:$0xff] %v1728_v46 }
 0x1b3   :  { %v1092_v63 = vpop.f32.mrb[28].mxu0 }
 0x1b4   :  { %v1729_v44 = vadd.f32 %v1092_v63, %v3047_v15  ;;  %v1460_v52 = vpop.f32.mrb[29].mxu0 }
 0x1b6   :  { %1280 = vst [vmem:[%s3300_s2 + $0x70] sm:$0xff] %v1729_v44 }
 0x1b7   :  { %v1097_v4 = vpop.f32.mrb[30].mxu0 }
 0x1b8   :  { %v1730_v50 = vadd.f32 %v1097_v4, %v3060_v22  ;;  %v1463_v54 = vpop.f32.mrb[31].mxu0 }
 0x1ba   :  { %1281 = vst [vmem:[%s3300_s2 + $0x78] sm:$0xff] %v1730_v50 }
 0x1bb   :  { %v1102_v27 = vpop.f32.mrb[32].mxu0 }
 0x1bc   :  { %v1731_v57 = vadd.f32 %v1102_v27, %v3073_v29  ;;  %v1466_v59 = vpop.f32.mrb[33].mxu0 }
 0x1be   :  { %1282 = vst [vmem:[%s3300_s2 + $0x80] sm:$0xff] %v1731_v57 }
 0x1bf   :  { %v1107_v15 = vpop.f32.mrb[34].mxu0 }
 0x1c0   :  { %v1732_v8 = vadd.f32 %v1107_v15, %v3086_v37  ;;  %v1469_v49 = vpop.f32.mrb[35].mxu0 }
 0x1c2   :  { %1283 = vst [vmem:[%s3300_s2 + $0x88] sm:$0xff] %v1732_v8 }
 0x1c3   :  { %v1112_v22 = vpop.f32.mrb[36].mxu0 }
 0x1c4   :  { %v1733_v5 = vadd.f32 %v1112_v22, %v3099_v43  ;;  %v1472_v1 = vpop.f32.mrb[37].mxu0 }
 0x1c6   :  { %1284 = vst [vmem:[%s3300_s2 + $0x90] sm:$0xff] %v1733_v5 }
 0x1c7   :  { %v1117_v29 = vpop.f32.mrb[38].mxu0 }
 0x1c8   :  { %v1734_v2 = vadd.f32 %v1117_v29, %v3109_v48  ;;  %v1475_v13 = vpop.f32.mrb[39].mxu0 }
 0x1ca   :  { %1285 = vst [vmem:[%s3300_s2 + $0x98] sm:$0xff] %v1734_v2 }
 0x1cb   :  { %v1122_v37 = vpop.f32.mrb[40].mxu0 }
 0x1cc   :  { %v1735_v3 = vadd.f32 %v1122_v37, %v3116_v53  ;;  %v1478_v6 = vpop.f32.mrb[41].mxu0 }
 0x1ce   :  { %1286 = vst [vmem:[%s3300_s2 + $0xa0] sm:$0xff] %v1735_v3 }
 0x1cf   :  { %v1127_v43 = vpop.f32.mrb[42].mxu0 }
 0x1d0   :  { %v1736_v20 = vadd.f32 %v1127_v43, %v3118_v56  ;;  %v1481_v7 = vpop.f32.mrb[43].mxu0 }
 0x1d2   :  { %1287 = vst [vmem:[%s3300_s2 + $0xa8] sm:$0xff] %v1736_v20 }
 0x1d3   :  { %v1132_v48 = vpop.f32.mrb[44].mxu0 }
 0x1d4   :  { %v1737_v9 = vadd.f32 %v1132_v48, %v3120_v58  ;;  %v1484_v12 = vpop.f32.mrb[45].mxu0 }
 0x1d6   :  { %1288 = vst [vmem:[%s3300_s2 + $0xb0] sm:$0xff] %v1737_v9 }
 0x1d7   :  { %v1137_v53 = vpop.f32.mrb[46].mxu0 }
 0x1d8   :  { %v1738_v10 = vadd.f32 %v1137_v53, %v3122_v60  ;;  %v1487_v14 = vpop.f32.mrb[47].mxu0 }
 0x1da   :  { %1289 = vst [vmem:[%s3300_s2 + $0xb8] sm:$0xff] %v1738_v10  ;;  %v837_v56 = vpop.f32.mrb[50].mxu1 }
 0x1db   :  { %v1142_v11 = vpop.f32.mrb[48].mxu0  ;;  %v839_v34 = vpop.f32.mrb[51].mxu1 }
 0x1dc   :  { %v1739_v0 = vadd.f32 %v1142_v11, %v3124_v61  ;;  %v1490_v18 = vpop.f32.mrb[49].mxu0 }
 0x1de   :  { %1290 = vst [vmem:[%s3300_s2 + $0xc0] sm:$0xff] %v1739_v0  ;;  %v842_v58 = vpop.f32.mrb[52].mxu1 }
 0x1df   :  { %v1147_v41 = vpop.f32.mrb[50].mxu0  ;;  %v844_v16 = vpop.f32.mrb[53].mxu1 }
 0x1e0   :  { %v1740_v21 = vadd.f32 %v1147_v41, %v837_v56  ;;  %v1493_v60 = vpop.f32.mrb[51].mxu0 }
 0x1e2   :  { %1291 = vst [vmem:[%s3300_s2 + $0xc8] sm:$0xff] %v1740_v21  ;;  %v847_v17 = vpop.f32.mrb[54].mxu1 }
 0x1e3   :  { %v1152_v19 = vpop.f32.mrb[52].mxu0  ;;  %v849_v26 = vpop.f32.mrb[55].mxu1 }
 0x1e4   :  { %v1741_v23 = vadd.f32 %v1152_v19, %v842_v58  ;;  %v1496_v24 = vpop.f32.mrb[53].mxu0 }
 0x1e6   :  { %1292 = vst [vmem:[%s3300_s2 + $0xd0] sm:$0xff] %v1741_v23  ;;  %v852_v61 = vpop.f32.mrb[56].mxu1 }
 0x1e7   :  { %v1157_v30 = vpop.f32.mrb[54].mxu0  ;;  %v854_v25 = vpop.f32.mrb[57].mxu1 }
 0x1e8   :  { %v1742_v28 = vadd.f32 %v1157_v30, %v847_v17  ;;  %v1499_v39 = vpop.f32.mrb[55].mxu0 }
 0x1ea   :  { %1293 = vst [vmem:[%s3300_s2 + $0xd8] sm:$0xff] %v1742_v28  ;;  %v857_v31 = vpop.f32.mrb[58].mxu1 }
 0x1eb   :  { %v1162_v32 = vpop.f32.mrb[56].mxu0  ;;  %v859_v45 = vpop.f32.mrb[59].mxu1 }
 0x1ec   :  { %v1743_v33 = vadd.f32 %v1162_v32, %v852_v61  ;;  %v1502_v35 = vpop.f32.mrb[57].mxu0 }
 0x1ee   :  { %1294 = vst [vmem:[%s3300_s2 + $0xe0] sm:$0xff] %v1743_v33  ;;  %v862_v51 = vpop.f32.mrb[60].mxu1 }
 0x1ef   :  { %v1167_v38 = vpop.f32.mrb[58].mxu0  ;;  %v864_v40 = vpop.f32.mrb[61].mxu1 }
 0x1f0   :  { %v1744_v55 = vadd.f32 %v1167_v38, %v857_v31  ;;  %v1505_v36 = vpop.f32.mrb[59].mxu0 }
 0x1f2   :  { %1295 = vst [vmem:[%s3300_s2 + $0xe8] sm:$0xff] %v1744_v55  ;;  %v867_v42 = vpop.f32.mrb[62].mxu1 }
 0x1f3   :  { %v1172_v62 = vpop.f32.mrb[60].mxu0  ;;  %v869_v46 = vpop.f32.mrb[63].mxu1 }
 0x1f4   :  { %v1745_v47 = vadd.f32 %v1172_v62, %v862_v51  ;;  %v1508_v63 = vpop.f32.mrb[61].mxu0 }
 0x1f6   :  { %1296 = vst [vmem:[%s3300_s2 + $0xf0] sm:$0xff] %v1745_v47  ;;  %v872_v44 = vpop.f32.mrb[64].mxu1 }
 0x1f7   :  { %v1177_v52 = vpop.f32.mrb[62].mxu0  ;;  %v874_v4 = vpop.f32.mrb[65].mxu1 }
 0x1f8   :  { %v1746_v50 = vadd.f32 %v1177_v52, %v867_v42  ;;  %v1511_v54 = vpop.f32.mrb[63].mxu0 }
 0x1fa   :  { %1297 = vst [vmem:[%s3300_s2 + $0xf8] sm:$0xff] %v1746_v50  ;;  %v877_v27 = vpop.f32.mrb[66].mxu1 }
 0x1fb   :  { %v1182_v57 = vpop.f32.mrb[64].mxu0  ;;  %v879_v59 = vpop.f32.mrb[67].mxu1 }
 0x1fc   :  { %v1747_v15 = vadd.f32 %v1182_v57, %v872_v44  ;;  %v1514_v8 = vpop.f32.mrb[65].mxu0 }
 0x1fe   :  { %1298 = vst [vmem:[%s3300_s2 + $0x100] sm:$0xff] %v1747_v15  ;;  %v882_v49 = vpop.f32.mrb[68].mxu1 }
 0x1ff   :  { %v1187_v22 = vpop.f32.mrb[66].mxu0  ;;  %v884_v5 = vpop.f32.mrb[69].mxu1 }
 0x200   :  { %v1748_v1 = vadd.f32 %v1187_v22, %v877_v27  ;;  %v1517_v29 = vpop.f32.mrb[67].mxu0 }
 0x202   :  { %1299 = vst [vmem:[%s3300_s2 + $0x108] sm:$0xff] %v1748_v1  ;;  %v887_v2 = vpop.f32.mrb[70].mxu1 }
 0x203   :  { %v1192_v13 = vpop.f32.mrb[68].mxu0  ;;  %v889_v37 = vpop.f32.mrb[71].mxu1 }
 0x204   :  { %v1749_v3 = vadd.f32 %v1192_v13, %v882_v49  ;;  %v1520_v6 = vpop.f32.mrb[69].mxu0 }
 0x206   :  { %1300 = vst [vmem:[%s3300_s2 + $0x110] sm:$0xff] %v1749_v3  ;;  %v892_v43 = vpop.f32.mrb[72].mxu1 }
 0x207   :  { %v1197_v20 = vpop.f32.mrb[70].mxu0  ;;  %v894_v7 = vpop.f32.mrb[73].mxu1 }
 0x208   :  { %v1750_v48 = vadd.f32 %v1197_v20, %v887_v2  ;;  %v1523_v9 = vpop.f32.mrb[71].mxu0 }
 0x20a   :  { %1301 = vst [vmem:[%s3300_s2 + $0x118] sm:$0xff] %v1750_v48  ;;  %v897_v12 = vpop.f32.mrb[74].mxu1 }
 0x20b   :  { %v1202_v53 = vpop.f32.mrb[72].mxu0  ;;  %v899_v10 = vpop.f32.mrb[75].mxu1 }
 0x20c   :  { %v1751_v14 = vadd.f32 %v1202_v53, %v892_v43  ;;  %v1526_v56 = vpop.f32.mrb[73].mxu0 }
 0x20e   :  { %1302 = vst [vmem:[%s3300_s2 + $0x120] sm:$0xff] %v1751_v14  ;;  %v902_v11 = vpop.f32.mrb[76].mxu1 }
 0x20f   :  { %v1207_v34 = vpop.f32.mrb[74].mxu0  ;;  %v904_v0 = vpop.f32.mrb[77].mxu1 }
 0x210   :  { %v1752_v18 = vadd.f32 %v1207_v34, %v897_v12  ;;  %v1529_v58 = vpop.f32.mrb[75].mxu0 }
 0x212   :  { %1303 = vst [vmem:[%s3300_s2 + $0x128] sm:$0xff] %v1752_v18  ;;  %v907_v41 = vpop.f32.mrb[78].mxu1 }
 0x213   :  { %v1212_v16 = vpop.f32.mrb[76].mxu0  ;;  %v909_v21 = vpop.f32.mrb[79].mxu1 }
 0x214   :  { %v1753_v60 = vadd.f32 %v1212_v16, %v902_v11  ;;  %v1532_v17 = vpop.f32.mrb[77].mxu0 }
 0x216   :  { %1304 = vst [vmem:[%s3300_s2 + $0x130] sm:$0xff] %v1753_v60  ;;  %v912_v19 = vpop.f32.mrb[80].mxu1 }
 0x217   :  { %v1217_v26 = vpop.f32.mrb[78].mxu0  ;;  %v914_v23 = vpop.f32.mrb[81].mxu1 }
 0x218   :  { %v1754_v24 = vadd.f32 %v1217_v26, %v907_v41  ;;  %v1535_v61 = vpop.f32.mrb[79].mxu0 }
 0x21a   :  { %1305 = vst [vmem:[%s3300_s2 + $0x138] sm:$0xff] %v1754_v24  ;;  %v917_v30 = vpop.f32.mrb[82].mxu1 }
 0x21b   :  { %v1222_v25 = vpop.f32.mrb[80].mxu0  ;;  %v919_v28 = vpop.f32.mrb[83].mxu1 }
 0x21c   :  { %v1755_v39 = vadd.f32 %v1222_v25, %v912_v19  ;;  %v1538_v31 = vpop.f32.mrb[81].mxu0 }
 0x21e   :  { %1306 = vst [vmem:[%s3300_s2 + $0x140] sm:$0xff] %v1755_v39  ;;  %v922_v32 = vpop.f32.mrb[84].mxu1 }
 0x21f   :  { %v1227_v45 = vpop.f32.mrb[82].mxu0  ;;  %v924_v33 = vpop.f32.mrb[85].mxu1 }
 0x220   :  { %v1756_v35 = vadd.f32 %v1227_v45, %v917_v30  ;;  %v1541_v51 = vpop.f32.mrb[83].mxu0 }
 0x222   :  { %1307 = vst [vmem:[%s3300_s2 + $0x148] sm:$0xff] %v1756_v35  ;;  %v927_v38 = vpop.f32.mrb[86].mxu1 }
 0x223   :  { %v1232_v40 = vpop.f32.mrb[84].mxu0  ;;  %v929_v55 = vpop.f32.mrb[87].mxu1 }
 0x224   :  { %v1757_v36 = vadd.f32 %v1232_v40, %v922_v32  ;;  %v1544_v42 = vpop.f32.mrb[85].mxu0 }
 0x226   :  { %1308 = vst [vmem:[%s3300_s2 + $0x150] sm:$0xff] %v1757_v36  ;;  %v932_v62 = vpop.f32.mrb[88].mxu1 }
 0x227   :  { %v1237_v46 = vpop.f32.mrb[86].mxu0  ;;  %v934_v47 = vpop.f32.mrb[89].mxu1 }
 0x228   :  { %v1758_v63 = vadd.f32 %v1237_v46, %v927_v38  ;;  %v1547_v44 = vpop.f32.mrb[87].mxu0 }
 0x22a   :  { %1309 = vst [vmem:[%s3300_s2 + $0x158] sm:$0xff] %v1758_v63  ;;  %v937_v52 = vpop.f32.mrb[90].mxu1 }
 0x22b   :  { %v1242_v4 = vpop.f32.mrb[88].mxu0  ;;  %v939_v50 = vpop.f32.mrb[91].mxu1 }
 0x22c   :  { %v1759_v54 = vadd.f32 %v1242_v4, %v932_v62  ;;  %v1550_v27 = vpop.f32.mrb[89].mxu0 }
 0x22e   :  { %1310 = vst [vmem:[%s3300_s2 + $0x160] sm:$0xff] %v1759_v54  ;;  %v942_v57 = vpop.f32.mrb[92].mxu1 }
 0x22f   :  { %v1247_v59 = vpop.f32.mrb[90].mxu0  ;;  %v944_v15 = vpop.f32.mrb[93].mxu1 }
 0x230   :  { %v1760_v8 = vadd.f32 %v1247_v59, %v937_v52  ;;  %v1553_v49 = vpop.f32.mrb[91].mxu0 }
 0x232   :  { %1311 = vst [vmem:[%s3300_s2 + $0x168] sm:$0xff] %v1760_v8  ;;  %v947_v22 = vpop.f32.mrb[94].mxu1 }
 0x233   :  { %v1252_v5 = vpop.f32.mrb[92].mxu0  ;;  %v949_v1 = vpop.f32.mrb[95].mxu1 }
 0x234   :  { %v1761_v29 = vadd.f32 %v1252_v5, %v942_v57  ;;  %v1556_v2 = vpop.f32.mrb[93].mxu0 }
 0x236   :  { %1312 = vst [vmem:[%s3300_s2 + $0x170] sm:$0xff] %v1761_v29  ;;  %v952_v13 = vpop.f32.mrb[96].mxu1 }
 0x237   :  { %v1257_v37 = vpop.f32.mrb[94].mxu0  ;;  %v954_v3 = vpop.f32.mrb[97].mxu1 }
 0x238   :  { %v1762_v6 = vadd.f32 %v1257_v37, %v947_v22  ;;  %v1559_v43 = vpop.f32.mrb[95].mxu0 }
 0x23a   :  { %1313 = vst [vmem:[%s3300_s2 + $0x178] sm:$0xff] %v1762_v6 }
 0x23b   :  { %v1262_v20 = vpop.f32.mrb[96].mxu0 }
 0x23c   :  { %v1763_v7 = vadd.f32 %v1262_v20, %v952_v13  ;;  %v1562_v48 = vpop.f32.mrb[97].mxu0 }
 0x23e   :  { %1314 = vst [vmem:[%s3300_s2 + $0x180] sm:$0xff] %v1763_v7 }

// kernel: densenet_forward_pallas.40
= control target key start
LH: loop header
LB: loop body
LE: loop exit
PB: predicated region body
PF: predicated region fallthrough
CT: control target
= control target key end

     0   :  { %v391_v0 = vmov 0.0|0.0   ;;  %vm392_vm0 = vmmov 0   ;;  %v393_v6 = vmov 0.0   ;;  %s623_s3 = inlined_call_operand.vmem [shape: f32[128,128], index: 3, kind: input, shape index: {}]   ;;  %s624_s0 = inlined_call_operand.vmem [shape: f32[98,128], index: 0, kind: input, shape index: {}]   ;;  %s625_s1 = inlined_call_operand.vmem [shape: f32[1,128], index: 1, kind: input, shape index: {}]   ;;  %s626_s2 = inlined_call_operand.vmem [shape: f32[1,128], index: 2, kind: input, shape index: {}]   ;;  %s627_s4 = inlined_call_operand.vmem [shape: f32[98,128], index: 4, kind: output, shape index: {}]  }
   0x1   :  { %348 = vmatprep.subr.bf16.mxu0 %v391_v0  ;;  %v83_v1 = vld [vmem:[%s623_s3] sm:$0xff]  ;;  %v84_v2 = vld [vmem:[%s623_s3 + $0x8] sm:$0xff]  ;;  %372 = vmatprep.subr.bf16.mxu1 %v391_v0  ;;  %v85_v3 = vld [vmem:[%s623_s3 + $0x10] sm:$0xff] }
   0x2   :  { %v349_v4 = vpack.c.bf16 %v84_v2, %v83_v1  ;;  %v86_v5 = vld [vmem:[%s623_s3 + $0x18] sm:$0xff]  ;;  %309 = vmatprep.mubr.msk.f32.mxu0 %vm392_vm0, %v393_v6  ;;  %330 = vmatprep.mubr.msk.f32.mxu1 %vm392_vm0, %v393_v6  ;;  %v87_v8 = vld [vmem:[%s623_s3 + $0x20] sm:$0xff]  ;;  %v88_v9 = vld [vmem:[%s623_s3 + $0x28] sm:$0xff] }
   0x3   :  { %v352_v7 = vpack.c.bf16 %v86_v5, %v85_v3  ;;  %v355_v10 = vpack.c.bf16 %v88_v9, %v87_v8  ;;  %v89_v11 = vld [vmem:[%s623_s3 + $0x30] sm:$0xff]  ;;  %v90_v12 = vld [vmem:[%s623_s3 + $0x38] sm:$0xff]  ;;  %v91_v14 = vld [vmem:[%s623_s3 + $0x40] sm:$0xff] }
   0x4   :  { %350 = vmatpush3.bf16.msra.mxu0 %v349_v4  ;;  %380 = vmatpush3.bf16.msra.mxu1 %v349_v4  ;;  %v358_v13 = vpack.c.bf16 %v90_v12, %v89_v11  ;;  %v92_v15 = vld [vmem:[%s623_s3 + $0x48] sm:$0xff]  ;;  %v93_v17 = vld [vmem:[%s623_s3 + $0x50] sm:$0xff]  ;;  %v94_v18 = vld [vmem:[%s623_s3 + $0x58] sm:$0xff] }
   0x5   :  { %351 = vmatprep.subr.bf16.mxu0 %v391_v0  ;;  %373 = vmatprep.subr.bf16.mxu1 %v391_v0  ;;  %v361_v16 = vpack.c.bf16 %v92_v15, %v91_v14  ;;  %v364_v19 = vpack.c.bf16 %v94_v18, %v93_v17  ;;  %v17_v20 = vld [vmem:[%s624_s0] sm:$0xff]  ;;  %v24_v22 = vld [vmem:[%s624_s0 + $0x38] sm:$0xff]  ;;  %v96_v24 = vld [vmem:[%s623_s3 + $0x68] sm:$0xff] }
   0x6   :  { %v475_v21 = vld [vmem:[%s625_s1] ss:$0 sm:$0xff]  ;;  %v18_v27 = vld [vmem:[%s624_s0 + $0x8] sm:$0xff]  ;;  %v97_v31 = vld [vmem:[%s623_s3 + $0x70] sm:$0xff] }
   0x7   :  { %v95_v23 = vld [vmem:[%s623_s3 + $0x60] sm:$0xff]  ;;  %v37_v25 = vmul.f32 %v475_v21, %v17_v20  ;;  %v44_v26 = vmul.f32 %v475_v21, %v24_v22  ;;  %v98_v32 = vld [vmem:[%s623_s3 + $0x78] sm:$0xff]  ;;  %v38_v33 = vmul.f32 %v475_v21, %v18_v27  ;;  %v19_v37 = vld [vmem:[%s624_s0 + $0x10] sm:$0xff] }
   0x8   :  { %353 = vmatpush3.bf16.msra.mxu0 %v352_v7  ;;  %381 = vmatpush3.bf16.msra.mxu1 %v352_v7  ;;  %v367_v28 = vpack.c.bf16 %v96_v24, %v95_v23  ;;  %v496_v29 = vld [vmem:[%s626_s2] ss:$0 sm:$0xff]  ;;  %v370_v38 = vpack.c.bf16 %v98_v32, %v97_v31  ;;  %v26_v39 = vld [vmem:[%s624_s0 + $0x48] sm:$0xff]  ;;  %v39_v41 = vmul.f32 %v475_v21, %v19_v37  ;;  %v20_v46 = vld [vmem:[%s624_s0 + $0x18] sm:$0xff] }
   0x9   :  { %354 = vmatprep.subr.bf16.mxu0 %v391_v0  ;;  %374 = vmatprep.subr.bf16.mxu1 %v391_v0  ;;  %v25_v30 = vld [vmem:[%s624_s0 + $0x40] sm:$0xff]  ;;  %v57_v34 = vadd.f32 %v496_v29, %v37_v25  ;;  %v64_v35 = vadd.f32 %v496_v29, %v44_v26  ;;  %v58_v40 = vadd.f32 %v496_v29, %v38_v33  ;;  %v27_v47 = vld [vmem:[%s624_s0 + $0x50] sm:$0xff]  ;;  %v28_v55 = vld [vmem:[%s624_s0 + $0x58] sm:$0xff] }
   0xa   :  { %v45_v36 = vmul.f32 %v475_v21, %v25_v30  ;;  %v46_v45 = vmul.f32 %v475_v21, %v26_v39  ;;  %v59_v48 = vadd.f32 %v496_v29, %v39_v41  ;;  %v40_v49 = vmul.f32 %v475_v21, %v20_v46  ;;  %v21_v54 = vld [vmem:[%s624_s0 + $0x20] sm:$0xff]  ;;  %v22_v62 = vld [vmem:[%s624_s0 + $0x28] sm:$0xff]  ;;  %v23_v7 = vld [vmem:[%s624_s0 + $0x30] sm:$0xff] }
   0xb   :  { %v70_v42 = vmax.f32 %v57_v34, 0.0  ;;  %v77_v43 = vmax.f32 %v64_v35, 0.0  ;;  %v71_v50 = vmax.f32 %v58_v40, 0.0  ;;  %v47_v53 = vmul.f32 %v475_v21, %v27_v47  ;;  %v29_v63 = vld [vmem:[%s624_s0 + $0x60] sm:$0x3] }
   0xc   :  { %356 = vmatpush3.bf16.msra.mxu0 %v355_v10  ;;  %382 = vmatpush3.bf16.msra.mxu1 %v355_v10  ;;  %v65_v44 = vadd.f32 %v496_v29, %v45_v36  ;;  %v66_v52 = vadd.f32 %v496_v29, %v46_v45  ;;  %v72_v56 = vmax.f32 %v59_v48, 0.0  ;;  %v60_v57 = vadd.f32 %v496_v29, %v40_v49 }
   0xd   :  { %357 = vmatprep.subr.bf16.mxu0 %v391_v0  ;;  %375 = vmatprep.subr.bf16.mxu1 %v391_v0  ;;  %v67_v59 = vadd.f32 %v496_v29, %v47_v53  ;;  %v41_v60 = vmul.f32 %v475_v21, %v21_v54  ;;  %v48_v61 = vmul.f32 %v475_v21, %v28_v55 }
   0xe   :  { %v78_v51 = vmax.f32 %v65_v44, 0.0  ;;  %v79_v58 = vmax.f32 %v66_v52, 0.0  ;;  %v42_v1 = vmul.f32 %v475_v21, %v22_v62  ;;  %v49_v5 = vmul.f32 %v475_v21, %v29_v63 }
   0xf   :  { %v80_v2 = vmax.f32 %v67_v59, 0.0  ;;  %v61_v3 = vadd.f32 %v496_v29, %v41_v60  ;;  %v68_v4 = vadd.f32 %v496_v29, %v48_v61  ;;  %v43_v8 = vmul.f32 %v475_v21, %v23_v7 }
  0x10   :  { %359 = vmatpush3.bf16.msra.mxu0 %v358_v13  ;;  %383 = vmatpush3.bf16.msra.mxu1 %v358_v13  ;;  %v62_v11 = vadd.f32 %v496_v29, %v42_v1  ;;  %v69_v12 = vadd.f32 %v496_v29, %v49_v5 }
  0x11   :  { %360 = vmatprep.subr.bf16.mxu0 %v391_v0  ;;  %376 = vmatprep.subr.bf16.mxu1 %v391_v0  ;;  %v74_v9 = vmax.f32 %v61_v3, 0.0  ;;  %v81_v10 = vmax.f32 %v68_v4, 0.0  ;;  %v63_v15 = vadd.f32 %v496_v29, %v43_v8 }
  0x12   :  { %v75_v13 = vmax.f32 %v62_v11, 0.0  ;;  %v82_v14 = vmax.f32 %v69_v12, 0.0 }
  0x14   :  { %362 = vmatpush3.bf16.msra.mxu0 %v361_v16  ;;  %384 = vmatpush3.bf16.msra.mxu1 %v361_v16  ;;  %v76_v16 = vmax.f32 %v63_v15, 0.0 }
  0x15   :  { %363 = vmatprep.subr.bf16.mxu0 %v391_v0  ;;  %377 = vmatprep.subr.bf16.mxu1 %v391_v0 }
  0x18   :  { %365 = vmatpush3.bf16.msra.mxu0 %v364_v19  ;;  %385 = vmatpush3.bf16.msra.mxu1 %v364_v19 }
  0x19   :  { %366 = vmatprep.subr.bf16.mxu0 %v391_v0  ;;  %378 = vmatprep.subr.bf16.mxu1 %v391_v0 }
  0x1c   :  { %368 = vmatpush3.bf16.msra.mxu0 %v367_v28  ;;  %386 = vmatpush3.bf16.msra.mxu1 %v367_v28 }
  0x1d   :  { %369 = vmatprep.subr.bf16.mxu0 %v391_v0  ;;  %379 = vmatprep.subr.bf16.mxu1 %v391_v0  ;;  %v73_v0 = vmax.f32 %v60_v57, 0.0 }
  0x20   :  { %371 = vmatpush3.bf16.msra.mxu0 %v370_v38  ;;  %387 = vmatpush3.bf16.msra.mxu1 %v370_v38 }
  0x23   :  { %310 = vmatmul.mubr.f32.vlgmr.msra.gmra.mrb[0].mxu0 %v70_v42  ;;  %331 = vmatmul.mubr.f32.vlgmr.msra.gmra.mrb[0].mxu1 %v77_v43 }
  0x24   :  { %312 = vmatprep.mubr.msk.f32.mxu0 %vm392_vm0, %v393_v6  ;;  %333 = vmatprep.mubr.msk.f32.mxu1 %vm392_vm0, %v393_v6 }
  0x27   :  { %313 = vmatmul.mubr.f32.gmra.mrb[2].mxu0 %v71_v50  ;;  %334 = vmatmul.mubr.f32.gmra.mrb[2].mxu1 %v78_v51 }
  0x28   :  { %315 = vmatprep.mubr.msk.f32.mxu0 %vm392_vm0, %v393_v6  ;;  %336 = vmatprep.mubr.msk.f32.mxu1 %vm392_vm0, %v393_v6 }
  0x2b   :  { %316 = vmatmul.mubr.f32.gmra.mrb[4].mxu0 %v72_v56  ;;  %337 = vmatmul.mubr.f32.gmra.mrb[4].mxu1 %v79_v58 }
  0x2c   :  { %318 = vmatprep.mubr.msk.f32.mxu0 %vm392_vm0, %v393_v6  ;;  %339 = vmatprep.mubr.msk.f32.mxu1 %vm392_vm0, %v393_v6 }
  0x2f   :  { %319 = vmatmul.mubr.f32.gmra.mrb[6].mxu0 %v73_v0  ;;  %340 = vmatmul.mubr.f32.gmra.mrb[6].mxu1 %v80_v2 }
  0x30   :  { %321 = vmatprep.mubr.msk.f32.mxu0 %vm392_vm0, %v393_v6  ;;  %342 = vmatprep.mubr.msk.f32.mxu1 %vm392_vm0, %v393_v6 }
  0x33   :  { %322 = vmatmul.mubr.f32.gmra.mrb[8].mxu0 %v74_v9  ;;  %343 = vmatmul.mubr.f32.gmra.mrb[8].mxu1 %v81_v10 }
  0x34   :  { %324 = vmatprep.mubr.msk.f32.mxu0 %vm392_vm0, %v393_v6  ;;  %345 = vmatprep.mubr.msk.f32.mxu1 %vm392_vm0, %v393_v6 }
  0x37   :  { %325 = vmatmul.mubr.f32.gmra.mrb[10].mxu0 %v75_v13  ;;  %346 = vmatmul.mubr.f32.gmra.mrb[10].mxu1 %v82_v14 }
  0x38   :  { %327 = vmatprep.mubr.msk.f32.mxu0 %vm392_vm0, %v393_v6 }
  0x3b   :  { %328 = vmatmul.mubr.f32.gmra.mrb[12].mxu0 %v76_v16 }
  0xf6   :  { %v165_v17 = vpop.f32.mrb[0].mxu0  ;;  %v200_v18 = vpop.f32.mrb[0].mxu1 }
  0xf7   :  { %229 = vst [vmem:[%s627_s4] sm:$0xff] %v165_v17  ;;  %v311_v19 = vpop.f32.mrb[1].mxu0  ;;  %236 = vst [vmem:[%s627_s4 + $0x38] sm:$0xff] %v200_v18  ;;  %v332_v20 = vpop.f32.mrb[1].mxu1 }
  0xfa   :  { %v170_v21 = vpop.f32.mrb[2].mxu0  ;;  %v205_v22 = vpop.f32.mrb[2].mxu1 }
  0xfb   :  { %230 = vst [vmem:[%s627_s4 + $0x8] sm:$0xff] %v170_v21  ;;  %v314_v6 = vpop.f32.mrb[3].mxu0  ;;  %237 = vst [vmem:[%s627_s4 + $0x40] sm:$0xff] %v205_v22  ;;  %v335_v23 = vpop.f32.mrb[3].mxu1 }
  0xfe   :  { %v175_v24 = vpop.f32.mrb[4].mxu0  ;;  %v210_v25 = vpop.f32.mrb[4].mxu1 }
  0xff   :  { %231 = vst [vmem:[%s627_s4 + $0x10] sm:$0xff] %v175_v24  ;;  %v317_v26 = vpop.f32.mrb[5].mxu0  ;;  %238 = vst [vmem:[%s627_s4 + $0x48] sm:$0xff] %v210_v25  ;;  %v338_v27 = vpop.f32.mrb[5].mxu1 }
 0x102   :  { %v180_v28 = vpop.f32.mrb[6].mxu0  ;;  %v215_v29 = vpop.f32.mrb[6].mxu1 }
 0x103   :  { %232 = vst [vmem:[%s627_s4 + $0x18] sm:$0xff] %v180_v28  ;;  %v320_v30 = vpop.f32.mrb[7].mxu0  ;;  %239 = vst [vmem:[%s627_s4 + $0x50] sm:$0xff] %v215_v29  ;;  %v341_v31 = vpop.f32.mrb[7].mxu1 }
 0x106   :  { %v185_v32 = vpop.f32.mrb[8].mxu0  ;;  %v220_v33 = vpop.f32.mrb[8].mxu1 }
 0x107   :  { %233 = vst [vmem:[%s627_s4 + $0x20] sm:$0xff] %v185_v32  ;;  %v323_v34 = vpop.f32.mrb[9].mxu0  ;;  %240 = vst [vmem:[%s627_s4 + $0x58] sm:$0xff] %v220_v33  ;;  %v344_v35 = vpop.f32.mrb[9].mxu1 }
 0x10a   :  { %v190_v36 = vpop.f32.mrb[10].mxu0  ;;  %v225_v37 = vpop.f32.mrb[10].mxu1 }
 0x10b   :  { %234 = vst [vmem:[%s627_s4 + $0x28] sm:$0xff] %v190_v36  ;;  %v326_v38 = vpop.f32.mrb[11].mxu0  ;;  %241 = vst [vmem:[%s627_s4 + $0x60] sm:$0x3] %v225_v37  ;;  %v347_v39 = vpop.f32.mrb[11].mxu1 }
 0x10e   :  { %v195_v40 = vpop.f32.mrb[12].mxu0 }
 0x10f   :  { %235 = vst [vmem:[%s627_s4 + $0x30] sm:$0xff] %v195_v40  ;;  %v329_v41 = vpop.f32.mrb[13].mxu0 }

// kernel: densenet_forward_pallas.41
= control target key start
LH: loop header
LB: loop body
LE: loop exit
PB: predicated region body
PF: predicated region fallthrough
CT: control target
= control target key end

     0   :  { %s203_s0 = inlined_call_operand.vmem [shape: f32[98,128], index: 0, kind: input, shape index: {}]   ;;  %s204_s1 = inlined_call_operand.vmem [shape: f32[1,128], index: 1, kind: input, shape index: {}]   ;;  %s205_s2 = inlined_call_operand.vmem [shape: f32[1,128], index: 2, kind: input, shape index: {}]   ;;  %s206_s3 = inlined_call_operand.vmem [shape: f32[98,128], index: 3, kind: output, shape index: {}]  }
   0x1   :  { %v14_v0 = vld [vmem:[%s203_s0] sm:$0xff]  ;;  %v15_v4 = vld [vmem:[%s203_s0 + $0x8] sm:$0xff]  ;;  %v16_v5 = vld [vmem:[%s203_s0 + $0x10] sm:$0xff] }
   0x2   :  { %v97_v1 = vld [vmem:[%s204_s1] ss:$0 sm:$0xff]  ;;  %v17_v6 = vld [vmem:[%s203_s0 + $0x18] sm:$0xff]  ;;  %v19_v11 = vld [vmem:[%s203_s0 + $0x28] sm:$0xff] }
   0x3   :  { %v98_v2 = vld [vmem:[%s205_s2] ss:$0 sm:$0xff]  ;;  %v34_v3 = vmul.f32 %v97_v1, %v14_v0  ;;  %v35_v7 = vmul.f32 %v97_v1, %v15_v4  ;;  %v36_v8 = vmul.f32 %v97_v1, %v16_v5  ;;  %v37_v9 = vmul.f32 %v97_v1, %v17_v6  ;;  %v20_v12 = vld [vmem:[%s203_s0 + $0x30] sm:$0xff]  ;;  %v21_v17 = vld [vmem:[%s203_s0 + $0x38] sm:$0xff] }
   0x4   :  { %v18_v10 = vld [vmem:[%s203_s0 + $0x20] sm:$0xff]  ;;  %v39_v15 = vmul.f32 %v97_v1, %v19_v11  ;;  %v40_v16 = vmul.f32 %v97_v1, %v20_v12  ;;  %v41_v21 = vmul.f32 %v97_v1, %v21_v17  ;;  %v23_v27 = vld [vmem:[%s203_s0 + $0x48] sm:$0xff]  ;;  %v24_v28 = vld [vmem:[%s203_s0 + $0x50] sm:$0xff] }
   0x5   :  { %v54_v13 = vadd.f32 %v98_v2, %v34_v3  ;;  %v38_v14 = vmul.f32 %v97_v1, %v18_v10  ;;  %v55_v18 = vadd.f32 %v98_v2, %v35_v7  ;;  %v56_v19 = vadd.f32 %v98_v2, %v36_v8  ;;  %v22_v22 = vld [vmem:[%s203_s0 + $0x40] sm:$0xff]  ;;  %v25_v29 = vld [vmem:[%s203_s0 + $0x58] sm:$0xff] }
   0x6   :  { %v57_v20 = vadd.f32 %v98_v2, %v37_v9  ;;  %v59_v25 = vadd.f32 %v98_v2, %v39_v15  ;;  %v60_v26 = vadd.f32 %v98_v2, %v40_v16  ;;  %v61_v33 = vadd.f32 %v98_v2, %v41_v21  ;;  %v26_v34 = vld [vmem:[%s203_s0 + $0x60] sm:$0x3] }
   0x7   :  { %v67_v23 = vmax.f32 %v54_v13, 0.0  ;;  %v58_v24 = vadd.f32 %v98_v2, %v38_v14  ;;  %v68_v30 = vmax.f32 %v55_v18, 0.0  ;;  %v69_v31 = vmax.f32 %v56_v19, 0.0 }
   0x8   :  { %v70_v32 = vmax.f32 %v57_v20, 0.0  ;;  %v72_v36 = vmax.f32 %v59_v25, 0.0  ;;  %v73_v37 = vmax.f32 %v60_v26, 0.0  ;;  %v42_v38 = vmul.f32 %v97_v1, %v22_v22 }
   0x9   :  { %80 = vst [vmem:[%s206_s3] sm:$0xff] %v67_v23  ;;  %v71_v35 = vmax.f32 %v58_v24, 0.0  ;;  %81 = vst [vmem:[%s206_s3 + $0x8] sm:$0xff] %v68_v30  ;;  %v74_v39 = vmax.f32 %v61_v33, 0.0  ;;  %v43_v40 = vmul.f32 %v97_v1, %v23_v27  ;;  %v44_v41 = vmul.f32 %v97_v1, %v24_v28 }
   0xa   :  { %82 = vst [vmem:[%s206_s3 + $0x10] sm:$0xff] %v69_v31  ;;  %83 = vst [vmem:[%s206_s3 + $0x18] sm:$0xff] %v70_v32  ;;  %v45_v42 = vmul.f32 %v97_v1, %v25_v29  ;;  %v62_v43 = vadd.f32 %v98_v2, %v42_v38  ;;  %v46_v44 = vmul.f32 %v97_v1, %v26_v34 }
   0xb   :  { %84 = vst [vmem:[%s206_s3 + $0x20] sm:$0xff] %v71_v35  ;;  %85 = vst [vmem:[%s206_s3 + $0x28] sm:$0xff] %v72_v36  ;;  %v63_v45 = vadd.f32 %v98_v2, %v43_v40  ;;  %v64_v46 = vadd.f32 %v98_v2, %v44_v41 }
   0xc   :  { %86 = vst [vmem:[%s206_s3 + $0x30] sm:$0xff] %v73_v37  ;;  %87 = vst [vmem:[%s206_s3 + $0x38] sm:$0xff] %v74_v39  ;;  %v65_v47 = vadd.f32 %v98_v2, %v45_v42  ;;  %v75_v48 = vmax.f32 %v62_v43, 0.0  ;;  %v66_v49 = vadd.f32 %v98_v2, %v46_v44 }
   0xd   :  { %v76_v50 = vmax.f32 %v63_v45, 0.0  ;;  %v77_v51 = vmax.f32 %v64_v46, 0.0 }
   0xe   :  { %v78_v52 = vmax.f32 %v65_v47, 0.0  ;;  %88 = vst [vmem:[%s206_s3 + $0x40] sm:$0xff] %v75_v48  ;;  %v79_v53 = vmax.f32 %v66_v49, 0.0 }
   0xf   :  { %89 = vst [vmem:[%s206_s3 + $0x48] sm:$0xff] %v76_v50  ;;  %90 = vst [vmem:[%s206_s3 + $0x50] sm:$0xff] %v77_v51 }
  0x10   :  { %91 = vst [vmem:[%s206_s3 + $0x58] sm:$0xff] %v78_v52  ;;  %92 = vst [vmem:[%s206_s3 + $0x60] sm:$0x3] %v79_v53 }

// kernel: densenet_forward_pallas.42
= control target key start
LH: loop header
LB: loop body
LE: loop exit
PB: predicated region body
PF: predicated region fallthrough
CT: control target
= control target key end

     0   :  { %vm913_vm0 = vmmov 0   ;;  %s1454_s1 = inlined_call_operand.vmem [shape: f32[640,128], index: 1, kind: input, shape index: {}]   ;;  %s1455_s0 = inlined_call_operand.vmem [shape: f32[98,640], index: 0, kind: input, shape index: {}]   ;;  %s1456_s2 = inlined_call_operand.vmem [shape: f32[98,128], index: 2, kind: output, shape index: {}]  }
   0x1   :  { %v92_v0 = vld [vmem:[%s1454_s1 + $0x80] sm:$0xff]  ;;  %v93_v1 = vld [vmem:[%s1454_s1 + $0x88] sm:$0xff]  ;;  %v94_v11 = vld [vmem:[%s1454_s1 + $0x90] sm:$0xff] }
   0x2   :  { %v124_v2 = vld [vmem:[%s1454_s1 + $0x180] sm:$0xff]  ;;  %v805_v3 = vpack.c.bf16 %v93_v1, %v92_v0  ;;  %v125_v4 = vld [vmem:[%s1454_s1 + $0x188] sm:$0xff]  ;;  %v95_v13 = vld [vmem:[%s1454_s1 + $0x98] sm:$0xff] }
   0x3   :  { %v76_v5 = vld [vmem:[%s1454_s1] sm:$0xff]  ;;  %v77_v6 = vld [vmem:[%s1454_s1 + $0x8] sm:$0xff]  ;;  %v837_v7 = vpack.c.bf16 %v125_v4, %v124_v2  ;;  %v126_v14 = vld [vmem:[%s1454_s1 + $0x190] sm:$0xff]  ;;  %v809_v16 = vpack.c.bf16 %v95_v13, %v94_v11 }
   0x4   :  { %v807_v8 = vpack.c.bf16 %v77_v6, %v76_v5  ;;  %v108_v9 = vld [vmem:[%s1454_s1 + $0x100] sm:$0xff]  ;;  %v109_v10 = vld [vmem:[%s1454_s1 + $0x108] sm:$0xff]  ;;  %806 = vmatprep.subr.bf16.mxu0 %v805_v3  ;;  %v127_v15 = vld [vmem:[%s1454_s1 + $0x198] sm:$0xff] }
   0x5   :  { %v839_v12 = vpack.c.bf16 %v109_v10, %v108_v9  ;;  %838 = vmatprep.subr.bf16.mxu1 %v837_v7  ;;  %v841_v17 = vpack.c.bf16 %v127_v15, %v126_v14  ;;  %v78_v18 = vld [vmem:[%s1454_s1 + $0x10] sm:$0xff]  ;;  %v79_v19 = vld [vmem:[%s1454_s1 + $0x18] sm:$0xff]  ;;  %v96_v23 = vld [vmem:[%s1454_s1 + $0xa0] sm:$0xff] }
   0x6   :  { %808 = vmatpush3.bf16.msra.mxu0 %v807_v8  ;;  %v110_v20 = vld [vmem:[%s1454_s1 + $0x110] sm:$0xff]  ;;  %v811_v21 = vpack.c.bf16 %v79_v19, %v78_v18  ;;  %v111_v22 = vld [vmem:[%s1454_s1 + $0x118] sm:$0xff]  ;;  %v97_v24 = vld [vmem:[%s1454_s1 + $0xa8] sm:$0xff] }
   0x7   :  { %840 = vmatpush3.bf16.msra.mxu1 %v839_v12  ;;  %810 = vmatprep.subr.bf16.mxu0 %v809_v16  ;;  %v843_v25 = vpack.c.bf16 %v111_v22, %v110_v20  ;;  %v813_v26 = vpack.c.bf16 %v97_v24, %v96_v23  ;;  %v128_v27 = vld [vmem:[%s1454_s1 + $0x1a0] sm:$0xff]  ;;  %v129_v28 = vld [vmem:[%s1454_s1 + $0x1a8] sm:$0xff]  ;;  %v98_v35 = vld [vmem:[%s1454_s1 + $0xb0] sm:$0xff] }
   0x8   :  { %842 = vmatprep.subr.bf16.mxu1 %v841_v17  ;;  %v80_v29 = vld [vmem:[%s1454_s1 + $0x20] sm:$0xff]  ;;  %v845_v30 = vpack.c.bf16 %v129_v28, %v128_v27  ;;  %v81_v31 = vld [vmem:[%s1454_s1 + $0x28] sm:$0xff]  ;;  %v99_v36 = vld [vmem:[%s1454_s1 + $0xb8] sm:$0xff] }
   0x9   :  { %v112_v32 = vld [vmem:[%s1454_s1 + $0x120] sm:$0xff]  ;;  %v113_v33 = vld [vmem:[%s1454_s1 + $0x128] sm:$0xff]  ;;  %v815_v34 = vpack.c.bf16 %v81_v31, %v80_v29  ;;  %v130_v37 = vld [vmem:[%s1454_s1 + $0x1b0] sm:$0xff]  ;;  %v817_v39 = vpack.c.bf16 %v99_v36, %v98_v35 }
   0xa   :  { %812 = vmatpush3.bf16.msra.mxu0 %v811_v21  ;;  %v847_v38 = vpack.c.bf16 %v113_v33, %v112_v32  ;;  %v131_v40 = vld [vmem:[%s1454_s1 + $0x1b8] sm:$0xff]  ;;  %v82_v41 = vld [vmem:[%s1454_s1 + $0x30] sm:$0xff]  ;;  %v100_v46 = vld [vmem:[%s1454_s1 + $0xc0] sm:$0xff] }
   0xb   :  { %844 = vmatpush3.bf16.msra.mxu1 %v843_v25  ;;  %814 = vmatprep.subr.bf16.mxu0 %v813_v26  ;;  %v83_v42 = vld [vmem:[%s1454_s1 + $0x38] sm:$0xff]  ;;  %v849_v43 = vpack.c.bf16 %v131_v40, %v130_v37  ;;  %v114_v44 = vld [vmem:[%s1454_s1 + $0x130] sm:$0xff]  ;;  %v101_v47 = vld [vmem:[%s1454_s1 + $0xc8] sm:$0xff] }
   0xc   :  { %846 = vmatprep.subr.bf16.mxu1 %v845_v30  ;;  %v115_v45 = vld [vmem:[%s1454_s1 + $0x138] sm:$0xff]  ;;  %v132_v48 = vld [vmem:[%s1454_s1 + $0x1c0] sm:$0xff]  ;;  %v133_v49 = vld [vmem:[%s1454_s1 + $0x1c8] sm:$0xff]  ;;  %v819_v50 = vpack.c.bf16 %v83_v42, %v82_v41  ;;  %v821_v52 = vpack.c.bf16 %v101_v47, %v100_v46 }
   0xd   :  { %v851_v51 = vpack.c.bf16 %v115_v45, %v114_v44  ;;  %v84_v53 = vld [vmem:[%s1454_s1 + $0x40] sm:$0xff]  ;;  %v85_v54 = vld [vmem:[%s1454_s1 + $0x48] sm:$0xff]  ;;  %v853_v56 = vpack.c.bf16 %v133_v49, %v132_v48  ;;  %v102_v58 = vld [vmem:[%s1454_s1 + $0xd0] sm:$0xff] }
   0xe   :  { %816 = vmatpush3.bf16.msra.mxu0 %v815_v34  ;;  %v116_v55 = vld [vmem:[%s1454_s1 + $0x140] sm:$0xff]  ;;  %v117_v57 = vld [vmem:[%s1454_s1 + $0x148] sm:$0xff]  ;;  %v103_v59 = vld [vmem:[%s1454_s1 + $0xd8] sm:$0xff]  ;;  %v823_v62 = vpack.c.bf16 %v85_v54, %v84_v53 }
   0xf   :  { %848 = vmatpush3.bf16.msra.mxu1 %v847_v38  ;;  %818 = vmatprep.subr.bf16.mxu0 %v817_v39  ;;  %v134_v60 = vld [vmem:[%s1454_s1 + $0x1d0] sm:$0xff]  ;;  %v135_v61 = vld [vmem:[%s1454_s1 + $0x1d8] sm:$0xff]  ;;  %v855_v63 = vpack.c.bf16 %v117_v57, %v116_v55  ;;  %v825_v0 = vpack.c.bf16 %v103_v59, %v102_v58  ;;  %v104_v6 = vld [vmem:[%s1454_s1 + $0xe0] sm:$0xff]  ;;  %v912_v39 = vmov 0.0|0.0  }
  0x10   :  { %850 = vmatprep.subr.bf16.mxu1 %v849_v43  ;;  %v86_v1 = vld [vmem:[%s1454_s1 + $0x50] sm:$0xff]  ;;  %v87_v2 = vld [vmem:[%s1454_s1 + $0x58] sm:$0xff]  ;;  %v857_v4 = vpack.c.bf16 %v135_v61, %v134_v60  ;;  %v105_v7 = vld [vmem:[%s1454_s1 + $0xe8] sm:$0xff] }
  0x11   :  { %v118_v3 = vld [vmem:[%s1454_s1 + $0x150] sm:$0xff]  ;;  %v119_v5 = vld [vmem:[%s1454_s1 + $0x158] sm:$0xff]  ;;  %v136_v8 = vld [vmem:[%s1454_s1 + $0x1e0] sm:$0xff]  ;;  %v827_v10 = vpack.c.bf16 %v87_v2, %v86_v1  ;;  %v829_v14 = vpack.c.bf16 %v105_v7, %v104_v6 }
  0x12   :  { %820 = vmatpush3.bf16.msra.mxu0 %v819_v50  ;;  %v137_v9 = vld [vmem:[%s1454_s1 + $0x1e8] sm:$0xff]  ;;  %v88_v11 = vld [vmem:[%s1454_s1 + $0x60] sm:$0xff]  ;;  %v859_v13 = vpack.c.bf16 %v119_v5, %v118_v3  ;;  %v14_v17 = vld [vmem:[%s1455_s0 + $0x18] sm:$0xff] }
  0x13   :  { %852 = vmatpush3.bf16.msra.mxu1 %v851_v51  ;;  %822 = vmatprep.subr.bf16.mxu0 %v821_v52  ;;  %v89_v12 = vld [vmem:[%s1454_s1 + $0x68] sm:$0xff]  ;;  %v120_v15 = vld [vmem:[%s1454_s1 + $0x160] sm:$0xff]  ;;  %v861_v18 = vpack.c.bf16 %v137_v9, %v136_v8  ;;  %v106_v20 = vld [vmem:[%s1454_s1 + $0xf0] sm:$0xff] }
  0x14   :  { %854 = vmatprep.subr.bf16.mxu1 %v853_v56  ;;  %v12_v16 = vld [vmem:[%s1455_s0 + $0x8] sm:$0xff]  ;;  %v107_v21 = vld [vmem:[%s1454_s1 + $0xf8] sm:$0xff]  ;;  %v138_v22 = vld [vmem:[%s1454_s1 + $0x1f0] sm:$0xff]  ;;  %350 = vmatprep.mubr.f32.mxu1 %v14_v17  ;;  %v831_v24 = vpack.c.bf16 %v89_v12, %v88_v11 }
  0x15   :  { %v121_v19 = vld [vmem:[%s1454_s1 + $0x168] sm:$0xff]  ;;  %220 = vmatprep.mubr.f32.mxu0 %v12_v16  ;;  %v139_v23 = vld [vmem:[%s1454_s1 + $0x1f8] sm:$0xff]  ;;  %v833_v26 = vpack.c.bf16 %v107_v21, %v106_v20  ;;  %v90_v27 = vld [vmem:[%s1454_s1 + $0x70] sm:$0xff] }
  0x16   :  { %824 = vmatpush3.bf16.msra.mxu0 %v823_v62  ;;  %v863_v25 = vpack.c.bf16 %v121_v19, %v120_v15  ;;  %v91_v28 = vld [vmem:[%s1454_s1 + $0x78] sm:$0xff]  ;;  %v865_v29 = vpack.c.bf16 %v139_v23, %v138_v22  ;;  %v122_v30 = vld [vmem:[%s1454_s1 + $0x170] sm:$0xff]  ;;  %v140_v34 = vld [vmem:[%s1454_s1 + $0x200] sm:$0xff] }
  0x17   :  { %856 = vmatpush3.bf16.msra.mxu1 %v855_v63  ;;  %826 = vmatprep.subr.bf16.mxu0 %v825_v0  ;;  %v123_v31 = vld [vmem:[%s1454_s1 + $0x178] sm:$0xff]  ;;  %v835_v32 = vpack.c.bf16 %v91_v28, %v90_v27  ;;  %v141_v35 = vld [vmem:[%s1454_s1 + $0x208] sm:$0xff]  ;;  %v11_v36 = vld [vmem:[%s1455_s0] sm:$0xff] }
  0x18   :  { %858 = vmatprep.subr.bf16.mxu1 %v857_v4  ;;  %v867_v33 = vpack.c.bf16 %v123_v31, %v122_v30  ;;  %v870_v37 = vpack.c.bf16 %v141_v35, %v140_v34  ;;  %v13_v38 = vld [vmem:[%s1455_s0 + $0x10] sm:$0xff]  ;;  %v19_v41 = vld [vmem:[%s1455_s0 + $0x40] sm:$0xff]  ;;  %v143_v43 = vld [vmem:[%s1454_s1 + $0x218] sm:$0xff] }
  0x19   :  { %v17_v40 = vld [vmem:[%s1455_s0 + $0x30] sm:$0xff]  ;;  %v16_v44 = vld [vmem:[%s1455_s0 + $0x28] sm:$0xff]  ;;  %v18_v45 = vld [vmem:[%s1455_s0 + $0x38] sm:$0xff] }
  0x1a   :  { %828 = vmatpush3.bf16.msra.mxu0 %v827_v10  ;;  %v142_v42 = vld [vmem:[%s1454_s1 + $0x210] sm:$0xff]  ;;  %v22_v46 = vld [vmem:[%s1455_s0 + $0x58] sm:$0xff]  ;;  %v24_v48 = vld [vmem:[%s1455_s0 + $0x68] sm:$0xff] }
  0x1b   :  { %860 = vmatpush3.bf16.msra.mxu1 %v859_v13  ;;  %830 = vmatprep.subr.bf16.mxu0 %v829_v14  ;;  %v873_v47 = vpack.c.bf16 %v143_v43, %v142_v42  ;;  %v144_v49 = vld [vmem:[%s1454_s1 + $0x220] sm:$0xff]  ;;  %v145_v50 = vld [vmem:[%s1454_s1 + $0x228] sm:$0xff]  ;;  %v21_v51 = vld [vmem:[%s1455_s0 + $0x50] sm:$0xff] }
  0x1c   :  { %862 = vmatprep.subr.bf16.mxu1 %v861_v18  ;;  %v23_v52 = vld [vmem:[%s1455_s0 + $0x60] sm:$0xff]  ;;  %v876_v54 = vpack.c.bf16 %v145_v50, %v144_v49  ;;  %v29_v55 = vld [vmem:[%s1455_s0 + $0x90] sm:$0xff]  ;;  %v147_v57 = vld [vmem:[%s1454_s1 + $0x238] sm:$0xff] }
  0x1d   :  { %v27_v53 = vld [vmem:[%s1455_s0 + $0x80] sm:$0xff]  ;;  %v146_v56 = vld [vmem:[%s1454_s1 + $0x230] sm:$0xff]  ;;  %v26_v58 = vld [vmem:[%s1455_s0 + $0x78] sm:$0xff] }
  0x1e   :  { %832 = vmatpush3.bf16.msra.mxu0 %v831_v24  ;;  %v28_v59 = vld [vmem:[%s1455_s0 + $0x88] sm:$0xff]  ;;  %v879_v61 = vpack.c.bf16 %v147_v57, %v146_v56  ;;  %v34_v62 = vld [vmem:[%s1455_s0 + $0xb8] sm:$0xff]  ;;  %v148_v63 = vld [vmem:[%s1454_s1 + $0x240] sm:$0xff] }
  0x1f   :  { %864 = vmatpush3.bf16.msra.mxu1 %v863_v25  ;;  %834 = vmatprep.subr.bf16.mxu0 %v833_v26  ;;  %v32_v60 = vld [vmem:[%s1455_s0 + $0xa8] sm:$0xff]  ;;  %v31_v1 = vld [vmem:[%s1455_s0 + $0xa0] sm:$0xff]  ;;  %v33_v2 = vld [vmem:[%s1455_s0 + $0xb0] sm:$0xff] }
  0x20   :  { %866 = vmatprep.subr.bf16.mxu1 %v865_v29  ;;  %v149_v0 = vld [vmem:[%s1454_s1 + $0x248] sm:$0xff]  ;;  %v37_v3 = vld [vmem:[%s1455_s0 + $0xd0] sm:$0xff]  ;;  %v39_v5 = vld [vmem:[%s1455_s0 + $0xe0] sm:$0xff] }
  0x21   :  { %v882_v4 = vpack.c.bf16 %v149_v0, %v148_v63  ;;  %v150_v6 = vld [vmem:[%s1454_s1 + $0x250] sm:$0xff]  ;;  %v151_v7 = vld [vmem:[%s1454_s1 + $0x258] sm:$0xff]  ;;  %v36_v8 = vld [vmem:[%s1455_s0 + $0xc8] sm:$0xff] }
  0x22   :  { %836 = vmatpush3.bf16.msra.mxu0 %v835_v32  ;;  %v38_v9 = vld [vmem:[%s1455_s0 + $0xd8] sm:$0xff]  ;;  %v885_v11 = vpack.c.bf16 %v151_v7, %v150_v6  ;;  %v44_v12 = vld [vmem:[%s1455_s0 + $0x108] sm:$0xff]  ;;  %v152_v13 = vld [vmem:[%s1454_s1 + $0x260] sm:$0xff] }
  0x23   :  { %868 = vmatpush3.bf16.msra.mxu1 %v867_v33  ;;  %869 = vmatprep.subr.bf16.mxu0 %v912_v39  ;;  %v42_v10 = vld [vmem:[%s1455_s0 + $0xf8] sm:$0xff]  ;;  %v153_v14 = vld [vmem:[%s1454_s1 + $0x268] sm:$0xff]  ;;  %v41_v15 = vld [vmem:[%s1455_s0 + $0xf0] sm:$0xff] }
  0x24   :  { %893 = vmatprep.subr.bf16.mxu1 %v912_v39  ;;  %v43_v16 = vld [vmem:[%s1455_s0 + $0x100] sm:$0xff]  ;;  %v888_v18 = vpack.c.bf16 %v153_v14, %v152_v13  ;;  %v49_v19 = vld [vmem:[%s1455_s0 + $0x130] sm:$0xff]  ;;  %v155_v21 = vld [vmem:[%s1454_s1 + $0x278] sm:$0xff] }
  0x25   :  { %221 = vmatmul.mubr.f32.vlgmr.msra.gmra.mrb[0].mxu0 %v11_v36  ;;  %v47_v17 = vld [vmem:[%s1455_s0 + $0x120] sm:$0xff]  ;;  %v154_v20 = vld [vmem:[%s1454_s1 + $0x270] sm:$0xff]  ;;  %v46_v22 = vld [vmem:[%s1455_s0 + $0x118] sm:$0xff] }
  0x26   :  { %351 = vmatmul.mubr.f32.vlgmr.msra.gmra.mrb[0].mxu1 %v13_v38  ;;  %871 = vmatpush3.bf16.msra.mxu0 %v870_v37  ;;  %v48_v23 = vld [vmem:[%s1455_s0 + $0x128] sm:$0xff]  ;;  %v891_v25 = vpack.c.bf16 %v155_v21, %v154_v20  ;;  %v54_v26 = vld [vmem:[%s1455_s0 + $0x158] sm:$0xff]  ;;  %v51_v27 = vld [vmem:[%s1455_s0 + $0x140] sm:$0xff] }
  0x27   :  { %225 = vmatprep.mubr.f32.mxu0 %v17_v40  ;;  %355 = vmatprep.mubr.f32.mxu1 %v19_v41  ;;  %v52_v24 = vld [vmem:[%s1455_s0 + $0x148] sm:$0xff]  ;;  %v53_v28 = vld [vmem:[%s1455_s0 + $0x150] sm:$0xff]  ;;  %v59_v30 = vld [vmem:[%s1455_s0 + $0x180] sm:$0xff] }
  0x28   :  { %901 = vmatpush3.bf16.msra.mxu1 %v870_v37  ;;  %872 = vmatprep.subr.bf16.mxu0 %v912_v39  ;;  %v57_v29 = vld [vmem:[%s1455_s0 + $0x170] sm:$0xff]  ;;  %v56_v31 = vld [vmem:[%s1455_s0 + $0x168] sm:$0xff]  ;;  %v58_v32 = vld [vmem:[%s1455_s0 + $0x178] sm:$0xff] }
  0x29   :  { %226 = vmatmul.mubr.f32.gmra.mrb[2].mxu0 %v16_v44  ;;  %894 = vmatprep.subr.bf16.mxu1 %v912_v39  ;;  %v62_v33 = vld [vmem:[%s1455_s0 + $0x198] sm:$0xff]  ;;  %v64_v34 = vld [vmem:[%s1455_s0 + $0x1a8] sm:$0xff]  ;;  %v61_v35 = vld [vmem:[%s1455_s0 + $0x190] sm:$0xff] }
  0x2a   :  { %356 = vmatmul.mubr.f32.gmra.mrb[2].mxu1 %v18_v45  ;;  %230 = vmatprep.mubr.f32.mxu0 %v22_v46  ;;  %v63_v36 = vld [vmem:[%s1455_s0 + $0x1a0] sm:$0xff]  ;;  %v69_v38 = vld [vmem:[%s1455_s0 + $0x1d0] sm:$0xff]  ;;  %v68_v40 = vld [vmem:[%s1455_s0 + $0x1c8] sm:$0xff]  ;;  %v914_v45 = vmov 0.0  }
  0x2b   :  { %360 = vmatprep.mubr.f32.mxu1 %v24_v48  ;;  %874 = vmatpush3.bf16.msra.mxu0 %v873_v47  ;;  %v67_v37 = vld [vmem:[%s1455_s0 + $0x1c0] sm:$0xff]  ;;  %v72_v41 = vld [vmem:[%s1455_s0 + $0x1e8] sm:$0x3]  ;;  %v74_v42 = vld [vmem:[%s1455_s0 + $0x1f8] sm:$0x3] }
  0x2c   :  { %902 = vmatpush3.bf16.msra.mxu1 %v873_v47  ;;  %875 = vmatprep.subr.bf16.mxu0 %v912_v39  ;;  %v71_v43 = vld [vmem:[%s1455_s0 + $0x1e0] sm:$0x3]  ;;  %v73_v44 = vld [vmem:[%s1455_s0 + $0x1f0] sm:$0x3]  ;;  %v50_v47 = vld [vmem:[%s1455_s0 + $0x138] sm:$0xff] }
  0x2d   :  { %231 = vmatmul.mubr.f32.gmra.mrb[4].mxu0 %v21_v51  ;;  %895 = vmatprep.subr.bf16.mxu1 %v912_v39  ;;  %v15_v46 = vld [vmem:[%s1455_s0 + $0x20] sm:$0xff]  ;;  %v20_v48 = vld [vmem:[%s1455_s0 + $0x48] sm:$0xff]  ;;  %v25_v50 = vld [vmem:[%s1455_s0 + $0x70] sm:$0xff] }
  0x2e   :  { %361 = vmatmul.mubr.f32.gmra.mrb[4].mxu1 %v23_v52  ;;  %235 = vmatprep.mubr.f32.mxu0 %v27_v53  ;;  %v55_v49 = vld [vmem:[%s1455_s0 + $0x160] sm:$0xff]  ;;  %v60_v51 = vld [vmem:[%s1455_s0 + $0x188] sm:$0xff]  ;;  %v30_v52 = vld [vmem:[%s1455_s0 + $0x98] sm:$0xff] }
  0x2f   :  { %365 = vmatprep.mubr.f32.mxu1 %v29_v55  ;;  %877 = vmatpush3.bf16.msra.mxu0 %v876_v54  ;;  %v65_v53 = vld [vmem:[%s1455_s0 + $0x1b0] sm:$0xff]  ;;  %v70_v55 = vld [vmem:[%s1455_s0 + $0x1d8] sm:$0xff]  ;;  %v40_v56 = vld [vmem:[%s1455_s0 + $0xe8] sm:$0xff] }
  0x30   :  { %903 = vmatpush3.bf16.msra.mxu1 %v876_v54  ;;  %878 = vmatprep.subr.bf16.mxu0 %v912_v39  ;;  %v35_v54 = vld [vmem:[%s1455_s0 + $0xc0] sm:$0xff] }
  0x31   :  { %236 = vmatmul.mubr.f32.gmra.mrb[6].mxu0 %v26_v58  ;;  %896 = vmatprep.subr.bf16.mxu1 %v912_v39  ;;  %v75_v57 = vld [vmem:[%s1455_s0 + $0x200] sm:$0x3]  ;;  %v45_v58 = vld [vmem:[%s1455_s0 + $0x110] sm:$0xff] }
  0x32   :  { %366 = vmatmul.mubr.f32.gmra.mrb[6].mxu1 %v28_v59  ;;  %240 = vmatprep.mubr.f32.mxu0 %v32_v60 }
  0x33   :  { %370 = vmatprep.mubr.f32.mxu1 %v34_v62  ;;  %880 = vmatpush3.bf16.msra.mxu0 %v879_v61 }
  0x34   :  { %904 = vmatpush3.bf16.msra.mxu1 %v879_v61  ;;  %881 = vmatprep.subr.bf16.mxu0 %v912_v39 }
  0x35   :  { %241 = vmatmul.mubr.f32.gmra.mrb[8].mxu0 %v31_v1  ;;  %897 = vmatprep.subr.bf16.mxu1 %v912_v39 }
  0x36   :  { %371 = vmatmul.mubr.f32.gmra.mrb[8].mxu1 %v33_v2  ;;  %245 = vmatprep.mubr.f32.mxu0 %v37_v3 }
  0x37   :  { %375 = vmatprep.mubr.f32.mxu1 %v39_v5  ;;  %883 = vmatpush3.bf16.msra.mxu0 %v882_v4 }
  0x38   :  { %905 = vmatpush3.bf16.msra.mxu1 %v882_v4  ;;  %884 = vmatprep.subr.bf16.mxu0 %v912_v39 }
  0x39   :  { %246 = vmatmul.mubr.f32.gmra.mrb[10].mxu0 %v36_v8  ;;  %898 = vmatprep.subr.bf16.mxu1 %v912_v39 }
  0x3a   :  { %376 = vmatmul.mubr.f32.gmra.mrb[10].mxu1 %v38_v9  ;;  %250 = vmatprep.mubr.f32.mxu0 %v42_v10 }
  0x3b   :  { %380 = vmatprep.mubr.f32.mxu1 %v44_v12  ;;  %886 = vmatpush3.bf16.msra.mxu0 %v885_v11 }
  0x3c   :  { %906 = vmatpush3.bf16.msra.mxu1 %v885_v11  ;;  %887 = vmatprep.subr.bf16.mxu0 %v912_v39 }
  0x3d   :  { %251 = vmatmul.mubr.f32.gmra.mrb[12].mxu0 %v41_v15  ;;  %899 = vmatprep.subr.bf16.mxu1 %v912_v39 }
  0x3e   :  { %381 = vmatmul.mubr.f32.gmra.mrb[12].mxu1 %v43_v16  ;;  %255 = vmatprep.mubr.f32.mxu0 %v47_v17 }
  0x3f   :  { %385 = vmatprep.mubr.f32.mxu1 %v49_v19  ;;  %889 = vmatpush3.bf16.msra.mxu0 %v888_v18 }
  0x40   :  { %907 = vmatpush3.bf16.msra.mxu1 %v888_v18  ;;  %890 = vmatprep.subr.bf16.mxu0 %v912_v39 }
  0x41   :  { %256 = vmatmul.mubr.f32.gmra.mrb[14].mxu0 %v46_v22  ;;  %900 = vmatprep.subr.bf16.mxu1 %v912_v39  ;;  %v66_v39 = vld [vmem:[%s1455_s0 + $0x1b8] sm:$0xff] }
  0x42   :  { %386 = vmatmul.mubr.f32.gmra.mrb[14].mxu1 %v48_v23  ;;  %260 = vmatprep.mubr.f32.mxu0 %v52_v24 }
  0x43   :  { %390 = vmatprep.mubr.f32.mxu1 %v54_v26  ;;  %892 = vmatpush3.bf16.msra.mxu0 %v891_v25 }
  0x44   :  { %908 = vmatpush3.bf16.msra.mxu1 %v891_v25 }
  0x45   :  { %261 = vmatmul.mubr.f32.gmra.mrb[16].mxu0 %v51_v27 }
  0x46   :  { %391 = vmatmul.mubr.f32.gmra.mrb[16].mxu1 %v53_v28  ;;  %265 = vmatprep.mubr.f32.mxu0 %v57_v29 }
  0x47   :  { %395 = vmatprep.mubr.f32.mxu1 %v59_v30 }
  0x49   :  { %266 = vmatmul.mubr.f32.gmra.mrb[18].mxu0 %v56_v31 }
  0x4a   :  { %396 = vmatmul.mubr.f32.gmra.mrb[18].mxu1 %v58_v32  ;;  %270 = vmatprep.mubr.f32.mxu0 %v62_v33 }
  0x4b   :  { %400 = vmatprep.mubr.f32.mxu1 %v64_v34 }
  0x4d   :  { %271 = vmatmul.mubr.f32.gmra.mrb[20].mxu0 %v61_v35 }
  0x4e   :  { %401 = vmatmul.mubr.f32.gmra.mrb[20].mxu1 %v63_v36  ;;  %275 = vmatprep.mubr.f32.mxu0 %v67_v37 }
  0x4f   :  { %405 = vmatprep.mubr.f32.mxu1 %v69_v38 }
  0x51   :  { %276 = vmatmul.mubr.f32.gmra.mrb[22].mxu0 %v66_v39 }
  0x52   :  { %406 = vmatmul.mubr.f32.gmra.mrb[22].mxu1 %v68_v40  ;;  %280 = vmatprep.mubr.f32.mxu0 %v72_v41 }
  0x53   :  { %410 = vmatprep.mubr.f32.mxu1 %v74_v42 }
  0x55   :  { %281 = vmatmul.mubr.f32.gmra.mrb[24].mxu0 %v71_v43 }
  0x56   :  { %411 = vmatmul.mubr.f32.gmra.mrb[24].mxu1 %v73_v44  ;;  %766 = vmatprep.mubr.msk.f32.mxu0 %vm913_vm0, %v914_v45 }
  0x57   :  { %787 = vmatprep.mubr.msk.f32.mxu1 %vm913_vm0, %v914_v45 }
  0x59   :  { %767 = vmatmul.mubr.f32.vlgmr.msra.gmra.mrb[26].mxu0 %v15_v46 }
  0x5a   :  { %788 = vmatmul.mubr.f32.vlgmr.msra.gmra.mrb[26].mxu1 %v50_v47  ;;  %769 = vmatprep.mubr.msk.f32.mxu0 %vm913_vm0, %v914_v45 }
  0x5b   :  { %790 = vmatprep.mubr.msk.f32.mxu1 %vm913_vm0, %v914_v45 }
  0x5d   :  { %770 = vmatmul.mubr.f32.gmra.mrb[28].mxu0 %v20_v48 }
  0x5e   :  { %791 = vmatmul.mubr.f32.gmra.mrb[28].mxu1 %v55_v49  ;;  %772 = vmatprep.mubr.msk.f32.mxu0 %vm913_vm0, %v914_v45 }
  0x5f   :  { %793 = vmatprep.mubr.msk.f32.mxu1 %vm913_vm0, %v914_v45 }
  0x61   :  { %773 = vmatmul.mubr.f32.gmra.mrb[30].mxu0 %v25_v50 }
  0x62   :  { %794 = vmatmul.mubr.f32.gmra.mrb[30].mxu1 %v60_v51  ;;  %775 = vmatprep.mubr.msk.f32.mxu0 %vm913_vm0, %v914_v45 }
  0x63   :  { %796 = vmatprep.mubr.msk.f32.mxu1 %vm913_vm0, %v914_v45 }
  0x65   :  { %776 = vmatmul.mubr.f32.gmra.mrb[32].mxu0 %v30_v52 }
  0x66   :  { %797 = vmatmul.mubr.f32.gmra.mrb[32].mxu1 %v65_v53  ;;  %778 = vmatprep.mubr.msk.f32.mxu0 %vm913_vm0, %v914_v45 }
  0x67   :  { %799 = vmatprep.mubr.msk.f32.mxu1 %vm913_vm0, %v914_v45 }
  0x69   :  { %779 = vmatmul.mubr.f32.gmra.mrb[34].mxu0 %v35_v54 }
  0x6a   :  { %800 = vmatmul.mubr.f32.gmra.mrb[34].mxu1 %v70_v55  ;;  %781 = vmatprep.mubr.msk.f32.mxu0 %vm913_vm0, %v914_v45 }
  0x6b   :  { %802 = vmatprep.mubr.msk.f32.mxu1 %vm913_vm0, %v914_v45 }
  0x6d   :  { %782 = vmatmul.mubr.f32.gmra.mrb[36].mxu0 %v40_v56 }
  0x6e   :  { %803 = vmatmul.mubr.f32.gmra.mrb[36].mxu1 %v75_v57  ;;  %784 = vmatprep.mubr.msk.f32.mxu0 %vm913_vm0, %v914_v45 }
  0x71   :  { %785 = vmatmul.mubr.f32.gmra.mrb[38].mxu0 %v45_v58 }
  0xf8   :  { %v595_v59 = vpop.f32.mrb[0].mxu0 }
  0xf9   :  { %v666_v60 = vpop.f32.mrb[0].mxu1  ;;  %v596_v61 = vpop.f32.mrb[1].mxu0 }
  0xfa   :  { %v597_v62 = vadd.f32 %v596_v61, %v595_v59  ;;  %v667_v63 = vpop.f32.mrb[1].mxu1 }
  0xfb   :  { %v668_v0 = vadd.f32 %v667_v63, %v666_v60 }
  0xfc   :  { %v598_v1 = vpop.f32.mrb[2].mxu0 }
  0xfd   :  { %v669_v2 = vpop.f32.mrb[2].mxu1  ;;  %v599_v3 = vpop.f32.mrb[3].mxu0  ;;  %v1394_v4 = vadd.f32 %v668_v0, %v597_v62 }
  0xfe   :  { %v600_v5 = vadd.f32 %v599_v3, %v598_v1  ;;  %v670_v6 = vpop.f32.mrb[3].mxu1 }
  0xff   :  { %v671_v7 = vadd.f32 %v670_v6, %v669_v2 }
 0x100   :  { %v601_v8 = vpop.f32.mrb[4].mxu0 }
 0x101   :  { %v672_v9 = vpop.f32.mrb[4].mxu1  ;;  %v602_v10 = vpop.f32.mrb[5].mxu0  ;;  %v1396_v11 = vadd.f32 %v671_v7, %v600_v5 }
 0x102   :  { %v603_v12 = vadd.f32 %v602_v10, %v601_v8  ;;  %v673_v13 = vpop.f32.mrb[5].mxu1 }
 0x103   :  { %v674_v14 = vadd.f32 %v673_v13, %v672_v9 }
 0x104   :  { %v604_v15 = vpop.f32.mrb[6].mxu0 }
 0x105   :  { %v675_v16 = vpop.f32.mrb[6].mxu1  ;;  %v605_v17 = vpop.f32.mrb[7].mxu0  ;;  %v1398_v18 = vadd.f32 %v674_v14, %v603_v12 }
 0x106   :  { %v606_v19 = vadd.f32 %v605_v17, %v604_v15  ;;  %v676_v20 = vpop.f32.mrb[7].mxu1 }
 0x107   :  { %v677_v21 = vadd.f32 %v676_v20, %v675_v16 }
 0x108   :  { %v607_v22 = vpop.f32.mrb[8].mxu0 }
 0x109   :  { %v678_v23 = vpop.f32.mrb[8].mxu1  ;;  %v608_v24 = vpop.f32.mrb[9].mxu0  ;;  %v1400_v25 = vadd.f32 %v677_v21, %v606_v19 }
 0x10a   :  { %v609_v26 = vadd.f32 %v608_v24, %v607_v22  ;;  %v679_v27 = vpop.f32.mrb[9].mxu1 }
 0x10b   :  { %v680_v28 = vadd.f32 %v679_v27, %v678_v23 }
 0x10c   :  { %v610_v29 = vpop.f32.mrb[10].mxu0 }
 0x10d   :  { %v681_v30 = vpop.f32.mrb[10].mxu1  ;;  %v611_v31 = vpop.f32.mrb[11].mxu0  ;;  %v1402_v32 = vadd.f32 %v680_v28, %v609_v26 }
 0x10e   :  { %v612_v33 = vadd.f32 %v611_v31, %v610_v29  ;;  %v682_v34 = vpop.f32.mrb[11].mxu1 }
 0x10f   :  { %v683_v35 = vadd.f32 %v682_v34, %v681_v30 }
 0x110   :  { %v613_v36 = vpop.f32.mrb[12].mxu0 }
 0x111   :  { %v684_v37 = vpop.f32.mrb[12].mxu1  ;;  %v614_v38 = vpop.f32.mrb[13].mxu0  ;;  %v1404_v39 = vadd.f32 %v683_v35, %v612_v33 }
 0x112   :  { %v615_v40 = vadd.f32 %v614_v38, %v613_v36  ;;  %v685_v41 = vpop.f32.mrb[13].mxu1 }
 0x113   :  { %v686_v42 = vadd.f32 %v685_v41, %v684_v37 }
 0x114   :  { %v616_v43 = vpop.f32.mrb[14].mxu0 }
 0x115   :  { %v687_v44 = vpop.f32.mrb[14].mxu1  ;;  %v617_v45 = vpop.f32.mrb[15].mxu0  ;;  %v1406_v46 = vadd.f32 %v686_v42, %v615_v40 }
 0x116   :  { %v618_v47 = vadd.f32 %v617_v45, %v616_v43  ;;  %v688_v48 = vpop.f32.mrb[15].mxu1 }
 0x117   :  { %v689_v49 = vadd.f32 %v688_v48, %v687_v44 }
 0x118   :  { %v619_v50 = vpop.f32.mrb[16].mxu0 }
 0x119   :  { %v690_v51 = vpop.f32.mrb[16].mxu1  ;;  %v620_v52 = vpop.f32.mrb[17].mxu0  ;;  %v388_v53 = vadd.f32 %v689_v49, %v618_v47 }
 0x11a   :  { %v621_v54 = vadd.f32 %v620_v52, %v619_v50  ;;  %v691_v55 = vpop.f32.mrb[17].mxu1 }
 0x11b   :  { %v692_v56 = vadd.f32 %v691_v55, %v690_v51 }
 0x11c   :  { %v622_v57 = vpop.f32.mrb[18].mxu0 }
 0x11d   :  { %v693_v58 = vpop.f32.mrb[18].mxu1  ;;  %v623_v59 = vpop.f32.mrb[19].mxu0  ;;  %v393_v60 = vadd.f32 %v692_v56, %v621_v54 }
 0x11e   :  { %v624_v61 = vadd.f32 %v623_v59, %v622_v57  ;;  %v694_v62 = vpop.f32.mrb[19].mxu1 }
 0x11f   :  { %v695_v63 = vadd.f32 %v694_v62, %v693_v58 }
 0x120   :  { %v625_v0 = vpop.f32.mrb[20].mxu0 }
 0x121   :  { %v696_v1 = vpop.f32.mrb[20].mxu1  ;;  %v626_v2 = vpop.f32.mrb[21].mxu0  ;;  %v398_v3 = vadd.f32 %v695_v63, %v624_v61 }
 0x122   :  { %v627_v5 = vadd.f32 %v626_v2, %v625_v0  ;;  %v697_v6 = vpop.f32.mrb[21].mxu1 }
 0x123   :  { %v698_v7 = vadd.f32 %v697_v6, %v696_v1 }
 0x124   :  { %v628_v8 = vpop.f32.mrb[22].mxu0 }
 0x125   :  { %v699_v9 = vpop.f32.mrb[22].mxu1  ;;  %v629_v10 = vpop.f32.mrb[23].mxu0  ;;  %v403_v12 = vadd.f32 %v698_v7, %v627_v5 }
 0x126   :  { %v630_v13 = vadd.f32 %v629_v10, %v628_v8  ;;  %v700_v14 = vpop.f32.mrb[23].mxu1 }
 0x127   :  { %v701_v15 = vadd.f32 %v700_v14, %v699_v9 }
 0x128   :  { %v631_v16 = vpop.f32.mrb[24].mxu0 }
 0x129   :  { %v702_v17 = vpop.f32.mrb[24].mxu1  ;;  %v632_v19 = vpop.f32.mrb[25].mxu0  ;;  %v408_v20 = vadd.f32 %v701_v15, %v630_v13 }
 0x12a   :  { %v633_v21 = vadd.f32 %v632_v19, %v631_v16  ;;  %v703_v22 = vpop.f32.mrb[25].mxu1 }
 0x12b   :  { %v704_v23 = vadd.f32 %v703_v22, %v702_v17 }
 0x12c   :  { %v482_v24 = vpop.f32.mrb[26].mxu0 }
 0x12d   :  { %v483_v26 = vadd.f32 %v482_v24, %v1394_v4  ;;  %v517_v27 = vpop.f32.mrb[26].mxu1  ;;  %v768_v28 = vpop.f32.mrb[27].mxu0  ;;  %v413_v29 = vadd.f32 %v704_v23, %v633_v21 }
 0x12e   :  { %v518_v30 = vadd.f32 %v517_v27, %v388_v53  ;;  %v789_v31 = vpop.f32.mrb[27].mxu1 }
 0x12f   :  { %546 = vst [vmem:[%s1456_s2] sm:$0xff] %v483_v26 }
 0x130   :  { %553 = vst [vmem:[%s1456_s2 + $0x38] sm:$0xff] %v518_v30  ;;  %v487_v33 = vpop.f32.mrb[28].mxu0 }
 0x131   :  { %v488_v34 = vadd.f32 %v487_v33, %v1396_v11  ;;  %v522_v35 = vpop.f32.mrb[28].mxu1  ;;  %v771_v36 = vpop.f32.mrb[29].mxu0 }
 0x132   :  { %v523_v37 = vadd.f32 %v522_v35, %v393_v60  ;;  %v792_v4 = vpop.f32.mrb[29].mxu1 }
 0x133   :  { %547 = vst [vmem:[%s1456_s2 + $0x8] sm:$0xff] %v488_v34 }
 0x134   :  { %554 = vst [vmem:[%s1456_s2 + $0x40] sm:$0xff] %v523_v37  ;;  %v492_v38 = vpop.f32.mrb[30].mxu0 }
 0x135   :  { %v493_v40 = vadd.f32 %v492_v38, %v1398_v18  ;;  %v527_v41 = vpop.f32.mrb[30].mxu1  ;;  %v774_v42 = vpop.f32.mrb[31].mxu0 }
 0x136   :  { %v528_v43 = vadd.f32 %v527_v41, %v398_v3  ;;  %v795_v44 = vpop.f32.mrb[31].mxu1 }
 0x137   :  { %548 = vst [vmem:[%s1456_s2 + $0x10] sm:$0xff] %v493_v40 }
 0x138   :  { %555 = vst [vmem:[%s1456_s2 + $0x48] sm:$0xff] %v528_v43  ;;  %v497_v11 = vpop.f32.mrb[32].mxu0 }
 0x139   :  { %v498_v45 = vadd.f32 %v497_v11, %v1400_v25  ;;  %v532_v47 = vpop.f32.mrb[32].mxu1  ;;  %v777_v48 = vpop.f32.mrb[33].mxu0 }
 0x13a   :  { %v533_v49 = vadd.f32 %v532_v47, %v403_v12  ;;  %v798_v50 = vpop.f32.mrb[33].mxu1 }
 0x13b   :  { %549 = vst [vmem:[%s1456_s2 + $0x18] sm:$0xff] %v498_v45 }
 0x13c   :  { %556 = vst [vmem:[%s1456_s2 + $0x50] sm:$0xff] %v533_v49  ;;  %v502_v18 = vpop.f32.mrb[34].mxu0 }
 0x13d   :  { %v503_v51 = vadd.f32 %v502_v18, %v1402_v32  ;;  %v537_v52 = vpop.f32.mrb[34].mxu1  ;;  %v780_v53 = vpop.f32.mrb[35].mxu0 }
 0x13e   :  { %v538_v54 = vadd.f32 %v537_v52, %v408_v20  ;;  %v801_v55 = vpop.f32.mrb[35].mxu1 }
 0x13f   :  { %550 = vst [vmem:[%s1456_s2 + $0x20] sm:$0xff] %v503_v51 }
 0x140   :  { %557 = vst [vmem:[%s1456_s2 + $0x58] sm:$0xff] %v538_v54  ;;  %v507_v25 = vpop.f32.mrb[36].mxu0 }
 0x141   :  { %v508_v56 = vadd.f32 %v507_v25, %v1404_v39  ;;  %v542_v57 = vpop.f32.mrb[36].mxu1  ;;  %v783_v58 = vpop.f32.mrb[37].mxu0 }
 0x142   :  { %v543_v59 = vadd.f32 %v542_v57, %v413_v29  ;;  %v804_v60 = vpop.f32.mrb[37].mxu1 }
 0x143   :  { %551 = vst [vmem:[%s1456_s2 + $0x28] sm:$0xff] %v508_v56 }
 0x144   :  { %558 = vst [vmem:[%s1456_s2 + $0x60] sm:$0x3] %v543_v59  ;;  %v512_v32 = vpop.f32.mrb[38].mxu0 }
 0x145   :  { %v513_v61 = vadd.f32 %v512_v32, %v1406_v46  ;;  %v786_v62 = vpop.f32.mrb[39].mxu0 }
 0x147   :  { %552 = vst [vmem:[%s1456_s2 + $0x30] sm:$0xff] %v513_v61 }

// kernel: densenet_forward_pallas.47
= control target key start
LH: loop header
LB: loop body
LE: loop exit
PB: predicated region body
PF: predicated region fallthrough
CT: control target
= control target key end

     0   :  { %v229_v3 = vmov 0.0|0.0   ;;  %vm230_vm0 = vmmov 0   ;;  %v231_v6 = vmov 0.0   ;;  %s319_s0 = inlined_call_operand.vmem [shape: f32[2,128], index: 0, kind: input, shape index: {}]   ;;  %s320_s1 = inlined_call_operand.vmem [shape: f32[128,128], index: 1, kind: input, shape index: {}]   ;;  %s321_s2 = inlined_call_operand.vmem [shape: f32[1,128], index: 2, kind: input, shape index: {}]   ;;  %s322_s3 = inlined_call_operand.hbm [shape: f32[2,128], index: 3, kind: output, shape index: {}]  }
   0x1   :  { %v16_v0 = vld [vmem:[%s320_s1] sm:$0xff]  ;;  %v17_v1 = vld [vmem:[%s320_s1 + $0x8] sm:$0xff]  ;;  %v18_v2 = vld [vmem:[%s320_s1 + $0x10] sm:$0xff]  ;;  %177 = vmatprep.subr.bf16.mxu0 %v229_v3  ;;  %174 = vmatprep.mubr.msk.f32.mxu0 %vm230_vm0, %v231_v6 }
   0x2   :  { %v178_v4 = vpack.c.bf16 %v17_v1, %v16_v0  ;;  %v19_v5 = vld [vmem:[%s320_s1 + $0x18] sm:$0xff]  ;;  %v20_v8 = vld [vmem:[%s320_s1 + $0x20] sm:$0xff]  ;;  %v21_v9 = vld [vmem:[%s320_s1 + $0x28] sm:$0xff] }
   0x3   :  { %v181_v7 = vpack.c.bf16 %v19_v5, %v18_v2 }
   0x4   :  { %179 = vmatpush3.bf16.msra.mxu0 %v178_v4 }
   0x5   :  { %180 = vmatprep.subr.bf16.mxu0 %v229_v3 }
   0x6   :  { %8 = vsyncpa [#allocation3], 0  ;;  %v184_v10 = vpack.c.bf16 %v21_v9, %v20_v8  ;;  %v22_v11 = vld [vmem:[%s320_s1 + $0x30] sm:$0xff]  ;;  %v23_v12 = vld [vmem:[%s320_s1 + $0x38] sm:$0xff]  ;;  %s232_s21 = smov [#allocation2]  }
   0x7   :  { %v187_v13 = vpack.c.bf16 %v23_v12, %v22_v11  ;;  %v24_v14 = vld [vmem:[%s320_s1 + $0x40] sm:$0xff]  ;;  %v25_v15 = vld [vmem:[%s320_s1 + $0x48] sm:$0xff]  ;;  %v26_v17 = vld [vmem:[%s320_s1 + $0x50] sm:$0xff]  ;;  %s116_s22 = sshll.u32 %s232_s21, 4  ;;  %s117_s22 = int_to_ptr.vmem [resolvable:$true] %s116_s22 }
   0x8   :  { %182 = vmatpush3.bf16.msra.mxu0 %v181_v7  ;;  %v190_v16 = vpack.c.bf16 %v25_v15, %v24_v14  ;;  %v27_v18 = vld [vmem:[%s320_s1 + $0x58] sm:$0xff]  ;;  %v28_v20 = vld [vmem:[%s320_s1 + $0x60] sm:$0xff]  ;;  %v29_v21 = vld [vmem:[%s320_s1 + $0x68] sm:$0xff]  ;;  %p210_p1 = scmp.lt.s32.totalorder %s117_s22, %s117_s22 }
   0x9   :  { %183 = vmatprep.subr.bf16.mxu0 %v229_v3  ;;  %v193_v19 = vpack.c.bf16 %v27_v18, %v26_v17  ;;  %v196_v22 = vpack.c.bf16 %v29_v21, %v28_v20  ;;  %v30_v23 = vld [vmem:[%s320_s1 + $0x70] sm:$0xff]  ;;  %v31_v24 = vld [vmem:[%s320_s1 + $0x78] sm:$0xff]  ;;  %v15_v26 = vld [vmem:[%s319_s0] sm:$0x3]  ;;  %s205_s1 = scalar_lea.vmem %s117_s22, 32 }
   0xa   :  { %v199_v25 = vpack.c.bf16 %v31_v24, %v30_v23  ;;  %v124_v27 = vld [vmem:[%s321_s2] ss:$0 sm:$0xff]  ;;  %p206_p0 = scmp.ne.s32.totalorder %s117_s22, %s205_s1  ;;  %p211_p2 = scmp.lt.s32.totalorder %s205_s1, %s205_s1 }
   0xc   :  { %185 = vmatpush3.bf16.msra.mxu0 %v184_v10  ;;  %p212_p3 = por %p211_p2, %p210_p1 }
   0xd   :  { %186 = vmatprep.subr.bf16.mxu0 %v229_v3 }
   0xe   :  { %p213_p4 = pnand %p212_p3, %p206_p0 }
  0x10   :  { %188 = vmatpush3.bf16.msra.mxu0 %v187_v13 }
  0x11   :  { %189 = vmatprep.subr.bf16.mxu0 %v229_v3 }
  0x14   :  { %191 = vmatpush3.bf16.msra.mxu0 %v190_v16 }
  0x15   :  { %192 = vmatprep.subr.bf16.mxu0 %v229_v3 }
  0x18   :  { %194 = vmatpush3.bf16.msra.mxu0 %v193_v19 }
  0x19   :  { %195 = vmatprep.subr.bf16.mxu0 %v229_v3 }
  0x1c   :  { %197 = vmatpush3.bf16.msra.mxu0 %v196_v22 }
  0x1d   :  { %198 = vmatprep.subr.bf16.mxu0 %v229_v3 }
  0x20   :  { %200 = vmatpush3.bf16.msra.mxu0 %v199_v25 }
  0x23   :  { %175 = vmatmul.mubr.f32.vlgmr.msra.gmra.mrb[0].mxu0 %v15_v26 }
  0xf6   :  { %v105_v28 = vpop.f32.mrb[0].mxu0 }
  0xf7   :  { %v106_v29 = vadd.f32 %v124_v27, %v105_v28  ;;  %v176_v30 = vpop.f32.mrb[1].mxu0 }
  0xf9   :  { %109 = vst [vmem:[#allocation2] sm:$0x3] %v106_v29 }
  0xfa   :  { %216 = shalt.err (!%p213_p4)
}
  0xfb   :  { %s217_s24 = scalar_lea.hbm %s322_s3, 32 }
  0xfc   :  { %p218_p5 = scmp.ne.s32.totalorder %s322_s3, %s217_s24  ;;  %p221_p6 = scmp.lt.u32.totalorder %s217_s24, %s322_s3 }
  0xfe   :  { %p223_p7 = pnand %p221_p6, %p218_p5 }
 0x100   :  { %226 = shalt.err (!%p223_p7)
}
 0x101   :  { %119 = dma.vmem_to_hbm [thread:$0]  %s117_s22, 32, %s322_s3, [#allocation3]  }
 0x102   :  { %227 = dma.done.wait [#allocation3], 32  }
 0x103   :  { %228 = vsyncadd [#allocation3], 4294967264 }
 0x104   :  { %123 = vsyncpa [#allocation3], 1 }

</bundles_post_ra>
